<compile_context>
chip_gen: v5e
topology: v5e:2x2
jax: 0.10.0
libtpu: 0.0.40
codegen_flags: <defaults>
</compile_context>

<pallas_src>
import functools

import jax
import jax.numpy as jnp
from jax import lax
from jax.experimental import pallas as pl
from jax.experimental.pallas import tpu as pltpu

DIM = 64          # Block_dt `dim` (must be 64: SFT convs are hard-coded 64ch)
RED = DIM // 8    # CA / PA bottleneck channels
SFT_MID = 32      # SFT bottleneck channels
KS = 3            # conv1/conv2 kernel_size (padding = KS//2, "same")

PARAM_ORDER = [
    "c1w", "c1b", "c2w", "c2b",
    "caw1", "cab1", "caw2", "cab2",
    "paw1", "pab1", "paw2", "pab2",
    "scw0", "scb0", "scw1", "scb1",
    "shw0", "shb0", "shw1", "shb1",
]


def _sigmoid(x):
    return 1.0 / (1.0 + jnp.exp(-x))


def _block_dt_kernel(
        x0_ref, x1_ref, ml_ref, mr_ref,
        c1w_ref, c1b_ref, c2w_ref, c2b_ref,
        caw1_ref, cab1_ref, caw2t_ref, cab2_ref,
        paw1t_ref, pab1_ref, paw2_ref, pab2_ref,
        sftw0_ref, sftb0_ref, sftw1_ref, sftb1_ref,
        out_ref,
        xflat_ref, col_ref,
        *, H, W):
    """One batch element per grid step.  Activations are (C, H*W) tiles."""
    C = DIM
    HW = H * W
    base = W + 1                      # lane offset of pixel (0,0) inside xflat
    f32 = jnp.float32
    bf16 = jnp.bfloat16

    ml = ml_ref[...]                  # (1, HW) 0/1 mask: kill w == 0 lanes
    mr = mr_ref[...]                  # (1, HW) 0/1 mask: kill w == W-1 lanes

    def conv3x3(w_ref, b_ref):
        # Build the (9C, HW) im2col matrix from 9 shifted lane-slices of the
        # zero-padded flat-spatial scratch, then one deep-K bf16 matmul.
        t = 0
        for dy in range(KS):
            for dx in range(KS):
                off = base + (dy - 1) * W + (dx - 1)       # static offset
                tap = xflat_ref[:, off:off + HW]           # (C, HW) bf16
                if dx == 0:
                    tap = tap * ml
                elif dx == KS - 1:
                    tap = tap * mr
                col_ref[t * C:(t + 1) * C, :] = tap
                t += 1
        return (jnp.dot(w_ref[...], col_ref[...],
                        preferred_element_type=f32) + b_ref[...])   # (C, HW) f32

    x0_bf = x0_ref[0]                        # (C, HW) bf16
    x0f = x0_bf.astype(f32)

    # Zero the padded scratch (the pads must stay 0 for the vertical taps);
    # re-zeroed every grid step so megacore grid splitting is safe.
    xflat_ref[...] = jnp.zeros(xflat_ref.shape, bf16)
    xflat_ref[:, base:base + HW] = x0_bf

    # res = relu(conv1(x[0])) + x[0]
    r = jnp.maximum(conv3x3(c1w_ref, c1b_ref), 0.0) + x0f            # (C, HW)

    # res = conv2(res)
    xflat_ref[:, base:base + HW] = r.astype(bf16)
    r = conv3x3(c2w_ref, c2b_ref)                                    # (C, HW)

    # CALayer: global avg pool -> 1x1 -> relu -> 1x1 -> sigmoid -> chan gate.
    # Tiny (C x C/8) layers stay on the VPU (no degenerate matmuls).
    y = jnp.sum(r, axis=1, keepdims=True) * (1.0 / HW)               # (C, 1)
    z = jnp.sum(caw1_ref[...] * y, axis=0, keepdims=True) + cab1_ref[...]   # (1, RED)
    z = jnp.maximum(z, 0.0)
    g = jnp.sum(caw2t_ref[...] * z, axis=1, keepdims=True) + cab2_ref[...]  # (C, 1)
    r = r * _sigmoid(g)

    # PALayer: per-pixel 1x1 -> relu -> 1x1(->1ch) -> sigmoid -> spatial gate
    pa = jnp.dot(paw1t_ref[...], r.astype(bf16),
                 preferred_element_type=f32) + pab1_ref[...]          # (RED, HW)
    pa = jnp.maximum(pa, 0.0)
    pg = _sigmoid(jnp.sum(pa * paw2_ref[...], axis=0, keepdims=True)
                  + pab2_ref[...])                                    # (1, HW)
    r = r * pg + x0f                                                  # res += x[0]

    # SFT: scale & shift branches fused into two matmuls.
    s = jnp.dot(sftw0_ref[...], x1_ref[0],
                preferred_element_type=f32) + sftb0_ref[...]          # (2*MID, HW)
    s = jnp.where(s > 0, s, 0.1 * s)                                  # leaky_relu(0.1)
    ss = jnp.dot(sftw1_ref[...], s.astype(bf16),
                 preferred_element_type=f32) + sftb1_ref[...]         # (2*C, HW)
    scale = ss[:C, :]
    shift = ss[C:, :]

    out_ref[0] = (r * (scale + 1.0) + shift).astype(out_ref.dtype)


def _prepare_params(p):
    """Reshape / transpose / fuse the per-layer params for the channels-first
    kernel.  All matmul operands are cast to bf16; biases stay f32."""
    bf = jnp.bfloat16
    f32 = jnp.float32

    def conv9t(w):   # (3,3,Cin,Cout) -> (Cout, 9*Cin), row-major tap order
        return jnp.transpose(w, (3, 0, 1, 2)).reshape(DIM, KS * KS * DIM).astype(bf)

    c1wT = conv9t(p["c1w"])
    c2wT = conv9t(p["c2w"])
    c1b = p["c1b"].reshape(DIM, 1).astype(f32)
    c2b = p["c2b"].reshape(DIM, 1).astype(f32)

    caw1 = p["caw1"].astype(f32)                       # (C, RED)
    cab1 = p["cab1"].astype(f32)                       # (1, RED)
    caw2T = jnp.transpose(p["caw2"]).astype(f32)       # (C, RED)
    cab2 = p["cab2"].reshape(DIM, 1).astype(f32)       # (C, 1)

    paw1T = jnp.transpose(p["paw1"]).astype(bf)        # (RED, C)
    pab1 = p["pab1"].reshape(RED, 1).astype(f32)       # (RED, 1)
    paw2 = p["paw2"].reshape(RED, 1).astype(f32)       # (RED, 1)
    pab2 = p["pab2"].astype(f32)                       # (1, 1)

    # SFT fusion: first layer [scale|shift] stacked on rows, second layer
    # block-diagonal so one matmul emits the (2*C, HW) [scale; shift] slab.
    sftw0T = jnp.concatenate(
        [jnp.transpose(p["scw0"]), jnp.transpose(p["shw0"])], axis=0).astype(bf)  # (2*MID, C)
    sftb0 = jnp.concatenate([p["scb0"], p["shb0"]], axis=1).reshape(2 * SFT_MID, 1).astype(f32)
    sftw1T = jnp.zeros((2 * DIM, 2 * SFT_MID), f32)
    sftw1T = sftw1T.at[:DIM, :SFT_MID].set(jnp.transpose(p["scw1"]))
    sftw1T = sftw1T.at[DIM:, SFT_MID:].set(jnp.transpose(p["shw1"]))
    sftw1T = sftw1T.astype(bf)                                                    # (2*C, 2*MID)
    sftb1 = jnp.concatenate([p["scb1"], p["shb1"]], axis=1).reshape(2 * DIM, 1).astype(f32)

    return [c1wT, c1b, c2wT, c2b,
            caw1, cab1, caw2T, cab2,
            paw1T, pab1, paw2, pab2,
            sftw0T, sftb0, sftw1T, sftb1]


def _full_spec(a):
    nd = a.ndim
    return pl.BlockSpec(a.shape, lambda b, _nd=nd: (0,) * _nd)


@jax.jit
def block_dt_forward(x0_nchw, x1_nchw, params):
    """Pallas implementation of Block_dt.forward((x0, x1)). NCHW in / NCHW out."""
    N, C, H, W = x0_nchw.shape
    assert C == DIM
    HW = H * W

    # NCHW -> (N, C, H*W): reshape only, no transpose in the hot path.
    x0s = x0_nchw.reshape(N, C, HW).astype(jnp.bfloat16)
    x1s = x1_nchw.reshape(N, C, HW).astype(jnp.bfloat16)

    # Horizontal-wrap masks for the left/right conv taps (0/1 over lanes).
    wpos = jnp.arange(HW, dtype=jnp.int32) % W
    mask_l = (wpos != 0).astype(jnp.bfloat16).reshape(1, HW)
    mask_r = (wpos != W - 1).astype(jnp.bfloat16).reshape(1, HW)

    weights = _prepare_params(params)
    operands = [x0s, x1s, mask_l, mask_r] + weights

    act_spec = pl.BlockSpec((1, C, HW), lambda b: (b, 0, 0))
    in_specs = [act_spec, act_spec] + [_full_spec(a) for a in operands[2:]]
    out_spec = pl.BlockSpec((1, C, HW), lambda b: (b, 0, 0))

    kernel = functools.partial(_block_dt_kernel, H=H, W=W)

    out = pl.pallas_call(
        kernel,
        out_shape=jax.ShapeDtypeStruct((N, C, HW), jnp.float32),
        grid_spec=pltpu.PrefetchScalarGridSpec(
            num_scalar_prefetch=0,
            grid=(N,),
            in_specs=in_specs,
            out_specs=out_spec,
            scratch_shapes=[
                # zero-padded flat-spatial activation buffer (pads = W+1 lanes)
                pltpu.VMEM((C, HW + 2 * W + 2), jnp.bfloat16),
                # im2col matrix for the deep-K conv matmuls
                pltpu.VMEM((KS * KS * C, HW), jnp.bfloat16),
            ]),
        compiler_params=pltpu.CompilerParams(
            dimension_semantics=("parallel",),
            vmem_limit_bytes=48 * 1024 * 1024),   # explicit (v5e default is 16 MiB)
    )(*operands)

    return out.reshape(N, C, H, W), x1_nchw


def init_params(key):
    """Deterministic synthetic parameters matching Block_dt(conv, dim=64, k=3)."""
    ks = jax.random.split(key, len(PARAM_ORDER))
    kit = iter(ks)

    def w(shape, scale=0.05):
        return jax.random.normal(next(kit), shape, jnp.float32) * scale

    p = {}
    # conv1 / conv2: 3x3, dim->dim, bias.  Weight layout (kh, kw, Cin, Cout).
    p["c1w"] = w((KS, KS, DIM, DIM)); p["c1b"] = w((1, DIM))
    p["c2w"] = w((KS, KS, DIM, DIM)); p["c2b"] = w((1, DIM))
    # CALayer: 1x1 dim->dim//8, 1x1 dim//8->dim
    p["caw1"] = w((DIM, RED)); p["cab1"] = w((1, RED))
    p["caw2"] = w((RED, DIM)); p["cab2"] = w((1, DIM))
    # PALayer: 1x1 dim->dim//8, 1x1 dim//8->1 (stored as a (1, RED) row)
    p["paw1"] = w((DIM, RED)); p["pab1"] = w((1, RED))
    p["paw2"] = w((1, RED));   p["pab2"] = w((1, 1))
    # SFT scale / shift: 1x1 64->32, 1x1 32->64
    p["scw0"] = w((DIM, SFT_MID)); p["scb0"] = w((1, SFT_MID))
    p["scw1"] = w((SFT_MID, DIM)); p["scb1"] = w((1, DIM))
    p["shw0"] = w((DIM, SFT_MID)); p["shb0"] = w((1, SFT_MID))
    p["shw1"] = w((SFT_MID, DIM)); p["shb1"] = w((1, DIM))
    return p


def reference_forward(x0_nchw, x1_nchw, p):
    """Pure-JAX f32 reference of Block_dt.forward for validation."""
    x0 = jnp.transpose(x0_nchw, (0, 2, 3, 1)).astype(jnp.float32)
    x1 = jnp.transpose(x1_nchw, (0, 2, 3, 1)).astype(jnp.float32)

    def conv3x3(x, wt, b):
        y = lax.conv_general_dilated(x, wt, (1, 1), "SAME",
                                     dimension_numbers=("NHWC", "HWIO", "NHWC"))
        return y + b

    def dense(x, wt, b):
        return jnp.einsum("nhwc,cd->nhwd", x, wt) + b

    r = jax.nn.relu(conv3x3(x0, p["c1w"], p["c1b"])) + x0
    r = conv3x3(r, p["c2w"], p["c2b"])
    # CALayer
    y = jnp.mean(r, axis=(1, 2), keepdims=True)
    y = jax.nn.relu(dense(y, p["caw1"], p["cab1"]))
    y = jax.nn.sigmoid(dense(y, p["caw2"], p["cab2"]))
    r = r * y
    # PALayer
    t = jax.nn.relu(dense(r, p["paw1"], p["pab1"]))
    pa = jax.nn.sigmoid(jnp.sum(t * p["paw2"], axis=-1, keepdims=True) + p["pab2"])
    r = r * pa
    r = r + x0
    # SFT
    s = dense(x1, p["scw0"], p["scb0"]); s = jnp.where(s > 0, s, 0.1 * s)
    scale = dense(s, p["scw1"], p["scb1"])
    h = dense(x1, p["shw0"], p["shb0"]); h = jnp.where(h > 0, h, 0.1 * h)
    shift = dense(h, p["shw1"], p["shb1"])
    r = r * (scale + 1.0) + shift
    return jnp.transpose(r, (0, 3, 1, 2)), x1_nchw


if __name__ == "__main__":
    key = jax.random.PRNGKey(0)
    kx0, kx1, kp = jax.random.split(key, 3)

    N, H, W = 2, 16, 16                    # channels = DIM = 64, H*W = 256 lanes
    x0 = jax.random.normal(kx0, (N, DIM, H, W), jnp.float32)   # NCHW like PyTorch
    x1 = jax.random.normal(kx1, (N, DIM, H, W), jnp.float32)
    params = init_params(kp)

    out, passthrough = block_dt_forward(x0, x1, params)
    out = jax.block_until_ready(out)

    ref_out, _ = reference_forward(x0, x1, params)
    assert out.shape == (N, DIM, H, W)
    assert passthrough.shape == x1.shape
    # bf16 matmul operands: tolerance tightened from 5e-2 to 3e-2.
    if not jnp.allclose(out, ref_out, atol=3e-2, rtol=3e-2):
        raise AssertionError(
            f"mismatch vs reference, max abs err = {jnp.max(jnp.abs(out - ref_out))}")
    print("KERNEL_OK")
</pallas_src>

<mosaic_0001>
module attributes {stable_mosaic.version = 11 : i64} {
  func.func @_block_dt_kernel(%arg0: i32, %arg1: memref<1x64x256xbf16, #tpu.memory_space<vmem>>, %arg2: memref<1x64x256xbf16, #tpu.memory_space<vmem>>, %arg3: memref<1x256xbf16, #tpu.memory_space<vmem>>, %arg4: memref<1x256xbf16, #tpu.memory_space<vmem>>, %arg5: memref<64x576xbf16, #tpu.memory_space<vmem>>, %arg6: memref<64x1xf32, #tpu.memory_space<vmem>>, %arg7: memref<64x576xbf16, #tpu.memory_space<vmem>>, %arg8: memref<64x1xf32, #tpu.memory_space<vmem>>, %arg9: memref<64x8xf32, #tpu.memory_space<vmem>>, %arg10: memref<1x8xf32, #tpu.memory_space<vmem>>, %arg11: memref<64x8xf32, #tpu.memory_space<vmem>>, %arg12: memref<64x1xf32, #tpu.memory_space<vmem>>, %arg13: memref<8x64xbf16, #tpu.memory_space<vmem>>, %arg14: memref<8x1xf32, #tpu.memory_space<vmem>>, %arg15: memref<8x1xf32, #tpu.memory_space<vmem>>, %arg16: memref<1x1xf32, #tpu.memory_space<vmem>>, %arg17: memref<64x64xbf16, #tpu.memory_space<vmem>>, %arg18: memref<64x1xf32, #tpu.memory_space<vmem>>, %arg19: memref<128x64xbf16, #tpu.memory_space<vmem>>, %arg20: memref<128x1xf32, #tpu.memory_space<vmem>>, %arg21: memref<1x64x256xf32, #tpu.memory_space<vmem>>, %arg22: memref<64x290xbf16, #tpu.memory_space<vmem>>, %arg23: memref<576x256xbf16, #tpu.memory_space<vmem>>) attributes {dimension_semantics = [#tpu.dimension_semantics<parallel>], iteration_bounds = array<i64: 2>, scalar_prefetch = 0 : i64, scratch_operands = 2 : i64, tpu.core_type = #tpu.core_type<tc>, window_params = [{transform_indices = @transform_0, window_bounds = array<i64: 1, 64, 256>}, {transform_indices = @transform_1, window_bounds = array<i64: 1, 64, 256>}, {pipeline_mode = #tpu.pipeline_mode<synchronous>, transform_indices = @transform_2, window_bounds = array<i64: 1, 256>}, {pipeline_mode = #tpu.pipeline_mode<synchronous>, transform_indices = @transform_3, window_bounds = array<i64: 1, 256>}, {pipeline_mode = #tpu.pipeline_mode<synchronous>, transform_indices = @transform_4, window_bounds = array<i64: 64, 576>}, {pipeline_mode = #tpu.pipeline_mode<synchronous>, transform_indices = @transform_5, window_bounds = array<i64: 64, 1>}, {pipeline_mode = #tpu.pipeline_mode<synchronous>, transform_indices = @transform_6, window_bounds = array<i64: 64, 576>}, {pipeline_mode = #tpu.pipeline_mode<synchronous>, transform_indices = @transform_7, window_bounds = array<i64: 64, 1>}, {pipeline_mode = #tpu.pipeline_mode<synchronous>, transform_indices = @transform_8, window_bounds = array<i64: 64, 8>}, {pipeline_mode = #tpu.pipeline_mode<synchronous>, transform_indices = @transform_9, window_bounds = array<i64: 1, 8>}, {pipeline_mode = #tpu.pipeline_mode<synchronous>, transform_indices = @transform_10, window_bounds = array<i64: 64, 8>}, {pipeline_mode = #tpu.pipeline_mode<synchronous>, transform_indices = @transform_11, window_bounds = array<i64: 64, 1>}, {pipeline_mode = #tpu.pipeline_mode<synchronous>, transform_indices = @transform_12, window_bounds = array<i64: 8, 64>}, {pipeline_mode = #tpu.pipeline_mode<synchronous>, transform_indices = @transform_13, window_bounds = array<i64: 8, 1>}, {pipeline_mode = #tpu.pipeline_mode<synchronous>, transform_indices = @transform_14, window_bounds = array<i64: 8, 1>}, {pipeline_mode = #tpu.pipeline_mode<synchronous>, transform_indices = @transform_15, window_bounds = array<i64: 1, 1>}, {pipeline_mode = #tpu.pipeline_mode<synchronous>, transform_indices = @transform_16, window_bounds = array<i64: 64, 64>}, {pipeline_mode = #tpu.pipeline_mode<synchronous>, transform_indices = @transform_17, window_bounds = array<i64: 64, 1>}, {pipeline_mode = #tpu.pipeline_mode<synchronous>, transform_indices = @transform_18, window_bounds = array<i64: 128, 64>}, {pipeline_mode = #tpu.pipeline_mode<synchronous>, transform_indices = @transform_19, window_bounds = array<i64: 128, 1>}, {transform_indices = @transform_20, window_bounds = array<i64: 1, 64, 256>}]} {
    %c0 = arith.constant 0 : index
    %c0_0 = arith.constant 0 : index
    %0 = vector.load %arg3[%c0, %c0_0] : memref<1x256xbf16, #tpu.memory_space<vmem>>, vector<1x256xbf16>
    %c0_1 = arith.constant 0 : index
    %c0_2 = arith.constant 0 : index
    %1 = vector.load %arg4[%c0_1, %c0_2] : memref<1x256xbf16, #tpu.memory_space<vmem>>, vector<1x256xbf16>
    %c0_3 = arith.constant 0 : index
    %c0_4 = arith.constant 0 : index
    %c0_5 = arith.constant 0 : index
    %2 = vector.load %arg1[%c0_3, %c0_4, %c0_5] : memref<1x64x256xbf16, #tpu.memory_space<vmem>>, vector<1x64x256xbf16>
    %3 = vector.shape_cast %2 : vector<1x64x256xbf16> to vector<64x256xbf16>
    %4 = arith.extf %3 : vector<64x256xbf16> to vector<64x256xf32>
    %cst = arith.constant 0.000000e+00 : bf16
    %5 = vector.broadcast %cst : bf16 to vector<64x290xbf16>
    %c0_6 = arith.constant 0 : index
    %c0_7 = arith.constant 0 : index
    %6 = vector.load %arg22[%c0_6, %c0_7] : memref<64x290xbf16, #tpu.memory_space<vmem>>, vector<64x290xbf16>
    tpu.vector_store %arg22[%c0_6, %c0_7], %5 {strides = array<i32>} : memref<64x290xbf16, #tpu.memory_space<vmem>>, vector<64x290xbf16>,
    %c0_8 = arith.constant 0 : index
    %c17 = arith.constant 17 : index
    %7 = vector.load %arg22[%c0_8, %c17] : memref<64x290xbf16, #tpu.memory_space<vmem>>, vector<64x256xbf16>
    tpu.vector_store %arg22[%c0_8, %c17], %3 {strides = array<i32>} : memref<64x290xbf16, #tpu.memory_space<vmem>>, vector<64x256xbf16>,
    %c0_9 = arith.constant 0 : index
    %c0_10 = arith.constant 0 : index
    %8 = vector.load %arg22[%c0_9, %c0_10] : memref<64x290xbf16, #tpu.memory_space<vmem>>, vector<64x256xbf16>
    %9 = vector.broadcast %0 : vector<1x256xbf16> to vector<64x256xbf16>
    %10 = arith.mulf %8, %9 : vector<64x256xbf16>
    %c0_11 = arith.constant 0 : index
    %c0_12 = arith.constant 0 : index
    %11 = vector.load %arg23[%c0_11, %c0_12] : memref<576x256xbf16, #tpu.memory_space<vmem>>, vector<64x256xbf16>
    tpu.vector_store %arg23[%c0_11, %c0_12], %10 {strides = array<i32>} : memref<576x256xbf16, #tpu.memory_space<vmem>>, vector<64x256xbf16>,
    %c0_13 = arith.constant 0 : index
    %c1 = arith.constant 1 : index
    %12 = vector.load %arg22[%c0_13, %c1] : memref<64x290xbf16, #tpu.memory_space<vmem>>, vector<64x256xbf16>
    %c64 = arith.constant 64 : index
    %c0_14 = arith.constant 0 : index
    %13 = vector.load %arg23[%c64, %c0_14] : memref<576x256xbf16, #tpu.memory_space<vmem>>, vector<64x256xbf16>
    tpu.vector_store %arg23[%c64, %c0_14], %12 {strides = array<i32>} : memref<576x256xbf16, #tpu.memory_space<vmem>>, vector<64x256xbf16>,
    %c0_15 = arith.constant 0 : index
    %c2 = arith.constant 2 : index
    %14 = vector.load %arg22[%c0_15, %c2] : memref<64x290xbf16, #tpu.memory_space<vmem>>, vector<64x256xbf16>
    %15 = vector.broadcast %1 : vector<1x256xbf16> to vector<64x256xbf16>
    %16 = arith.mulf %14, %15 : vector<64x256xbf16>
    %c128 = arith.constant 128 : index
    %c0_16 = arith.constant 0 : index
    %17 = vector.load %arg23[%c128, %c0_16] : memref<576x256xbf16, #tpu.memory_space<vmem>>, vector<64x256xbf16>
    tpu.vector_store %arg23[%c128, %c0_16], %16 {strides = array<i32>} : memref<576x256xbf16, #tpu.memory_space<vmem>>, vector<64x256xbf16>,
    %c0_17 = arith.constant 0 : index
    %c16 = arith.constant 16 : index
    %18 = vector.load %arg22[%c0_17, %c16] : memref<64x290xbf16, #tpu.memory_space<vmem>>, vector<64x256xbf16>
    %19 = vector.broadcast %0 : vector<1x256xbf16> to vector<64x256xbf16>
    %20 = arith.mulf %18, %19 : vector<64x256xbf16>
    %c192 = arith.constant 192 : index
    %c0_18 = arith.constant 0 : index
    %21 = vector.load %arg23[%c192, %c0_18] : memref<576x256xbf16, #tpu.memory_space<vmem>>, vector<64x256xbf16>
    tpu.vector_store %arg23[%c192, %c0_18], %20 {strides = array<i32>} : memref<576x256xbf16, #tpu.memory_space<vmem>>, vector<64x256xbf16>,
    %c0_19 = arith.constant 0 : index
    %c17_20 = arith.constant 17 : index
    %22 = vector.load %arg22[%c0_19, %c17_20] : memref<64x290xbf16, #tpu.memory_space<vmem>>, vector<64x256xbf16>
    %c256 = arith.constant 256 : index
    %c0_21 = arith.constant 0 : index
    %23 = vector.load %arg23[%c256, %c0_21] : memref<576x256xbf16, #tpu.memory_space<vmem>>, vector<64x256xbf16>
    tpu.vector_store %arg23[%c256, %c0_21], %22 {strides = array<i32>} : memref<576x256xbf16, #tpu.memory_space<vmem>>, vector<64x256xbf16>,
    %c0_22 = arith.constant 0 : index
    %c18 = arith.constant 18 : index
    %24 = vector.load %arg22[%c0_22, %c18] : memref<64x290xbf16, #tpu.memory_space<vmem>>, vector<64x256xbf16>
    %25 = vector.broadcast %1 : vector<1x256xbf16> to vector<64x256xbf16>
    %26 = arith.mulf %24, %25 : vector<64x256xbf16>
    %c320 = arith.constant 320 : index
    %c0_23 = arith.constant 0 : index
    %27 = vector.load %arg23[%c320, %c0_23] : memref<576x256xbf16, #tpu.memory_space<vmem>>, vector<64x256xbf16>
    tpu.vector_store %arg23[%c320, %c0_23], %26 {strides = array<i32>} : memref<576x256xbf16, #tpu.memory_space<vmem>>, vector<64x256xbf16>,
    %c0_24 = arith.constant 0 : index
    %c32 = arith.constant 32 : index
    %28 = vector.load %arg22[%c0_24, %c32] : memref<64x290xbf16, #tpu.memory_space<vmem>>, vector<64x256xbf16>
    %29 = vector.broadcast %0 : vector<1x256xbf16> to vector<64x256xbf16>
    %30 = arith.mulf %28, %29 : vector<64x256xbf16>
    %c384 = arith.constant 384 : index
    %c0_25 = arith.constant 0 : index
    %31 = vector.load %arg23[%c384, %c0_25] : memref<576x256xbf16, #tpu.memory_space<vmem>>, vector<64x256xbf16>
    tpu.vector_store %arg23[%c384, %c0_25], %30 {strides = array<i32>} : memref<576x256xbf16, #tpu.memory_space<vmem>>, vector<64x256xbf16>,
    %c0_26 = arith.constant 0 : index
    %c33 = arith.constant 33 : index
    %32 = vector.load %arg22[%c0_26, %c33] : memref<64x290xbf16, #tpu.memory_space<vmem>>, vector<64x256xbf16>
    %c448 = arith.constant 448 : index
    %c0_27 = arith.constant 0 : index
    %33 = vector.load %arg23[%c448, %c0_27] : memref<576x256xbf16, #tpu.memory_space<vmem>>, vector<64x256xbf16>
    tpu.vector_store %arg23[%c448, %c0_27], %32 {strides = array<i32>} : memref<576x256xbf16, #tpu.memory_space<vmem>>, vector<64x256xbf16>,
    %c0_28 = arith.constant 0 : index
    %c34 = arith.constant 34 : index
    %34 = vector.load %arg22[%c0_28, %c34] : memref<64x290xbf16, #tpu.memory_space<vmem>>, vector<64x256xbf16>
    %35 = vector.broadcast %1 : vector<1x256xbf16> to vector<64x256xbf16>
    %36 = arith.mulf %34, %35 : vector<64x256xbf16>
    %c512 = arith.constant 512 : index
    %c0_29 = arith.constant 0 : index
    %37 = vector.load %arg23[%c512, %c0_29] : memref<576x256xbf16, #tpu.memory_space<vmem>>, vector<64x256xbf16>
    tpu.vector_store %arg23[%c512, %c0_29], %36 {strides = array<i32>} : memref<576x256xbf16, #tpu.memory_space<vmem>>, vector<64x256xbf16>,
    %c0_30 = arith.constant 0 : index
    %c0_31 = arith.constant 0 : index
    %38 = vector.load %arg5[%c0_30, %c0_31] : memref<64x576xbf16, #tpu.memory_space<vmem>>, vector<64x576xbf16>
    %c0_32 = arith.constant 0 : index
    %c0_33 = arith.constant 0 : index
    %39 = vector.load %arg23[%c0_32, %c0_33] : memref<576x256xbf16, #tpu.memory_space<vmem>>, vector<576x256xbf16>
    %cst_34 = arith.constant dense<0.000000e+00> : vector<64x256xf32>
    %40 = tpu.matmul %38, %39, %cst_34 {dimension_numbers = #tpu.dot_dimension_numbers<[1], [0], [0], [1], [0, 0, 1, 1], [], []>} : vector<64x576xbf16>, vector<576x256xbf16>, vector<64x256xf32> -> vector<64x256xf32>
    %c0_35 = arith.constant 0 : index
    %c0_36 = arith.constant 0 : index
    %41 = vector.load %arg6[%c0_35, %c0_36] : memref<64x1xf32, #tpu.memory_space<vmem>>, vector<64x1xf32>
    %42 = vector.broadcast %41 : vector<64x1xf32> to vector<64x256xf32>
    %43 = arith.addf %40, %42 : vector<64x256xf32>
    %cst_37 = arith.constant 0.000000e+00 : f32
    %44 = vector.broadcast %cst_37 : f32 to vector<64x256xf32>
    %45 = arith.maximumf %43, %44 : vector<64x256xf32>
    %46 = arith.addf %45, %4 : vector<64x256xf32>
    %47 = arith.truncf %46 : vector<64x256xf32> to vector<64x256xbf16>
    %c0_38 = arith.constant 0 : index
    %c17_39 = arith.constant 17 : index
    %48 = vector.load %arg22[%c0_38, %c17_39] : memref<64x290xbf16, #tpu.memory_space<vmem>>, vector<64x256xbf16>
    tpu.vector_store %arg22[%c0_38, %c17_39], %47 {strides = array<i32>} : memref<64x290xbf16, #tpu.memory_space<vmem>>, vector<64x256xbf16>,
    %c0_40 = arith.constant 0 : index
    %c0_41 = arith.constant 0 : index
    %49 = vector.load %arg22[%c0_40, %c0_41] : memref<64x290xbf16, #tpu.memory_space<vmem>>, vector<64x256xbf16>
    %50 = vector.broadcast %0 : vector<1x256xbf16> to vector<64x256xbf16>
    %51 = arith.mulf %49, %50 : vector<64x256xbf16>
    %c0_42 = arith.constant 0 : index
    %c0_43 = arith.constant 0 : index
    %52 = vector.load %arg23[%c0_42, %c0_43] : memref<576x256xbf16, #tpu.memory_space<vmem>>, vector<64x256xbf16>
    tpu.vector_store %arg23[%c0_42, %c0_43], %51 {strides = array<i32>} : memref<576x256xbf16, #tpu.memory_space<vmem>>, vector<64x256xbf16>,
    %c0_44 = arith.constant 0 : index
    %c1_45 = arith.constant 1 : index
    %53 = vector.load %arg22[%c0_44, %c1_45] : memref<64x290xbf16, #tpu.memory_space<vmem>>, vector<64x256xbf16>
    %c64_46 = arith.constant 64 : index
    %c0_47 = arith.constant 0 : index
    %54 = vector.load %arg23[%c64_46, %c0_47] : memref<576x256xbf16, #tpu.memory_space<vmem>>, vector<64x256xbf16>
    tpu.vector_store %arg23[%c64_46, %c0_47], %53 {strides = array<i32>} : memref<576x256xbf16, #tpu.memory_space<vmem>>, vector<64x256xbf16>,
    %c0_48 = arith.constant 0 : index
    %c2_49 = arith.constant 2 : index
    %55 = vector.load %arg22[%c0_48, %c2_49] : memref<64x290xbf16, #tpu.memory_space<vmem>>, vector<64x256xbf16>
    %56 = vector.broadcast %1 : vector<1x256xbf16> to vector<64x256xbf16>
    %57 = arith.mulf %55, %56 : vector<64x256xbf16>
    %c128_50 = arith.constant 128 : index
    %c0_51 = arith.constant 0 : index
    %58 = vector.load %arg23[%c128_50, %c0_51] : memref<576x256xbf16, #tpu.memory_space<vmem>>, vector<64x256xbf16>
    tpu.vector_store %arg23[%c128_50, %c0_51], %57 {strides = array<i32>} : memref<576x256xbf16, #tpu.memory_space<vmem>>, vector<64x256xbf16>,
    %c0_52 = arith.constant 0 : index
    %c16_53 = arith.constant 16 : index
    %59 = vector.load %arg22[%c0_52, %c16_53] : memref<64x290xbf16, #tpu.memory_space<vmem>>, vector<64x256xbf16>
    %60 = vector.broadcast %0 : vector<1x256xbf16> to vector<64x256xbf16>
    %61 = arith.mulf %59, %60 : vector<64x256xbf16>
    %c192_54 = arith.constant 192 : index
    %c0_55 = arith.constant 0 : index
    %62 = vector.load %arg23[%c192_54, %c0_55] : memref<576x256xbf16, #tpu.memory_space<vmem>>, vector<64x256xbf16>
    tpu.vector_store %arg23[%c192_54, %c0_55], %61 {strides = array<i32>} : memref<576x256xbf16, #tpu.memory_space<vmem>>, vector<64x256xbf16>,
    %c0_56 = arith.constant 0 : index
    %c17_57 = arith.constant 17 : index
    %63 = vector.load %arg22[%c0_56, %c17_57] : memref<64x290xbf16, #tpu.memory_space<vmem>>, vector<64x256xbf16>
    %c256_58 = arith.constant 256 : index
    %c0_59 = arith.constant 0 : index
    %64 = vector.load %arg23[%c256_58, %c0_59] : memref<576x256xbf16, #tpu.memory_space<vmem>>, vector<64x256xbf16>
    tpu.vector_store %arg23[%c256_58, %c0_59], %63 {strides = array<i32>} : memref<576x256xbf16, #tpu.memory_space<vmem>>, vector<64x256xbf16>,
    %c0_60 = arith.constant 0 : index
    %c18_61 = arith.constant 18 : index
    %65 = vector.load %arg22[%c0_60, %c18_61] : memref<64x290xbf16, #tpu.memory_space<vmem>>, vector<64x256xbf16>
    %66 = vector.broadcast %1 : vector<1x256xbf16> to vector<64x256xbf16>
    %67 = arith.mulf %65, %66 : vector<64x256xbf16>
    %c320_62 = arith.constant 320 : index
    %c0_63 = arith.constant 0 : index
    %68 = vector.load %arg23[%c320_62, %c0_63] : memref<576x256xbf16, #tpu.memory_space<vmem>>, vector<64x256xbf16>
    tpu.vector_store %arg23[%c320_62, %c0_63], %67 {strides = array<i32>} : memref<576x256xbf16, #tpu.memory_space<vmem>>, vector<64x256xbf16>,
    %c0_64 = arith.constant 0 : index
    %c32_65 = arith.constant 32 : index
    %69 = vector.load %arg22[%c0_64, %c32_65] : memref<64x290xbf16, #tpu.memory_space<vmem>>, vector<64x256xbf16>
    %70 = vector.broadcast %0 : vector<1x256xbf16> to vector<64x256xbf16>
    %71 = arith.mulf %69, %70 : vector<64x256xbf16>
    %c384_66 = arith.constant 384 : index
    %c0_67 = arith.constant 0 : index
    %72 = vector.load %arg23[%c384_66, %c0_67] : memref<576x256xbf16, #tpu.memory_space<vmem>>, vector<64x256xbf16>
    tpu.vector_store %arg23[%c384_66, %c0_67], %71 {strides = array<i32>} : memref<576x256xbf16, #tpu.memory_space<vmem>>, vector<64x256xbf16>,
    %c0_68 = arith.constant 0 : index
    %c33_69 = arith.constant 33 : index
    %73 = vector.load %arg22[%c0_68, %c33_69] : memref<64x290xbf16, #tpu.memory_space<vmem>>, vector<64x256xbf16>
    %c448_70 = arith.constant 448 : index
    %c0_71 = arith.constant 0 : index
    %74 = vector.load %arg23[%c448_70, %c0_71] : memref<576x256xbf16, #tpu.memory_space<vmem>>, vector<64x256xbf16>
    tpu.vector_store %arg23[%c448_70, %c0_71], %73 {strides = array<i32>} : memref<576x256xbf16, #tpu.memory_space<vmem>>, vector<64x256xbf16>,
    %c0_72 = arith.constant 0 : index
    %c34_73 = arith.constant 34 : index
    %75 = vector.load %arg22[%c0_72, %c34_73] : memref<64x290xbf16, #tpu.memory_space<vmem>>, vector<64x256xbf16>
    %76 = vector.broadcast %1 : vector<1x256xbf16> to vector<64x256xbf16>
    %77 = arith.mulf %75, %76 : vector<64x256xbf16>
    %c512_74 = arith.constant 512 : index
    %c0_75 = arith.constant 0 : index
    %78 = vector.load %arg23[%c512_74, %c0_75] : memref<576x256xbf16, #tpu.memory_space<vmem>>, vector<64x256xbf16>
    tpu.vector_store %arg23[%c512_74, %c0_75], %77 {strides = array<i32>} : memref<576x256xbf16, #tpu.memory_space<vmem>>, vector<64x256xbf16>,
    %c0_76 = arith.constant 0 : index
    %c0_77 = arith.constant 0 : index
    %79 = vector.load %arg7[%c0_76, %c0_77] : memref<64x576xbf16, #tpu.memory_space<vmem>>, vector<64x576xbf16>
    %c0_78 = arith.constant 0 : index
    %c0_79 = arith.constant 0 : index
    %80 = vector.load %arg23[%c0_78, %c0_79] : memref<576x256xbf16, #tpu.memory_space<vmem>>, vector<576x256xbf16>
    %cst_80 = arith.constant dense<0.000000e+00> : vector<64x256xf32>
    %81 = tpu.matmul %79, %80, %cst_80 {dimension_numbers = #tpu.dot_dimension_numbers<[1], [0], [0], [1], [0, 0, 1, 1], [], []>} : vector<64x576xbf16>, vector<576x256xbf16>, vector<64x256xf32> -> vector<64x256xf32>
    %c0_81 = arith.constant 0 : index
    %c0_82 = arith.constant 0 : index
    %82 = vector.load %arg8[%c0_81, %c0_82] : memref<64x1xf32, #tpu.memory_space<vmem>>, vector<64x1xf32>
    %83 = vector.broadcast %82 : vector<64x1xf32> to vector<64x256xf32>
    %84 = arith.addf %81, %83 : vector<64x256xf32>
    %cst_83 = arith.constant dense<0.000000e+00> : vector<64xf32>
    %85 = vector.multi_reduction <add>, %84, %cst_83 [1] : vector<64x256xf32> to vector<64xf32>
    %86 = vector.shape_cast %85 : vector<64xf32> to vector<64x1xf32>
    %cst_84 = arith.constant 3.906250e-03 : f32
    %87 = vector.broadcast %cst_84 : f32 to vector<64x1xf32>
    %88 = arith.mulf %86, %87 : vector<64x1xf32>
    %c0_85 = arith.constant 0 : index
    %c0_86 = arith.constant 0 : index
    %89 = vector.load %arg9[%c0_85, %c0_86] : memref<64x8xf32, #tpu.memory_space<vmem>>, vector<64x8xf32>
    %90 = vector.broadcast %88 : vector<64x1xf32> to vector<64x8xf32>
    %91 = arith.mulf %89, %90 : vector<64x8xf32>
    %cst_87 = arith.constant dense<0.000000e+00> : vector<8xf32>
    %92 = vector.multi_reduction <add>, %91, %cst_87 [0] : vector<64x8xf32> to vector<8xf32>
    %93 = vector.shape_cast %92 : vector<8xf32> to vector<1x8xf32>
    %c0_88 = arith.constant 0 : index
    %c0_89 = arith.constant 0 : index
    %94 = vector.load %arg10[%c0_88, %c0_89] : memref<1x8xf32, #tpu.memory_space<vmem>>, vector<1x8xf32>
    %95 = arith.addf %93, %94 : vector<1x8xf32>
    %cst_90 = arith.constant 0.000000e+00 : f32
    %96 = vector.broadcast %cst_90 : f32 to vector<1x8xf32>
    %97 = arith.maximumf %95, %96 : vector<1x8xf32>
    %c0_91 = arith.constant 0 : index
    %c0_92 = arith.constant 0 : index
    %98 = vector.load %arg11[%c0_91, %c0_92] : memref<64x8xf32, #tpu.memory_space<vmem>>, vector<64x8xf32>
    %99 = vector.broadcast %97 : vector<1x8xf32> to vector<64x8xf32>
    %100 = arith.mulf %98, %99 : vector<64x8xf32>
    %cst_93 = arith.constant dense<0.000000e+00> : vector<64xf32>
    %101 = vector.multi_reduction <add>, %100, %cst_93 [1] : vector<64x8xf32> to vector<64xf32>
    %102 = vector.shape_cast %101 : vector<64xf32> to vector<64x1xf32>
    %c0_94 = arith.constant 0 : index
    %c0_95 = arith.constant 0 : index
    %103 = vector.load %arg12[%c0_94, %c0_95] : memref<64x1xf32, #tpu.memory_space<vmem>>, vector<64x1xf32>
    %104 = arith.addf %102, %103 : vector<64x1xf32>
    %cst_96 = arith.constant 0.000000e+00 : f32
    %105 = vector.broadcast %cst_96 : f32 to vector<64x1xf32>
    %106 = arith.subf %105, %104 : vector<64x1xf32>
    %107 = math.exp %106 : vector<64x1xf32>
    %cst_97 = arith.constant 1.000000e+00 : f32
    %108 = vector.broadcast %cst_97 : f32 to vector<64x1xf32>
    %109 = arith.addf %108, %107 : vector<64x1xf32>
    %cst_98 = arith.constant 1.000000e+00 : f32
    %110 = vector.broadcast %cst_98 : f32 to vector<64x1xf32>
    %111 = arith.divf %110, %109 : vector<64x1xf32>
    %112 = vector.broadcast %111 : vector<64x1xf32> to vector<64x256xf32>
    %113 = arith.mulf %84, %112 : vector<64x256xf32>
    %c0_99 = arith.constant 0 : index
    %c0_100 = arith.constant 0 : index
    %114 = vector.load %arg13[%c0_99, %c0_100] : memref<8x64xbf16, #tpu.memory_space<vmem>>, vector<8x64xbf16>
    %115 = arith.truncf %113 : vector<64x256xf32> to vector<64x256xbf16>
    %cst_101 = arith.constant dense<0.000000e+00> : vector<8x256xf32>
    %116 = tpu.matmul %114, %115, %cst_101 {dimension_numbers = #tpu.dot_dimension_numbers<[1], [0], [0], [1], [0, 0, 1, 1], [], []>} : vector<8x64xbf16>, vector<64x256xbf16>, vector<8x256xf32> -> vector<8x256xf32>
    %c0_102 = arith.constant 0 : index
    %c0_103 = arith.constant 0 : index
    %117 = vector.load %arg14[%c0_102, %c0_103] : memref<8x1xf32, #tpu.memory_space<vmem>>, vector<8x1xf32>
    %118 = vector.broadcast %117 : vector<8x1xf32> to vector<8x256xf32>
    %119 = arith.addf %116, %118 : vector<8x256xf32>
    %cst_104 = arith.constant 0.000000e+00 : f32
    %120 = vector.broadcast %cst_104 : f32 to vector<8x256xf32>
    %121 = arith.maximumf %119, %120 : vector<8x256xf32>
    %c0_105 = arith.constant 0 : index
    %c0_106 = arith.constant 0 : index
    %122 = vector.load %arg15[%c0_105, %c0_106] : memref<8x1xf32, #tpu.memory_space<vmem>>, vector<8x1xf32>
    %123 = vector.broadcast %122 : vector<8x1xf32> to vector<8x256xf32>
    %124 = arith.mulf %121, %123 : vector<8x256xf32>
    %cst_107 = arith.constant dense<0.000000e+00> : vector<256xf32>
    %125 = vector.multi_reduction <add>, %124, %cst_107 [0] : vector<8x256xf32> to vector<256xf32>
    %126 = vector.shape_cast %125 : vector<256xf32> to vector<1x256xf32>
    %c0_108 = arith.constant 0 : index
    %c0_109 = arith.constant 0 : index
    %127 = vector.load %arg16[%c0_108, %c0_109] : memref<1x1xf32, #tpu.memory_space<vmem>>, vector<1x1xf32>
    %128 = vector.broadcast %127 : vector<1x1xf32> to vector<1x256xf32>
    %129 = arith.addf %126, %128 : vector<1x256xf32>
    %cst_110 = arith.constant 0.000000e+00 : f32
    %130 = vector.broadcast %cst_110 : f32 to vector<1x256xf32>
    %131 = arith.subf %130, %129 : vector<1x256xf32>
    %132 = math.exp %131 : vector<1x256xf32>
    %cst_111 = arith.constant 1.000000e+00 : f32
    %133 = vector.broadcast %cst_111 : f32 to vector<1x256xf32>
    %134 = arith.addf %133, %132 : vector<1x256xf32>
    %cst_112 = arith.constant 1.000000e+00 : f32
    %135 = vector.broadcast %cst_112 : f32 to vector<1x256xf32>
    %136 = arith.divf %135, %134 : vector<1x256xf32>
    %137 = vector.broadcast %136 : vector<1x256xf32> to vector<64x256xf32>
    %138 = arith.mulf %113, %137 : vector<64x256xf32>
    %139 = arith.addf %138, %4 : vector<64x256xf32>
    %c0_113 = arith.constant 0 : index
    %c0_114 = arith.constant 0 : index
    %140 = vector.load %arg17[%c0_113, %c0_114] : memref<64x64xbf16, #tpu.memory_space<vmem>>, vector<64x64xbf16>
    %c0_115 = arith.constant 0 : index
    %c0_116 = arith.constant 0 : index
    %c0_117 = arith.constant 0 : index
    %141 = vector.load %arg2[%c0_115, %c0_116, %c0_117] : memref<1x64x256xbf16, #tpu.memory_space<vmem>>, vector<1x64x256xbf16>
    %142 = vector.shape_cast %141 : vector<1x64x256xbf16> to vector<64x256xbf16>
    %cst_118 = arith.constant dense<0.000000e+00> : vector<64x256xf32>
    %143 = tpu.matmul %140, %142, %cst_118 {dimension_numbers = #tpu.dot_dimension_numbers<[1], [0], [0], [1], [0, 0, 1, 1], [], []>} : vector<64x64xbf16>, vector<64x256xbf16>, vector<64x256xf32> -> vector<64x256xf32>
    %c0_119 = arith.constant 0 : index
    %c0_120 = arith.constant 0 : index
    %144 = vector.load %arg18[%c0_119, %c0_120] : memref<64x1xf32, #tpu.memory_space<vmem>>, vector<64x1xf32>
    %145 = vector.broadcast %144 : vector<64x1xf32> to vector<64x256xf32>
    %146 = arith.addf %143, %145 : vector<64x256xf32>
    %cst_121 = arith.constant 0.000000e+00 : f32
    %147 = vector.broadcast %cst_121 : f32 to vector<64x256xf32>
    %148 = arith.cmpf ogt, %146, %147 : vector<64x256xf32>
    %cst_122 = arith.constant 1.000000e-01 : f32
    %149 = vector.broadcast %cst_122 : f32 to vector<64x256xf32>
    %150 = arith.mulf %149, %146 : vector<64x256xf32>
    %151 = arith.select %148, %146, %150 : vector<64x256xi1>, vector<64x256xf32>
    %c0_123 = arith.constant 0 : index
    %c0_124 = arith.constant 0 : index
    %152 = vector.load %arg19[%c0_123, %c0_124] : memref<128x64xbf16, #tpu.memory_space<vmem>>, vector<128x64xbf16>
    %153 = arith.truncf %151 : vector<64x256xf32> to vector<64x256xbf16>
    %cst_125 = arith.constant dense<0.000000e+00> : vector<128x256xf32>
    %154 = tpu.matmul %152, %153, %cst_125 {dimension_numbers = #tpu.dot_dimension_numbers<[1], [0], [0], [1], [0, 0, 1, 1], [], []>} : vector<128x64xbf16>, vector<64x256xbf16>, vector<128x256xf32> -> vector<128x256xf32>
    %c0_126 = arith.constant 0 : index
    %c0_127 = arith.constant 0 : index
    %155 = vector.load %arg20[%c0_126, %c0_127] : memref<128x1xf32, #tpu.memory_space<vmem>>, vector<128x1xf32>
    %156 = vector.broadcast %155 : vector<128x1xf32> to vector<128x256xf32>
    %157 = arith.addf %154, %156 : vector<128x256xf32>
    %158 = vector.extract_strided_slice %157 {offsets = [0, 0], sizes = [64, 256], strides = [1, 1]} : vector<128x256xf32> to vector<64x256xf32>
    %159 = vector.extract_strided_slice %157 {offsets = [64, 0], sizes = [64, 256], strides = [1, 1]} : vector<128x256xf32> to vector<64x256xf32>
    %cst_128 = arith.constant 1.000000e+00 : f32
    %160 = vector.broadcast %cst_128 : f32 to vector<64x256xf32>
    %161 = arith.addf %158, %160 : vector<64x256xf32>
    %162 = arith.mulf %139, %161 : vector<64x256xf32>
    %163 = arith.addf %162, %159 : vector<64x256xf32>
    %c0_129 = arith.constant 0 : index
    %c0_130 = arith.constant 0 : index
    %c0_131 = arith.constant 0 : index
    %164 = vector.load %arg21[%c0_129, %c0_130, %c0_131] : memref<1x64x256xf32, #tpu.memory_space<vmem>>, vector<1x64x256xf32>
    %165 = vector.shape_cast %164 : vector<1x64x256xf32> to vector<64x256xf32>
    %166 = vector.shape_cast %163 : vector<64x256xf32> to vector<1x64x256xf32>
    tpu.vector_store %arg21[%c0_129, %c0_130, %c0_131], %166 {strides = array<i32>} : memref<1x64x256xf32, #tpu.memory_space<vmem>>, vector<1x64x256xf32>,
    return
  }
  func.func @transform_0(%arg0: i32) -> (i32, i32, i32) {
    %c0_i32 = arith.constant 0 : i32
    %c0_i32_0 = arith.constant 0 : i32
    %c0_i32_1 = arith.constant 0 : i32
    return %arg0, %c0_i32, %c0_i32_0 : i32, i32, i32
  }
  func.func @transform_1(%arg0: i32) -> (i32, i32, i32) {
    %c0_i32 = arith.constant 0 : i32
    %c0_i32_0 = arith.constant 0 : i32
    %c0_i32_1 = arith.constant 0 : i32
    return %arg0, %c0_i32, %c0_i32_0 : i32, i32, i32
  }
  func.func @transform_2(%arg0: i32) -> (i32, i32) {
    %c0_i32 = arith.constant 0 : i32
    %c0_i32_0 = arith.constant 0 : i32
    %c0_i32_1 = arith.constant 0 : i32
    return %c0_i32, %c0_i32_0 : i32, i32
  }
  func.func @transform_3(%arg0: i32) -> (i32, i32) {
    %c0_i32 = arith.constant 0 : i32
    %c0_i32_0 = arith.constant 0 : i32
    %c0_i32_1 = arith.constant 0 : i32
    return %c0_i32, %c0_i32_0 : i32, i32
  }
  func.func @transform_4(%arg0: i32) -> (i32, i32) {
    %c0_i32 = arith.constant 0 : i32
    %c0_i32_0 = arith.constant 0 : i32
    %c0_i32_1 = arith.constant 0 : i32
    return %c0_i32, %c0_i32_0 : i32, i32
  }
  func.func @transform_5(%arg0: i32) -> (i32, i32) {
    %c0_i32 = arith.constant 0 : i32
    %c0_i32_0 = arith.constant 0 : i32
    %c0_i32_1 = arith.constant 0 : i32
    return %c0_i32, %c0_i32_0 : i32, i32
  }
  func.func @transform_6(%arg0: i32) -> (i32, i32) {
    %c0_i32 = arith.constant 0 : i32
    %c0_i32_0 = arith.constant 0 : i32
    %c0_i32_1 = arith.constant 0 : i32
    return %c0_i32, %c0_i32_0 : i32, i32
  }
  func.func @transform_7(%arg0: i32) -> (i32, i32) {
    %c0_i32 = arith.constant 0 : i32
    %c0_i32_0 = arith.constant 0 : i32
    %c0_i32_1 = arith.constant 0 : i32
    return %c0_i32, %c0_i32_0 : i32, i32
  }
  func.func @transform_8(%arg0: i32) -> (i32, i32) {
    %c0_i32 = arith.constant 0 : i32
    %c0_i32_0 = arith.constant 0 : i32
    %c0_i32_1 = arith.constant 0 : i32
    return %c0_i32, %c0_i32_0 : i32, i32
  }
  func.func @transform_9(%arg0: i32) -> (i32, i32) {
    %c0_i32 = arith.constant 0 : i32
    %c0_i32_0 = arith.constant 0 : i32
    %c0_i32_1 = arith.constant 0 : i32
    return %c0_i32, %c0_i32_0 : i32, i32
  }
  func.func @transform_10(%arg0: i32) -> (i32, i32) {
    %c0_i32 = arith.constant 0 : i32
    %c0_i32_0 = arith.constant 0 : i32
    %c0_i32_1 = arith.constant 0 : i32
    return %c0_i32, %c0_i32_0 : i32, i32
  }
  func.func @transform_11(%arg0: i32) -> (i32, i32) {
    %c0_i32 = arith.constant 0 : i32
    %c0_i32_0 = arith.constant 0 : i32
    %c0_i32_1 = arith.constant 0 : i32
    return %c0_i32, %c0_i32_0 : i32, i32
  }
  func.func @transform_12(%arg0: i32) -> (i32, i32) {
    %c0_i32 = arith.constant 0 : i32
    %c0_i32_0 = arith.constant 0 : i32
    %c0_i32_1 = arith.constant 0 : i32
    return %c0_i32, %c0_i32_0 : i32, i32
  }
  func.func @transform_13(%arg0: i32) -> (i32, i32) {
    %c0_i32 = arith.constant 0 : i32
    %c0_i32_0 = arith.constant 0 : i32
    %c0_i32_1 = arith.constant 0 : i32
    return %c0_i32, %c0_i32_0 : i32, i32
  }
  func.func @transform_14(%arg0: i32) -> (i32, i32) {
    %c0_i32 = arith.constant 0 : i32
    %c0_i32_0 = arith.constant 0 : i32
    %c0_i32_1 = arith.constant 0 : i32
    return %c0_i32, %c0_i32_0 : i32, i32
  }
  func.func @transform_15(%arg0: i32) -> (i32, i32) {
    %c0_i32 = arith.constant 0 : i32
    %c0_i32_0 = arith.constant 0 : i32
    %c0_i32_1 = arith.constant 0 : i32
    return %c0_i32, %c0_i32_0 : i32, i32
  }
  func.func @transform_16(%arg0: i32) -> (i32, i32) {
    %c0_i32 = arith.constant 0 : i32
    %c0_i32_0 = arith.constant 0 : i32
    %c0_i32_1 = arith.constant 0 : i32
    return %c0_i32, %c0_i32_0 : i32, i32
  }
  func.func @transform_17(%arg0: i32) -> (i32, i32) {
    %c0_i32 = arith.constant 0 : i32
    %c0_i32_0 = arith.constant 0 : i32
    %c0_i32_1 = arith.constant 0 : i32
    return %c0_i32, %c0_i32_0 : i32, i32
  }
  func.func @transform_18(%arg0: i32) -> (i32, i32) {
    %c0_i32 = arith.constant 0 : i32
    %c0_i32_0 = arith.constant 0 : i32
    %c0_i32_1 = arith.constant 0 : i32
    return %c0_i32, %c0_i32_0 : i32, i32
  }
  func.func @transform_19(%arg0: i32) -> (i32, i32) {
    %c0_i32 = arith.constant 0 : i32
    %c0_i32_0 = arith.constant 0 : i32
    %c0_i32_1 = arith.constant 0 : i32
    return %c0_i32, %c0_i32_0 : i32, i32
  }
  func.func @transform_20(%arg0: i32) -> (i32, i32, i32) {
    %c0_i32 = arith.constant 0 : i32
    %c0_i32_0 = arith.constant 0 : i32
    %c0_i32_1 = arith.constant 0 : i32
    return %arg0, %c0_i32, %c0_i32_0 : i32, i32, i32
  }
}

</mosaic_0001>

<bundles_post_ra>
// kernel: block_dt_forward.1
= control target key start
LH: loop header
LB: loop body
LE: loop exit
PB: predicated region body
PF: predicated region fallthrough
CT: control target
= control target key end

     0   :  { %s7795_s23 = smov 0   ;;  %s10975_s0 = inlined_call_operand.vmem [shape: bf16[2,64,256], index: 0, kind: input, shape index: {}]   ;;  %s10976_s1 = inlined_call_operand.vmem [shape: bf16[2,64,256], index: 1, kind: input, shape index: {}]   ;;  %s10977_s2 = inlined_call_operand.vmem [shape: bf16[1,256], index: 2, kind: input, shape index: {}]   ;;  %s10978_s3 = inlined_call_operand.vmem [shape: bf16[1,256], index: 3, kind: input, shape index: {}]   ;;  %s10979_s4 = inlined_call_operand.vmem [shape: bf16[64,576], index: 4, kind: input, shape index: {}]   ;;  %s10980_s5 = inlined_call_operand.vmem [shape: f32[64,1], index: 5, kind: input, shape index: {}]   ;;  %s10981_s6 = inlined_call_operand.vmem [shape: bf16[64,576], index: 6, kind: input, shape index: {}]   ;;  %s10982_s7 = inlined_call_operand.vmem [shape: f32[64,1], index: 7, kind: input, shape index: {}]   ;;  %s10983_s8 = inlined_call_operand.vmem [shape: f32[64,8], index: 8, kind: input, shape index: {}]   ;;  %s10984_s9 = inlined_call_operand.vmem [shape: f32[1,8], index: 9, kind: input, shape index: {}]   ;;  %s10985_s10 = inlined_call_operand.vmem [shape: f32[64,8], index: 10, kind: input, shape index: {}]   ;;  %s10986_s11 = inlined_call_operand.vmem [shape: f32[64,1], index: 11, kind: input, shape index: {}]   ;;  %s10987_s12 = inlined_call_operand.vmem [shape: bf16[8,64], index: 12, kind: input, shape index: {}]   ;;  %s10988_s13 = inlined_call_operand.vmem [shape: f32[8,1], index: 13, kind: input, shape index: {}]   ;;  %s10989_s14 = inlined_call_operand.vmem [shape: f32[8,1], index: 14, kind: input, shape index: {}]   ;;  %s10990_s15 = inlined_call_operand.<no memory space> [shape: f32[1,1], index: 15, kind: input, shape index: {}]   ;;  %s10991_s16 = inlined_call_operand.vmem [shape: bf16[64,64], index: 16, kind: input, shape index: {}]   ;;  %s10992_s17 = inlined_call_operand.vmem [shape: f32[64,1], index: 17, kind: input, shape index: {}]   ;;  %s10993_s18 = inlined_call_operand.vmem [shape: bf16[128,64], index: 18, kind: input, shape index: {}]   ;;  %s10994_s19 = inlined_call_operand.vmem [shape: f32[128,1], index: 19, kind: input, shape index: {}]   ;;  %s10995_s20 = inlined_call_operand.vmem [shape: f32[2,64,256], index: 20, kind: output, shape index: {}]  }
   0x1   :  { %11104 = sst [smem:[#allocation35_spill]] %s10975_s0  ;;  %v25_v0 = vstv %s10990_s15 }
   0x2   :  { %11105 = sst [smem:[#allocation36_spill]] %s10976_s1  ;;  %26 = vst [vmem:[#allocation4] sm:$0x1] %v25_v0 }
   0x3   :  { %11106 = sst [smem:[#allocation37_spill]] %s10977_s2 }
   0x4   :  { %11107 = sst [smem:[#allocation38_spill]] %s10978_s3 }
   0x5   :  { %11108 = sst [smem:[#allocation39_spill]] %s10979_s4 }
   0x6 LB: > { %s6462_s24 = sadd.s32 4294967295, %s7670_s23   ;;  %p6466_p0 = scmp.ge.s32.totalorder %s7670_s23, 1  ;;  %s7670_s23 = sphi %s7795_s23, %s32_s23  }
   0x7   : > { %p574_p1 = scmp.lt.s32.totalorder %s7670_s23, 3 }
   0x9   : > { %p575_p2 = pnand %p6466_p0, %p574_p1 }
   0xb   : > { %578 = sbr.rel (%p575_p2) target bundleno = 2395 (0x95b), region = 100 }
  0x10   : > { %p637_p3 = scmp.lt.s32.totalorder %s6462_s24, 1  ;;  %s11109_s15 = sld [smem:[#allocation37_spill]]  ;;  %vm680_vm0 = vcmask 273408   ;;  %v7673_v14 = vmov 0   ;;  %vm753_vm1 = vcmask 1043592   ;;  %vm754_vm2 = vcmask 1047556  }
  0x11   : > { %s11110_s28 = sld [smem:[#allocation35_spill]]  ;;  %s7672_s29 = smov 17   ;;  %684 = vst [vmem:[#allocation2 + $0x18] sm:$0xff] %v7673_v14  ;;  %7604 = vset.pattern.permute.xlu0 %v7673_v14  ;;  %7605 = vset.pattern.permute.xlu1 %v7673_v14  ;;  %vm728_vm3 = vcmask 138240   ;;  %vm757_vm4 = vcmask 134144   ;;  %vm7849_vm5 = vmor %vm754_vm2, %vm753_vm1  ;;  %v11114_v32 = vmov 0 }
  0x12   : > { %s11294_s24 = smov (!%p637_p3, %s6462_s24), 1  ;;  %s11111_s21 = sld [smem:[#allocation38_spill]]  ;;  %685 = vst.msk [vmem:[#allocation2 + $0x20] sm:$0xf] %vm680_vm0, %v7673_v14  ;;  %7606 = vset.pattern.permute.xlu2 %v7673_v14  ;;  %v11115_v32 = vsel %vm7849_vm5, 4294967295, %v11114_v32  ;;  %vm1201_vm6 = vcmask 130048  }
  0x13   : > { %s11031_s3 = sshll.u32 %s11294_s24, 6  ;;  %679 = vst [vmem:[#allocation2] sm:$0xff] %v7673_v14  ;;  %s7674_s1 = smov 16   ;;  %vm1013_vm7 = vcmask 15360   ;;  %vm1500_vm8 = vcmask 146432   ;;  %vm1686_vm9 = vcmask 261120  }
  0x14   : > { %681 = vst.msk [vmem:[#allocation2 + $0x8] sm:$0xf] %vm680_vm0, %v7673_v14  ;;  %s7675_s22 = smov 2   ;;  %s7676_s2 = smov 32   ;;  %vm1985_vm10 = vcmask 277504   ;;  %vm921_vm11 = vcmask 1043456  }
  0x15   : > { %682 = vst [vmem:[#allocation2 + $0xc] sm:$0xff] %v7673_v14  ;;  %s7677_s25 = smov 18   ;;  %s7679_s26 = smov 127   ;;  %vm923_vm12 = vcmask 1039360   ;;  %vm1311_vm13 = vcmask 916480   ;;  %vm1123_vm14 = vcmask 1031168  }
  0x16   : > { %v653_v1 = vld [vmem:[%s11109_s15] sm:$0x3]  ;;  %683 = vst.msk [vmem:[#allocation2 + $0x14] sm:$0xf] %vm680_vm0, %v7673_v14  ;;  %s7678_s15 = smov 34   ;;  %s11040_s27 = smov 112  }
  0x17   : > { %782 = vst [vmem:[#allocation1] ss:$9 sm:$0xff] %v653_v1  ;;  %s7814_s4 = scalar_lea.vmem %s11110_s28, %s11031_s3  ;;  %s7681_s28 = smov 126   ;;  %vm1610_vm15 = vcmask 900096   ;;  %vm1424_vm1 = vcmask 908288   ;;  %vm1796_vm2 = vcmask 785408  }
  0x18   : > { %v661_v2 = vld [vmem:[%s7814_s4 + $0x30] sm:$0xff]  ;;  %v659_v3 = vld [vmem:[%s7814_s4 + $0x20] sm:$0xff]  ;;  %v662_v10 = vld [vmem:[%s7814_s4 + $0x38] sm:$0xff]  ;;  %686 = vst [vmem:[#allocation2 + $0x24] sm:$0xff] %v7673_v14  ;;  %s11038_s30 = smov 110   ;;  %s7683_s0 = smov 95  }
  0x19   : > { %v657_v4 = vld [vmem:[%s7814_s4 + $0x10] sm:$0xff]  ;;  %716 = vrot.lane.b32.xlu0 %v661_v2, %s7672_s29  ;;  %712 = vrot.lane.b32.xlu1 %v659_v3, %s7672_s29  ;;  %v654_v5 = vld [vmem:[%s11111_s21] sm:$0x3]  ;;  %687 = vst.msk [vmem:[#allocation2 + $0x2c] sm:$0xf] %vm680_vm0, %v7673_v14  ;;  %s11034_s21 = smov 111  }
  0x1a   : > { %708 = vrot.lane.b32.xlu2 %v657_v4, %s7672_s29  ;;  %v660_v11 = vld [vmem:[%s7814_s4 + $0x28] sm:$0xff]  ;;  %v658_v15 = vld [vmem:[%s7814_s4 + $0x18] sm:$0xff]  ;;  %v655_v22 = vld [vmem:[%s7814_s4] sm:$0xff]  ;;  %688 = vst [vmem:[#allocation2 + $0x30] sm:$0xff] %v7673_v14  ;;  %s11232_s3 = smov 94  }
  0x1b   : > { %v656_v24 = vld [vmem:[%s7814_s4 + $0x8] sm:$0xff]  ;;  %689 = vst.msk [vmem:[#allocation2 + $0x38] sm:$0xf] %vm680_vm0, %v7673_v14 }
  0x1c   : > { %690 = vst [vmem:[#allocation2 + $0x3c] sm:$0xff] %v7673_v14 }
  0x1d   : > { %691 = vst.msk [vmem:[#allocation2 + $0x44] sm:$0xf] %vm680_vm0, %v7673_v14 }
  0x1e   : > { %v783_v6 = vld [vmem:[#allocation1] sm:$0xff]  ;;  %v784_v7 = vld [vmem:[#allocation1 + $0x9] sm:$0xff]  ;;  %692 = vst [vmem:[#allocation2 + $0x48] sm:$0xff] %v7673_v14 }
  0x1f   : > { %v785_v8 = vpack.i.b16 %v783_v6, %v783_v6  ;;  %v788_v9 = vpack.i.b16 %v784_v7, %v784_v7  ;;  %972 = vst [vmem:[#allocation1] ss:$9 sm:$0xff] %v654_v5 }
  0x20   : > { %693 = vst.msk [vmem:[#allocation2 + $0x50] sm:$0xf] %vm680_vm0, %v7673_v14 }
  0x21   : > { %v787_v12 = vperm.slane %v785_v8, 0  ;;  %v790_v13 = vperm.slane %v788_v9, 0  ;;  %718 = vrot.lane.b32.xlu0 %v662_v10, %s7672_s29  ;;  %714 = vrot.lane.b32.xlu1 %v660_v11, %s7672_s29  ;;  %694 = vst [vmem:[#allocation2 + $0x54] sm:$0xff] %v7673_v14 }
  0x22   : > { %710 = vrot.lane.b32.xlu2 %v658_v15, %s7672_s29  ;;  %695 = vst.msk [vmem:[#allocation2 + $0x5c] sm:$0xf] %vm680_vm0, %v7673_v14  ;;  %vm1909_vm0 = vcmask 777216  }
  0x23   : > { %v7833_v16 = vunpack.c.l.bf16 %v787_v12  ;;  %v7835_v17 = vunpack.c.l.bf16 %v790_v13  ;;  %11116 = vst [vmem:[#allocation7_spill] sm:$0xff] %v11115_v32 }
  0x25   : > { %11112 = vst [vmem:[#allocation5_spill] sm:$0xff] %v7833_v16  ;;  %v7579_v23 = vpack.i.bf16 %v7835_v17, %v7833_v16 }
  0x26   : > { %11113 = vst [vmem:[#allocation6_spill] sm:$0xff] %v7835_v17  ;;  %v973_v18 = vld [vmem:[#allocation1] sm:$0xff]  ;;  %v974_v19 = vld [vmem:[#allocation1 + $0x9] sm:$0xff] }
  0x27   : > { %v975_v20 = vpack.i.b16 %v973_v18, %v973_v18  ;;  %v978_v21 = vpack.i.b16 %v974_v19, %v974_v19 }
  0x29   : > { %v977_v25 = vperm.slane %v975_v20, 0  ;;  %v980_v26 = vperm.slane %v978_v21, 0  ;;  %704 = vrot.lane.b32.xlu0 %v655_v22, %s7672_s29  ;;  %706 = vrot.lane.b32.xlu1 %v656_v24, %s7672_s29 }
  0x2a   : > { %7580 = vrot.lane.b32.xlu2 %v7579_v23, %s7674_s1  ;;  %s11032_s1 = smov 96  }
  0x2b   : > { %v1005_v27 = vunpack.c.l.bf16 %v977_v25  ;;  %v1006_v28 = vunpack.c.l.bf16 %v980_v26 }
  0x2d   : > { %v7584_v29 = vpack.i.bf16 %v1006_v28, %v1005_v27 }
  0x31   : > { %7585 = vrot.lane.b32.xlu0 %v7584_v29, %s7675_s22  ;;  %s11036_s22 = smov 94  }
  0x32   : > { %7595 = vrot.lane.b32.xlu2 %v7579_v23, %s7676_s2  ;;  %s11235_s2 = smov 96  }
  0x39   : > { %7590 = vrot.lane.b32.xlu0 %v7584_v29, %s7677_s25 }
  0x3a   : > { %7600 = vrot.lane.b32.xlu2 %v7584_v29, %s7678_s15  ;;  %s11194_s15 = sld [smem:[#allocation39_spill]] }
  0x74   : > { %v709_v30 = vpop.permute.xlu2 %708 }
  0x75   : > { %v722_v31 = vrot.slane %v709_v30, 4 }
  0x77   : > { %v731_v33 = vsel %vm728_vm3, %v722_v31, %v709_v30  ;;  %762 = vst.msk [vmem:[#allocation2 + $0x20] sm:$0xf] %vm757_vm4, %v722_v31 }
  0x78   : > { %761 = vst.msk [vmem:[#allocation2 + $0x18] sm:$0xff] %vm7849_vm5, %v731_v33 }
  0x7c   : > { %v711_v34 = vpop.permute.xlu2 %710 }
  0x7d   : > { %v723_v35 = vrot.slane %v711_v34, 4 }
  0x7f   : > { %v732_v36 = vsel %vm728_vm3, %v723_v35, %v711_v34  ;;  %764 = vst.msk [vmem:[#allocation2 + $0x2c] sm:$0xf] %vm757_vm4, %v723_v35  ;;  %v7859_v37 = vld [vmem:[#allocation2 + $0x18] sm:$0xff] }
  0x80   : > { %763 = vst.msk [vmem:[#allocation2 + $0x24] sm:$0xff] %vm7849_vm5, %v732_v36  ;;  %v7864_v38 = vunpack.c.l.bf16 %v7859_v37  ;;  %v7867_v40 = vunpack.c.h.bf16 %v7859_v37 }
  0x82   : > { %v813_v59 = vmul.f32 %v7864_v38, %v7833_v16  ;;  %v814_v60 = vmul.f32 %v7867_v40, %v7835_v17 }
  0x84   : > { %v7581_v39 = vpop.permute.xlu2 %7580  ;;  %v827_v63 = vpack.c.bf16 %v814_v60, %v813_v59 }
  0x85   : > { %v7869_v41 = vunpack.i.h.bf16 %v7581_v39  ;;  %v7871_v42 = vunpack.i.l.bf16 %v7581_v39 }
  0x86   : > { %835 = vst [vmem:[#allocation3 + $0x10] sm:$0xff] %v827_v63 }
  0x87   : > { %11117 = vst [vmem:[#allocation8_spill] sm:$0xff] %v7871_v42  ;;  %v7873_v43 = vld [vmem:[#allocation2 + $0x24] sm:$0xff]  ;;  %v7877_v44 = vsel %vm1201_vm6, %v7871_v42, %v7869_v41  ;;  %v7881_v45 = vmul.f32 %v7871_v42, %v7864_v38  ;;  %vm2095_vm6 = vcmask 769024  }
  0x88   : > { %11118 = vst [vmem:[#allocation9_spill] sm:$0xff] %v7873_v43  ;;  %v7885_v46 = vmul.f32 %v7877_v44, %v7867_v40  ;;  %v7888_v47 = vunpack.c.l.bf16 %v7873_v43  ;;  %v7891_v48 = vunpack.c.h.bf16 %v7873_v43 }
  0x89   : > { %11119 = vst [vmem:[#allocation10_spill] sm:$0xff] %v7877_v44 }
  0x8a   : > { %v7897_v50 = vmul.f32 %v7871_v42, %v7888_v47  ;;  %v7901_v51 = vmul.f32 %v7877_v44, %v7891_v48  ;;  %v815_v61 = vmul.f32 %v7888_v47, %v7833_v16  ;;  %v816_v62 = vmul.f32 %v7891_v48, %v7835_v17 }
  0x8b   : > { %v717_v52 = vpop.permute.xlu0 %716  ;;  %v713_v53 = vpop.permute.xlu1 %712 }
  0x8c   : > { %v726_v54 = vrot.slane %v717_v52, 4  ;;  %v724_v55 = vrot.slane %v713_v53, 4  ;;  %v828_v0 = vpack.c.bf16 %v816_v62, %v815_v61 }
  0x8e   : > { %v735_v57 = vsel %vm728_vm3, %v726_v54, %v717_v52  ;;  %770 = vst.msk [vmem:[#allocation2 + $0x50] sm:$0xf] %vm757_vm4, %v726_v54  ;;  %v733_v58 = vsel %vm728_vm3, %v724_v55, %v713_v53  ;;  %v848_v54 = vld [vmem:[#allocation2 + $0x2c] sm:$0xf] }
  0x8f   : > { %769 = vst.msk [vmem:[#allocation2 + $0x48] sm:$0xff] %vm7849_vm5, %v735_v57 }
  0x90   : > { %765 = vst.msk [vmem:[#allocation2 + $0x30] sm:$0xff] %vm7849_vm5, %v733_v58 }
  0x91   : > { %766 = vst.msk [vmem:[#allocation2 + $0x38] sm:$0xf] %vm757_vm4, %v724_v55 }
  0x92   : > { %836 = vst [vmem:[#allocation3 + $0x18] sm:$0xff] %v828_v0  ;;  %v846_v0 = vld [vmem:[#allocation2 + $0x20] sm:$0xf] }
  0x93   : > { %v719_v1 = vpop.permute.xlu0 %718  ;;  %v715_v2 = vpop.permute.xlu1 %714 }
  0x94   : > { %v727_v3 = vrot.slane %v719_v1, 4  ;;  %v725_v4 = vrot.slane %v715_v2, 4 }
  0x95   : > { %v854_v5 = vld [vmem:[#allocation2 + $0x50] sm:$0xf] }
  0x96   : > { %v7921_v6 = vld [vmem:[#allocation2 + $0x48] sm:$0xff]  ;;  %v736_v7 = vsel %vm728_vm3, %v727_v3, %v719_v1  ;;  %772 = vst.msk [vmem:[#allocation2 + $0x5c] sm:$0xf] %vm757_vm4, %v727_v3  ;;  %v734_v8 = vsel %vm728_vm3, %v725_v4, %v715_v2  ;;  %899 = vrot.lane.b32.xlu2 %v854_v5, %s7679_s26 }
  0x97   : > { %v7927_v9 = vld [vmem:[#allocation2 + $0x30] sm:$0xff]  ;;  %771 = vst.msk [vmem:[#allocation2 + $0x54] sm:$0xff] %vm7849_vm5, %v736_v7  ;;  %v7932_v10 = vunpack.c.l.bf16 %v7921_v6  ;;  %v7937_v12 = vunpack.c.h.bf16 %v7921_v6 }
  0x98   : > { %11120 = vst [vmem:[#allocation11_spill] sm:$0xff] %v7927_v9  ;;  %v850_v11 = vld [vmem:[#allocation2 + $0x38] sm:$0xf]  ;;  %v7940_v13 = vunpack.c.l.bf16 %v7927_v9  ;;  %v7943_v14 = vunpack.c.h.bf16 %v7927_v9 }
  0x99   : > { %767 = vst.msk [vmem:[#allocation2 + $0x3c] sm:$0xff] %vm7849_vm5, %v734_v8  ;;  %891 = vrot.lane.b32.xlu0 %v850_v11, %s7679_s26  ;;  %v821_v21 = vmul.f32 %v7932_v10, %v7833_v16  ;;  %v822_v25 = vmul.f32 %v7937_v12, %v7835_v17 }
  0x9a   : > { %768 = vst.msk [vmem:[#allocation2 + $0x44] sm:$0xf] %vm757_vm4, %v725_v4  ;;  %v7949_v15 = vmul.f32 %v7871_v42, %v7940_v13  ;;  %v7953_v18 = vmul.f32 %v7877_v44, %v7943_v14  ;;  %v817_v27 = vmul.f32 %v7940_v13, %v7833_v16  ;;  %v818_v28 = vmul.f32 %v7943_v14, %v7835_v17 }
  0x9b   : > { %v705_v19 = vpop.permute.xlu0 %704  ;;  %v707_v20 = vpop.permute.xlu1 %706  ;;  %v831_v35 = vpack.c.bf16 %v822_v25, %v821_v21 }
  0x9c   : > { %v720_v22 = vrot.slane %v705_v19, 4  ;;  %v721_v23 = vrot.slane %v707_v20, 4  ;;  %v829_v36 = vpack.c.bf16 %v818_v28, %v817_v27 }
  0x9d   : > { %v856_v26 = vld [vmem:[#allocation2 + $0x5c] sm:$0xf]  ;;  %839 = vst [vmem:[#allocation3 + $0x30] sm:$0xff] %v831_v35 }
  0x9e   : > { %v7965_v29 = vld [vmem:[#allocation2 + $0x54] sm:$0xff]  ;;  %v729_v30 = vsel %vm728_vm3, %v720_v22, %v705_v19  ;;  %758 = vst.msk [vmem:[#allocation2 + $0x8] sm:$0xf] %vm757_vm4, %v720_v22  ;;  %903 = vrot.lane.b32.xlu1 %v856_v26, %s7679_s26  ;;  %v730_v31 = vsel %vm728_vm3, %v721_v23, %v707_v20 }
  0x9f   : > { %11121 = vst [vmem:[#allocation12_spill] sm:$0xff] %v7965_v29  ;;  %v7974_v33 = vunpack.c.l.bf16 %v7965_v29  ;;  %v7977_v34 = vunpack.c.h.bf16 %v7965_v29 }
  0xa0   : > { %756 = vst.msk [vmem:[#allocation2] sm:$0xff] %vm7849_vm5, %v729_v30  ;;  %v8005_v1 = vld [vmem:[#allocation2 + $0x3c] sm:$0xff] }
  0xa1   : > { %v852_v39 = vld [vmem:[#allocation2 + $0x44] sm:$0xf]  ;;  %759 = vst.msk [vmem:[#allocation2 + $0xc] sm:$0xff] %vm7849_vm5, %v730_v31  ;;  %v823_v52 = vmul.f32 %v7974_v33, %v7833_v16  ;;  %v824_v55 = vmul.f32 %v7977_v34, %v7835_v17  ;;  %v8027_v19 = vunpack.c.l.bf16 %v8005_v1  ;;  %v8030_v20 = vunpack.c.h.bf16 %v8005_v1 }
  0xa2   : > { %895 = vrot.lane.b32.xlu2 %v852_v39, %s7679_s26  ;;  %760 = vst.msk [vmem:[#allocation2 + $0x14] sm:$0xf] %vm757_vm4, %v721_v23 }
  0xa3   : > { %v7586_v53 = vpop.permute.xlu0 %7585  ;;  %837 = vst [vmem:[#allocation3 + $0x20] sm:$0xff] %v829_v36  ;;  %v832_v60 = vpack.c.bf16 %v824_v55, %v823_v52  ;;  %v1170_v36 = vld [vmem:[#allocation2 + $0x5c] sm:$0xf] }
  0xa4   : > { %v7987_v57 = vunpack.i.h.bf16 %v7586_v53  ;;  %v7989_v58 = vunpack.i.l.bf16 %v7586_v53  ;;  %11124 = vst [vmem:[#allocation15_spill] sm:$0xff] %v8005_v1 }
  0xa5   : > { %v842_v59 = vld [vmem:[#allocation2 + $0x8] sm:$0xf]  ;;  %840 = vst [vmem:[#allocation3 + $0x38] sm:$0xff] %v832_v60 }
  0xa6   : > { %11122 = vst [vmem:[#allocation13_spill] sm:$0xff] %v7989_v58  ;;  %887 = vrot.lane.b32.xlu1 %v848_v54, %s7679_s26  ;;  %875 = vrot.lane.b32.xlu0 %v842_v59, %s7679_s26  ;;  %v7995_v61 = vsel %vm1013_vm7, %v7989_v58, %v7987_v57  ;;  %v7999_v62 = vmul.f32 %v7989_v58, %v7974_v33  ;;  %vm2731_vm7 = vcmask 523264  }
  0xa7   : > { %11123 = vst [vmem:[#allocation14_spill] sm:$0xff] %v7995_v61  ;;  %v8003_v63 = vmul.f32 %v7977_v34, %v7995_v61  ;;  %v8010_v3 = vld [vmem:[#allocation2] sm:$0xff]  ;;  %v8016_v5 = vmul.f32 %v7989_v58, %v7932_v10  ;;  %v8020_v7 = vmul.f32 %v7937_v12, %v7995_v61  ;;  %v8024_v8 = vmul.f32 %v7989_v58, %v7864_v38 }
  0xa8   : > { %v8012_v4 = vld [vmem:[#allocation2 + $0xc] sm:$0xff]  ;;  %v8033_v21 = vunpack.c.l.bf16 %v8010_v3  ;;  %v8036_v22 = vunpack.c.h.bf16 %v8010_v3  ;;  %v8042_v25 = vmul.f32 %v7867_v40, %v7995_v61  ;;  %v8056_v30 = vmul.f32 %v7989_v58, %v8027_v19 }
  0xa9   : > { %v844_v26 = vld [vmem:[#allocation2 + $0x14] sm:$0xf]  ;;  %v8049_v27 = vunpack.c.l.bf16 %v8012_v4  ;;  %v8052_v28 = vunpack.c.h.bf16 %v8012_v4  ;;  %v8060_v31 = vmul.f32 %v8030_v20, %v7995_v61  ;;  %v8081_v59 = vmul.f32 %v7989_v58, %v7940_v13 }
  0xaa   : > { %883 = vrot.lane.b32.xlu2 %v846_v0, %s7679_s26  ;;  %v8085_v60 = vmul.f32 %v7943_v14, %v7995_v61  ;;  %v1194_v0 = vunpack.c.l.bf16 %v1170_v36  ;;  %v8091_v53 = vmul.f32 %v7989_v58, %v8033_v21  ;;  %v8101_v23 = vmul.f32 %v7989_v58, %v7888_v47 }
  0xab   : > { %v7591_v11 = vpop.permute.xlu0 %7590  ;;  %v8072_v54 = vmul.f32 %v7989_v58, %v8049_v27  ;;  %v8076_v55 = vmul.f32 %v8052_v28, %v7995_v61  ;;  %v8105_v36 = vmul.f32 %v7891_v48, %v7995_v61 }
  0xac   : > { %v8062_v35 = vunpack.i.h.bf16 %v7591_v11  ;;  %v8066_v52 = vunpack.i.l.bf16 %v7591_v11  ;;  %v1229_v48 = vmul.f32 %v7869_v41, %v1194_v0  ;;  %v819_v0 = vmul.f32 %v8027_v19, %v7833_v16 }
  0xae   : > { %897 = vrot.lane.b32.xlu1 %v7921_v6, %s7679_s26  ;;  %901 = vrot.lane.b32.xlu0 %v7965_v29, %s7679_s26  ;;  %11125 = vst [vmem:[#allocation16_spill] sm:$0xff] %v8062_v35  ;;  %v8111_v2 = vsel %vm1500_vm8, %v8066_v52, %v8062_v35  ;;  %v8117_v39 = vmul.f32 %v8066_v52, %v7974_v33 }
  0xaf   : > { %11126 = vst [vmem:[#allocation17_spill] sm:$0xff] %v8066_v52  ;;  %v8121_v47 = vmul.f32 %v8111_v2, %v7977_v34  ;;  %v8130_v11 = vmul.f32 %v8066_v52, %v7932_v10  ;;  %v8134_v24 = vmul.f32 %v8111_v2, %v7937_v12  ;;  %v8140_v49 = vmul.f32 %v8066_v52, %v8027_v19 }
  0xb0   : > { %11127 = vst [vmem:[#allocation18_spill] sm:$0xff] %v8111_v2  ;;  %v8152_v32 = vmul.f32 %v8066_v52, %v7940_v13  ;;  %v8156_v56 = vmul.f32 %v8111_v2, %v7943_v14  ;;  %v8166_v58 = vmul.f32 %v8066_v52, %v7864_v38  ;;  %v8170_v13 = vmul.f32 %v8111_v2, %v7867_v40  ;;  %v1156_v14 = vld [vmem:[#allocation2 + $0x8] sm:$0xf] }
  0xb1   : > { %11128 = vst [vmem:[#allocation19_spill] sm:$0xff] %v8117_v39  ;;  %v1164_v39 = vld [vmem:[#allocation2 + $0x38] sm:$0xf]  ;;  %v809_v29 = vmul.f32 %v8033_v21, %v7833_v16  ;;  %v810_v38 = vmul.f32 %v8036_v22, %v7835_v17  ;;  %v811_v40 = vmul.f32 %v8049_v27, %v7833_v16 }
  0xb2   : > { %879 = vrot.lane.b32.xlu2 %v844_v26, %s7679_s26  ;;  %v8095_v26 = vmul.f32 %v8036_v22, %v7995_v61  ;;  %11129 = vst [vmem:[#allocation20_spill] sm:$0xff] %v8121_v47  ;;  %v8144_v61 = vmul.f32 %v8111_v2, %v8030_v20 }
  0xb3   : > { %11130 = vst [vmem:[#allocation21_spill] sm:$0xff] %v8130_v11  ;;  %v825_v11 = vpack.c.bf16 %v810_v38, %v809_v29  ;;  %v8199_v38 = vld [vmem:[#allocation2 + $0x24] sm:$0xff] }
  0xb4   : > { %11131 = vst [vmem:[#allocation22_spill] sm:$0xff] %v8134_v24  ;;  %v1245_v24 = vpack.c.bf16 %v1229_v48, %v1229_v48  ;;  %v1185_v48 = vunpack.c.l.bf16 %v1164_v39  ;;  %v1173_v39 = vunpack.c.l.bf16 %v1156_v14 }
  0xb5   : > { %11132 = vst [vmem:[#allocation23_spill] sm:$0xff] %v8166_v58 }
  0xb6   : > { %893 = vrot.lane.b32.xlu1 %v8005_v1, %s7679_s26  ;;  %885 = vrot.lane.b32.xlu0 %v7873_v43, %s7679_s26  ;;  %v820_v43 = vmul.f32 %v8030_v20, %v7835_v17  ;;  %v1162_v1 = vld [vmem:[#allocation2 + $0x2c] sm:$0xf]  ;;  %11133 = vst [vmem:[#allocation24_spill] sm:$0xff] %v8170_v13 }
  0xb7   : > { %833 = vst [vmem:[#allocation3] sm:$0xff] %v825_v11  ;;  %v1225_v11 = vmul.f32 %v7877_v44, %v7937_v12 }
  0xb8   : > { %v830_v47 = vpack.c.bf16 %v820_v43, %v819_v0  ;;  %v812_v43 = vmul.f32 %v8052_v28, %v7835_v17  ;;  %11134 = vst [vmem:[#allocation25_spill] sm:$0xff] %v8199_v38 }
  0xba   : > { %889 = vrot.lane.b32.xlu2 %v7927_v9, %s7679_s26  ;;  %v1182_v9 = vunpack.c.l.bf16 %v1162_v1  ;;  %838 = vst [vmem:[#allocation3 + $0x28] sm:$0xff] %v830_v47  ;;  %v7596_v1 = vpop.permute.xlu2 %7595  ;;  %v1220_v47 = vmul.f32 %v7869_v41, %v1185_v48 }
  0xbb   : > { %v8207_v14 = vunpack.i.l.bf16 %v7596_v1 }
  0xbc   : > { %v1217_v0 = vmul.f32 %v7869_v41, %v1182_v9  ;;  %v1239_v9 = vpack.c.bf16 %v1220_v47, %v1220_v47 }
  0xbd   : > { %11137 = vst [vmem:[#allocation28_spill] sm:$0xff] %v8207_v14 }
  0xbe   : > { %881 = vrot.lane.b32.xlu1 %v7859_v37, %s7679_s26  ;;  %1292 = vrot.lane.b32.xlu0 %v1245_v24, %s11040_s27  ;;  %v1168_v37 = vld [vmem:[#allocation2 + $0x50] sm:$0xf]  ;;  %v826_v24 = vpack.c.bf16 %v812_v43, %v811_v40  ;;  %v1237_v2 = vpack.c.bf16 %v1217_v0, %v1217_v0  ;;  %v1166_v40 = vld [vmem:[#allocation2 + $0x44] sm:$0xf] }
  0xbf   : > { %v1191_v16 = vunpack.c.l.bf16 %v1168_v37  ;;  %v8203_v43 = vld [vmem:[#allocation2] sm:$0xff]  ;;  %v1188_v37 = vunpack.c.l.bf16 %v1166_v40 }
  0xc0   : > { %834 = vst [vmem:[#allocation3 + $0x8] sm:$0xff] %v826_v24  ;;  %v8211_v24 = vld [vmem:[#allocation2 + $0x3c] sm:$0xff] }
  0xc1   : > { %v1226_v29 = vmul.f32 %v7869_v41, %v1191_v16  ;;  %11135 = vst [vmem:[#allocation26_spill] sm:$0xff] %v8203_v43  ;;  %v11017_v16 = vunpack.c.l.bf16 %v8199_v38 }
  0xc2   : > { %873 = vrot.lane.b32.xlu2 %v8010_v3, %s7679_s26  ;;  %v1224_v3 = vmul.f32 %v7871_v42, %v7932_v10  ;;  %v7601_v48 = vpop.permute.xlu2 %7600  ;;  %v1160_v10 = vld [vmem:[#allocation2 + $0x20] sm:$0xf] }
  0xc3   : > { %v1243_v0 = vpack.c.bf16 %v1226_v29, %v1226_v29  ;;  %v8213_v47 = vunpack.i.h.bf16 %v7601_v48  ;;  %v8223_v17 = vunpack.i.l.bf16 %v7601_v48  ;;  %v1228_v48 = vmul.f32 %v7877_v44, %v7977_v34 }
  0xc4   : > { %v1242_v12 = vpack.c.bf16 %v1225_v11, %v1224_v3  ;;  %v1221_v3 = vmul.f32 %v7871_v42, %v8027_v19  ;;  %v1222_v11 = vmul.f32 %v7877_v44, %v8030_v20  ;;  %v8242_v19 = vmul.f32 %v8207_v14, %v11017_v16 }
  0xc5   : > { %11138 = vst [vmem:[#allocation29_spill] sm:$0xff] %v8213_v47  ;;  %v11141_v20 = vunpack.c.h.bf16 %v8199_v38  ;;  %v1227_v16 = vmul.f32 %v7871_v42, %v7974_v33  ;;  %v11146_v33 = vunpack.c.h.bf16 %v8211_v24  ;;  %v1179_v13 = vunpack.c.l.bf16 %v1160_v10 }
  0xc6   : > { %877 = vrot.lane.b32.xlu1 %v8012_v4, %s7679_s26  ;;  %1276 = vrot.lane.b32.xlu0 %v1237_v2, %s11040_s27  ;;  %v1208_v4 = vmul.f32 %v7869_v41, %v1173_v39  ;;  %v8205_v2 = vunpack.i.h.bf16 %v7596_v1  ;;  %v8216_v39 = vunpack.c.l.bf16 %v8203_v43  ;;  %v8221_v1 = vld [vmem:[#allocation2 + $0x30] sm:$0xff]  ;;  %11139 = vst [vmem:[#allocation30_spill] sm:$0xff] %v8223_v17  ;;  %v1240_v58 = vpack.c.bf16 %v1222_v11, %v1221_v3 }
  0xc7   : > { %v1244_v3 = vpack.c.bf16 %v1228_v48, %v1227_v16  ;;  %v11149_v16 = vpack.c.bf16 %v7885_v46, %v7881_v45  ;;  %v1209_v11 = vmul.f32 %v7871_v42, %v8049_v27 }
  0xc8   : > { %11136 = vst [vmem:[#allocation27_spill] sm:$0xff] %v8205_v2  ;;  %v1231_v29 = vpack.c.bf16 %v1208_v4, %v1208_v4  ;;  %v8233_v40 = vsel %vm1686_vm9, %v8207_v14, %v8205_v2  ;;  %v8309_v2 = vld [vmem:[#allocation2 + $0xc] sm:$0xff] }
  0xc9   : > { %11140 = vst [vmem:[#allocation31_spill] sm:$0xff] %v8233_v40  ;;  %v8247_v4 = vmul.f32 %v8233_v40, %v11141_v20  ;;  %v8263_v20 = vsel %vm1985_vm10, %v8223_v17, %v8213_v47  ;;  %v1476_v48 = vunpack.c.h.bf16 %v8309_v2 }
  0xca   : > { %1280 = vrot.lane.b32.xlu2 %v1239_v9, %s11040_s27  ;;  %v8219_v9 = vunpack.c.h.bf16 %v8203_v43  ;;  %11143 = vst [vmem:[#allocation33_spill] sm:$0xff] %v8263_v20  ;;  %v11144_v43 = vunpack.c.l.bf16 %v8211_v24  ;;  %v8279_v38 = vmul.f32 %v8263_v20, %v11146_v33  ;;  %v8295_v33 = vmul.f32 %v8223_v17, %v8216_v39 }
  0xcb   : > { %v8335_v46 = vmul.f32 %v8233_v40, %v1476_v48 }
  0xcc   : > { %v8274_v52 = vmul.f32 %v8223_v17, %v11144_v43  ;;  %v8301_v10 = vmul.f32 %v8263_v20, %v8219_v9 }
  0xce   : > { %1288 = vrot.lane.b32.xlu1 %v1243_v0, %s11040_s27  ;;  %1286 = vrot.lane.b32.xlu0 %v1242_v12, %s11040_s27  ;;  %v1223_v0 = vmul.f32 %v7869_v41, %v1188_v37  ;;  %v8253_v37 = vmul.f32 %v8207_v14, %v8216_v39  ;;  %v8257_v12 = vmul.f32 %v8233_v40, %v8219_v9 }
  0xcf   : > { %11145 = vst [vmem:[#allocation34_spill] sm:$0xff] %v8274_v52  ;;  %v964_v52 = vld [vmem:[#allocation2 + $0x38] sm:$0xf] }
  0xd0   : > { %11142 = vst [vmem:[#allocation32_spill] sm:$0xff] %v8253_v37  ;;  %v1241_v47 = vpack.c.bf16 %v1223_v0, %v1223_v0  ;;  %v11148_v37 = vunpack.c.h.bf16 %v8221_v1  ;;  %v1214_v0 = vmul.f32 %v7869_v41, %v1179_v13  ;;  %v1475_v13 = vunpack.c.l.bf16 %v8309_v2 }
  0xd2   : > { %1264 = vrot.lane.b32.xlu2 %v1231_v29, %s11040_s27  ;;  %v11147_v29 = vunpack.c.l.bf16 %v8221_v1  ;;  %v8291_v43 = vmul.f32 %v8263_v20, %v11148_v37  ;;  %v995_v37 = vunpack.c.l.bf16 %v964_v52  ;;  %v8330_v45 = vmul.f32 %v8207_v14, %v1475_v13  ;;  %v970_v52 = vld [vmem:[#allocation2 + $0x5c] sm:$0xf] }
  0xd4   : > { %v8284_v34 = vmul.f32 %v8223_v17, %v11147_v29  ;;  %v1158_v29 = vld [vmem:[#allocation2 + $0x14] sm:$0xf]  ;;  %v1032_v27 = vmul.f32 %v7987_v57, %v995_v37  ;;  %v11151_v37 = vpack.c.bf16 %v7953_v18, %v7949_v15  ;;  %v11153_v15 = vpack.c.bf16 %v8020_v7, %v8016_v5 }
  0xd5   : > { %v11155_v5 = vpack.c.bf16 %v8060_v31, %v8056_v30  ;;  %v11156_v30 = vpack.c.bf16 %v8076_v55, %v8072_v54 }
  0xd6   : > { %1284 = vrot.lane.b32.xlu1 %v1241_v47, %s11040_s27  ;;  %1282 = vrot.lane.b32.xlu0 %v1240_v58, %s11040_s27  ;;  %v1235_v47 = vpack.c.bf16 %v1214_v0, %v1214_v0  ;;  %v1176_v58 = vunpack.c.l.bf16 %v1158_v29  ;;  %v1210_v0 = vmul.f32 %v7877_v44, %v8052_v28  ;;  %v11150_v29 = vpack.c.bf16 %v7901_v51, %v7897_v50 }
  0xd7   : > { %v1004_v50 = vunpack.c.l.bf16 %v970_v52  ;;  %v1051_v51 = vpack.c.bf16 %v1032_v27, %v1032_v27  ;;  %v968_v52 = vld [vmem:[#allocation2 + $0x50] sm:$0xf] }
  0xd8   : > { %v1232_v28 = vpack.c.bf16 %v1210_v0, %v1209_v11  ;;  %v1206_v11 = vmul.f32 %v7871_v42, %v8033_v21  ;;  %v11152_v0 = vpack.c.bf16 %v8003_v63, %v7999_v62  ;;  %v1001_v18 = vunpack.c.l.bf16 %v968_v52  ;;  %v966_v63 = vld [vmem:[#allocation2 + $0x44] sm:$0xf] }
  0xd9   : > { %v11154_v62 = vpack.c.bf16 %v8042_v25, %v8024_v8 }
  0xda   : > { %1290 = vrot.lane.b32.xlu2 %v1244_v3, %s11040_s27  ;;  %v1211_v3 = vmul.f32 %v7869_v41, %v1176_v58  ;;  %v1717_v58 = vpack.c.bf16 %v8335_v46, %v8330_v45  ;;  %v11193_v45 = vpack.c.bf16 %v8301_v10, %v8295_v33 }
  0xde   : > { %1272 = vrot.lane.b32.xlu1 %v1235_v47, %s11040_s27  ;;  %1270 = vrot.lane.b32.xlu0 %v11149_v16, %s11040_s27  ;;  %v1233_v47 = vpack.c.bf16 %v1211_v3, %v1211_v3  ;;  %v1041_v16 = vmul.f32 %v7987_v57, %v1004_v50  ;;  %v1207_v3 = vmul.f32 %v7877_v44, %v8036_v22 }
  0xdf   : > { %v1038_v22 = vmul.f32 %v7987_v57, %v1001_v18 }
  0xe2   : > { %1274 = vrot.lane.b32.xlu2 %v11150_v29, %s11040_s27  ;;  %v1057_v29 = vpack.c.bf16 %v1041_v16, %v1041_v16  ;;  %v960_v16 = vld [vmem:[#allocation2 + $0x20] sm:$0xf] }
  0xe3   : > { %v989_v7 = vunpack.c.l.bf16 %v960_v16  ;;  %v956_v16 = vld [vmem:[#allocation2 + $0x8] sm:$0xf] }
  0xe5   : > { %v1026_v25 = vmul.f32 %v7987_v57, %v989_v7 }
  0xe6   : > { %1268 = vrot.lane.b32.xlu1 %v1233_v47, %s11040_s27  ;;  %1266 = vrot.lane.b32.xlu0 %v1232_v28, %s11040_s27  ;;  %v1230_v47 = vpack.c.bf16 %v1207_v3, %v1206_v11  ;;  %v962_v28 = vld [vmem:[#allocation2 + $0x2c] sm:$0xf] }
  0xe7   : > { %v992_v21 = vunpack.c.l.bf16 %v962_v28  ;;  %v1047_v52 = vpack.c.bf16 %v1026_v25, %v1026_v25  ;;  %v958_v28 = vld [vmem:[#allocation2 + $0x14] sm:$0xf] }
  0xea   : > { %1092 = vrot.lane.b32.xlu2 %v1051_v51, %s7681_s28  ;;  %v1029_v51 = vmul.f32 %v7987_v57, %v992_v21  ;;  %v986_v21 = vunpack.c.l.bf16 %v958_v28 }
  0xec   : > { %v1049_v11 = vpack.c.bf16 %v1029_v51, %v1029_v51  ;;  %v1023_v51 = vmul.f32 %v7987_v57, %v986_v21  ;;  %v1843_v21 = vld [vmem:[#allocation2 + $0x5c] sm:$0xf] }
  0xee   : > { %1278 = vrot.lane.b32.xlu1 %v11151_v37, %s11040_s27  ;;  %1104 = vrot.lane.b32.xlu0 %v1057_v29, %s7681_s28  ;;  %v1055_v29 = vpack.c.bf16 %v1038_v22, %v1038_v22  ;;  %v998_v37 = vunpack.c.l.bf16 %v966_v63  ;;  %v11157_v22 = vpack.c.bf16 %v8085_v60, %v8081_v59  ;;  %v1045_v59 = vpack.c.bf16 %v1023_v51, %v1023_v51 }
  0xef   : > { %v983_v60 = vunpack.c.l.bf16 %v956_v16 }
  0xf0   : > { %v8357_v27 = vpop.permute.xlu2 %899  ;;  %v1035_v8 = vmul.f32 %v7987_v57, %v998_v37 }
  0xf1   : > { %v1020_v25 = vmul.f32 %v7987_v57, %v983_v60 }
  0xf2   : > { %1102 = vrot.lane.b32.xlu2 %v11152_v0, %s7681_s28  ;;  %v1053_v0 = vpack.c.bf16 %v1035_v8, %v1035_v8 }
  0xf6   : > { %1262 = vrot.lane.b32.xlu1 %v1230_v47, %s11040_s27  ;;  %1098 = vrot.lane.b32.xlu0 %v11153_v15, %s7681_s28  ;;  %v1469_v47 = vld [vmem:[#allocation2 + $0x50] sm:$0xf] }
  0xf7   : > { %v1492_v31 = vunpack.c.l.bf16 %v1469_v47 }
  0xf9   : > { %v1525_v18 = vmul.f32 %v8062_v35, %v1492_v31  ;;  %v11161_v31 = vld [vmem:[#allocation19_spill] sm:$0xff] }
  0xfa   : > { %1082 = vrot.lane.b32.xlu2 %v11154_v62, %s7681_s28  ;;  %v11158_v62 = vpack.c.bf16 %v8095_v26, %v8091_v53  ;;  %v11159_v53 = vpack.c.bf16 %v8105_v36, %v8101_v23  ;;  %v11160_v36 = vld [vmem:[#allocation20_spill] sm:$0xff] }
  0xfb   : > { %v1542_v54 = vpack.c.bf16 %v1525_v18, %v1525_v18  ;;  %v11162_v28 = vpack.c.bf16 %v11160_v36, %v11161_v31  ;;  %v1467_v31 = vld [vmem:[#allocation2 + $0x44] sm:$0xf] }
  0xfc   : > { %v8369_v50 = vpop.permute.xlu2 %895 }
  0xfe   : > { %1100 = vrot.lane.b32.xlu1 %v1055_v29, %s7681_s28  ;;  %1094 = vrot.lane.b32.xlu0 %v11155_v5, %s7681_s28 }
 0x102   : > { %1088 = vrot.lane.b32.xlu2 %v1049_v11, %s7681_s28 }
 0x104   : > { %v8380_v3 = vpop.permute.xlu2 %883 }
 0x106   : > { %1096 = vrot.lane.b32.xlu1 %v1053_v0, %s7681_s28  ;;  %1084 = vrot.lane.b32.xlu0 %v1047_v52, %s7681_s28 }
 0x10a   : > { %1078 = vrot.lane.b32.xlu2 %v11156_v30, %s7681_s28  ;;  %v1043_v30 = vpack.c.bf16 %v1020_v25, %v1020_v25 }
 0x10b   : > { %v892_v63 = vpop.permute.xlu0 %891 }
 0x10c   : > { %v8388_v15 = vpop.permute.xlu2 %879  ;;  %v914_v29 = vrot.slane %v892_v63, 4 }
 0x10e   : > { %1090 = vrot.lane.b32.xlu1 %v11157_v22, %s7681_s28  ;;  %1074 = vrot.lane.b32.xlu0 %v11158_v62, %s7681_s28 }
 0x110   : > { %v904_v55 = vpop.permute.xlu1 %903 }
 0x111   : > { %v920_v63 = vrot.slane %v904_v55, 4  ;;  %v11164_v55 = vld [vmem:[#allocation21_spill] sm:$0xff] }
 0x112   : > { %1587 = vrot.lane.b32.xlu2 %v1542_v54, %s11038_s30 }
 0x114   : > { %v890_v37 = vpop.permute.xlu2 %889 }
 0x115   : > { %v913_v5 = vrot.slane %v890_v37, 4 }
 0x116   : > { %1086 = vrot.lane.b32.xlu1 %v11159_v53, %s7681_s28  ;;  %1080 = vrot.lane.b32.xlu0 %v1045_v59, %s7681_s28 }
 0x117   : > { %v931_v7 = vsel %vm921_vm11, %v913_v5, %v914_v29  ;;  %v1471_v5 = vld [vmem:[#allocation2 + $0x5c] sm:$0xf] }
 0x118   : > { %v932_v26 = vsel %vm923_vm12, %v890_v37, %v931_v7  ;;  %v888_v11 = vpop.permute.xlu1 %887  ;;  %v876_v8 = vpop.permute.xlu0 %875  ;;  %v1841_v7 = vld [vmem:[#allocation2 + $0x50] sm:$0xf] }
 0x119   : > { %951 = vst [vmem:[#allocation3 + $0x60] sm:$0xff] %v932_v26  ;;  %v906_v0 = vrot.slane %v876_v8, 4  ;;  %v1495_v26 = vunpack.c.l.bf16 %v1471_v5  ;;  %v1465_v5 = vld [vmem:[#allocation2 + $0x38] sm:$0xf] }
 0x11a   : > { %1884 = vrot.lane.b32.xlu2 %v7921_v6, %s7683_s0  ;;  %v918_v6 = vrot.slane %v8357_v27, 4  ;;  %v11163_v27 = vld [vmem:[#allocation22_spill] sm:$0xff] }
 0x11b   : > { %v11165_v53 = vpack.c.bf16 %v11163_v27, %v11164_v55 }
 0x11c   : > { %v874_v52 = vpop.permute.xlu2 %873 }
 0x11d   : > { %v905_v47 = vrot.slane %v874_v52, 4 }
 0x11e   : > { %1076 = vrot.lane.b32.xlu1 %v1043_v30, %s7681_s28  ;;  %1589 = vrot.lane.b32.xlu0 %v11162_v28, %s11038_s30  ;;  %v11166_v30 = vpack.c.bf16 %v8144_v61, %v8140_v49  ;;  %v11167_v49 = vpack.c.bf16 %v8156_v56, %v8152_v32  ;;  %v1486_v32 = vunpack.c.l.bf16 %v1465_v5 }
 0x11f   : > { %v922_v23 = vsel %vm921_vm11, %v905_v47, %v906_v0  ;;  %v1528_v0 = vmul.f32 %v8062_v35, %v1495_v26  ;;  %v912_v47 = vrot.slane %v888_v11, 4 }
 0x120   : > { %v924_v18 = vsel %vm923_vm12, %v874_v52, %v922_v23  ;;  %v898_v22 = vpop.permute.xlu1 %897  ;;  %v902_v62 = vpop.permute.xlu0 %901  ;;  %v916_v52 = vrot.slane %v8369_v50, 4 }
 0x121   : > { %947 = vst [vmem:[#allocation3 + $0x40] sm:$0xff] %v924_v18  ;;  %v917_v54 = vrot.slane %v898_v22, 4  ;;  %v919_v51 = vrot.slane %v902_v62, 4  ;;  %v1544_v50 = vpack.c.bf16 %v1528_v0, %v1528_v0 }
 0x122   : > { %1890 = vrot.lane.b32.xlu2 %v1843_v21, %s7683_s0 }
 0x123   : > { %v935_v16 = vsel %vm921_vm11, %v917_v54, %v918_v6  ;;  %v937_v37 = vsel %vm921_vm11, %v919_v51, %v920_v63  ;;  %v1489_v6 = vunpack.c.l.bf16 %v1467_v31  ;;  %v1837_v54 = vld [vmem:[#allocation2 + $0x38] sm:$0xf]  ;;  %v1519_v31 = vmul.f32 %v8062_v35, %v1486_v32 }
 0x124   : > { %v8421_v29 = vpop.permute.xlu2 %1280  ;;  %v936_v59 = vsel %vm923_vm12, %v898_v22, %v935_v16  ;;  %v938_v60 = vsel %vm923_vm12, %v902_v62, %v937_v37 }
 0x125   : > { %953 = vst [vmem:[#allocation3 + $0x70] sm:$0xff] %v936_v59  ;;  %v1522_v37 = vmul.f32 %v8062_v35, %v1489_v6  ;;  %v910_v59 = vrot.slane %v8380_v3, 4  ;;  %v11168_v3 = vld [vmem:[#allocation12_spill] sm:$0xff] }
 0x126   : > { %954 = vst [vmem:[#allocation3 + $0x78] sm:$0xff] %v938_v60  ;;  %1585 = vrot.lane.b32.xlu1 %v11165_v53, %s11038_s30  ;;  %1886 = vrot.lane.b32.xlu0 %v1841_v7, %s7683_s0 }
 0x127   : > { %v1540_v26 = vpack.c.bf16 %v1522_v37, %v1522_v37  ;;  %v1538_v37 = vpack.c.bf16 %v1519_v31, %v1519_v31 }
 0x128   : > { %v894_v8 = vpop.permute.xlu1 %893  ;;  %v886_v25 = vpop.permute.xlu0 %885 }
 0x129   : > { %v915_v23 = vrot.slane %v894_v8, 4  ;;  %v911_v36 = vrot.slane %v886_v25, 4 }
 0x12a   : > { %1581 = vrot.lane.b32.xlu2 %v11166_v30, %s11038_s30 }
 0x12b   : > { %v933_v28 = vsel %vm921_vm11, %v915_v23, %v916_v52  ;;  %v929_v21 = vsel %vm921_vm11, %v911_v36, %v912_v47  ;;  %v1463_v47 = vld [vmem:[#allocation2 + $0x2c] sm:$0xf] }
 0x12c   : > { %v8438_v18 = vpop.permute.xlu2 %1264  ;;  %v934_v22 = vsel %vm923_vm12, %v894_v8, %v933_v28  ;;  %v930_v62 = vsel %vm923_vm12, %v886_v25, %v929_v21  ;;  %v6611_v11 = vld [vmem:[#allocation3 + $0x70] sm:$0xf]  ;;  %v6603_v8 = vld [vmem:[#allocation3 + $0x60] sm:$0xf]  ;;  %v908_v28 = vrot.slane %v8388_v15, 4 }
 0x12d   : > { %952 = vst [vmem:[#allocation3 + $0x68] sm:$0xff] %v934_v22  ;;  %v7371_v63 = vld [vmem:[#allocation3 + $0x74] sm:$0xf0] }
 0x12e   : > { %950 = vst [vmem:[#allocation3 + $0x58] sm:$0xff] %v930_v62  ;;  %1591 = vrot.lane.b32.xlu1 %v1544_v50, %s11038_s30  ;;  %1577 = vrot.lane.b32.xlu0 %v11167_v49, %s11038_s30  ;;  %v6612_v61 = vor.u32 %v7371_v63, %v6611_v11  ;;  %v11169_v21 = vld [vmem:[#allocation24_spill] sm:$0xff]  ;;  %v11170_v22 = vld [vmem:[#allocation23_spill] sm:$0xff]  ;;  %v1483_v11 = vunpack.c.l.bf16 %v1463_v47 }
 0x12f   : > { %v11171_v62 = vpack.c.bf16 %v11169_v21, %v11170_v22  ;;  %v7363_v21 = vld [vmem:[#allocation3 + $0x34] sm:$0xf0] }
 0x130   : > { %2744 = vmatpush.bf16.msra.mxu0 %v6612_v61  ;;  %7540 = vmatpush.bf16.msra.mxu2 %v6612_v61  ;;  %v882_v51 = vpop.permute.xlu1 %881  ;;  %v1293_v16 = vpop.permute.xlu0 %1292  ;;  %v1516_v61 = vmul.f32 %v8062_v35, %v1483_v11  ;;  %v6579_v11 = vld [vmem:[#allocation3 + $0x30] sm:$0xf] }
 0x131   : > { %v909_v60 = vrot.slane %v882_v51, 4  ;;  %v1309_v7 = vrot.slane %v1293_v16, 4 }
 0x132   : > { %1878 = vrot.lane.b32.xlu2 %v1837_v54, %s7683_s0  ;;  %v1461_v54 = vld [vmem:[#allocation2 + $0x20] sm:$0xf]  ;;  %v1536_v32 = vpack.c.bf16 %v1516_v61, %v1516_v61  ;;  %v6580_v61 = vor.u32 %v7363_v21, %v6579_v11 }
 0x133   : > { %v927_v27 = vsel %vm921_vm11, %v909_v60, %v910_v59 }
 0x134   : > { %v1291_v55 = vpop.permute.xlu2 %1290  ;;  %v928_v56 = vsel %vm923_vm12, %v882_v51, %v927_v27  ;;  %v7369_v25 = vld [vmem:[#allocation3 + $0x64] sm:$0xf0]  ;;  %v1480_v27 = vunpack.c.l.bf16 %v1461_v54  ;;  %v6571_v54 = vld [vmem:[#allocation3 + $0x20] sm:$0xf] }
 0x135   : > { %v1308_v53 = vrot.slane %v1291_v55, 4  ;;  %949 = vst [vmem:[#allocation3 + $0x50] sm:$0xff] %v928_v56  ;;  %v6604_v0 = vor.u32 %v7369_v25, %v6603_v8  ;;  %v7367_v15 = vld [vmem:[#allocation3 + $0x54] sm:$0xf0] }
 0x136   : > { %1888 = vrot.lane.b32.xlu1 %v11168_v3, %s7683_s0  ;;  %1583 = vrot.lane.b32.xlu0 %v1540_v26, %s11038_s30  ;;  %v1513_v26 = vmul.f32 %v8062_v35, %v1480_v27  ;;  %v8488_v27 = vld [vmem:[#allocation2 + $0x18] sm:$0xff] }
 0x137   : > { %v1325_v52 = vsel %vm921_vm11, %v1308_v53, %v1309_v7  ;;  %2745 = vmatpush.bf16.msra.mxu0 %v6604_v0  ;;  %7541 = vmatpush.bf16.msra.mxu2 %v6604_v0  ;;  %v11172_v7 = vld [vmem:[#allocation15_spill] sm:$0xff] }
 0x138   : > { %v1326_v30 = vsel %vm1311_vm13, %v1291_v55, %v1325_v52  ;;  %v878_v23 = vpop.permute.xlu1 %877  ;;  %v1277_v36 = vpop.permute.xlu0 %1276  ;;  %v1534_v47 = vpack.c.bf16 %v1513_v26, %v1513_v26 }
 0x139   : > { %1342 = vst [vmem:[#allocation3 + $0xf8] sm:$0xff] %v1326_v30  ;;  %v907_v50 = vrot.slane %v878_v23, 4  ;;  %v1301_v6 = vrot.slane %v1277_v36, 4  ;;  %v6587_v30 = vld [vmem:[#allocation3 + $0x40] sm:$0xf] }
 0x13a   : > { %1569 = vrot.lane.b32.xlu2 %v11171_v62, %s11038_s30  ;;  %v1457_v36 = vld [vmem:[#allocation2 + $0x8] sm:$0xf] }
 0x13b   : > { %v925_v63 = vsel %vm921_vm11, %v907_v50, %v908_v28  ;;  %v11173_v28 = vld [vmem:[#allocation11_spill] sm:$0xff]  ;;  %v1474_v22 = vunpack.c.l.bf16 %v1457_v36  ;;  %v11179_v36 = vld [vmem:[#allocation18_spill] sm:$0xff] }
 0x13c   : > { %v1275_v49 = vpop.permute.xlu2 %1274  ;;  %v926_v51 = vsel %vm923_vm12, %v878_v23, %v925_v63  ;;  %v6595_v5 = vld [vmem:[#allocation3 + $0x50] sm:$0xf] }
 0x13d   : > { %v1300_v16 = vrot.slane %v1275_v49, 4  ;;  %948 = vst [vmem:[#allocation3 + $0x48] sm:$0xff] %v926_v51  ;;  %v6596_v59 = vor.u32 %v7367_v15, %v6595_v5  ;;  %v7361_v51 = vld [vmem:[#allocation3 + $0x24] sm:$0xf0]  ;;  %v1507_v5 = vmul.f32 %v8062_v35, %v1474_v22 }
 0x13e   : > { %1579 = vrot.lane.b32.xlu1 %v1538_v37, %s11038_s30  ;;  %1880 = vrot.lane.b32.xlu0 %v11172_v7, %s7683_s0  ;;  %v1839_v7 = vld [vmem:[#allocation2 + $0x44] sm:$0xf] }
 0x13f   : > { %v1317_v60 = vsel %vm921_vm11, %v1300_v16, %v1301_v6  ;;  %2746 = vmatpush.bf16.msra.mxu0 %v6596_v59  ;;  %7542 = vmatpush.bf16.msra.mxu2 %v6596_v59  ;;  %v11174_v6 = vld [vmem:[#allocation9_spill] sm:$0xff]  ;;  %v1530_v26 = vpack.c.bf16 %v1507_v5, %v1507_v5 }
 0x140   : > { %v1318_v55 = vsel %vm1311_vm13, %v1275_v49, %v1317_v60  ;;  %v1289_v56 = vpop.permute.xlu1 %1288  ;;  %v1287_v53 = vpop.permute.xlu0 %1286  ;;  %v7387_v60 = vld [vmem:[#allocation3 + $0xf4] sm:$0xf0] }
 0x141   : > { %1338 = vst [vmem:[#allocation3 + $0xd8] sm:$0xff] %v1318_v55  ;;  %v1307_v8 = vrot.slane %v1289_v56, 4  ;;  %v1306_v25 = vrot.slane %v1287_v53, 4  ;;  %v6572_v55 = vor.u32 %v7361_v51, %v6571_v54  ;;  %v6563_v56 = vld [vmem:[#allocation3 + $0x10] sm:$0xf] }
 0x142   : > { %1575 = vrot.lane.b32.xlu2 %v1536_v32, %s11038_s30 }
 0x143   : > { %v1323_v0 = vsel %vm921_vm11, %v1306_v25, %v1307_v8 }
 0x144   : > { %v8475_v52 = vpop.permute.xlu2 %1092  ;;  %v1324_v3 = vsel %vm1311_vm13, %v1287_v53, %v1323_v0  ;;  %v7365_v23 = vld [vmem:[#allocation3 + $0x44] sm:$0xf0]  ;;  %v7359_v53 = vld [vmem:[#allocation3 + $0x14] sm:$0xf0] }
 0x145   : > { %1341 = vst [vmem:[#allocation3 + $0xf0] sm:$0xff] %v1324_v3  ;;  %v6588_v31 = vor.u32 %v7365_v23, %v6587_v30  ;;  %v11175_v0 = vld [vmem:[#allocation25_spill] sm:$0xff]  ;;  %v6564_v22 = vor.u32 %v7359_v53, %v6563_v56 }
 0x146   : > { %1876 = vrot.lane.b32.xlu1 %v11173_v28, %s7683_s0  ;;  %1571 = vrot.lane.b32.xlu0 %v1534_v47, %s11038_s30  ;;  %v11176_v3 = vunpack.c.l.bf16 %v11175_v0  ;;  %v11177_v47 = vld [vmem:[#allocation17_spill] sm:$0xff]  ;;  %v11178_v23 = vunpack.c.h.bf16 %v11175_v0 }
 0x147   : > { %2747 = vmatpush.bf16.msra.mxu0 %v6588_v31  ;;  %7543 = vmatpush.bf16.msra.mxu2 %v6588_v31  ;;  %v1508_v5 = vmul.f32 %v11177_v47, %v1475_v13  ;;  %v1303_v13 = vrot.slane %v8421_v29, 4  ;;  %v1505_v0 = vmul.f32 %v11177_v47, %v8216_v39 }
 0x148   : > { %v1285_v62 = vpop.permute.xlu1 %1284  ;;  %v1283_v50 = vpop.permute.xlu0 %1282  ;;  %v1514_v30 = vmul.f32 %v11177_v47, %v11176_v3  ;;  %v1515_v31 = vmul.f32 %v11179_v36, %v11178_v23  ;;  %v1506_v3 = vmul.f32 %v11179_v36, %v8219_v9  ;;  %v9154_v47 = vld [vmem:[%s7814_s4 + $0x8] sm:$0xff] }
 0x149   : > { %v1305_v63 = vrot.slane %v1285_v62, 4  ;;  %v1304_v49 = vrot.slane %v1283_v50, 4  ;;  %v6555_v62 = vld [vmem:[#allocation3] sm:$0xf]  ;;  %11196 = vst [vmem:[#allocation19_spill] sm:$0xff] %v9154_v47 }
 0x14a   : > { %1872 = vrot.lane.b32.xlu2 %v11174_v6, %s7683_s0  ;;  %v1529_v9 = vpack.c.bf16 %v1506_v3, %v1505_v0  ;;  %v7383_v3 = vld [vmem:[#allocation3 + $0xd4] sm:$0xf0] }
 0x14b   : > { %v1321_v16 = vsel %vm921_vm11, %v1304_v49, %v1305_v63  ;;  %2748 = vmatpush.bf16.msra.mxu0 %v6580_v61  ;;  %7544 = vmatpush.bf16.msra.mxu2 %v6580_v61  ;;  %v1535_v49 = vpack.c.bf16 %v1515_v31, %v1514_v30  ;;  %v1835_v61 = vld [vmem:[#allocation2 + $0x2c] sm:$0xf] }
 0x14c   : > { %v8484_v37 = vpop.permute.xlu2 %1102  ;;  %v1322_v15 = vsel %vm1311_vm13, %v1283_v50, %v1321_v16  ;;  %v6675_v59 = vld [vmem:[#allocation3 + $0xf0] sm:$0xf]  ;;  %v7357_v50 = vld [vmem:[#allocation3 + $0x4] sm:$0xf0] }
 0x14d   : > { %1340 = vst [vmem:[#allocation3 + $0xe8] sm:$0xff] %v1322_v15  ;;  %v6676_v32 = vor.u32 %v7387_v60, %v6675_v59  ;;  %v6556_v54 = vor.u32 %v7357_v50, %v6555_v62  ;;  %v1509_v15 = vmul.f32 %v11179_v36, %v1476_v48  ;;  %v11180_v59 = vld [vmem:[#allocation26_spill] sm:$0xff]  ;;  %v1831_v48 = vld [vmem:[#allocation2 + $0x14] sm:$0xf]  ;;  %v1120_v30 = vrot.slane %v8484_v37, 4 }
 0x14e   : > { %1882 = vrot.lane.b32.xlu1 %v1839_v7, %s7683_s0  ;;  %1868 = vrot.lane.b32.xlu0 %v8488_v27, %s7683_s0 }
 0x14f   : > { %2749 = vmatpush.bf16.msra.mxu0 %v6572_v55  ;;  %7545 = vmatpush.bf16.msra.mxu2 %v6572_v55  ;;  %v1531_v53 = vpack.c.bf16 %v1509_v15, %v1508_v5  ;;  %v1295_v5 = vrot.slane %v8438_v18, 4 }
 0x150   : > { %2773 = vmatpush.bf16.msra.mxu1 %v6676_v32  ;;  %7548 = vmatpush.bf16.msra.mxu3 %v6676_v32  ;;  %v1273_v8 = vpop.permute.xlu1 %1272  ;;  %v1271_v25 = vpop.permute.xlu0 %1270 }
 0x151   : > { %v1299_v28 = vrot.slane %v1273_v8, 4  ;;  %v1298_v21 = vrot.slane %v1271_v25, 4 }
 0x152   : > { %1563 = vrot.lane.b32.xlu2 %v1530_v26, %s11038_s30  ;;  %v1833_v26 = vld [vmem:[#allocation2 + $0x20] sm:$0xf] }
 0x153   : > { %v1315_v11 = vsel %vm921_vm11, %v1298_v21, %v1299_v28  ;;  %2750 = vmatpush.bf16.msra.mxu0 %v6564_v22  ;;  %7546 = vmatpush.bf16.msra.mxu2 %v6564_v22  ;;  %v1459_v28 = vld [vmem:[#allocation2 + $0x14] sm:$0xf] }
 0x154   : > { %v8501_v6 = vpop.permute.xlu2 %1082  ;;  %v1316_v63 = vsel %vm1311_vm13, %v1271_v25, %v1315_v11  ;;  %v1477_v50 = vunpack.c.l.bf16 %v1459_v28  ;;  %v1655_v11 = vld [vmem:[#allocation2 + $0x50] sm:$0xf] }
 0x155   : > { %1337 = vst [vmem:[#allocation3 + $0xd0] sm:$0xff] %v1316_v63  ;;  %v1829_v63 = vld [vmem:[#allocation2 + $0x8] sm:$0xf] }
 0x156   : > { %1573 = vrot.lane.b32.xlu1 %v1535_v49, %s11038_s30  ;;  %1874 = vrot.lane.b32.xlu0 %v1835_v61, %s7683_s0  ;;  %v1678_v49 = vunpack.c.l.bf16 %v1655_v11  ;;  %v8536_v61 = vld [vmem:[#allocation2 + $0x54] sm:$0xff]  ;;  %v1358_v11 = vld [vmem:[#allocation2 + $0x5c] sm:$0xf] }
 0x157   : > { %2751 = vmatpush.bf16.msra.mxu0 %v6556_v54  ;;  %7547 = vmatpush.bf16.msra.mxu2 %v6556_v54 }
 0x158   : > { %v1269_v51 = vpop.permute.xlu1 %1268  ;;  %v1267_v16 = vpop.permute.xlu0 %1266 }
 0x159   : > { %v1297_v60 = vrot.slane %v1269_v51, 4  ;;  %v1296_v7 = vrot.slane %v1267_v16, 4 }
 0x15a   : > { %1860 = vrot.lane.b32.xlu2 %v11180_v59, %s7683_s0 }
 0x15b   : > { %v1313_v55 = vsel %vm921_vm11, %v1296_v7, %v1297_v60  ;;  %v11181_v60 = vld [vmem:[#allocation27_spill] sm:$0xff] }
 0x15c   : > { %v8515_v32 = vpop.permute.xlu2 %1088  ;;  %v1314_v56 = vsel %vm1311_vm13, %v1267_v16, %v1313_v55  ;;  %v1510_v16 = vmul.f32 %v8062_v35, %v1477_v50  ;;  %v1711_v7 = vmul.f32 %v11181_v60, %v1678_v49  ;;  %v1680_v50 = vunpack.c.h.bf16 %v8536_v61 }
 0x15d   : > { %1336 = vst [vmem:[#allocation3 + $0xc8] sm:$0xff] %v1314_v56 }
 0x15e   : > { %1870 = vrot.lane.b32.xlu1 %v1833_v26, %s7683_s0  ;;  %1565 = vrot.lane.b32.xlu0 %v1531_v53, %s11038_s30  ;;  %v1532_v56 = vpack.c.bf16 %v1510_v16, %v1510_v16  ;;  %v7385_v26 = vld [vmem:[#allocation3 + $0xe4] sm:$0xf0]  ;;  %v1713_v16 = vmul.f32 %v8233_v40, %v1680_v50 }
 0x160   : > { %v1279_v8 = vpop.permute.xlu1 %1278  ;;  %v1105_v25 = vpop.permute.xlu0 %1104 }
 0x161   : > { %v1302_v23 = vrot.slane %v1279_v8, 4  ;;  %v1121_v31 = vrot.slane %v1105_v25, 4 }
 0x162   : > { %1866 = vrot.lane.b32.xlu2 %v1831_v48, %s7683_s0  ;;  %v6659_v48 = vld [vmem:[#allocation3 + $0xd0] sm:$0xf] }
 0x163   : > { %v1319_v21 = vsel %vm921_vm11, %v1302_v23, %v1303_v13  ;;  %v1137_v29 = vsel %vm921_vm11, %v1120_v30, %v1121_v31  ;;  %v8547_v13 = vld [vmem:[#allocation2 + $0x48] sm:$0xff]  ;;  %v6660_v31 = vor.u32 %v7383_v3, %v6659_v48 }
 0x164   : > { %v8529_v22 = vpop.permute.xlu2 %1078  ;;  %v1320_v62 = vsel %vm1311_vm13, %v1279_v8, %v1319_v21  ;;  %v1138_v39 = vsel %vm1123_vm14, %v8484_v37, %v1137_v29  ;;  %v1728_v8 = vpack.c.bf16 %v1711_v7, %v1711_v7  ;;  %v1677_v3 = vunpack.c.h.bf16 %v8547_v13 }
 0x165   : > { %1339 = vst [vmem:[#allocation3 + $0xe0] sm:$0xff] %v1320_v62 }
 0x166   : > { %1154 = vst [vmem:[#allocation3 + $0xb8] sm:$0xff] %v1138_v39  ;;  %1561 = vrot.lane.b32.xlu1 %v1529_v9, %s11038_s30  ;;  %1862 = vrot.lane.b32.xlu0 %v1829_v63, %s7683_s0  ;;  %v7381_v39 = vld [vmem:[#allocation3 + $0xc4] sm:$0xf0]  ;;  %v1679_v9 = vunpack.c.l.bf16 %v8536_v61 }
 0x168   : > { %v1263_v54 = vpop.permute.xlu1 %1262  ;;  %v1099_v51 = vpop.permute.xlu0 %1098 }
 0x169   : > { %v1294_v37 = vrot.slane %v1263_v54, 4  ;;  %v1118_v30 = vrot.slane %v1099_v51, 4 }
 0x16a   : > { %1403 = vrot.lane.b32.xlu2 %v8536_v61, %s11034_s21 }
 0x16b   : > { %v1310_v15 = vsel %vm921_vm11, %v1294_v37, %v1295_v5  ;;  %v1110_v5 = vrot.slane %v8501_v6, 4 }
 0x16c   : > { %v8543_v59 = vpop.permute.xlu2 %1587  ;;  %v1312_v55 = vsel %vm1311_vm13, %v1263_v54, %v1310_v15  ;;  %v6667_v53 = vld [vmem:[#allocation3 + $0xe0] sm:$0xf] }
 0x16d   : > { %1335 = vst [vmem:[#allocation3 + $0xc0] sm:$0xff] %v1312_v55  ;;  %v6668_v18 = vor.u32 %v7385_v26, %v6667_v53  ;;  %v1676_v53 = vunpack.c.l.bf16 %v8547_v13 }
 0x16e   : > { %1567 = vrot.lane.b32.xlu1 %v1532_v56, %s11038_s30  ;;  %1399 = vrot.lane.b32.xlu0 %v8547_v13, %s11034_s21 }
 0x16f   : > { %2774 = vmatpush.bf16.msra.mxu1 %v6668_v18  ;;  %7549 = vmatpush.bf16.msra.mxu3 %v6668_v18 }
 0x170   : > { %v1101_v25 = vpop.permute.xlu1 %1100  ;;  %v1095_v0 = vpop.permute.xlu0 %1094 }
 0x171   : > { %v1119_v23 = vrot.slane %v1101_v25, 4  ;;  %v1116_v37 = vrot.slane %v1095_v0, 4  ;;  %v7379_v25 = vld [vmem:[#allocation3 + $0xb4] sm:$0xf0] }
 0x172   : > { %1773 = vrot.lane.b32.xlu2 %v1728_v8, %s11032_s1 }
 0x173   : > { %v1135_v28 = vsel %vm921_vm11, %v1118_v30, %v1119_v23  ;;  %2775 = vmatpush.bf16.msra.mxu1 %v6660_v31  ;;  %7550 = vmatpush.bf16.msra.mxu3 %v6660_v31  ;;  %v1356_v30 = vld [vmem:[#allocation2 + $0x50] sm:$0xf]  ;;  %v1354_v31 = vld [vmem:[#allocation2 + $0x44] sm:$0xf] }
 0x174   : > { %v8554_v21 = vpop.permute.xlu2 %1884  ;;  %v1136_v29 = vsel %vm1123_vm14, %v1099_v51, %v1135_v28  ;;  %v6651_v62 = vld [vmem:[#allocation3 + $0xc0] sm:$0xf]  ;;  %v1712_v51 = vmul.f32 %v8207_v14, %v1679_v9 }
 0x175   : > { %1153 = vst [vmem:[#allocation3 + $0xb0] sm:$0xff] %v1136_v29  ;;  %v6652_v63 = vor.u32 %v7381_v39, %v6651_v62  ;;  %v1710_v29 = vmul.f32 %v8233_v40, %v1677_v3  ;;  %v1115_v62 = vrot.slane %v8475_v52, 4 }
 0x176   : > { %1864 = vrot.lane.b32.xlu1 %v8309_v2, %s7683_s0  ;;  %1405 = vrot.lane.b32.xlu0 %v1358_v11, %s11034_s21  ;;  %v1729_v48 = vpack.c.bf16 %v1713_v16, %v1712_v51  ;;  %v1657_v11 = vld [vmem:[#allocation2 + $0x5c] sm:$0xf]  ;;  %v11183_v16 = vunpack.c.h.bf16 %v8211_v24 }
 0x177   : > { %2776 = vmatpush.bf16.msra.mxu1 %v6652_v63  ;;  %7551 = vmatpush.bf16.msra.mxu3 %v6652_v63  ;;  %v1681_v52 = vunpack.c.l.bf16 %v1657_v11 }
 0x178   : > { %v1097_v49 = vpop.permute.xlu1 %1096  ;;  %v1085_v54 = vpop.permute.xlu0 %1084 }
 0x179   : > { %v1117_v2 = vrot.slane %v1097_v49, 4  ;;  %v1111_v15 = vrot.slane %v1085_v54, 4  ;;  %v11182_v54 = vunpack.c.l.bf16 %v8211_v24 }
 0x17a   : > { %1391 = vrot.lane.b32.xlu2 %v8221_v1, %s11034_s21 }
 0x17b   : > { %v1133_v7 = vsel %vm921_vm11, %v1116_v37, %v1117_v2  ;;  %v1127_v55 = vsel %vm921_vm11, %v1110_v5, %v1111_v15  ;;  %v1706_v51 = vmul.f32 %v8207_v14, %v11182_v54  ;;  %v1707_v5 = vmul.f32 %v8233_v40, %v11183_v16  ;;  %v1352_v15 = vld [vmem:[#allocation2 + $0x38] sm:$0xf] }
 0x17c   : > { %v8573_v56 = vpop.permute.xlu2 %1890  ;;  %v1134_v26 = vsel %vm1123_vm14, %v1095_v0, %v1133_v7  ;;  %v1128_v18 = vsel %vm1123_vm14, %v8501_v6, %v1127_v55  ;;  %v6643_v8 = vld [vmem:[#allocation3 + $0xb0] sm:$0xf]  ;;  %v1709_v6 = vmul.f32 %v8207_v14, %v1676_v53 }
 0x17d   : > { %1152 = vst [vmem:[#allocation3 + $0xa8] sm:$0xff] %v1134_v26  ;;  %v6644_v23 = vor.u32 %v7379_v25, %v6643_v8  ;;  %v1725_v7 = vpack.c.bf16 %v1707_v5, %v1706_v51  ;;  %v11185_v8 = vunpack.c.h.bf16 %v8221_v1 }
 0x17e   : > { %1149 = vst [vmem:[#allocation3 + $0x90] sm:$0xff] %v1128_v18  ;;  %1401 = vrot.lane.b32.xlu1 %v1356_v30, %s11034_s21  ;;  %1775 = vrot.lane.b32.xlu0 %v1729_v48, %s11032_s1  ;;  %v1727_v2 = vpack.c.bf16 %v1710_v29, %v1709_v6  ;;  %v1714_v18 = vmul.f32 %v11181_v60, %v1681_v52  ;;  %v11184_v48 = vunpack.c.l.bf16 %v8221_v1  ;;  %v1653_v30 = vld [vmem:[#allocation2 + $0x44] sm:$0xf]  ;;  %v1348_v52 = vld [vmem:[#allocation2 + $0x20] sm:$0xf] }
 0x17f   : > { %2777 = vmatpush.bf16.msra.mxu1 %v6644_v23  ;;  %7552 = vmatpush.bf16.msra.mxu3 %v6644_v23  ;;  %v1704_v25 = vmul.f32 %v8233_v40, %v11185_v8  ;;  %v1113_v23 = vrot.slane %v8515_v32, 4  ;;  %v1675_v11 = vunpack.c.l.bf16 %v1653_v30 }
 0x180   : > { %v1091_v0 = vpop.permute.xlu1 %1090  ;;  %v1075_v28 = vpop.permute.xlu0 %1074  ;;  %v1703_v24 = vmul.f32 %v8207_v14, %v11184_v48  ;;  %v1730_v54 = vpack.c.bf16 %v1714_v18, %v1714_v18  ;;  %v1651_v18 = vld [vmem:[#allocation2 + $0x38] sm:$0xf] }
 0x181   : > { %v1114_v39 = vrot.slane %v1091_v0, 4 }
 0x182   : > { %1397 = vrot.lane.b32.xlu2 %v1354_v31, %s11034_s21  ;;  %v1108_v31 = vrot.slane %v8529_v22, 4  ;;  %v1723_v32 = vpack.c.bf16 %v1704_v25, %v1703_v24 }
 0x183   : > { %v1131_v63 = vsel %vm921_vm11, %v1114_v39, %v1115_v62 }
 0x184   : > { %v8591_v49 = vpop.permute.xlu2 %1581  ;;  %v1132_v37 = vsel %vm1123_vm14, %v1091_v0, %v1131_v63  ;;  %v7377_v16 = vld [vmem:[#allocation3 + $0xa4] sm:$0xf0] }
 0x185   : > { %1151 = vst [vmem:[#allocation3 + $0xa0] sm:$0xff] %v1132_v37  ;;  %v1664_v37 = vunpack.c.l.bf16 %v8488_v27 }
 0x186   : > { %1771 = vrot.lane.b32.xlu1 %v1727_v2, %s11032_s1  ;;  %1393 = vrot.lane.b32.xlu0 %v1352_v15, %s11034_s21  ;;  %v1665_v2 = vunpack.c.h.bf16 %v8488_v27 }
 0x187   : > { %v1697_v8 = vmul.f32 %v8207_v14, %v1664_v37 }
 0x188   : > { %v1087_v55 = vpop.permute.xlu1 %1086  ;;  %v1081_v26 = vpop.permute.xlu0 %1080  ;;  %v1698_v25 = vmul.f32 %v8233_v40, %v1665_v2  ;;  %v1647_v2 = vld [vmem:[#allocation2 + $0x20] sm:$0xf]  ;;  %v9145_v40 = vld [vmem:[%s7814_s4] sm:$0xff] }
 0x189   : > { %v1112_v0 = vrot.slane %v1087_v55, 4  ;;  %v1109_v6 = vrot.slane %v1081_v26, 4  ;;  %11195 = vst [vmem:[#allocation20_spill] sm:$0xff] %v9145_v40 }
 0x18a   : > { %1767 = vrot.lane.b32.xlu2 %v1725_v7, %s11032_s1  ;;  %v1708_v7 = vmul.f32 %v11181_v60, %v1675_v11  ;;  %v7647_v11 = vld [vmem:[#allocation2 + $0x3c] sm:$0xff] }
 0x18b   : > { %v1129_v29 = vsel %vm921_vm11, %v1112_v0, %v1113_v23  ;;  %v1125_v39 = vsel %vm921_vm11, %v1108_v31, %v1109_v6  ;;  %v6627_v31 = vld [vmem:[#allocation3 + $0x90] sm:$0xf]  ;;  %v1672_v6 = vunpack.c.l.bf16 %v1651_v18 }
 0x18c   : > { %v8613_v62 = vpop.permute.xlu2 %1878  ;;  %v1130_v1 = vsel %vm1123_vm14, %v1087_v55, %v1129_v29  ;;  %v1126_v63 = vsel %vm1123_vm14, %v8529_v22, %v1125_v39  ;;  %v6635_v51 = vld [vmem:[#allocation3 + $0xa0] sm:$0xf]  ;;  %v1106_v55 = vrot.slane %v1075_v28, 4  ;;  %v1726_v23 = vpack.c.bf16 %v1708_v7, %v1708_v7  ;;  %v1649_v29 = vld [vmem:[#allocation2 + $0x2c] sm:$0xf] }
 0x18d   : > { %1150 = vst [vmem:[#allocation3 + $0x98] sm:$0xff] %v1130_v1  ;;  %v6636_v5 = vor.u32 %v7377_v16, %v6635_v51  ;;  %v1719_v1 = vpack.c.bf16 %v1698_v25, %v1697_v8  ;;  %v1705_v16 = vmul.f32 %v11181_v60, %v1672_v6 }
 0x18e   : > { %1148 = vst [vmem:[#allocation3 + $0x88] sm:$0xff] %v1126_v63  ;;  %1777 = vrot.lane.b32.xlu1 %v1730_v54, %s11032_s1  ;;  %1763 = vrot.lane.b32.xlu0 %v1723_v32, %s11032_s1  ;;  %v1669_v63 = vunpack.c.l.bf16 %v1649_v29  ;;  %v1606_v54 = vrot.slane %v8543_v59, 4 }
 0x18f   : > { %2778 = vmatpush.bf16.msra.mxu1 %v6636_v5  ;;  %7553 = vmatpush.bf16.msra.mxu3 %v6636_v5  ;;  %v1724_v8 = vpack.c.bf16 %v1705_v16, %v1705_v16 }
 0x190   : > { %v1077_v15 = vpop.permute.xlu1 %1076  ;;  %v8623_v22 = vpop.permute.xlu0 %1589  ;;  %v1702_v59 = vmul.f32 %v11181_v60, %v1669_v63 }
 0x191   : > { %v1107_v26 = vrot.slane %v1077_v15, 4  ;;  %v1607_v63 = vrot.slane %v8623_v22, 4 }
 0x192   : > { %1385 = vrot.lane.b32.xlu2 %v1348_v52, %s11034_s21  ;;  %v1722_v29 = vpack.c.bf16 %v1702_v59, %v1702_v59  ;;  %v6597_v59 = vld [vmem:[#allocation3 + $0x58] sm:$0xf0] }
 0x193   : > { %v1122_v48 = vsel %vm921_vm11, %v1106_v55, %v1107_v26  ;;  %v7370_v55 = vld [vmem:[#allocation3 + $0x74] sm:$0xf]  ;;  %v6613_v26 = vld [vmem:[#allocation3 + $0x78] sm:$0xf0] }
 0x194   : > { %v8628_v24 = vpop.permute.xlu2 %1569  ;;  %v1124_v30 = vsel %vm1123_vm14, %v1075_v28, %v1122_v48  ;;  %v7375_v0 = vld [vmem:[#allocation3 + $0x94] sm:$0xf0]  ;;  %v1904_v28 = vrot.slane %v8554_v21, 4  ;;  %v6616_v6 = vor.u32 %v7370_v55, %v6613_v26 }
 0x195   : > { %1147 = vst [vmem:[#allocation3 + $0x80] sm:$0xff] %v1124_v30  ;;  %v6628_v39 = vor.u32 %v7375_v0, %v6627_v31  ;;  %v7373_v30 = vld [vmem:[#allocation3 + $0x84] sm:$0xf0] }
 0x196   : > { %1395 = vrot.lane.b32.xlu1 %v7647_v11, %s11034_s21  ;;  %1769 = vrot.lane.b32.xlu0 %v1726_v23, %s11032_s1  ;;  %v1666_v23 = vunpack.c.l.bf16 %v1647_v2  ;;  %v7648_v0 = vld [vmem:[#allocation2 + $0x24] sm:$0xff]  ;;  %v7366_v2 = vld [vmem:[#allocation3 + $0x54] sm:$0xf] }
 0x197   : > { %2779 = vmatpush.bf16.msra.mxu1 %v6628_v39  ;;  %7554 = vmatpush.bf16.msra.mxu3 %v6628_v39  ;;  %v6605_v39 = vld [vmem:[#allocation3 + $0x68] sm:$0xf0]  ;;  %v6600_v55 = vor.u32 %v7366_v2, %v6597_v59 }
 0x198   : > { %v1586_v32 = vpop.permute.xlu1 %1585  ;;  %v1887_v51 = vpop.permute.xlu0 %1886 }
 0x199   : > { %v1605_v5 = vrot.slane %v1586_v32, 4  ;;  %v1905_v37 = vrot.slane %v1887_v51, 4 }
 0x19a   : > { %1755 = vrot.lane.b32.xlu2 %v1719_v1, %s11032_s1  ;;  %v1699_v1 = vmul.f32 %v11181_v60, %v1666_v23  ;;  %v7364_v23 = vld [vmem:[#allocation3 + $0x44] sm:$0xf] }
 0x19b   : > { %v1622_v52 = vsel %vm921_vm11, %v1605_v5, %v1606_v54  ;;  %v1921_v7 = vsel %vm921_vm11, %v1904_v28, %v1905_v37  ;;  %v7368_v28 = vld [vmem:[#allocation3 + $0x64] sm:$0xf]  ;;  %v2011_v5 = vmul.f32 %v8223_v17, %v1679_v9  ;;  %v2012_v37 = vmul.f32 %v8263_v20, %v1680_v50  ;;  %v6589_v9 = vld [vmem:[#allocation3 + $0x48] sm:$0xf0] }
 0x19c   : > { %v8640_v15 = vpop.permute.xlu2 %1575  ;;  %v1623_v18 = vsel %vm1610_vm15, %v1586_v32, %v1622_v52  ;;  %v1922_v48 = vsel %vm1909_vm0, %v8554_v21, %v1921_v7  ;;  %v6619_v25 = vld [vmem:[#allocation3 + $0x80] sm:$0xf]  ;;  %v6608_v32 = vor.u32 %v7368_v28, %v6605_v39  ;;  %v1720_v7 = vpack.c.bf16 %v1699_v1, %v1699_v1  ;;  %v7362_v28 = vld [vmem:[#allocation3 + $0x34] sm:$0xf] }
 0x19d   : > { %1640 = vst [vmem:[#allocation3 + $0x170] sm:$0xff] %v1623_v18  ;;  %v6620_v31 = vor.u32 %v7373_v30, %v6619_v25  ;;  %v2028_v26 = vpack.c.bf16 %v2012_v37, %v2011_v5  ;;  %v2008_v50 = vmul.f32 %v8223_v17, %v1676_v53  ;;  %v6581_v53 = vld [vmem:[#allocation3 + $0x38] sm:$0xf0]  ;;  %v6573_v5 = vld [vmem:[#allocation3 + $0x28] sm:$0xf0] }
 0x19e   : > { %1939 = vst [vmem:[#allocation3 + $0x1f0] sm:$0xff] %v1922_v48  ;;  %1765 = vrot.lane.b32.xlu1 %v1724_v8, %s11032_s1  ;;  %1387 = vrot.lane.b32.xlu0 %v7648_v0, %s11034_s21  ;;  %v1956_v48 = vld [vmem:[#allocation2 + $0x5c] sm:$0xf]  ;;  %v1907_v8 = vrot.slane %v8573_v56, 4  ;;  %v1344_v37 = vld [vmem:[#allocation2 + $0x8] sm:$0xf] }
 0x19f   : > { %2780 = vmatpush.bf16.msra.mxu1 %v6620_v31  ;;  %7555 = vmatpush.bf16.msra.mxu3 %v6620_v31  ;;  %v6592_v31 = vor.u32 %v7364_v23, %v6589_v9  ;;  %v1980_v1 = vunpack.c.l.bf16 %v1956_v48 }
 0x1a0   : > { %v1592_v11 = vpop.permute.xlu1 %1591  ;;  %v8649_v21 = vpop.permute.xlu0 %1577 }
 0x1a1   : > { %v1608_v54 = vrot.slane %v1592_v11, 4  ;;  %v1601_v59 = vrot.slane %v8649_v21, 4 }
 0x1a2   : > { %1761 = vrot.lane.b32.xlu2 %v1722_v29, %s11032_s1 }
 0x1a3   : > { %2889 = vmatpush.bf16.msrb.mxu1 %v6616_v6  ;;  %v1624_v51 = vsel %vm921_vm11, %v1607_v63, %v1608_v54  ;;  %v1350_v63 = vld [vmem:[#allocation2 + $0x2c] sm:$0xf] }
 0x1a4   : > { %v8655_v16 = vpop.permute.xlu2 %1872  ;;  %v1625_v52 = vsel %vm1610_vm15, %v8623_v22, %v1624_v51  ;;  %v2009_v22 = vmul.f32 %v8263_v20, %v1677_v3  ;;  %v6739_v39 = vld [vmem:[#allocation3 + $0x170] sm:$0xf]  ;;  %v7360_v51 = vld [vmem:[#allocation3 + $0x24] sm:$0xf] }
 0x1a5   : > { %1641 = vst [vmem:[#allocation3 + $0x178] sm:$0xff] %v1625_v52  ;;  %v11186_v52 = vld [vmem:[#allocation29_spill] sm:$0xff]  ;;  %v6576_v9 = vor.u32 %v7360_v51, %v6573_v5 }
 0x1a6   : > { %1383 = vrot.lane.b32.xlu1 %v8488_v27, %s11034_s21  ;;  %1757 = vrot.lane.b32.xlu0 %v1720_v7, %s11032_s1  ;;  %v1603_v27 = vrot.slane %v8591_v49, 4  ;;  %v2026_v29 = vpack.c.bf16 %v2009_v22, %v2008_v50  ;;  %v2013_v7 = vmul.f32 %v11186_v52, %v1980_v1  ;;  %v6565_v50 = vld [vmem:[#allocation3 + $0x18] sm:$0xf0]  ;;  %v1597_v1 = vrot.slane %v8628_v24, 4 }
 0x1a7   : > { %2890 = vmatpush.bf16.msrb.mxu1 %v6608_v32  ;;  %v6584_v32 = vor.u32 %v7362_v28, %v6581_v53  ;;  %v6557_v53 = vld [vmem:[#allocation3 + $0x8] sm:$0xf0]  ;;  %v1643_v28 = vld [vmem:[#allocation2 + $0x8] sm:$0xf] }
 0x1a8   : > { %v1889_v18 = vpop.permute.xlu1 %1888  ;;  %v1584_v61 = vpop.permute.xlu0 %1583  ;;  %v2029_v48 = vpack.c.bf16 %v2013_v7, %v2013_v7 }
 0x1a9   : > { %v1906_v25 = vrot.slane %v1889_v18, 4  ;;  %v1604_v30 = vrot.slane %v1584_v61, 4  ;;  %v7358_v61 = vld [vmem:[#allocation3 + $0x14] sm:$0xf] }
 0x1aa   : > { %2074 = vrot.lane.b32.xlu2 %v2028_v26, %s11036_s22  ;;  %v1954_v26 = vld [vmem:[#allocation2 + $0x50] sm:$0xf] }
 0x1ab   : > { %2891 = vmatpush.bf16.msrb.mxu1 %v6600_v55  ;;  %v1923_v0 = vsel %vm921_vm11, %v1906_v25, %v1907_v8  ;;  %v1620_v13 = vsel %vm921_vm11, %v1603_v27, %v1604_v30  ;;  %v6803_v8 = vld [vmem:[#allocation3 + $0x1f0] sm:$0xf]  ;;  %v1977_v25 = vunpack.c.l.bf16 %v1954_v26  ;;  %v1645_v30 = vld [vmem:[#allocation2 + $0x14] sm:$0xf] }
 0x1ac   : > { %v8678_v6 = vpop.permute.xlu2 %1563  ;;  %v1924_v3 = vsel %vm1909_vm0, %v1889_v18, %v1923_v0  ;;  %v1621_v56 = vsel %vm1610_vm15, %v8591_v49, %v1620_v13  ;;  %v7403_v11 = vld [vmem:[#allocation3 + $0x174] sm:$0xf0]  ;;  %v11187_v0 = vpack.c.bf16 %v8247_v4, %v8242_v19  ;;  %v6568_v13 = vor.u32 %v7358_v61, %v6565_v50 }
 0x1ad   : > { %1940 = vst [vmem:[#allocation3 + $0x1f8] sm:$0xff] %v1924_v3  ;;  %v6740_v54 = vor.u32 %v7403_v11, %v6739_v39  ;;  %v1663_v3 = vunpack.c.l.bf16 %v1645_v30  ;;  %v2010_v39 = vmul.f32 %v11186_v52, %v1977_v25  ;;  %v1901_v11 = vrot.slane %v8613_v62, 4  ;;  %v11188_v19 = vld [vmem:[#allocation32_spill] sm:$0xff] }
 0x1ae   : > { %1639 = vst [vmem:[#allocation3 + $0x168] sm:$0xff] %v1621_v56  ;;  %1389 = vrot.lane.b32.xlu1 %v1350_v63, %s11034_s21  ;;  %2070 = vrot.lane.b32.xlu0 %v2026_v29, %s11036_s22  ;;  %v11189_v4 = vpack.c.bf16 %v8257_v12, %v11188_v19  ;;  %v1952_v19 = vld [vmem:[#allocation2 + $0x44] sm:$0xf] }
 0x1af   : > { %2892 = vmatpush.bf16.msrb.mxu1 %v6592_v31  ;;  %2802 = vmatpush.bf16.msrb.mxu2 %v6740_v54  ;;  %v2027_v7 = vpack.c.bf16 %v2010_v39, %v2010_v39 }
 0x1b0   : > { %v1580_v49 = vpop.permute.xlu1 %1579  ;;  %v8686_v2 = vpop.permute.xlu0 %1880 }
 0x1b1   : > { %v1602_v55 = vrot.slane %v1580_v49, 4 }
 0x1b2   : > { %1377 = vrot.lane.b32.xlu2 %v1344_v37, %s11034_s21  ;;  %v1696_v37 = vmul.f32 %v11181_v60, %v1663_v3  ;;  %v1600_v3 = vrot.slane %v8640_v15, 4 }
 0x1b3   : > { %2893 = vmatpush.bf16.msrb.mxu1 %v6584_v32  ;;  %v1618_v18 = vsel %vm921_vm11, %v1601_v59, %v1602_v55  ;;  %v1660_v55 = vunpack.c.l.bf16 %v1643_v28 }
 0x1b4   : > { %v1619_v22 = vsel %vm1610_vm15, %v8649_v21, %v1618_v18  ;;  %v7419_v27 = vld [vmem:[#allocation3 + $0x1f4] sm:$0xf0]  ;;  %v8694_v23 = vpop.permute.xlu2 %1860  ;;  %v7356_v21 = vld [vmem:[#allocation3 + $0x4] sm:$0xf]  ;;  %v1718_v61 = vpack.c.bf16 %v1696_v37, %v1696_v37 }
 0x1b5   : > { %1638 = vst [vmem:[#allocation3 + $0x160] sm:$0xff] %v1619_v22  ;;  %v6804_v31 = vor.u32 %v7419_v27, %v6803_v8  ;;  %v6560_v32 = vor.u32 %v7356_v21, %v6557_v53  ;;  %v7401_v12 = vld [vmem:[#allocation3 + $0x164] sm:$0xf0] }
 0x1b6   : > { %1759 = vrot.lane.b32.xlu1 %v11187_v0, %s11032_s1  ;;  %2076 = vrot.lane.b32.xlu0 %v2029_v48, %s11036_s22  ;;  %v1902_v48 = vrot.slane %v8686_v2, 4  ;;  %v7650_v0 = vld [vmem:[#allocation2] sm:$0xff] }
 0x1b7   : > { %2894 = vmatpush.bf16.msrb.mxu1 %v6576_v9  ;;  %2831 = vmatpush.bf16.msrb.mxu3 %v6804_v31  ;;  %v7649_v9 = vld [vmem:[#allocation2 + $0xc] sm:$0xff]  ;;  %v1946_v31 = vld [vmem:[#allocation2 + $0x20] sm:$0xf] }
 0x1b8   : > { %v1877_v56 = vpop.permute.xlu1 %1876  ;;  %v1572_v29 = vpop.permute.xlu0 %1571 }
 0x1b9   : > { %v1900_v63 = vrot.slane %v1877_v56, 4  ;;  %v1598_v54 = vrot.slane %v1572_v29, 4 }
 0x1ba   : > { %1747 = vrot.lane.b32.xlu2 %v11189_v4, %s11032_s1 }
 0x1bb   : > { %2895 = vmatpush.bf16.msrb.mxu1 %v6568_v13  ;;  %v1917_v51 = vsel %vm921_vm11, %v1900_v63, %v1901_v11  ;;  %v1614_v5 = vsel %vm921_vm11, %v1597_v1, %v1598_v54  ;;  %v1965_v13 = vunpack.c.l.bf16 %v1946_v31 }
 0x1bc   : > { %v1918_v49 = vsel %vm1909_vm0, %v1877_v56, %v1917_v51  ;;  %v1615_v62 = vsel %vm1610_vm15, %v8628_v24, %v1614_v5  ;;  %v6731_v59 = vld [vmem:[#allocation3 + $0x160] sm:$0xf]  ;;  %v8716_v18 = vpop.permute.xlu2 %1866  ;;  %v1693_v24 = vmul.f32 %v11181_v60, %v1660_v55  ;;  %v1898_v56 = vrot.slane %v8655_v16, 4 }
 0x1bd   : > { %1937 = vst [vmem:[#allocation3 + $0x1e0] sm:$0xff] %v1918_v49  ;;  %v6732_v26 = vor.u32 %v7401_v12, %v6731_v59  ;;  %v1998_v54 = vmul.f32 %v11186_v52, %v1965_v13  ;;  %v1974_v5 = vunpack.c.l.bf16 %v1952_v19  ;;  %v11192_v49 = vpack.c.bf16 %v8291_v43, %v8284_v34  ;;  %v1950_v12 = vld [vmem:[#allocation2 + $0x38] sm:$0xf] }
 0x1be   : > { %1636 = vst [vmem:[#allocation3 + $0x150] sm:$0xff] %v1615_v62  ;;  %2072 = vrot.lane.b32.xlu1 %v2027_v7, %s11036_s22  ;;  %1379 = vrot.lane.b32.xlu0 %v7649_v9, %s11034_s21  ;;  %v1716_v30 = vpack.c.bf16 %v1693_v24, %v1693_v24  ;;  %v1947_v9 = vld [vmem:[#allocation2 + $0x24] sm:$0xff]  ;;  %v1971_v24 = vunpack.c.l.bf16 %v1950_v12  ;;  %v1945_v13 = vld [vmem:[#allocation2 + $0x18] sm:$0xff]  ;;  %v1948_v12 = vld [vmem:[#allocation2 + $0x2c] sm:$0xf] }
 0x1bf   : > { %2896 = vmatpush.bf16.msrb.mxu1 %v6560_v32  ;;  %2803 = vmatpush.bf16.msrb.mxu2 %v6732_v26  ;;  %v2019_v62 = vpack.c.bf16 %v1998_v54, %v1998_v54  ;;  %v1964_v19 = vunpack.c.h.bf16 %v1945_v13 }
 0x1c0   : > { %v1883_v50 = vpop.permute.xlu1 %1882  ;;  %v1869_v22 = vpop.permute.xlu0 %1868 }
 0x1c1   : > { %v1903_v8 = vrot.slane %v1883_v50, 4  ;;  %v1896_v55 = vrot.slane %v1869_v22, 4 }
 0x1c2   : > { %1753 = vrot.lane.b32.xlu2 %v1718_v61, %s11032_s1 }
 0x1c3   : > { %v1919_v27 = vsel %vm921_vm11, %v1902_v48, %v1903_v8 }
 0x1c4   : > { %v1920_v25 = vsel %vm1909_vm0, %v8686_v2, %v1919_v27  ;;  %v8728_v29 = vpop.permute.xlu2 %1403  ;;  %v11190_v2 = vld [vmem:[#allocation34_spill] sm:$0xff]  ;;  %v6795_v32 = vld [vmem:[#allocation3 + $0x1e0] sm:$0xf]  ;;  %v1944_v27 = vld [vmem:[#allocation2 + $0x14] sm:$0xf] }
 0x1c5   : > { %1938 = vst [vmem:[#allocation3 + $0x1e8] sm:$0xff] %v1920_v25  ;;  %v11191_v39 = vpack.c.bf16 %v8279_v38, %v11190_v2  ;;  %v1346_v38 = vld [vmem:[#allocation2 + $0x14] sm:$0xf]  ;;  %v6723_v48 = vld [vmem:[#allocation3 + $0x150] sm:$0xf]  ;;  %v1966_v25 = vunpack.c.l.bf16 %v1947_v9 }
 0x1c6   : > { %1375 = vrot.lane.b32.xlu1 %v7650_v0, %s11034_s21  ;;  %1749 = vrot.lane.b32.xlu0 %v1716_v30, %s11032_s1  ;;  %v1967_v30 = vunpack.c.h.bf16 %v1947_v9  ;;  %v1962_v0 = vunpack.c.l.bf16 %v1944_v27  ;;  %v1942_v2 = vld [vmem:[#allocation2 + $0x8] sm:$0xf]  ;;  %v1895_v27 = vrot.slane %v8716_v18, 4 }
 0x1c8   : > { %v1574_v21 = vpop.permute.xlu1 %1573  ;;  %v1875_v53 = vpop.permute.xlu0 %1874  ;;  %v1995_v54 = vmul.f32 %v11186_v52, %v1962_v0 }
 0x1c9   : > { %v1599_v11 = vrot.slane %v1574_v21, 4  ;;  %v1899_v1 = vrot.slane %v1875_v53, 4  ;;  %v2004_v53 = vmul.f32 %v11186_v52, %v1971_v24 }
 0x1ca   : > { %2066 = vrot.lane.b32.xlu2 %v11191_v39, %s11036_s22  ;;  %v1594_v39 = vrot.slane %v8678_v6, 4 }
 0x1cb   : > { %v1616_v4 = vsel %vm921_vm11, %v1599_v11, %v1600_v3  ;;  %v1915_v63 = vsel %vm921_vm11, %v1898_v56, %v1899_v1  ;;  %v1999_v3 = vmul.f32 %v8223_v17, %v1966_v25  ;;  %v2000_v56 = vmul.f32 %v8263_v20, %v1967_v30 }
 0x1cc   : > { %v1617_v15 = vsel %vm1610_vm15, %v1574_v21, %v1616_v4  ;;  %v1916_v28 = vsel %vm1909_vm0, %v8655_v16, %v1915_v63  ;;  %v7417_v51 = vld [vmem:[#allocation3 + $0x1e4] sm:$0xf0]  ;;  %v2007_v16 = vmul.f32 %v11186_v52, %v1974_v5  ;;  %v8749_v61 = vpop.permute.xlu2 %1773  ;;  %v1892_v11 = vrot.slane %v8694_v23, 4 }
 0x1cd   : > { %1637 = vst [vmem:[#allocation3 + $0x158] sm:$0xff] %v1617_v15  ;;  %v6796_v37 = vor.u32 %v7417_v51, %v6795_v32  ;;  %v1963_v1 = vunpack.c.l.bf16 %v1945_v13  ;;  %v1959_v15 = vunpack.c.l.bf16 %v1942_v2  ;;  %v2023_v32 = vpack.c.bf16 %v2004_v53, %v2004_v53  ;;  %v1943_v13 = vld [vmem:[#allocation2 + $0xc] sm:$0xff] }
 0x1ce   : > { %1936 = vst [vmem:[#allocation3 + $0x1d8] sm:$0xff] %v1916_v28  ;;  %1381 = vrot.lane.b32.xlu1 %v1346_v38, %s11034_s21  ;;  %2062 = vrot.lane.b32.xlu0 %v11192_v49, %s11036_s22  ;;  %v2025_v43 = vpack.c.bf16 %v2007_v16, %v2007_v16  ;;  %v2020_v51 = vpack.c.bf16 %v2000_v56, %v1999_v3 }
 0x1cf   : > { %2832 = vmatpush.bf16.msrb.mxu3 %v6796_v37  ;;  %v2017_v37 = vpack.c.bf16 %v1995_v54, %v1995_v54  ;;  %v1992_v16 = vmul.f32 %v11186_v52, %v1959_v15 }
 0x1d0   : > { %v1871_v7 = vpop.permute.xlu1 %1870  ;;  %v8745_v59 = vpop.permute.xlu0 %1565 }
 0x1d1   : > { %v1897_v26 = vrot.slane %v1871_v7, 4  ;;  %v1996_v7 = vmul.f32 %v8223_v17, %v1963_v1 }
 0x1d2   : > { %2056 = vrot.lane.b32.xlu2 %v2019_v62, %s11036_s22 }
 0x1d3   : > { %v1913_v50 = vsel %vm921_vm11, %v1896_v55, %v1897_v26  ;;  %v1595_v55 = vrot.slane %v8745_v59, 4 }
 0x1d4   : > { %v1914_v34 = vsel %vm1909_vm0, %v1869_v22, %v1913_v50  ;;  %v7399_v8 = vld [vmem:[#allocation3 + $0x154] sm:$0xf0]  ;;  %v8773_v5 = vpop.permute.xlu2 %1391  ;;  %v1968_v50 = vunpack.c.l.bf16 %v1948_v12 }
 0x1d5   : > { %1935 = vst [vmem:[#allocation3 + $0x1d0] sm:$0xff] %v1914_v34  ;;  %v6724_v31 = vor.u32 %v7399_v8, %v6723_v48  ;;  %v7415_v10 = vld [vmem:[#allocation3 + $0x1d4] sm:$0xf0] }
 0x1d6   : > { %1751 = vrot.lane.b32.xlu1 %v1717_v58, %s11032_s1  ;;  %2068 = vrot.lane.b32.xlu0 %v2025_v43, %s11036_s22  ;;  %v2015_v43 = vpack.c.bf16 %v1992_v16, %v1992_v16  ;;  %v2001_v8 = vmul.f32 %v11186_v52, %v1968_v50  ;;  %s11233_s1 = smov 111  }
 0x1d7   : > { %2804 = vmatpush.bf16.msrb.mxu2 %v6724_v31  ;;  %v1421_v31 = vrot.slane %v8728_v29, 4 }
 0x1d8   : > { %v1562_v21 = vpop.permute.xlu1 %1561  ;;  %v1863_v22 = vpop.permute.xlu0 %1862  ;;  %v2021_v53 = vpack.c.bf16 %v2001_v8, %v2001_v8 }
 0x1d9   : > { %v1593_v46 = vrot.slane %v1562_v21, 4  ;;  %v1893_v58 = vrot.slane %v1863_v22, 4 }
 0x1da   : > { %2046 = vrot.lane.b32.xlu2 %v11193_v45, %s11036_s22 }
 0x1db   : > { %v1609_v4 = vsel %vm921_vm11, %v1593_v46, %v1594_v39  ;;  %v1908_v63 = vsel %vm921_vm11, %v1892_v11, %v1893_v58  ;;  %v1960_v39 = vunpack.c.l.bf16 %v1943_v13  ;;  %v1961_v11 = vunpack.c.h.bf16 %v1943_v13 }
 0x1dc   : > { %v1611_v6 = vsel %vm1610_vm15, %v1562_v21, %v1609_v4  ;;  %v1910_v28 = vsel %vm1909_vm0, %v8694_v23, %v1908_v63  ;;  %v6787_v33 = vld [vmem:[#allocation3 + $0x1d0] sm:$0xf]  ;;  %v1997_v23 = vmul.f32 %v8263_v20, %v1964_v19  ;;  %v8787_v48 = vpop.permute.xlu2 %1397 }
 0x1dd   : > { %1634 = vst [vmem:[#allocation3 + $0x140] sm:$0xff] %v1611_v6  ;;  %v6788_v38 = vor.u32 %v7415_v10, %v6787_v33  ;;  %v1993_v1 = vmul.f32 %v8223_v17, %v1960_v39  ;;  %v1994_v19 = vmul.f32 %v8263_v20, %v1961_v11  ;;  %v1792_v33 = vrot.slane %v8749_v61, 4 }
 0x1de   : > { %1933 = vst [vmem:[#allocation3 + $0x1c0] sm:$0xff] %v1910_v28  ;;  %2064 = vrot.lane.b32.xlu1 %v2023_v32, %s11036_s22  ;;  %2058 = vrot.lane.b32.xlu0 %v2020_v51, %s11036_s22  ;;  %v2018_v34 = vpack.c.bf16 %v1997_v23, %v1996_v7  ;;  %v1418_v13 = vrot.slane %v8787_v48, 4 }
 0x1df   : > { %2833 = vmatpush.bf16.msrb.mxu3 %v6788_v38  ;;  %v2016_v6 = vpack.c.bf16 %v1994_v19, %v1993_v1 }
 0x1e0   : > { %v1568_v49 = vpop.permute.xlu1 %1567  ;;  %v1400_v62 = vpop.permute.xlu0 %1399 }
 0x1e1   : > { %v1596_v26 = vrot.slane %v1568_v49, 4  ;;  %v1419_v63 = vrot.slane %v1400_v62, 4 }
 0x1e2   : > { %2052 = vrot.lane.b32.xlu2 %v2017_v37, %s11036_s22  ;;  %v1415_v37 = vrot.slane %v8773_v5, 4 }
 0x1e3   : > { %v1612_v9 = vsel %vm921_vm11, %v1595_v55, %v1596_v26 }
 0x1e4   : > { %v1613_v24 = vsel %vm1610_vm15, %v8745_v59, %v1612_v9  ;;  %v6715_v2 = vld [vmem:[#allocation3 + $0x140] sm:$0xf]  ;;  %v1768_v4 = vpop.permute.xlu2 %1767 }
 0x1e5   : > { %1635 = vst [vmem:[#allocation3 + $0x148] sm:$0xff] %v1613_v24  ;;  %v6779_v28 = vld [vmem:[#allocation3 + $0x1c0] sm:$0xf] }
 0x1e6   : > { %2054 = vrot.lane.b32.xlu1 %v2018_v34, %s11036_s22  ;;  %2048 = vrot.lane.b32.xlu0 %v2015_v43, %s11036_s22 }
 0x1e8   : > { %v1865_v25 = vpop.permute.xlu1 %1864  ;;  %v1406_v30 = vpop.permute.xlu0 %1405 }
 0x1e9   : > { %v1894_v0 = vrot.slane %v1865_v25, 4  ;;  %v1422_v59 = vrot.slane %v1406_v30, 4  ;;  %v7343_v30 = vld [vmem:[%s11194_s15 + $0x38] sm:$0xf0] }
 0x1eb   : > { %v1911_v21 = vsel %vm921_vm11, %v1894_v0, %v1895_v27  ;;  %v1438_v22 = vsel %vm921_vm11, %v1421_v31, %v1422_v59 }
 0x1ec   : > { %v1912_v3 = vsel %vm1909_vm0, %v1865_v25, %v1911_v21  ;;  %v1439_v56 = vsel %vm1424_vm1, %v8728_v29, %v1438_v22  ;;  %v7397_v18 = vld [vmem:[#allocation3 + $0x144] sm:$0xf0]  ;;  %v8805_v23 = vpop.permute.xlu2 %1385  ;;  %v1789_v21 = vrot.slane %v1768_v4, 4 }
 0x1ed   : > { %1934 = vst [vmem:[#allocation3 + $0x1c8] sm:$0xff] %v1912_v3  ;;  %v6716_v45 = vor.u32 %v7397_v18, %v6715_v2 }
 0x1ee   : > { %1455 = vst [vmem:[#allocation3 + $0x138] sm:$0xff] %v1439_v56  ;;  %2060 = vrot.lane.b32.xlu1 %v2021_v53, %s11036_s22 }
 0x1ef   : > { %2805 = vmatpush.bf16.msrb.mxu2 %v6716_v45 }
 0x1f0   : > { %v1402_v46 = vpop.permute.xlu1 %1401  ;;  %v1776_v58 = vpop.permute.xlu0 %1775 }
 0x1f1   : > { %v1420_v54 = vrot.slane %v1402_v46, 4  ;;  %v1793_v34 = vrot.slane %v1776_v58, 4 }
 0x1f3   : > { %v1436_v29 = vsel %vm921_vm11, %v1419_v63, %v1420_v54 }
 0x1f4   : > { %v1437_v15 = vsel %vm1424_vm1, %v1400_v62, %v1436_v29  ;;  %v7413_v32 = vld [vmem:[#allocation3 + $0x1c4] sm:$0xf0]  ;;  %v1756_v25 = vpop.permute.xlu2 %1755 }
 0x1f5   : > { %1454 = vst [vmem:[#allocation3 + $0x130] sm:$0xff] %v1437_v15  ;;  %v6780_v51 = vor.u32 %v7413_v32, %v6779_v28  ;;  %v7395_v61 = vld [vmem:[#allocation3 + $0x134] sm:$0xf0]  ;;  %v6477_v28 = vld [vmem:[%s11194_s15 + $0x14] sm:$0xf0] }
 0x1f6   : > { %2050 = vrot.lane.b32.xlu1 %v2016_v6, %s11036_s22  ;;  %v7336_v6 = vld [vmem:[%s11194_s15 + $0x4] sm:$0xf]  ;;  %v6515_v32 = vld [vmem:[%s11194_s15 + $0x50] sm:$0xf] }
 0x1f7   : > { %2834 = vmatpush.bf16.msrb.mxu3 %v6780_v51  ;;  %v7348_v51 = vld [vmem:[%s11194_s15 + $0x60] sm:$0xf0] }
 0x1f8   : > { %v1772_v10 = vpop.permute.xlu1 %1771  ;;  %v1394_v38 = vpop.permute.xlu0 %1393 }
 0x1f9   : > { %v1791_v49 = vrot.slane %v1772_v10, 4  ;;  %v1416_v7 = vrot.slane %v1394_v38, 4 }
 0x1fb   : > { %v1808_v62 = vsel %vm921_vm11, %v1791_v49, %v1792_v33  ;;  %v1432_v16 = vsel %vm921_vm11, %v1415_v37, %v1416_v7  ;;  %v8844_v33 = vor.u32 %v7336_v6, %v6477_v28  ;;  %v1412_v49 = vrot.slane %v8805_v23, 4  ;;  %v2229_v6 = vld [vmem:[%s10980_s5 + $0x30] sm:$0xff]  ;;  %v7351_v28 = vld [vmem:[%s11194_s15 + $0x7c] sm:$0xf] }
 0x1fc   : > { %v1809_v12 = vsel %vm1796_vm2, %v1772_v10, %v1808_v62  ;;  %v1433_v55 = vsel %vm1424_vm1, %v8773_v5, %v1432_v16  ;;  %v6707_v26 = vld [vmem:[#allocation3 + $0x130] sm:$0xf]  ;;  %v6495_v5 = vld [vmem:[%s11194_s15 + $0x28] sm:$0xf]  ;;  %v8828_v46 = vpop.permute.xlu2 %1761  ;;  %v8846_v10 = vor.u32 %v7348_v51, %v6515_v32  ;;  %v1783_v7 = vrot.slane %v1756_v25, 4  ;;  %2263 = vperm.xlu0 %7604, %v2229_v6  }
 0x1fd   : > { %1826 = vst [vmem:[#allocation3 + $0x1b0] sm:$0xff] %v1809_v12  ;;  %v6708_v9 = vor.u32 %v7395_v61, %v6707_v26  ;;  %v8820_v31 = vor.u32 %v7343_v30, %v6495_v5  ;;  %2781 = vmatmul.bf16.vlgmr.msra.gmra.mxu1 %v8844_v33  ;;  %v6537_v32 = vld [vmem:[%s11194_s15 + $0x8c] sm:$0xf0] }
 0x1fe   : > { %1452 = vst [vmem:[#allocation3 + $0x120] sm:$0xff] %v1433_v55  ;;  %v8900_v51 = vor.u32 %v7351_v28, %v6537_v32 }
 0x1ff   : > { %2806 = vmatpush.bf16.msrb.mxu2 %v6708_v9 }
 0x200   : > { %v1778_v50 = vpop.permute.xlu1 %1777  ;;  %v1764_v24 = vpop.permute.xlu0 %1763  ;;  %2757 = vmatmul.bf16.vlgmr.msra.gmra.mxu2 %v8820_v31 }
 0x201   : > { %v1794_v43 = vrot.slane %v1778_v50, 4  ;;  %v1787_v1 = vrot.slane %v1764_v24, 4 }
 0x203   : > { %v1810_v8 = vsel %vm921_vm11, %v1793_v34, %v1794_v43  ;;  %v7346_v34 = vld [vmem:[%s11194_s15 + $0x54] sm:$0xf]  ;;  %v6517_v43 = vld [vmem:[%s11194_s15 + $0x64] sm:$0xf0] }
 0x204   : > { %v1811_v27 = vsel %vm1796_vm2, %v1776_v58, %v1810_v8  ;;  %v6771_v39 = vld [vmem:[#allocation3 + $0x1b0] sm:$0xf]  ;;  %v2075_v62 = vpop.permute.xlu2 %2074  ;;  %v8861_v8 = vor.u32 %v7346_v34, %v6517_v43 }
 0x205   : > { %1827 = vst [vmem:[#allocation3 + $0x1b8] sm:$0xff] %v1811_v27  ;;  %v6699_v29 = vld [vmem:[#allocation3 + $0x120] sm:$0xf]  ;;  %v2230_v34 = vld [vmem:[%s10980_s5 + $0x38] sm:$0xff] }
 0x206   : > { %2791 = vmatmul.bf16.vlgmr.msra.gmra.mxu3 %v8861_v8  ;;  %2268 = vperm.xlu1 %7605, %v2230_v34   ;;  %v2225_v34 = vld [vmem:[%s10980_s5 + $0x10] sm:$0xff] }
 0x208   : > { %v1396_v0 = vpop.permute.xlu1 %1395  ;;  %v1770_v59 = vpop.permute.xlu0 %1769 }
 0x209   : > { %v1417_v22 = vrot.slane %v1396_v0, 4  ;;  %v1790_v53 = vrot.slane %v1770_v59, 4 }
 0x20b   : > { %v1434_v3 = vsel %vm921_vm11, %v1417_v22, %v1418_v13  ;;  %v1806_v56 = vsel %vm921_vm11, %v1789_v21, %v1790_v53  ;;  %v7341_v21 = vld [vmem:[%s11194_s15 + $0x2c] sm:$0xf]  ;;  %v6497_v22 = vld [vmem:[%s11194_s15 + $0x3c] sm:$0xf0]  ;;  %v6535_v53 = vld [vmem:[%s11194_s15 + $0x78] sm:$0xf] }
 0x20c   : > { %v1435_v2 = vsel %vm1424_vm1, %v1396_v0, %v1434_v3  ;;  %v1807_v18 = vsel %vm1796_vm2, %v1768_v4, %v1806_v56  ;;  %v7411_v11 = vld [vmem:[#allocation3 + $0x1b4] sm:$0xf0]  ;;  %v8864_v0 = vpop.permute.xlu2 %1377  ;;  %v7353_v3 = vld [vmem:[%s11194_s15 + $0x88] sm:$0xf0]  ;;  %v8880_v56 = vor.u32 %v7341_v21, %v6497_v22 }
 0x20d   : > { %1453 = vst [vmem:[#allocation3 + $0x128] sm:$0xff] %v1435_v2  ;;  %v6772_v45 = vor.u32 %v7411_v11, %v6771_v39  ;;  %v8882_v2 = vor.u32 %v7353_v3, %v6535_v53 }
 0x20e   : > { %1825 = vst [vmem:[#allocation3 + $0x1a8] sm:$0xff] %v1807_v18  ;;  %v1786_v18 = vrot.slane %v8828_v46, 4  ;;  %2786 = vmatmul.bf16.gmra.mxu1 %v8880_v56 }
 0x20f   : > { %2835 = vmatpush.bf16.msrb.mxu3 %v6772_v45  ;;  %v2092_v45 = vrot.slane %v2075_v62, 4 }
 0x210   : > { %v1766_v48 = vpop.permute.xlu1 %1765  ;;  %v1388_v58 = vpop.permute.xlu0 %1387  ;;  %2762 = vmatmul.bf16.gmra.mxu2 %v8846_v10 }
 0x211   : > { %v1788_v19 = vrot.slane %v1766_v48, 4  ;;  %v1413_v30 = vrot.slane %v1388_v58, 4 }
 0x213   : > { %v1804_v63 = vsel %vm921_vm11, %v1787_v1, %v1788_v19 }
 0x214   : > { %v1805_v54 = vsel %vm1796_vm2, %v1764_v24, %v1804_v63  ;;  %v7393_v15 = vld [vmem:[#allocation3 + $0x124] sm:$0xf0] }
 0x215   : > { %1824 = vst [vmem:[#allocation3 + $0x1a0] sm:$0xff] %v1805_v54  ;;  %v6700_v4 = vor.u32 %v7393_v15, %v6699_v29  ;;  %v7409_v24 = vld [vmem:[#allocation3 + $0x1a4] sm:$0xf0]  ;;  %v1748_v15 = vpop.permute.xlu2 %1747 }
 0x216   : > { %2796 = vmatmul.bf16.gmra.mxu3 %v8900_v51 }
 0x217   : > { %2807 = vmatpush.bf16.msrb.mxu2 %v6700_v4 }
 0x218   : > { %v1384_v38 = vpop.permute.xlu1 %1383  ;;  %v1758_v37 = vpop.permute.xlu0 %1757 }
 0x219   : > { %v1411_v16 = vrot.slane %v1384_v38, 4  ;;  %v1784_v12 = vrot.slane %v1758_v37, 4 }
 0x21b   : > { %v1428_v55 = vsel %vm921_vm11, %v1411_v16, %v1412_v49  ;;  %v1800_v26 = vsel %vm921_vm11, %v1783_v7, %v1784_v12 }
 0x21c   : > { %v1429_v61 = vsel %vm1424_vm1, %v1384_v38, %v1428_v55  ;;  %v1801_v9 = vsel %vm1796_vm2, %v1756_v25, %v1800_v26  ;;  %v6763_v50 = vld [vmem:[#allocation3 + $0x1a0] sm:$0xf] }
 0x21d   : > { %1450 = vst [vmem:[#allocation3 + $0x110] sm:$0xff] %v1429_v61  ;;  %v6764_v23 = vor.u32 %v7409_v24, %v6763_v50  ;;  %v2226_v61 = vld [vmem:[%s10980_s5 + $0x18] sm:$0xff]  ;;  %v7338_v50 = vld [vmem:[%s11194_s15 + $0x10] sm:$0xf0]  ;;  %v1754_v24 = vpop.permute.xlu2 %1753 }
 0x21e   : > { %1822 = vst [vmem:[#allocation3 + $0x190] sm:$0xff] %v1801_v9  ;;  %v6475_v9 = vld [vmem:[%s11194_s15] sm:$0xf]  ;;  %2248 = vperm.xlu0 %7604, %v2226_v61   ;;  %v1782_v32 = vrot.slane %v1754_v24, 4 }
 0x21f   : > { %2836 = vmatpush.bf16.msrb.mxu3 %v6764_v23  ;;  %v6476_v23 = vor.u32 %v7338_v50, %v6475_v9 }
 0x220   : > { %v1390_v27 = vpop.permute.xlu1 %1389  ;;  %v2071_v5 = vpop.permute.xlu0 %2070  ;;  %2767 = vmatmul.bf16.gmra.mxu2 %v8882_v2 }
 0x221   : > { %v1414_v25 = vrot.slane %v1390_v27, 4  ;;  %v2090_v49 = vrot.slane %v2071_v5, 4  ;;  %2752 = vmatmul.bf16.vlgmr.msra.gmra.mxu0 %v6476_v23  ;;  %2897 = vmatmul.bf16.vlgmr.msrb.gmra.mxu1 %v6476_v23  ;;  %v6677_v23 = vld [vmem:[#allocation3 + $0xf8] sm:$0xf0] }
 0x223   : > { %v1430_v59 = vsel %vm921_vm11, %v1413_v30, %v1414_v25  ;;  %v1779_v30 = vrot.slane %v1748_v15, 4 }
 0x224   : > { %v1431_v13 = vsel %vm1424_vm1, %v1388_v58, %v1430_v59  ;;  %v6691_v29 = vld [vmem:[#allocation3 + $0x110] sm:$0xf] }
 0x225   : > { %1451 = vst [vmem:[#allocation3 + $0x118] sm:$0xff] %v1431_v13  ;;  %v6755_v12 = vld [vmem:[#allocation3 + $0x190] sm:$0xf] }
 0x228   : > { %v1760_v39 = vpop.permute.xlu1 %1759  ;;  %v2077_v11 = vpop.permute.xlu0 %2076 }
 0x229   : > { %v1785_v48 = vrot.slane %v1760_v39, 4  ;;  %v2093_v58 = vrot.slane %v2077_v11, 4 }
 0x22b   : > { %v1802_v1 = vsel %vm921_vm11, %v1785_v48, %v1786_v18  ;;  %v2109_v19 = vsel %vm921_vm11, %v2092_v45, %v2093_v58  ;;  %v2228_v48 = vld [vmem:[%s10980_s5 + $0x28] sm:$0xff] }
 0x22c   : > { %v1803_v63 = vsel %vm1796_vm2, %v1760_v39, %v1802_v1  ;;  %v2110_v54 = vsel %vm2095_vm6, %v2075_v62, %v2109_v19  ;;  %v7391_v46 = vld [vmem:[#allocation3 + $0x114] sm:$0xf0]  ;;  %2258 = vperm.xlu1 %7605, %v2228_v48  }
 0x22d   : > { %1823 = vst [vmem:[#allocation3 + $0x198] sm:$0xff] %v1803_v63  ;;  %v6692_v4 = vor.u32 %v7391_v46, %v6691_v29 }
 0x22e   : > { %2126 = vst [vmem:[#allocation3 + $0x238] sm:$0xff] %v2110_v54  ;;  %v2067_v54 = vpop.permute.xlu2 %2066 }
 0x22f   : > { %2808 = vmatpush.bf16.msrb.mxu2 %v6692_v4  ;;  %v2223_v4 = vld [vmem:[%s10980_s5] sm:$0xff] }
 0x230   : > { %v2073_v38 = vpop.permute.xlu1 %2072  ;;  %v1380_v37 = vpop.permute.xlu0 %1379 }
 0x231   : > { %v2091_v7 = vrot.slane %v2073_v38, 4  ;;  %v1409_v19 = vrot.slane %v1380_v37, 4  ;;  %v2088_v38 = vrot.slane %v2067_v54, 4  ;;  %2902 = vmatmul.bf16.gmra.mxu1 %v8820_v31 }
 0x233   : > { %v2107_v62 = vsel %vm921_vm11, %v2090_v49, %v2091_v7 }
 0x234   : > { %v2108_v16 = vsel %vm2095_vm6, %v2071_v5, %v2107_v62  ;;  %v7407_v55 = vld [vmem:[#allocation3 + $0x194] sm:$0xf0]  ;;  %v1408_v5 = vrot.slane %v8864_v0, 4  ;;  %2233 = vperm.xlu1 %7605, %v2223_v4   ;;  %v7380_v4 = vld [vmem:[#allocation3 + $0xc4] sm:$0xf] }
 0x235   : > { %2125 = vst [vmem:[#allocation3 + $0x230] sm:$0xff] %v2108_v16  ;;  %v6756_v26 = vor.u32 %v7407_v55, %v6755_v12  ;;  %v7427_v22 = vld [vmem:[#allocation3 + $0x234] sm:$0xf0]  ;;  %v6837_v11 = vld [vmem:[#allocation3 + $0x238] sm:$0xf0] }
 0x236   : > { %v7386_v16 = vld [vmem:[#allocation3 + $0xf4] sm:$0xf]  ;;  %v6483_v12 = vld [vmem:[%s11194_s15 + $0x8] sm:$0xf] }
 0x237   : > { %2837 = vmatpush.bf16.msrb.mxu3 %v6756_v26  ;;  %v7339_v55 = vld [vmem:[%s11194_s15 + $0x18] sm:$0xf0]  ;;  %v2057_v26 = vpop.permute.xlu2 %2056 }
 0x238   : > { %v1376_v43 = vpop.permute.xlu1 %1375  ;;  %v1750_v27 = vpop.permute.xlu0 %1749 }
 0x239   : > { %v1407_v25 = vrot.slane %v1376_v43, 4  ;;  %v1780_v59 = vrot.slane %v1750_v27, 4  ;;  %v8947_v27 = vor.u32 %v7339_v55, %v6483_v12  ;;  %v7378_v55 = vld [vmem:[#allocation3 + $0xb4] sm:$0xf] }
 0x23b   : > { %v1423_v13 = vsel %vm921_vm11, %v1407_v25, %v1408_v5  ;;  %v1795_v21 = vsel %vm921_vm11, %v1779_v30, %v1780_v59  ;;  %v7384_v5 = vld [vmem:[#allocation3 + $0xe4] sm:$0xf] }
 0x23c   : > { %v1425_v53 = vsel %vm1424_vm1, %v1376_v43, %v1423_v13  ;;  %v1797_v3 = vsel %vm1796_vm2, %v1748_v15, %v1795_v21  ;;  %v6835_v18 = vld [vmem:[#allocation3 + $0x230] sm:$0xf]  ;;  %v7426_v39 = vld [vmem:[#allocation3 + $0x234] sm:$0xf]  ;;  %v2227_v15 = vld [vmem:[%s10980_s5 + $0x20] sm:$0xff]  ;;  %v6680_v43 = vor.u32 %v7386_v16, %v6677_v23 }
 0x23d   : > { %1448 = vst [vmem:[#allocation3 + $0x100] sm:$0xff] %v1425_v53  ;;  %v6836_v45 = vor.u32 %v7427_v22, %v6835_v18  ;;  %v6840_v0 = vor.u32 %v7426_v39, %v6837_v11  ;;  %2253 = vperm.xlu2 %7606, %v2227_v15   ;;  %v6669_v21 = vld [vmem:[#allocation3 + $0xe8] sm:$0xf0]  ;;  %v7382_v53 = vld [vmem:[#allocation3 + $0xd4] sm:$0xf] }
 0x23e   : > { %1820 = vst [vmem:[#allocation3 + $0x180] sm:$0xff] %v1797_v3  ;;  %v6672_v22 = vor.u32 %v7384_v5, %v6669_v21  ;;  %v6741_v18 = vld [vmem:[#allocation3 + $0x178] sm:$0xf0]  ;;  %v7337_v39 = vld [vmem:[%s11194_s15 + $0xc] sm:$0xf] }
 0x23f   : > { %2864 = vmatpush.bf16.msrb.mxu0 %v6836_v45  ;;  %3009 = vmatpush.bf16.msra.mxu1 %v6840_v0  ;;  %v6485_v11 = vld [vmem:[%s11194_s15 + $0x1c] sm:$0xf0]  ;;  %v6645_v21 = vld [vmem:[#allocation3 + $0xb8] sm:$0xf0] }
 0x240   : > { %v1382_v58 = vpop.permute.xlu1 %1381  ;;  %v2063_v1 = vpop.permute.xlu0 %2062  ;;  %v8960_v15 = vor.u32 %v7337_v39, %v6485_v11  ;;  %v7376_v39 = vld [vmem:[#allocation3 + $0xa4] sm:$0xf]  ;;  %v6717_v11 = vld [vmem:[#allocation3 + $0x148] sm:$0xf0] }
 0x241   : > { %v1410_v63 = vrot.slane %v1382_v58, 4  ;;  %v2086_v59 = vrot.slane %v2063_v1, 4  ;;  %2907 = vmatmul.bf16.gmra.mxu1 %v8846_v10  ;;  %v7344_v10 = vld [vmem:[%s11194_s15 + $0x40] sm:$0xf0] }
 0x243   : > { %v1426_v29 = vsel %vm921_vm11, %v1409_v19, %v1410_v63  ;;  %v6661_v19 = vld [vmem:[#allocation3 + $0xd8] sm:$0xf0]  ;;  %v7402_v63 = vld [vmem:[#allocation3 + $0x174] sm:$0xf] }
 0x244   : > { %v1427_v46 = vsel %vm1424_vm1, %v1380_v37, %v1426_v29  ;;  %v6683_v50 = vld [vmem:[#allocation3 + $0x100] sm:$0xf]  ;;  %v6664_v29 = vor.u32 %v7382_v53, %v6661_v19  ;;  %v6648_v53 = vor.u32 %v7378_v55, %v6645_v21  ;;  %v7396_v19 = vld [vmem:[#allocation3 + $0x144] sm:$0xf] }
 0x245   : > { %1449 = vst [vmem:[#allocation3 + $0x108] sm:$0xff] %v1427_v46  ;;  %2243 = vperm.xlu2 %7606, %v2225_v34   ;;  %v6747_v0 = vld [vmem:[#allocation3 + $0x180] sm:$0xf]  ;;  %v6744_v46 = vor.u32 %v7402_v63, %v6741_v18 }
 0x248   : > { %v1752_v6 = vpop.permute.xlu1 %1751  ;;  %v2069_v28 = vpop.permute.xlu0 %2068 }
 0x249   : > { %v1781_v49 = vrot.slane %v1752_v6, 4  ;;  %v2089_v7 = vrot.slane %v2069_v28, 4 }
 0x24b   : > { %v1798_v37 = vsel %vm921_vm11, %v1781_v49, %v1782_v32  ;;  %v2105_v62 = vsel %vm921_vm11, %v2088_v38, %v2089_v7  ;;  %v2083_v38 = vrot.slane %v2057_v26, 4 }
 0x24c   : > { %v1799_v61 = vsel %vm1796_vm2, %v1752_v6, %v1798_v37  ;;  %v2106_v9 = vsel %vm2095_vm6, %v2067_v54, %v2105_v62  ;;  %v7389_v31 = vld [vmem:[#allocation3 + $0x104] sm:$0xf0]  ;;  %v2047_v54 = vpop.permute.xlu2 %2046  ;;  %v7400_v6 = vld [vmem:[#allocation3 + $0x164] sm:$0xf]  ;;  %v6733_v62 = vld [vmem:[#allocation3 + $0x168] sm:$0xf0] }
 0x24d   : > { %1821 = vst [vmem:[#allocation3 + $0x188] sm:$0xff] %v1799_v61  ;;  %v6684_v24 = vor.u32 %v7389_v31, %v6683_v50  ;;  %v2078_v49 = vrot.slane %v2047_v54, 4  ;;  %v6736_v12 = vor.u32 %v7400_v6, %v6733_v62  ;;  %v6725_v61 = vld [vmem:[#allocation3 + $0x158] sm:$0xf0]  ;;  %v7342_v6 = vld [vmem:[%s11194_s15 + $0x34] sm:$0xf] }
 0x24e   : > { %2124 = vst [vmem:[#allocation3 + $0x228] sm:$0xff] %v2106_v9  ;;  %v6503_v9 = vld [vmem:[%s11194_s15 + $0x30] sm:$0xf] }
 0x24f   : > { %2809 = vmatpush.bf16.msrb.mxu2 %v6684_v24  ;;  %v8977_v18 = vor.u32 %v7344_v10, %v6503_v9 }
 0x250   : > { %v2065_v30 = vpop.permute.xlu1 %2064  ;;  %v8949_v25 = vpop.permute.xlu0 %2058 }
 0x251   : > { %v2087_v13 = vrot.slane %v2065_v30, 4  ;;  %v2224_v30 = vld [vmem:[%s10980_s5 + $0x8] sm:$0xff]  ;;  %2912 = vmatmul.bf16.gmra.mxu1 %v8882_v2 }
 0x252   : > { %2810 = vmatmul.bf16.vlgmr.msrb.gmra.mxu2 %v8947_v27  ;;  %2238 = vperm.xlu2 %7606, %v2224_v30  }
 0x253   : > { %2918 = vmatpush.bf16.msra.mxu2 %v6680_v43  ;;  %v2103_v3 = vsel %vm921_vm11, %v2086_v59, %v2087_v13 }
 0x254   : > { %v2104_v45 = vsel %vm2095_vm6, %v2063_v1, %v2103_v3  ;;  %v7405_v48 = vld [vmem:[#allocation3 + $0x184] sm:$0xf0]  ;;  %v6653_v1 = vld [vmem:[#allocation3 + $0xc8] sm:$0xf0] }
 0x255   : > { %2123 = vst [vmem:[#allocation3 + $0x220] sm:$0xff] %v2104_v45  ;;  %v6748_v58 = vor.u32 %v7405_v48, %v6747_v0  ;;  %v6656_v16 = vor.u32 %v7380_v4, %v6653_v1  ;;  %v7425_v31 = vld [vmem:[#allocation3 + $0x224] sm:$0xf0]  ;;  %v6829_v24 = vld [vmem:[#allocation3 + $0x228] sm:$0xf0]  ;;  %v2084_v0 = vrot.slane %v8949_v25, 4 }
 0x256   : > { %v7394_v4 = vld [vmem:[#allocation3 + $0x134] sm:$0xf] }
 0x257   : > { %2919 = vmatpush.bf16.msra.mxu2 %v6672_v22  ;;  %2838 = vmatpush.bf16.msrb.mxu3 %v6748_v58  ;;  %v7398_v22 = vld [vmem:[#allocation3 + $0x154] sm:$0xf]  ;;  %v6637_v58 = vld [vmem:[#allocation3 + $0xa8] sm:$0xf0] }
 0x258   : > { %v2055_v28 = vpop.permute.xlu1 %2054  ;;  %v2049_v32 = vpop.permute.xlu0 %2048  ;;  %v6728_v3 = vor.u32 %v7398_v22, %v6725_v61  ;;  %v6640_v63 = vor.u32 %v7376_v39, %v6637_v58  ;;  %v7374_v1 = vld [vmem:[#allocation3 + $0x94] sm:$0xf]  ;;  %v6685_v39 = vld [vmem:[#allocation3 + $0x108] sm:$0xf0]  ;;  %v6525_v58 = vld [vmem:[%s11194_s15 + $0x6c] sm:$0xf0] }
 0x259   : > { %v2082_v7 = vrot.slane %v2055_v28, 4  ;;  %v2079_v37 = vrot.slane %v2049_v32, 4  ;;  %v7390_v22 = vld [vmem:[#allocation3 + $0x114] sm:$0xf] }
 0x25a   : > { %2839 = vmatmul.bf16.vlgmr.msrb.gmra.mxu3 %v8960_v15 }
 0x25b   : > { %2920 = vmatpush.bf16.msra.mxu2 %v6664_v29  ;;  %2947 = vmatpush.bf16.msra.mxu3 %v6744_v46  ;;  %v2099_v50 = vsel %vm921_vm11, %v2082_v7, %v2083_v38  ;;  %v2094_v26 = vsel %vm921_vm11, %v2078_v49, %v2079_v37  ;;  %v6629_v29 = vld [vmem:[#allocation3 + $0x98] sm:$0xf0]  ;;  %v2053_v49 = vpop.permute.xlu2 %2052 }
 0x25c   : > { %v2100_v23 = vsel %vm2095_vm6, %v2055_v28, %v2099_v50  ;;  %v2096_v34 = vsel %vm2095_vm6, %v2047_v54, %v2094_v26  ;;  %v6827_v43 = vld [vmem:[#allocation3 + $0x220] sm:$0xf]  ;;  %v7424_v5 = vld [vmem:[#allocation3 + $0x224] sm:$0xf]  ;;  %v6720_v54 = vor.u32 %v7396_v19, %v6717_v11  ;;  %v6709_v38 = vld [vmem:[#allocation3 + $0x138] sm:$0xf0]  ;;  %v6632_v7 = vor.u32 %v7374_v1, %v6629_v29 }
 0x25d   : > { %2121 = vst [vmem:[#allocation3 + $0x210] sm:$0xff] %v2100_v23  ;;  %v6828_v59 = vor.u32 %v7425_v31, %v6827_v43  ;;  %v6832_v13 = vor.u32 %v7424_v5, %v6829_v24  ;;  %v6505_v28 = vld [vmem:[%s11194_s15 + $0x44] sm:$0xf0]  ;;  %v6712_v37 = vor.u32 %v7394_v4, %v6709_v38  ;;  %v2081_v61 = vrot.slane %v2053_v49, 4  ;;  %v6621_v50 = vld [vmem:[#allocation3 + $0x88] sm:$0xf0] }
 0x25e   : > { %2119 = vst [vmem:[#allocation3 + $0x200] sm:$0xff] %v2096_v34  ;;  %v8990_v62 = vor.u32 %v7342_v6, %v6505_v28  ;;  %v7392_v26 = vld [vmem:[#allocation3 + $0x124] sm:$0xf]  ;;  %v6693_v24 = vld [vmem:[#allocation3 + $0x118] sm:$0xf0] }
 0x25f   : > { %2921 = vmatpush.bf16.msra.mxu2 %v6656_v16  ;;  %2948 = vmatpush.bf16.msra.mxu3 %v6736_v12  ;;  %v7372_v16 = vld [vmem:[#allocation3 + $0x84] sm:$0xf]  ;;  %v6701_v12 = vld [vmem:[#allocation3 + $0x128] sm:$0xf0]  ;;  %v6523_v34 = vld [vmem:[%s11194_s15 + $0x58] sm:$0xf] }
 0x260   : > { %2865 = vmatpush.bf16.msrb.mxu0 %v6828_v59  ;;  %3010 = vmatpush.bf16.msra.mxu1 %v6832_v13  ;;  %v2061_v45 = vpop.permute.xlu1 %2060  ;;  %v6704_v31 = vor.u32 %v7392_v26, %v6701_v12  ;;  %v7349_v43 = vld [vmem:[%s11194_s15 + $0x68] sm:$0xf0]  ;;  %v7414_v12 = vld [vmem:[#allocation3 + $0x1d4] sm:$0xf] }
 0x261   : > { %v2085_v48 = vrot.slane %v2061_v45, 4  ;;  %v7388_v11 = vld [vmem:[#allocation3 + $0x104] sm:$0xf] }
 0x262   : > { %2815 = vmatmul.bf16.gmra.mxu2 %v8977_v18  ;;  %v6688_v45 = vor.u32 %v7388_v11, %v6685_v39  ;;  %v6757_v39 = vld [vmem:[#allocation3 + $0x198] sm:$0xf0] }
 0x263   : > { %2922 = vmatpush.bf16.msra.mxu2 %v6648_v53  ;;  %2949 = vmatpush.bf16.msra.mxu3 %v6728_v3  ;;  %v2101_v46 = vsel %vm921_vm11, %v2084_v0, %v2085_v48  ;;  %v6696_v53 = vor.u32 %v7390_v22, %v6693_v24  ;;  %v9002_v3 = vor.u32 %v7349_v43, %v6523_v34  ;;  %v6805_v0 = vld [vmem:[#allocation3 + $0x1f8] sm:$0xf0]  ;;  %v7347_v48 = vld [vmem:[%s11194_s15 + $0x5c] sm:$0xf]  ;;  %v6545_v34 = vld [vmem:[%s11194_s15 + $0x94] sm:$0xf0] }
 0x264   : > { %v2102_v32 = vsel %vm2095_vm6, %v8949_v25, %v2101_v46  ;;  %v6624_v25 = vor.u32 %v7372_v16, %v6621_v50  ;;  %v6819_v23 = vld [vmem:[#allocation3 + $0x210] sm:$0xf]  ;;  %v7422_v30 = vld [vmem:[#allocation3 + $0x214] sm:$0xf]  ;;  %v9017_v38 = vor.u32 %v7347_v48, %v6525_v58  ;;  %v6765_v22 = vld [vmem:[#allocation3 + $0x1a8] sm:$0xf0] }
 0x265   : > { %2122 = vst [vmem:[#allocation3 + $0x218] sm:$0xff] %v2102_v32  ;;  %v6811_v19 = vld [vmem:[#allocation3 + $0x200] sm:$0xf]  ;;  %v7420_v46 = vld [vmem:[#allocation3 + $0x204] sm:$0xf] }
 0x266   : > { %v7418_v32 = vld [vmem:[#allocation3 + $0x1f4] sm:$0xf]  ;;  %v6511_v43 = vld [vmem:[%s11194_s15 + $0x38] sm:$0xf]  ;;  %v6749_v48 = vld [vmem:[#allocation3 + $0x188] sm:$0xf0] }
 0x267   : > { %2923 = vmatpush.bf16.msra.mxu2 %v6640_v63  ;;  %2950 = vmatpush.bf16.msra.mxu3 %v6720_v54  ;;  %v6491_v63 = vld [vmem:[%s11194_s15 + $0x10] sm:$0xf]  ;;  %v7340_v54 = vld [vmem:[%s11194_s15 + $0x20] sm:$0xf0]  ;;  %v6808_v1 = vor.u32 %v7418_v32, %v6805_v0  ;;  %v7404_v58 = vld [vmem:[#allocation3 + $0x184] sm:$0xf] }
 0x268   : > { %v2051_v55 = vpop.permute.xlu1 %2050  ;;  %v6492_v49 = vor.u32 %v7340_v54, %v6491_v63  ;;  %v6531_v63 = vld [vmem:[%s11194_s15 + $0x60] sm:$0xf]  ;;  %v7350_v54 = vld [vmem:[%s11194_s15 + $0x70] sm:$0xf0]  ;;  %v7355_v32 = vld [vmem:[%s11194_s15 + $0x98] sm:$0xf0] }
 0x269   : > { %v2080_v9 = vrot.slane %v2051_v55, 4 }
 0x26a   : > { %2844 = vmatmul.bf16.gmra.mxu3 %v8990_v62 }
 0x26b   : > { %2924 = vmatpush.bf16.msra.mxu2 %v6632_v7  ;;  %2951 = vmatpush.bf16.msra.mxu3 %v6712_v37  ;;  %v2097_v10 = vsel %vm921_vm11, %v2080_v9, %v2081_v61  ;;  %v6797_v7 = vld [vmem:[#allocation3 + $0x1e8] sm:$0xf0]  ;;  %v7416_v37 = vld [vmem:[#allocation3 + $0x1e4] sm:$0xf]  ;;  %v6789_v9 = vld [vmem:[#allocation3 + $0x1d8] sm:$0xf0] }
 0x26c   : > { %v2098_v5 = vsel %vm2095_vm6, %v2051_v55, %v2097_v10  ;;  %v7423_v2 = vld [vmem:[#allocation3 + $0x214] sm:$0xf0]  ;;  %v6821_v59 = vld [vmem:[#allocation3 + $0x218] sm:$0xf0]  ;;  %v6800_v16 = vor.u32 %v7416_v37, %v6797_v7  ;;  %v7354_v61 = vld [vmem:[%s11194_s15 + $0x90] sm:$0xf0]  ;;  %v6792_v50 = vor.u32 %v7414_v12, %v6789_v9 }
 0x26d   : > { %2120 = vst [vmem:[#allocation3 + $0x208] sm:$0xff] %v2098_v5  ;;  %v6820_v13 = vor.u32 %v7423_v2, %v6819_v23  ;;  %v6824_v21 = vor.u32 %v7422_v30, %v6821_v59  ;;  %v6543_v55 = vld [vmem:[%s11194_s15 + $0x80] sm:$0xf]  ;;  %v6773_v10 = vld [vmem:[#allocation3 + $0x1b8] sm:$0xf0] }
 0x26e   : > { %v9028_v26 = vor.u32 %v7354_v61, %v6543_v55  ;;  %v7352_v23 = vld [vmem:[%s11194_s15 + $0x84] sm:$0xf]  ;;  %v7345_v5 = vld [vmem:[%s11194_s15 + $0x48] sm:$0xf0]  ;;  %v7410_v2 = vld [vmem:[#allocation3 + $0x1b4] sm:$0xf]  ;;  %v9079_v12 = vpop.permute.xlu0 %2263 }
 0x26f   : > { %2925 = vmatpush.bf16.msra.mxu2 %v6624_v25  ;;  %2952 = vmatpush.bf16.msra.mxu3 %v6704_v31  ;;  %v6781_v25 = vld [vmem:[#allocation3 + $0x1c8] sm:$0xf0]  ;;  %v7412_v31 = vld [vmem:[#allocation3 + $0x1c4] sm:$0xf]  ;;  %v6776_v30 = vor.u32 %v7410_v2, %v6773_v10  ;;  %v9043_v59 = vor.u32 %v7352_v23, %v6545_v34 }
 0x270   : > { %2866 = vmatpush.bf16.msrb.mxu0 %v6820_v13  ;;  %3011 = vmatpush.bf16.msra.mxu1 %v6824_v21  ;;  %v6784_v24 = vor.u32 %v7412_v31, %v6781_v25  ;;  %v6512_v13 = vor.u32 %v7345_v5, %v6511_v43  ;;  %v7408_v21 = vld [vmem:[#allocation3 + $0x1a4] sm:$0xf] }
 0x272   : > { %2820 = vmatmul.bf16.gmra.mxu2 %v9002_v3 }
 0x273   : > { %2953 = vmatpush.bf16.msra.mxu3 %v6696_v53  ;;  %v6768_v53 = vor.u32 %v7408_v21, %v6765_v22 }
 0x274   : > { %v7421_v29 = vld [vmem:[#allocation3 + $0x204] sm:$0xf0]  ;;  %v6813_v4 = vld [vmem:[#allocation3 + $0x208] sm:$0xf0] }
 0x275   : > { %v6812_v6 = vor.u32 %v7421_v29, %v6811_v19  ;;  %v6816_v28 = vor.u32 %v7420_v46, %v6813_v4  ;;  %v6752_v19 = vor.u32 %v7404_v58, %v6749_v48  ;;  %v6532_v46 = vor.u32 %v7350_v54, %v6531_v63 }
 0x277   : > { %2954 = vmatpush.bf16.msra.mxu3 %v6688_v45  ;;  %2867 = vmatpush.bf16.msrb.mxu0 %v6812_v6  ;;  %v7406_v45 = vld [vmem:[#allocation3 + $0x194] sm:$0xf] }
 0x278   : > { %3012 = vmatpush.bf16.msra.mxu1 %v6816_v28  ;;  %v6760_v0 = vor.u32 %v7406_v45, %v6757_v39  ;;  %v6551_v28 = vld [vmem:[%s11194_s15 + $0x88] sm:$0xf] }
 0x27a   : > { %2849 = vmatmul.bf16.gmra.mxu3 %v9017_v38  ;;  %6841 = vmatmul.msk.bf16.vlgmr.msrb.gmra.mxu0 %vm2731_vm7, %v6492_v49  ;;  %v2782_v37 = vpop.f32.mrf.mxu1 }
 0x27b   : > { %2976 = vmatpush.bf16.msra.mxu0 %v6808_v1  ;;  %6845 = vmatmul.msk.bf16.vlgmr.msra.gmra.mxu1 %vm2731_vm7, %v6492_v49 }
 0x27f   : > { %2977 = vmatpush.bf16.msra.mxu0 %v6800_v16  ;;  %v9074_v16 = vpop.permute.xlu1 %2268 }
 0x282   : > { %2825 = vmatmul.bf16.gmra.mxu2 %v9028_v26 }
 0x283   : > { %2978 = vmatpush.bf16.msra.mxu0 %v6792_v50  ;;  %v2758_v11 = vpop.f32.mrf.mxu2  ;;  %v9085_v50 = vpop.f32.mrf.mxu1 }
 0x287   : > { %2979 = vmatpush.bf16.msra.mxu0 %v6784_v24 }
 0x289   : > { %v2792_v1 = vpop.f32.mrf.mxu3 }
 0x28a   : > { %2854 = vmatmul.bf16.gmra.mxu3 %v9043_v59  ;;  %6842 = vmatmul.msk.bf16.gmra.mxu0 %vm2731_vm7, %v6512_v13 }
 0x28b   : > { %2980 = vmatpush.bf16.msra.mxu0 %v6776_v30  ;;  %6846 = vmatmul.msk.bf16.gmra.mxu1 %vm2731_vm7, %v6512_v13  ;;  %v9055_v29 = vpop.f32.mrf.mxu2 }
 0x28f   : > { %2981 = vmatpush.bf16.msra.mxu0 %v6768_v53 }
 0x292   : > { %2926 = vmatmul.bf16.vlgmr.msra.gmra.mxu2 %v8844_v33 }
 0x293   : > { %2982 = vmatpush.bf16.msra.mxu0 %v6760_v0  ;;  %v2763_v33 = vpop.f32.mrf.mxu2 }
 0x297   : > { %2983 = vmatpush.bf16.msra.mxu0 %v6752_v19  ;;  %v9060_v4 = vpop.permute.xlu2 %2253 }
 0x298   : > { %v2764_v6 = vadd.f32 %v2763_v33, %v9060_v4 }
 0x29a   : > { %6843 = vmatmul.msk.bf16.gmra.mxu0 %vm2731_vm7, %v6532_v46  ;;  %2955 = vmatmul.bf16.vlgmr.msra.gmra.mxu3 %v8947_v27  ;;  %v2793_v49 = vadd.f32 %v2792_v1, %v2764_v6  ;;  %v6552_v27 = vor.u32 %v7355_v32, %v6551_v28 }
 0x29b   : > { %6847 = vmatmul.msk.bf16.gmra.mxu1 %vm2731_vm7, %v6532_v46  ;;  %v9070_v7 = vpop.f32.mrf.mxu2 }
 0x29e   : > { %v9083_v9 = vpop.permute.xlu1 %2258  ;;  %v2753_v10 = vpop.f32.mrf.mxu0 }
 0x2a2   : > { %2931 = vmatmul.bf16.gmra.mxu2 %v8880_v56  ;;  %v9077_v56 = vpop.f32.mrf.mxu3 }
 0x2a3   : > { %v2768_v55 = vpop.f32.mrf.mxu2 }
 0x2a4   : > { %v2769_v61 = vadd.f32 %v2768_v55, %v9079_v12 }
 0x2a6   : > { %v9092_v23 = vpop.permute.xlu1 %2233  ;;  %v2755_v58 = vpop.f32.mrf.mxu0 }
 0x2a7   : > { %v2754_v34 = vadd.f32 %v2753_v10, %v9092_v23 }
 0x2a9   : > { %v2783_v43 = vadd.f32 %v2782_v37, %v2754_v34 }
 0x2aa   : > { %6844 = vmatmul.msk.bf16.gmra.mxu0 %vm2731_vm7, %v6552_v27  ;;  %2960 = vmatmul.bf16.gmra.mxu3 %v8977_v18  ;;  %v2797_v25 = vpop.f32.mrf.mxu3  ;;  %v9087_v18 = vpop.permute.xlu2 %2243 }
 0x2ab   : > { %6848 = vmatmul.msk.bf16.gmra.mxu1 %vm2731_vm7, %v6552_v27  ;;  %v2798_v31 = vadd.f32 %v2797_v25, %v2769_v61  ;;  %v2759_v24 = vadd.f32 %v2758_v11, %v9087_v18  ;;  %v9098_v2 = vpop.f32.mrf.mxu2 }
 0x2b2   : > { %2936 = vmatmul.bf16.gmra.mxu2 %v8861_v8  ;;  %v2787_v8 = vpop.f32.mrf.mxu1 }
 0x2b3   : > { %v2788_v5 = vadd.f32 %v2787_v8, %v2759_v24 }
 0x2ba   : > { %2965 = vmatmul.bf16.gmra.mxu3 %v9002_v3  ;;  %2984 = vmatmul.bf16.vlgmr.msra.gmra.mxu0 %v8960_v15  ;;  %v9100_v3 = vpop.f32.mrf.mxu3  ;;  %v9102_v15 = vpop.f32.mrf.mxu1 }
 0x2c2   : > { %2941 = vmatmul.bf16.gmra.mxu2 %v8900_v51  ;;  %v2898_v21 = vpop.f32.mrf.mxu1 }
 0x2ca   : > { %2970 = vmatmul.bf16.gmra.mxu3 %v9028_v26  ;;  %2989 = vmatmul.bf16.gmra.mxu0 %v8990_v62  ;;  %v2900_v26 = vpop.f32.mrf.mxu1 }
 0x2d2   : > { %v9108_v19 = vpop.f32.mrf.mxu1 }
 0x2d5   : > { %v2811_v30 = vpop.f32.mrf.mxu2 }
 0x2d6   : > { %v2812_v13 = vadd.f32 %v2811_v30, %v2783_v43 }
 0x2da   : > { %2994 = vmatmul.bf16.gmra.mxu0 %v9017_v38  ;;  %v9112_v6 = vpop.f32.mrf.mxu1 }
 0x2dd   : > { %v2813_v22 = vpop.f32.mrf.mxu2  ;;  %v2840_v53 = vpop.f32.mrf.mxu3 }
 0x2de   : > { %v2841_v39 = vadd.f32 %v2840_v53, %v2812_v13 }
 0x2e2   : > { %v9116_v27 = vpop.f32.mrf.mxu1 }
 0x2e5   : > { %v2816_v11 = vpop.f32.mrf.mxu2  ;;  %v2842_v51 = vpop.f32.mrf.mxu3 }
 0x2e6   : > { %v2817_v45 = vadd.f32 %v2816_v11, %v2788_v5 }
 0x2ea   : > { %2999 = vmatmul.bf16.gmra.mxu0 %v9043_v59  ;;  %v9124_v8 = vpop.f32.mrf.mxu1 }
 0x2ed   : > { %v9106_v62 = vpop.f32.mrf.mxu2  ;;  %v2845_v0 = vpop.f32.mrf.mxu3 }
 0x2ee   : > { %v2846_v48 = vadd.f32 %v2845_v0, %v2817_v45 }
 0x2f2   : > { %v9130_v13 = vpop.f32.mrf.mxu1 }
 0x2f5   : > { %v2821_v63 = vpop.f32.mrf.mxu2  ;;  %v9110_v54 = vpop.f32.mrf.mxu3 }
 0x2f6   : > { %v2822_v38 = vadd.f32 %v2821_v63, %v2793_v49 }
 0x2f7   : > { %v2869_v46 = vpop.f32.mrf.mxu0 }
 0x2f8   : > { %v2870_v33 = vadd.f32 %v2869_v46, %v2841_v39 }
 0x2fa   : > { %v9136_v11 = vpop.f32.mrf.mxu1 }
 0x2fd   : > { %v9114_v28 = vpop.f32.mrf.mxu2  ;;  %v2850_v32 = vpop.f32.mrf.mxu3 }
 0x2fe   : > { %v2851_v1 = vadd.f32 %v2850_v32, %v2822_v38 }
 0x2ff   : > { %v2871_v59 = vpop.f32.mrf.mxu0 }
 0x302   : > { %v3014_v63 = vpop.f32.mrf.mxu1 }
 0x305   : > { %v2826_v37 = vpop.f32.mrf.mxu2  ;;  %v9118_v55 = vpop.f32.mrf.mxu3 }
 0x306   : > { %v2827_v61 = vadd.f32 %v2826_v37, %v2798_v31  ;;  %v2899_v37 = vadd.f32 %v2898_v21, %v9092_v23  ;;  %v3034_v23 = vmax.f32 %v2870_v33, 0.0 }
 0x307   : > { %v2874_v25 = vpop.f32.mrf.mxu0 }
 0x308   : > { %v9120_v24 = vadd.f32 %v2874_v25, %v2846_v48 }
 0x30d   : > { %v2855_v10 = vpop.f32.mrf.mxu3  ;;  %v9128_v30 = vpop.f32.mrf.mxu2 }
 0x30e   : > { %v2856_v49 = vadd.f32 %v2855_v10, %v2827_v61  ;;  %v3016_v10 = vpop.f32.mrf.mxu1 }
 0x30f   : > { %v9122_v34 = vpop.f32.mrf.mxu0 }
 0x315   : > { %v9132_v53 = vpop.f32.mrf.mxu3  ;;  %v2927_v31 = vpop.f32.mrf.mxu2 }
 0x316   : > { %v2928_v25 = vadd.f32 %v2927_v31, %v2899_v37  ;;  %v3019_v37 = vpop.f32.mrf.mxu1 }
 0x317   : > { %v2879_v43 = vpop.f32.mrf.mxu0 }
 0x318   : > { %v9126_v5 = vadd.f32 %v2879_v43, %v2851_v1  ;;  %v2239_v1 = vpop.permute.xlu2 %2238 }
 0x319   : > { %v2756_v61 = vadd.f32 %v2755_v58, %v2239_v1  ;;  %v2901_v42 = vadd.f32 %v2900_v26, %v2239_v1 }
 0x31b   : > { %v2785_v20 = vadd.f32 %v9085_v50, %v2756_v61 }
 0x31d   : > { %v2956_v45 = vpop.f32.mrf.mxu3  ;;  %v2929_v38 = vpop.f32.mrf.mxu2  ;;  %v2814_v44 = vadd.f32 %v2813_v22, %v2785_v20  ;;  %v11071_v20 = vunpack.c.l.bf16 %v9154_v47  ;;  %v2904_v22 = vadd.f32 %v9108_v19, %v9087_v18 }
 0x31e   : > { %v2957_v43 = vadd.f32 %v2956_v45, %v2928_v25  ;;  %v2930_v31 = vadd.f32 %v2929_v38, %v2901_v42  ;;  %v11070_v42 = vunpack.c.h.bf16 %v9154_v47 }
 0x31f   : > { %v9134_v39 = vpop.f32.mrf.mxu0  ;;  %v2843_v58 = vadd.f32 %v2842_v51, %v2814_v44 }
 0x325   : > { %v2958_v46 = vpop.f32.mrf.mxu3  ;;  %v2932_v60 = vpop.f32.mrf.mxu2 }
 0x326   : > { %v2959_v61 = vadd.f32 %v2958_v46, %v2930_v31 }
 0x327   : > { %v2884_v0 = vpop.f32.mrf.mxu0 }
 0x328   : > { %v9138_v48 = vadd.f32 %v2884_v0, %v2856_v49  ;;  %v11074_v49 = vunpack.c.l.bf16 %v9145_v40  ;;  %v11072_v0 = vunpack.c.h.bf16 %v9145_v40 }
 0x32a   : > { %v3050_v50 = vadd.f32 %v3034_v23, %v11074_v49 }
 0x32d   : > { %v2961_v14 = vpop.f32.mrf.mxu3  ;;  %v2934_v44 = vpop.f32.mrf.mxu2 }
 0x32f   : > { %v9140_v32 = vpop.f32.mrf.mxu0 }
 0x335   : > { %v2963_v33 = vpop.f32.mrf.mxu3 }
 0x337   : > { %v2985_v52 = vpop.f32.mrf.mxu0 }
 0x338   : > { %v2986_v17 = vadd.f32 %v2985_v52, %v2957_v43  ;;  %v2872_v52 = vadd.f32 %v2871_v59, %v2843_v58  ;;  %v3021_v58 = vpop.f32.mrf.mxu1 }
 0x33a   : > { %v3015_v21 = vadd.f32 %v3014_v63, %v2986_v17  ;;  %v2249_v17 = vpop.permute.xlu0 %2248  ;;  %v3036_v51 = vmax.f32 %v2872_v52, 0.0  ;;  %v2933_v63 = vadd.f32 %v2932_v60, %v2904_v22 }
 0x33b   : > { %v2761_v59 = vadd.f32 %v9055_v29, %v2249_v17  ;;  %v2906_v31 = vadd.f32 %v9112_v6, %v2249_v17 }
 0x33c   : > { %v3035_v45 = vmax.f32 %v3015_v21, 0.0  ;;  %v3052_v46 = vadd.f32 %v3036_v51, %v11071_v20  ;;  %v2962_v1 = vadd.f32 %v2961_v14, %v2933_v63  ;;  %v3038_v14 = vmax.f32 %v9120_v24, 0.0  ;;  %v9183_v51 = vld [vmem:[%s7814_s4 + $0x18] sm:$0xff] }
 0x33d   : > { %v2790_v18 = vadd.f32 %v9102_v15, %v2761_v59  ;;  %v2935_v52 = vadd.f32 %v2934_v44, %v2906_v31  ;;  %11198 = vst [vmem:[#allocation21_spill] sm:$0xff] %v9183_v51  ;;  %v11066_v44 = vunpack.c.h.bf16 %v9183_v51  ;;  %v2909_v59 = vadd.f32 %v9116_v27, %v9060_v4 }
 0x33e   : > { %v3051_v25 = vadd.f32 %v3035_v45, %v11072_v0 }
 0x33f   : > { %v2987_v43 = vpop.f32.mrf.mxu0  ;;  %v2819_v29 = vadd.f32 %v9106_v62, %v2790_v18  ;;  %v2964_v62 = vadd.f32 %v2963_v33, %v2935_v52  ;;  %v2766_v33 = vadd.f32 %v9070_v7, %v9083_v9 }
 0x340   : > { %v3066_v35 = vpack.c.bf16 %v3051_v25, %v3050_v50  ;;  %v2988_v36 = vadd.f32 %v2987_v43, %v2959_v61  ;;  %v2937_v50 = vpop.f32.mrf.mxu2  ;;  %v2966_v25 = vpop.f32.mrf.mxu3 }
 0x341   : > { %v2848_v15 = vadd.f32 %v9110_v54, %v2819_v29  ;;  %v3024_v54 = vpop.f32.mrf.mxu1  ;;  %v2795_v27 = vadd.f32 %v9077_v56, %v2766_v33  ;;  %v9198_v29 = vld [vmem:[%s7814_s4 + $0x20] sm:$0xff] }
 0x342   : > { %v3017_v26 = vadd.f32 %v3016_v10, %v2988_v36  ;;  %3082 = vrot.lane.b32.xlu0 %v3066_v35, %s7672_s29  ;;  %v9168_v10 = vld [vmem:[%s7814_s4 + $0x10] sm:$0xff]  ;;  %11199 = vst [vmem:[#allocation12_spill] sm:$0xff] %v9198_v29  ;;  %v11065_v7 = vunpack.c.l.bf16 %v9198_v29  ;;  %v11064_v31 = vunpack.c.h.bf16 %v9198_v29 }
 0x343   : > { %11197 = vst [vmem:[#allocation22_spill] sm:$0xff] %v9168_v10  ;;  %v11069_v35 = vunpack.c.l.bf16 %v9168_v10  ;;  %v11068_v60 = vunpack.c.h.bf16 %v9168_v10  ;;  %v2877_v22 = vadd.f32 %v9122_v34, %v2848_v15 }
 0x344   : > { %v3037_v38 = vmax.f32 %v3017_v26, 0.0  ;;  %v11067_v26 = vunpack.c.l.bf16 %v9183_v51  ;;  %v11230_v51 = vld [vmem:[#allocation6_spill] sm:$0xff] }
 0x345   : > { %v3054_v43 = vadd.f32 %v3038_v14, %v11069_v35  ;;  %v3040_v63 = vmax.f32 %v2877_v22, 0.0  ;;  %v2824_v14 = vadd.f32 %v9114_v28, %v2795_v27 }
 0x346   : > { %v3053_v23 = vadd.f32 %v3037_v38, %v11070_v42  ;;  %v2938_v38 = vadd.f32 %v2937_v50, %v2909_v59  ;;  %v3042_v50 = vmax.f32 %v9126_v5, 0.0 }
 0x347   : > { %v2990_v21 = vpop.f32.mrf.mxu0  ;;  %v2853_v52 = vadd.f32 %v9118_v55, %v2824_v14  ;;  %v3046_v14 = vmax.f32 %v9138_v48, 0.0 }
 0x348   : > { %v2991_v19 = vadd.f32 %v2990_v21, %v2962_v1  ;;  %v3067_v36 = vpack.c.bf16 %v3053_v23, %v3052_v46  ;;  %v2939_v1 = vpop.f32.mrf.mxu2  ;;  %v3056_v23 = vadd.f32 %v3040_v63, %v11067_v26  ;;  %v2967_v21 = vadd.f32 %v2966_v25, %v2938_v38 }
 0x349   : > { %v3026_v56 = vpop.f32.mrf.mxu1  ;;  %v2882_v22 = vadd.f32 %v9134_v39, %v2853_v52  ;;  %v2771_v63 = vadd.f32 %v9098_v2, %v9074_v16 }
 0x34a   : > { %v3020_v45 = vadd.f32 %v3019_v37, %v2991_v19  ;;  %3084 = vrot.lane.b32.xlu1 %v3067_v36, %s7672_s29  ;;  %v2968_v19 = vpop.f32.mrf.mxu3 }
 0x34b   : > { %v3044_v39 = vmax.f32 %v2882_v22, 0.0  ;;  %v9245_v22 = vld [vmem:[%s7814_s4 + $0x38] sm:$0xff] }
 0x34c   : > { %v3039_v61 = vmax.f32 %v3020_v45, 0.0  ;;  %v2911_v45 = vadd.f32 %v9124_v8, %v9083_v9  ;;  %11202 = vst [vmem:[#allocation15_spill] sm:$0xff] %v9245_v22 }
 0x34e   : > { %v3055_v6 = vadd.f32 %v3039_v61, %v11068_v60  ;;  %v2940_v61 = vadd.f32 %v2939_v1, %v2911_v45 }
 0x34f   : > { %v2992_v17 = vpop.f32.mrf.mxu0 }
 0x350   : > { %v3068_v24 = vpack.c.bf16 %v3055_v6, %v3054_v43  ;;  %v2993_v37 = vadd.f32 %v2992_v17, %v2964_v62  ;;  %v3058_v43 = vadd.f32 %v3042_v50, %v11065_v7  ;;  %v2969_v28 = vadd.f32 %v2968_v19, %v2940_v61  ;;  %v2942_v8 = vpop.f32.mrf.mxu2  ;;  %v9214_v17 = vld [vmem:[%s7814_s4 + $0x28] sm:$0xff]  ;;  %v9229_v19 = vld [vmem:[%s7814_s4 + $0x30] sm:$0xff]  ;;  %s11204_s4 = smov 112  }
 0x351   : > { %11200 = vst [vmem:[#allocation24_spill] sm:$0xff] %v9214_v17  ;;  %v3029_v38 = vpop.f32.mrf.mxu1  ;;  %v11060_v2 = vunpack.c.h.bf16 %v9229_v19 }
 0x352   : > { %v3022_v34 = vadd.f32 %v3021_v58, %v2993_v37  ;;  %3086 = vrot.lane.b32.xlu1 %v3068_v24, %s7672_s29  ;;  %v11063_v24 = vunpack.c.l.bf16 %v9214_v17  ;;  %v2971_v55 = vpop.f32.mrf.mxu3  ;;  %v11062_v37 = vunpack.c.h.bf16 %v9214_v17  ;;  %11201 = vst [vmem:[#allocation23_spill] sm:$0xff] %v9229_v19  ;;  %v11229_v17 = vld [vmem:[#allocation5_spill] sm:$0xff] }
 0x354   : > { %v3041_v46 = vmax.f32 %v3022_v34, 0.0 }
 0x356   : > { %v3057_v18 = vadd.f32 %v3041_v46, %v11066_v44  ;;  %v3060_v46 = vadd.f32 %v3044_v39, %v11063_v24 }
 0x357   : > { %v2995_v4 = vpop.f32.mrf.mxu0 }
 0x358   : > { %v3069_v58 = vpack.c.bf16 %v3057_v18, %v3056_v23  ;;  %v2996_v36 = vadd.f32 %v2995_v4, %v2967_v21  ;;  %v11061_v4 = vunpack.c.l.bf16 %v9229_v19  ;;  %v2944_v27 = vpop.f32.mrf.mxu2 }
 0x35a   : > { %v3025_v15 = vadd.f32 %v3024_v54, %v2996_v36  ;;  %3088 = vrot.lane.b32.xlu2 %v3069_v58, %s7672_s29  ;;  %v2914_v54 = vadd.f32 %v9130_v13, %v9079_v12  ;;  %v2800_v12 = vadd.f32 %v9100_v3, %v2771_v63  ;;  %v2916_v36 = vadd.f32 %v9136_v11, %v9074_v16  ;;  %v2973_v3 = vpop.f32.mrf.mxu3 }
 0x35b   : > { %v3062_v52 = vadd.f32 %v3046_v14, %v11061_v4 }
 0x35c   : > { %v3043_v25 = vmax.f32 %v3025_v15, 0.0  ;;  %v2943_v34 = vadd.f32 %v2942_v8, %v2914_v54  ;;  %v2829_v58 = vadd.f32 %v9128_v30, %v2800_v12  ;;  %v2945_v15 = vadd.f32 %v2944_v27, %v2916_v36 }
 0x35e   : > { %v3059_v9 = vadd.f32 %v3043_v25, %v11064_v31  ;;  %v2972_v1 = vadd.f32 %v2971_v55, %v2943_v34  ;;  %v2858_v50 = vadd.f32 %v9132_v53, %v2829_v58  ;;  %v2974_v30 = vadd.f32 %v2973_v3, %v2945_v15  ;;  %v3031_v25 = vpop.f32.mrf.mxu1 }
 0x35f   : > { %v2997_v62 = vpop.f32.mrf.mxu0  ;;  %v11073_v53 = vunpack.c.h.bf16 %v9245_v22 }
 0x360   : > { %v3070_v5 = vpack.c.bf16 %v3059_v9, %v3058_v43  ;;  %v2998_v6 = vadd.f32 %v2997_v62, %v2969_v28  ;;  %v2887_v61 = vadd.f32 %v9140_v32, %v2858_v50  ;;  %v11075_v28 = vunpack.c.l.bf16 %v9245_v22 }
 0x362   : > { %v3027_v59 = vadd.f32 %v3026_v56, %v2998_v6  ;;  %3090 = vrot.lane.b32.xlu2 %v3070_v5, %s7672_s29  ;;  %v3048_v9 = vmax.f32 %v2887_v61, 0.0 }
 0x364   : > { %v3045_v33 = vmax.f32 %v3027_v59, 0.0  ;;  %v3064_v32 = vadd.f32 %v3048_v9, %v11075_v28 }
 0x366   : > { %v3061_v23 = vadd.f32 %v3045_v33, %v11062_v37 }
 0x367   : > { %v3000_v21 = vpop.f32.mrf.mxu0 }
 0x368   : > { %v3071_v13 = vpack.c.bf16 %v3061_v23, %v3060_v46  ;;  %v3001_v18 = vadd.f32 %v3000_v21, %v2972_v1 }
 0x36a   : > { %v3030_v45 = vadd.f32 %v3029_v38, %v3001_v18  ;;  %3092 = vrot.lane.b32.xlu0 %v3071_v13, %s7672_s29 }
 0x36c   : > { %v3047_v56 = vmax.f32 %v3030_v45, 0.0 }
 0x36e   : > { %v3063_v16 = vadd.f32 %v3047_v56, %v11060_v2 }
 0x36f   : > { %v3002_v11 = vpop.f32.mrf.mxu0 }
 0x370   : > { %v3072_v48 = vpack.c.bf16 %v3063_v16, %v3062_v52  ;;  %v3003_v43 = vadd.f32 %v3002_v11, %v2974_v30 }
 0x372   : > { %v3032_v8 = vadd.f32 %v3031_v25, %v3003_v43  ;;  %3094 = vrot.lane.b32.xlu0 %v3072_v48, %s7672_s29  ;;  %v11205_v43 = vld [vmem:[#allocation17_spill] sm:$0xff] }
 0x374   : > { %v3049_v62 = vmax.f32 %v3032_v8, 0.0  ;;  %v11206_v8 = vld [vmem:[#allocation18_spill] sm:$0xff] }
 0x376   : > { %v3065_v5 = vadd.f32 %v3049_v62, %v11073_v53 }
 0x378   : > { %v3073_v6 = vpack.c.bf16 %v3065_v5, %v3064_v32  ;;  %v11207_v32 = vld [vmem:[#allocation16_spill] sm:$0xff] }
 0x37a   : > { %3096 = vrot.lane.b32.xlu1 %v3073_v6, %s7672_s29  ;;  %v11208_v6 = vld [vmem:[#allocation13_spill] sm:$0xff]  ;;  %s11210_s29 = smov 110  }
 0x3b4   : > { %v3089_v55 = vpop.permute.xlu2 %3088  ;;  %v3083_v54 = vpop.permute.xlu0 %3082 }
 0x3b5   : > { %v3101_v39 = vrot.slane %v3089_v55, 4  ;;  %v3098_v59 = vrot.slane %v3083_v54, 4 }
 0x3b7   : > { %v3109_v63 = vsel %vm728_vm3, %v3101_v39, %v3089_v55  ;;  %3137 = vst.msk [vmem:[#allocation2 + $0x2c] sm:$0xf] %vm757_vm4, %v3101_v39  ;;  %v3106_v34 = vsel %vm728_vm3, %v3098_v59, %v3083_v54  ;;  %v11209_v54 = vld [vmem:[#allocation14_spill] sm:$0xff] }
 0x3b8   : > { %3136 = vst.msk [vmem:[#allocation2 + $0x24] sm:$0xff] %vm7849_vm5, %v3109_v63 }
 0x3b9   : > { %3130 = vst.msk [vmem:[#allocation2] sm:$0xff] %vm7849_vm5, %v3106_v34 }
 0x3ba   : > { %3131 = vst.msk [vmem:[#allocation2 + $0x8] sm:$0xf] %vm757_vm4, %v3098_v59 }
 0x3bc   : > { %v3085_v38 = vpop.permute.xlu1 %3084  ;;  %v3091_v46 = vpop.permute.xlu2 %3090 }
 0x3bd   : > { %v3099_v1 = vrot.slane %v3085_v38, 4  ;;  %v3102_v23 = vrot.slane %v3091_v46, 4 }
 0x3bf   : > { %v3107_v21 = vsel %vm728_vm3, %v3099_v1, %v3085_v38  ;;  %3133 = vst.msk [vmem:[#allocation2 + $0x14] sm:$0xf] %vm757_vm4, %v3099_v1  ;;  %v3110_v12 = vsel %vm728_vm3, %v3102_v23, %v3091_v46  ;;  %v11211_v38 = vld [vmem:[#allocation8_spill] sm:$0xff]  ;;  %v11212_v1 = vld [vmem:[#allocation10_spill] sm:$0xff] }
 0x3c0   : > { %3132 = vst.msk [vmem:[#allocation2 + $0xc] sm:$0xff] %vm7849_vm5, %v3107_v21  ;;  %v3202_v13 = vld [vmem:[#allocation2] sm:$0xff] }
 0x3c1   : > { %3138 = vst.msk [vmem:[#allocation2 + $0x30] sm:$0xff] %vm7849_vm5, %v3110_v12  ;;  %v4131_v18 = vld [vmem:[#allocation2 + $0x8] sm:$0xf]  ;;  %3234 = vrot.lane.b32.xlu2 %v3202_v13, %s7679_s26  ;;  %v3330_v16 = vunpack.c.l.bf16 %v3202_v13  ;;  %v3331_v11 = vunpack.c.h.bf16 %v3202_v13 }
 0x3c2   : > { %v3203_v27 = vld [vmem:[#allocation2 + $0x8] sm:$0xf]  ;;  %3139 = vst.msk [vmem:[#allocation2 + $0x38] sm:$0xf] %vm757_vm4, %v3102_v23  ;;  %4164 = vrot.lane.b32.xlu1 %v4131_v18, %s7683_s0 }
 0x3c3   : > { %3236 = vrot.lane.b32.xlu0 %v3203_v27, %s7679_s26  ;;  %v3491_v58 = vld [vmem:[#allocation2 + $0x8] sm:$0xf]  ;;  %v3818_v9 = vmul.f32 %v11205_v43, %v3330_v16  ;;  %v3819_v62 = vmul.f32 %v3331_v11, %v11206_v8  ;;  %v3354_v55 = vmul.f32 %v11208_v6, %v3330_v16  ;;  %v3355_v39 = vmul.f32 %v3331_v11, %v11209_v54 }
 0x3c4   : > { %v3315_v36 = vld [vmem:[#allocation2 + $0x8] sm:$0xf]  ;;  %v3508_v14 = vunpack.c.l.bf16 %v3491_v58  ;;  %v3087_v3 = vpop.permute.xlu1 %3086  ;;  %v3530_v46 = vmul.f32 %v11211_v38, %v3330_v16  ;;  %v3531_v23 = vmul.f32 %v3331_v11, %v11212_v1 }
 0x3c5   : > { %v3332_v45 = vunpack.c.l.bf16 %v3315_v36  ;;  %v3100_v50 = vrot.slane %v3087_v3, 4  ;;  %v3779_v52 = vld [vmem:[#allocation2 + $0x8] sm:$0xf]  ;;  %v3842_v59 = vpack.c.bf16 %v3819_v62, %v3818_v9  ;;  %v3378_v34 = vpack.c.bf16 %v3355_v39, %v3354_v55 }
 0x3c6   : > { %v3532_v15 = vmul.f32 %v7869_v41, %v3508_v14  ;;  %v3796_v48 = vunpack.c.l.bf16 %v3779_v52  ;;  %v3317_v21 = vld [vmem:[#allocation2 + $0x14] sm:$0xf]  ;;  %v3554_v12 = vpack.c.bf16 %v3531_v23, %v3530_v46 }
 0x3c7   : > { %v3356_v56 = vmul.f32 %v7987_v57, %v3332_v45  ;;  %v3108_v61 = vsel %vm728_vm3, %v3100_v50, %v3087_v3  ;;  %3135 = vst.msk [vmem:[#allocation2 + $0x20] sm:$0xf] %vm757_vm4, %v3100_v50  ;;  %v3335_v18 = vunpack.c.l.bf16 %v3317_v21  ;;  %v3204_v27 = vld [vmem:[#allocation2 + $0xc] sm:$0xff]  ;;  %v3781_v14 = vld [vmem:[#allocation2 + $0x14] sm:$0xf] }
 0x3c8   : > { %3134 = vst.msk [vmem:[#allocation2 + $0x18] sm:$0xff] %vm7849_vm5, %v3108_v61  ;;  %v3555_v25 = vpack.c.bf16 %v3532_v15, %v3532_v15  ;;  %v3820_v5 = vmul.f32 %v11207_v32, %v3796_v48  ;;  %v3493_v3 = vld [vmem:[#allocation2 + $0x14] sm:$0xf]  ;;  %v3799_v15 = vunpack.c.l.bf16 %v3781_v14  ;;  %v3797_v61 = vunpack.c.l.bf16 %v3204_v27  ;;  %v11213_v14 = vld [vmem:[#allocation28_spill] sm:$0xff] }
 0x3c9   : > { %v3379_v30 = vpack.c.bf16 %v3356_v56, %v3356_v56  ;;  %v3359_v36 = vmul.f32 %v7987_v57, %v3335_v18  ;;  %v3511_v52 = vunpack.c.l.bf16 %v3493_v3  ;;  %v4133_v16 = vld [vmem:[#allocation2 + $0x14] sm:$0xf] }
 0x3ca   : > { %3588 = vrot.lane.b32.xlu1 %v3555_v25, %s11204_s4  ;;  %v3843_v63 = vpack.c.bf16 %v3820_v5, %v3820_v5  ;;  %v3823_v11 = vmul.f32 %v11207_v32, %v3799_v15  ;;  %v3821_v9 = vmul.f32 %v11205_v43, %v3797_v61  ;;  %v9308_v55 = vld [vmem:[#allocation2 + $0x30] sm:$0xff]  ;;  %v3533_v18 = vmul.f32 %v11211_v38, %v3797_v61 }
 0x3cb   : > { %3412 = vrot.lane.b32.xlu2 %v3379_v30, %s7681_s28  ;;  %4162 = vrot.lane.b32.xlu0 %v3202_v13, %s7683_s0  ;;  %v3205_v13 = vld [vmem:[#allocation2 + $0x14] sm:$0xf]  ;;  %v3381_v56 = vpack.c.bf16 %v3359_v36, %v3359_v36  ;;  %v3798_v30 = vunpack.c.h.bf16 %v3204_v27  ;;  %v3535_v48 = vmul.f32 %v7869_v41, %v3511_v52  ;;  %v9315_v23 = vunpack.c.l.bf16 %v9308_v55 }
 0x3cc   : > { %v9318_v21 = vunpack.c.h.bf16 %v9308_v55  ;;  %v11214_v3 = vld [vmem:[#allocation31_spill] sm:$0xff] }
 0x3cd   : > { %v3822_v62 = vmul.f32 %v3798_v30, %v11206_v8  ;;  %v3358_v36 = vmul.f32 %v3798_v30, %v11209_v54  ;;  %v3150_v28 = vld [vmem:[#allocation2 + $0x30] sm:$0xff] }
 0x3ce   : > { %v4135_v42 = vld [vmem:[#allocation2 + $0x20] sm:$0xf] }
 0x3cf   : > { %v3844_v46 = vpack.c.bf16 %v3822_v62, %v3821_v9  ;;  %v4246_v15 = vld [vmem:[#allocation2 + $0x18] sm:$0xff]  ;;  %v3783_v19 = vld [vmem:[#allocation2 + $0x20] sm:$0xf] }
 0x3d0   : > { %v3802_v40 = vunpack.c.l.bf16 %v3783_v19 }
 0x3d2   : > { %3410 = vrot.lane.b32.xlu1 %v3378_v34, %s7681_s28  ;;  %v3557_v34 = vpack.c.bf16 %v3535_v48, %v3535_v48 }
 0x3d3   : > { %3874 = vrot.lane.b32.xlu2 %v3842_v59, %s11210_s29  ;;  %3876 = vrot.lane.b32.xlu0 %v3843_v63, %s11210_s29  ;;  %v3845_v59 = vpack.c.bf16 %v3823_v11, %v3823_v11  ;;  %v4248_v63 = vld [vmem:[#allocation2 + $0x24] sm:$0xff]  ;;  %v4265_v11 = vunpack.c.h.bf16 %v4246_v15 }
 0x3d5   : > { %v3175_v10 = vmul.f32 %v4265_v11, %v11230_v51 }
 0x3da   : > { %3238 = vrot.lane.b32.xlu1 %v3204_v27, %s7679_s26 }
 0x3db   : > { %3240 = vrot.lane.b32.xlu2 %v3205_v13, %s7679_s26  ;;  %3586 = vrot.lane.b32.xlu0 %v3554_v12, %s11204_s4  ;;  %v9323_v12 = vunpack.c.l.bf16 %v4248_v63  ;;  %v3357_v13 = vmul.f32 %v11208_v6, %v3797_v61  ;;  %v3162_v61 = vunpack.c.l.bf16 %v3150_v28 }
 0x3dc   : > { %v3093_v58 = vpop.permute.xlu0 %3092 }
 0x3dd   : > { %v3103_v45 = vrot.slane %v3093_v58, 4  ;;  %v3380_v62 = vpack.c.bf16 %v3358_v36, %v3357_v13  ;;  %v4244_v13 = vld [vmem:[#allocation2 + $0xc] sm:$0xff]  ;;  %v3178_v47 = vmul.f32 %v3162_v61, %v11229_v17  ;;  %v3176_v53 = vmul.f32 %v9323_v12, %v11229_v17 }
 0x3de   : > { %v4261_v4 = vunpack.c.l.bf16 %v4244_v13  ;;  %v4262_v24 = vunpack.c.h.bf16 %v4244_v13 }
 0x3df   : > { %v3111_v50 = vsel %vm728_vm3, %v3103_v45, %v3093_v58  ;;  %3141 = vst.msk [vmem:[#allocation2 + $0x44] sm:$0xf] %vm757_vm4, %v3103_v45  ;;  %v9331_v45 = vmul.f32 %v11213_v14, %v9315_v23 }
 0x3e0   : > { %3140 = vst.msk [vmem:[#allocation2 + $0x3c] sm:$0xff] %vm7849_vm5, %v3111_v50  ;;  %v9335_v50 = vmul.f32 %v9318_v21, %v11214_v3  ;;  %v9422_v7 = vmul.f32 %v11213_v14, %v4261_v4  ;;  %v9429_v37 = vmul.f32 %v4262_v24, %v11214_v3 }
 0x3e2   : > { %3416 = vrot.lane.b32.xlu1 %v3381_v56, %s7681_s28  ;;  %v9337_v56 = vunpack.c.h.bf16 %v4248_v63  ;;  %11227 = vst [vmem:[#allocation13_spill] sm:$0xff] %v9422_v7  ;;  %v3785_v7 = vld [vmem:[#allocation2 + $0x2c] sm:$0xf] }
 0x3e3   : > { %4166 = vrot.lane.b32.xlu2 %v3204_v27, %s7683_s0  ;;  %4168 = vrot.lane.b32.xlu0 %v4133_v16, %s7683_s0  ;;  %v3534_v27 = vmul.f32 %v3798_v30, %v11212_v1  ;;  %v9339_v16 = vunpack.c.l.bf16 %v4246_v15  ;;  %v11215_v30 = vld [vmem:[#allocation30_spill] sm:$0xff]  ;;  %11228 = vst [vmem:[#allocation14_spill] sm:$0xff] %v9429_v37 }
 0x3e4   : > { %v3095_v25 = vpop.permute.xlu0 %3094  ;;  %v9393_v44 = vmul.f32 %v11215_v30, %v4261_v4 }
 0x3e5   : > { %v3104_v5 = vrot.slane %v3095_v25, 4  ;;  %v3556_v9 = vpack.c.bf16 %v3534_v27, %v3533_v18  ;;  %v3319_v18 = vld [vmem:[#allocation2 + $0x20] sm:$0xf]  ;;  %v9365_v33 = vmul.f32 %v11213_v14, %v9339_v16  ;;  %v3174_v29 = vmul.f32 %v9339_v16, %v11229_v17 }
 0x3e6   : > { %v3338_v2 = vunpack.c.l.bf16 %v3319_v18  ;;  %11221 = vst [vmem:[#allocation32_spill] sm:$0xff] %v9393_v44 }
 0x3e7   : > { %v3112_v39 = vsel %vm728_vm3, %v3104_v5, %v3095_v25  ;;  %3143 = vst.msk [vmem:[#allocation2 + $0x50] sm:$0xf] %vm757_vm4, %v3104_v5  ;;  %v9345_v25 = vmul.f32 %v11215_v30, %v9323_v12  ;;  %v3206_v5 = vld [vmem:[#allocation2 + $0x18] sm:$0xff] }
 0x3e8   : > { %3142 = vst.msk [vmem:[#allocation2 + $0x48] sm:$0xff] %vm7849_vm5, %v3112_v39  ;;  %v9353_v39 = vmul.f32 %v11215_v30, %v9339_v16  ;;  %v9373_v36 = vunpack.c.l.bf16 %v3206_v5  ;;  %v9375_v15 = vunpack.c.h.bf16 %v3206_v5  ;;  %v3362_v13 = vmul.f32 %v7987_v57, %v3338_v2 }
 0x3e9   : > { %11217 = vst [vmem:[#allocation11_spill] sm:$0xff] %v9365_v33  ;;  %v3211_v33 = vld [vmem:[#allocation2 + $0x38] sm:$0xf] }
 0x3ea   : > { %3878 = vrot.lane.b32.xlu1 %v3844_v46, %s11210_s29  ;;  %v3207_v46 = vld [vmem:[#allocation2 + $0x20] sm:$0xf]  ;;  %v3360_v26 = vmul.f32 %v11208_v6, %v9373_v36  ;;  %v3361_v20 = vmul.f32 %v9375_v15, %v11209_v54  ;;  %v3383_v27 = vpack.c.bf16 %v3362_v13, %v3362_v13  ;;  %v3188_v13 = vpack.c.bf16 %v3175_v10, %v3174_v29 }
 0x3eb   : > { %3880 = vrot.lane.b32.xlu2 %v3845_v59, %s11210_s29  ;;  %3592 = vrot.lane.b32.xlu0 %v3557_v34, %s11204_s4  ;;  %v11216_v59 = vld [vmem:[#allocation33_spill] sm:$0xff]  ;;  %v3825_v19 = vmul.f32 %v9375_v15, %v11206_v8 }
 0x3ec   : > { %v3097_v58 = vpop.permute.xlu1 %3096  ;;  %v9356_v63 = vmul.f32 %v4265_v11, %v11216_v59  ;;  %v9360_v34 = vmul.f32 %v9337_v56, %v11216_v59  ;;  %v9398_v60 = vmul.f32 %v4262_v24, %v11216_v59  ;;  %3196 = vst [vmem:[#allocation3 + $0x10] sm:$0xff] %v3188_v13  ;;  %v3321_v13 = vld [vmem:[#allocation2 + $0x2c] sm:$0xf] }
 0x3ed   : > { %v3105_v52 = vrot.slane %v3097_v58, 4 }
 0x3ee   : > { %11222 = vst [vmem:[#allocation34_spill] sm:$0xff] %v9398_v60 }
 0x3ef   : > { %v3113_v48 = vsel %vm728_vm3, %v3105_v52, %v3097_v58  ;;  %3145 = vst.msk [vmem:[#allocation2 + $0x5c] sm:$0xf] %vm757_vm4, %v3105_v52  ;;  %v3495_v52 = vld [vmem:[#allocation2 + $0x20] sm:$0xf]  ;;  %v3382_v58 = vpack.c.bf16 %v3361_v20, %v3360_v26  ;;  %v3177_v20 = vmul.f32 %v9337_v56, %v11230_v51  ;;  %vm5372_vm3 = vcmask 64512  }
 0x3f0   : > { %3144 = vst.msk [vmem:[#allocation2 + $0x54] sm:$0xff] %vm7849_vm5, %v3113_v48  ;;  %v9378_v48 = vmul.f32 %v4265_v11, %v11214_v3  ;;  %v3514_v31 = vunpack.c.l.bf16 %v3495_v52  ;;  %v3172_v11 = vmul.f32 %v4261_v4, %v11229_v17  ;;  %v3826_v4 = vmul.f32 %v11207_v32, %v3802_v40 }
 0x3f1   : > { %v3189_v16 = vpack.c.bf16 %v3177_v20, %v3176_v53  ;;  %v3209_v20 = vld [vmem:[#allocation2 + $0x2c] sm:$0xf] }
 0x3f2   : > { %3244 = vrot.lane.b32.xlu1 %v3207_v46, %s7679_s26  ;;  %11218 = vst [vmem:[#allocation9_spill] sm:$0xff] %v9378_v48  ;;  %v9386_v46 = vmul.f32 %v9337_v56, %v11214_v3  ;;  %v3538_v2 = vmul.f32 %v7869_v41, %v3514_v31  ;;  %v3163_v31 = vunpack.c.h.bf16 %v3150_v28  ;;  %v3847_v56 = vpack.c.bf16 %v3826_v4, %v3826_v4 }
 0x3f3   : > { %3590 = vrot.lane.b32.xlu2 %v3556_v9, %s11204_s4  ;;  %3414 = vrot.lane.b32.xlu0 %v3380_v62, %s7681_s28  ;;  %v4242_v9 = vld [vmem:[#allocation2] sm:$0xff]  ;;  %v9382_v62 = vmul.f32 %v11213_v14, %v9323_v12  ;;  %3197 = vst [vmem:[#allocation3 + $0x18] sm:$0xff] %v3189_v16 }
 0x3f4   : > { %11220 = vst [vmem:[#allocation26_spill] sm:$0xff] %v9386_v46  ;;  %v4258_v18 = vunpack.c.l.bf16 %v4242_v9  ;;  %v4259_v35 = vunpack.c.h.bf16 %v4242_v9  ;;  %v3179_v26 = vmul.f32 %v3163_v31, %v11230_v51  ;;  %v9469_v31 = vld [vmem:[#allocation2 + $0x3c] sm:$0xff] }
 0x3f5   : > { %11219 = vst [vmem:[#allocation25_spill] sm:$0xff] %v9382_v62  ;;  %v9482_v16 = vunpack.c.h.bf16 %v9469_v31 }
 0x3f6   : > { %v9404_v52 = vmul.f32 %v11215_v30, %v4258_v18  ;;  %v9407_v0 = vmul.f32 %v11213_v14, %v4258_v18  ;;  %v9413_v49 = vmul.f32 %v4259_v35, %v11216_v59  ;;  %v9416_v9 = vmul.f32 %v4259_v35, %v11214_v3 }
 0x3f7   : > { %v3171_v28 = vmul.f32 %v4259_v35, %v11230_v51  ;;  %v3190_v61 = vpack.c.bf16 %v3179_v26, %v3178_v47  ;;  %v3824_v35 = vmul.f32 %v11205_v43, %v9373_v36 }
 0x3f8   : > { %11223 = vst [vmem:[#allocation7_spill] sm:$0xff] %v9404_v52 }
 0x3f9   : > { %11224 = vst [vmem:[#allocation17_spill] sm:$0xff] %v9407_v0  ;;  %v3846_v12 = vpack.c.bf16 %v3825_v19, %v3824_v35  ;;  %v3152_v35 = vld [vmem:[#allocation2 + $0x48] sm:$0xff] }
 0x3fa   : > { %11225 = vst [vmem:[#allocation18_spill] sm:$0xff] %v9413_v49  ;;  %4170 = vrot.lane.b32.xlu1 %v3206_v5, %s7683_s0  ;;  %v3805_v49 = vunpack.c.l.bf16 %v3785_v7 }
 0x3fb   : > { %4172 = vrot.lane.b32.xlu2 %v4135_v42, %s7683_s0  ;;  %11226 = vst [vmem:[#allocation16_spill] sm:$0xff] %v9416_v9  ;;  %3242 = vrot.lane.b32.xlu0 %v3206_v5, %s7679_s26  ;;  %v3559_v42 = vpack.c.bf16 %v3538_v2, %v3538_v2  ;;  %v3170_v5 = vmul.f32 %v4258_v18, %v11229_v17 }
 0x3fc   : > { %v3173_v2 = vmul.f32 %v4262_v24, %v11230_v51  ;;  %v3208_v24 = vld [vmem:[#allocation2 + $0x24] sm:$0xff]  ;;  %3198 = vst [vmem:[#allocation3 + $0x20] sm:$0xff] %v3190_v61  ;;  %v3537_v18 = vmul.f32 %v9375_v15, %v11212_v1  ;;  %v9479_v15 = vunpack.c.l.bf16 %v9469_v31  ;;  %v3151_v61 = vld [vmem:[#allocation2 + $0x3c] sm:$0xff] }
 0x3fd   : > { %v3186_v10 = vpack.c.bf16 %v3171_v28, %v3170_v5  ;;  %v9454_v47 = vunpack.c.l.bf16 %v3208_v24  ;;  %v9456_v53 = vunpack.c.h.bf16 %v3208_v24  ;;  %v3497_v28 = vld [vmem:[#allocation2 + $0x2c] sm:$0xf] }
 0x3fe   : > { %v3187_v29 = vpack.c.bf16 %v3173_v2, %v3172_v11  ;;  %v9484_v11 = vld [vmem:[#allocation2 + $0x54] sm:$0xff] }
 0x3ff   : > { %3194 = vst [vmem:[#allocation3] sm:$0xff] %v3186_v10  ;;  %v3364_v40 = vmul.f32 %v9456_v53, %v11209_v54  ;;  %v3827_v26 = vmul.f32 %v11205_v43, %v9454_v47  ;;  %v3527_v2 = vunpack.c.l.bf16 %v9484_v11  ;;  %v3341_v10 = vunpack.c.l.bf16 %v3321_v13 }
 0x400   : > { %3195 = vst [vmem:[#allocation3 + $0x8] sm:$0xff] %v3187_v29  ;;  %v3517_v29 = vunpack.c.l.bf16 %v3497_v28  ;;  %v3528_v4 = vunpack.c.h.bf16 %v9484_v11  ;;  %v3167_v13 = vunpack.c.h.bf16 %v3152_v35 }
 0x401   : > { %v9535_v22 = vmul.f32 %v11213_v14, %v3527_v2  ;;  %v3184_v52 = vmul.f32 %v3527_v2, %v11229_v17 }
 0x402   : > { %3420 = vrot.lane.b32.xlu1 %v3383_v27, %s7681_s28  ;;  %v3363_v27 = vmul.f32 %v11208_v6, %v9454_v47  ;;  %v3183_v9 = vmul.f32 %v3167_v13, %v11230_v51 }
 0x403   : > { %3596 = vrot.lane.b32.xlu2 %v3559_v42, %s11204_s4  ;;  %3418 = vrot.lane.b32.xlu0 %v3382_v58, %s7681_s28  ;;  %v3536_v58 = vmul.f32 %v11211_v38, %v9373_v36  ;;  %v3828_v36 = vmul.f32 %v9456_v53, %v11206_v8 }
 0x404   : > { %v3384_v42 = vpack.c.bf16 %v3364_v40, %v3363_v27  ;;  %v9497_v27 = vmul.f32 %v11211_v38, %v3527_v2  ;;  %v9500_v40 = vmul.f32 %v11208_v6, %v3527_v2 }
 0x405   : > { %v3558_v5 = vpack.c.bf16 %v3537_v18, %v3536_v58  ;;  %v3848_v19 = vpack.c.bf16 %v3828_v36, %v3827_v26  ;;  %v3164_v58 = vunpack.c.l.bf16 %v3151_v61  ;;  %v4137_v18 = vld [vmem:[#allocation2 + $0x2c] sm:$0xf]  ;;  %v3541_v26 = vmul.f32 %v7869_v41, %v3517_v29 }
 0x406   : > { %v9511_v36 = vmul.f32 %v3528_v4, %v11209_v54  ;;  %v9525_v29 = vmul.f32 %v3528_v4, %v11206_v8 }
 0x407   : > { %v3180_v37 = vmul.f32 %v3164_v58, %v11229_v17  ;;  %v3185_v58 = vmul.f32 %v3528_v4, %v11230_v51 }
 0x40a   : > { %3884 = vrot.lane.b32.xlu1 %v3847_v56, %s11210_s29  ;;  %v9494_v56 = vmul.f32 %v9482_v16, %v11214_v3 }
 0x40b   : > { %3246 = vrot.lane.b32.xlu2 %v3208_v24, %s7679_s26  ;;  %3882 = vrot.lane.b32.xlu0 %v3846_v12, %s11210_s29  ;;  %v9490_v12 = vmul.f32 %v11213_v14, %v9479_v15 }
 0x412   : > { %3594 = vrot.lane.b32.xlu1 %v3558_v5, %s11204_s4  ;;  %v3166_v5 = vunpack.c.l.bf16 %v3152_v35  ;;  %v9528_v35 = vmul.f32 %v11215_v30, %v3527_v2 }
 0x413   : > { %3422 = vrot.lane.b32.xlu2 %v3384_v42, %s7681_s28  ;;  %3248 = vrot.lane.b32.xlu0 %v3209_v20, %s7679_s26  ;;  %v9504_v42 = vmul.f32 %v3528_v4, %v11212_v1  ;;  %v3365_v20 = vmul.f32 %v7987_v57, %v3341_v10  ;;  %v3193_v10 = vpack.c.bf16 %v3185_v58, %v3184_v52 }
 0x414   : > { %v3182_v0 = vmul.f32 %v3166_v5, %v11229_v17  ;;  %v3561_v5 = vpack.c.bf16 %v3541_v26, %v3541_v26  ;;  %v3829_v17 = vmul.f32 %v11207_v32, %v3805_v49  ;;  %v3540_v49 = vmul.f32 %v9456_v53, %v11212_v1  ;;  %v11231_v53 = vld [vmem:[#allocation29_spill] sm:$0xff] }
 0x415   : > { %v3385_v46 = vpack.c.bf16 %v3365_v20, %v3365_v20  ;;  %3201 = vst [vmem:[#allocation3 + $0x38] sm:$0xff] %v3193_v10  ;;  %v4294_v58 = vmul.f32 %v11215_v30, %v9315_v23 }
 0x416   : > { %v3192_v48 = vpack.c.bf16 %v3183_v9, %v3182_v0 }
 0x418   : > { %3200 = vst [vmem:[#allocation3 + $0x30] sm:$0xff] %v3192_v48  ;;  %v3830_v48 = vmul.f32 %v11205_v43, %v9315_v23 }
 0x41a   : > { %4176 = vrot.lane.b32.xlu1 %v4137_v18, %s7683_s0  ;;  %v3165_v18 = vunpack.c.h.bf16 %v3151_v61  ;;  %v9538_v61 = vmul.f32 %v3528_v4, %v11214_v3 }
 0x41b   : > { %3886 = vrot.lane.b32.xlu2 %v3848_v19, %s11210_s29  ;;  %4174 = vrot.lane.b32.xlu0 %v3208_v24, %s7683_s0  ;;  %v9513_v28 = vpop.permute.xlu2 %3234  ;;  %v9520_v24 = vmul.f32 %v11205_v43, %v3527_v2  ;;  %v9532_v19 = vmul.f32 %v3528_v4, %v11216_v59  ;;  %v3787_v2 = vld [vmem:[#allocation2 + $0x38] sm:$0xf]  ;;  %v3849_v4 = vpack.c.bf16 %v3829_v17, %v3829_v17 }
 0x41c   : > { %v4032_v60 = vpack.c.bf16 %v9538_v61, %v9535_v22  ;;  %v3181_v62 = vmul.f32 %v3165_v18, %v11230_v51  ;;  %v3808_v51 = vunpack.c.l.bf16 %v3787_v2  ;;  %v3499_v2 = vld [vmem:[#allocation2 + $0x38] sm:$0xf] }
 0x41d   : > { %v4320_v44 = vpack.c.bf16 %v9532_v19, %v9528_v35  ;;  %v3667_v35 = vld [vmem:[#allocation2 + $0x8] sm:$0xf] }
 0x41e   : > { %v3191_v13 = vpack.c.bf16 %v3181_v62, %v3180_v37  ;;  %v3832_v37 = vmul.f32 %v11207_v32, %v3808_v51  ;;  %v3831_v62 = vmul.f32 %v9318_v21, %v11206_v8 }
 0x420   : > { %3199 = vst [vmem:[#allocation3 + $0x28] sm:$0xff] %v3191_v13  ;;  %v3851_v52 = vpack.c.bf16 %v3832_v37, %v3832_v37  ;;  %v3850_v20 = vpack.c.bf16 %v3831_v62, %v3830_v48  ;;  %v3266_v13 = vrot.slane %v9513_v28, 4  ;;  %v4139_v48 = vld [vmem:[#allocation2 + $0x38] sm:$0xf] }
 0x422   : > { %3600 = vrot.lane.b32.xlu1 %v3561_v5, %s11204_s4  ;;  %v4295_v5 = vmul.f32 %v9318_v21, %v11216_v59 }
 0x423   : > { %3252 = vrot.lane.b32.xlu2 %v3211_v33, %s7679_s26  ;;  %3424 = vrot.lane.b32.xlu0 %v3385_v46, %s7681_s28  ;;  %v3539_v33 = vmul.f32 %v11211_v38, %v9454_v47  ;;  %v4251_v46 = vld [vmem:[#allocation2 + $0x38] sm:$0xf] }
 0x424   : > { %v4272_v9 = vunpack.c.l.bf16 %v4251_v46  ;;  %v3542_v46 = vmul.f32 %v11211_v38, %v9315_v23 }
 0x425   : > { %v9554_v7 = vpop.permute.xlu2 %3412 }
 0x426   : > { %v4296_v26 = vmul.f32 %v11231_v53, %v4272_v9 }
 0x42a   : > { %3250 = vrot.lane.b32.xlu1 %v9308_v55, %s7679_s26 }
 0x42b   : > { %4178 = vrot.lane.b32.xlu2 %v9308_v55, %s7683_s0  ;;  %3888 = vrot.lane.b32.xlu0 %v3849_v4, %s11210_s29  ;;  %v3560_v55 = vpack.c.bf16 %v3540_v49, %v3539_v33  ;;  %v4315_v4 = vpack.c.bf16 %v4296_v26, %v4296_v26  ;;  %v4314_v33 = vpack.c.bf16 %v4295_v5, %v4294_v58  ;;  %v3520_v49 = vunpack.c.l.bf16 %v3499_v2 }
 0x42d   : > { %v9562_v0 = vpop.permute.xlu2 %3874 }
 0x432   : > { %3890 = vrot.lane.b32.xlu1 %v3850_v20, %s11210_s29 }
 0x433   : > { %3892 = vrot.lane.b32.xlu2 %v3851_v52, %s11210_s29  ;;  %3598 = vrot.lane.b32.xlu0 %v3560_v55, %s11204_s4  ;;  %v3543_v52 = vmul.f32 %v9318_v21, %v11212_v1  ;;  %v3544_v55 = vmul.f32 %v7869_v41, %v3520_v49 }
 0x434   : > { %v4165_v18 = vpop.permute.xlu1 %4164 }
 0x435   : > { %v9576_v47 = vpop.permute.xlu2 %3240  ;;  %v3237_v10 = vpop.permute.xlu0 %3236  ;;  %v4195_v20 = vrot.slane %v4165_v18, 4  ;;  %v3562_v5 = vpack.c.bf16 %v3543_v52, %v3542_v46  ;;  %v3366_v18 = vmul.f32 %v11208_v6, %v9315_v23  ;;  %v3443_v46 = vrot.slane %v9554_v7, 4 }
 0x436   : > { %v3267_v17 = vrot.slane %v3237_v10, 4  ;;  %v3323_v10 = vld [vmem:[#allocation2 + $0x38] sm:$0xf]  ;;  %v3906_v52 = vrot.slane %v9562_v0, 4 }
 0x437   : > { %v3344_v2 = vunpack.c.l.bf16 %v3323_v10 }
 0x438   : > { %v3282_v51 = vsel %vm921_vm11, %v3266_v13, %v3267_v17  ;;  %v3563_v17 = vpack.c.bf16 %v3544_v55, %v3544_v55 }
 0x439   : > { %v3283_v37 = vsel %vm923_vm12, %v9513_v28, %v3282_v51  ;;  %v3213_v51 = vld [vmem:[#allocation2 + $0x44] sm:$0xf] }
 0x43a   : > { %3306 = vst [vmem:[#allocation3 + $0x40] sm:$0xff] %v3283_v37  ;;  %4354 = vrot.lane.b32.xlu1 %v4314_v33, %s11232_s3  ;;  %v3367_v37 = vmul.f32 %v9318_v21, %v11209_v54 }
 0x43b   : > { %4356 = vrot.lane.b32.xlu2 %v4315_v4, %s11232_s3  ;;  %4180 = vrot.lane.b32.xlu0 %v4139_v48, %s7683_s0  ;;  %v3368_v48 = vmul.f32 %v7987_v57, %v3344_v2 }
 0x43c   : > { %v3589_v9 = vpop.permute.xlu1 %3588 }
 0x43d   : > { %v9590_v62 = vpop.permute.xlu2 %4166  ;;  %v4163_v28 = vpop.permute.xlu0 %4162 }
 0x43e   : > { %v4194_v26 = vrot.slane %v4163_v28, 4 }
 0x440   : > { %v4210_v58 = vsel %vm921_vm11, %v4194_v26, %v4195_v20  ;;  %v3789_v20 = vld [vmem:[#allocation2 + $0x44] sm:$0xf] }
 0x441   : > { %v4211_v13 = vsel %vm1909_vm0, %v4163_v28, %v4210_v58  ;;  %v3386_v58 = vpack.c.bf16 %v3367_v37, %v3366_v18  ;;  %v3501_v18 = vld [vmem:[#allocation2 + $0x44] sm:$0xf]  ;;  %v3269_v37 = vrot.slane %v9576_v47, 4 }
 0x442   : > { %4234 = vst [vmem:[#allocation3 + $0x1c0] sm:$0xff] %v4211_v13  ;;  %3256 = vrot.lane.b32.xlu1 %v3213_v51, %s7679_s26  ;;  %v3811_v13 = vunpack.c.l.bf16 %v3789_v20 }
 0x443   : > { %3602 = vrot.lane.b32.xlu2 %v3562_v5, %s11204_s4  ;;  %3604 = vrot.lane.b32.xlu0 %v3563_v17, %s11204_s4  ;;  %v3387_v5 = vpack.c.bf16 %v3368_v48, %v3368_v48  ;;  %v4253_v48 = vld [vmem:[#allocation2 + $0x44] sm:$0xf] }
 0x444   : > { %v3411_v33 = vpop.permute.xlu1 %3410  ;;  %v3835_v51 = vmul.f32 %v11207_v32, %v3811_v13  ;;  %v3833_v13 = vmul.f32 %v11205_v43, %v9479_v15 }
 0x445   : > { %v9602_v4 = vpop.permute.xlu2 %3880  ;;  %v3877_v49 = vpop.permute.xlu0 %3876  ;;  %v3442_v28 = vrot.slane %v3411_v33, 4 }
 0x446   : > { %v3907_v55 = vrot.slane %v3877_v49, 4 }
 0x447   : > { %v3458_v26 = vsel %vm921_vm11, %v3442_v28, %v3443_v46  ;;  %v3523_v28 = vunpack.c.l.bf16 %v3501_v18 }
 0x448   : > { %v3922_v10 = vsel %vm921_vm11, %v3906_v52, %v3907_v55  ;;  %v3459_v23 = vsel %vm1123_vm14, %v3411_v33, %v3458_v26  ;;  %v3853_v26 = vpack.c.bf16 %v3835_v51, %v3835_v51  ;;  %v4196_v51 = vrot.slane %v9590_v62, 4 }
 0x449   : > { %v3923_v21 = vsel %vm1610_vm15, %v9562_v0, %v3922_v10  ;;  %3482 = vst [vmem:[#allocation3 + $0x80] sm:$0xff] %v3459_v23  ;;  %v3619_v0 = vrot.slane %v3589_v9, 4  ;;  %v4141_v10 = vld [vmem:[#allocation2 + $0x44] sm:$0xf]  ;;  %v3547_v9 = vmul.f32 %v7869_v41, %v3523_v28 }
 0x44a   : > { %3946 = vst [vmem:[#allocation3 + $0x140] sm:$0xff] %v3923_v21  ;;  %4182 = vrot.lane.b32.xlu1 %v9469_v31, %s7683_s0 }
 0x44b   : > { %3426 = vrot.lane.b32.xlu2 %v3386_v58, %s7681_s28  ;;  %3428 = vrot.lane.b32.xlu0 %v3387_v5, %s7681_s28  ;;  %v4275_v58 = vunpack.c.l.bf16 %v4253_v48 }
 0x44c   : > { %v3239_v17 = vpop.permute.xlu1 %3238 }
 0x44d   : > { %v3591_v7 = vpop.permute.xlu2 %3590  ;;  %v3587_v2 = vpop.permute.xlu0 %3586  ;;  %v3268_v33 = vrot.slane %v3239_v17, 4  ;;  %v4299_v5 = vmul.f32 %v11231_v53, %v4275_v58  ;;  %v4298_v58 = vmul.f32 %v9482_v16, %v11216_v59 }
 0x44e   : > { %v3618_v49 = vrot.slane %v3587_v2, 4 }
 0x44f   : > { %v3284_v46 = vsel %vm921_vm11, %v3268_v33, %v3269_v37  ;;  %v4317_v48 = vpack.c.bf16 %v4299_v5, %v4299_v5 }
 0x450   : > { %v3634_v52 = vsel %vm921_vm11, %v3618_v49, %v3619_v0  ;;  %v3285_v55 = vsel %vm923_vm12, %v3239_v17, %v3284_v46  ;;  %v3834_v17 = vmul.f32 %v9482_v16, %v11206_v8  ;;  %v3565_v0 = vpack.c.bf16 %v3547_v9, %v3547_v9 }
 0x451   : > { %v3635_v20 = vsel %vm1311_vm13, %v3587_v2, %v3634_v52  ;;  %3307 = vst [vmem:[#allocation3 + $0x48] sm:$0xff] %v3285_v55  ;;  %v3325_v2 = vld [vmem:[#allocation2 + $0x44] sm:$0xf]  ;;  %v3909_v9 = vrot.slane %v9602_v4, 4 }
 0x452   : > { %3658 = vst [vmem:[#allocation3 + $0xc0] sm:$0xff] %v3635_v20  ;;  %3896 = vrot.lane.b32.xlu1 %v3853_v26, %s11210_s29  ;;  %v3347_v33 = vunpack.c.l.bf16 %v3325_v2  ;;  %v3852_v46 = vpack.c.bf16 %v3834_v17, %v3833_v13  ;;  %v3545_v26 = vmul.f32 %v11211_v38, %v9479_v15 }
 0x453   : > { %4184 = vrot.lane.b32.xlu2 %v4141_v10, %s7683_s0  ;;  %3254 = vrot.lane.b32.xlu0 %v9469_v31, %s7679_s26  ;;  %v4297_v10 = vmul.f32 %v11215_v30, %v9479_v15 }
 0x454   : > { %v3417_v23 = vpop.permute.xlu1 %3416  ;;  %v3371_v28 = vmul.f32 %v7987_v57, %v3347_v33 }
 0x455   : > { %v9630_v47 = vpop.permute.xlu2 %4172  ;;  %v4169_v21 = vpop.permute.xlu0 %4168  ;;  %v4316_v33 = vpack.c.bf16 %v4298_v58, %v4297_v10  ;;  %v3214_v10 = vld [vmem:[#allocation2 + $0x48] sm:$0xff]  ;;  %v3215_v58 = vld [vmem:[#allocation2 + $0x50] sm:$0xf] }
 0x456   : > { %v4197_v18 = vrot.slane %v4169_v21, 4  ;;  %v3620_v21 = vrot.slane %v3591_v7, 4 }
 0x458   : > { %v4212_v37 = vsel %vm921_vm11, %v4196_v51, %v4197_v18  ;;  %v3389_v51 = vpack.c.bf16 %v3371_v28, %v3371_v28  ;;  %v3445_v28 = vrot.slane %v3417_v23, 4  ;;  %v3327_v23 = vld [vmem:[#allocation2 + $0x50] sm:$0xf] }
 0x459   : > { %v4213_v49 = vsel %vm1909_vm0, %v9590_v62, %v4212_v37  ;;  %v3546_v62 = vmul.f32 %v9482_v16, %v11212_v1 }
 0x45a   : > { %4235 = vst [vmem:[#allocation3 + $0x1c8] sm:$0xff] %v4213_v49  ;;  %4360 = vrot.lane.b32.xlu1 %v4317_v48, %s11232_s3 }
 0x45b   : > { %3608 = vrot.lane.b32.xlu2 %v3565_v0, %s11204_s4  ;;  %3894 = vrot.lane.b32.xlu0 %v3852_v46, %s11210_s29  ;;  %v3564_v0 = vpack.c.bf16 %v3546_v62, %v3545_v26  ;;  %v3369_v46 = vmul.f32 %v11208_v6, %v9479_v15 }
 0x45c   : > { %v3879_v55 = vpop.permute.xlu1 %3878 }
 0x45d   : > { %v9645_v52 = vpop.permute.xlu2 %3596  ;;  %v3593_v20 = vpop.permute.xlu0 %3592  ;;  %v3908_v5 = vrot.slane %v3879_v55, 4 }
 0x45e   : > { %v3621_v13 = vrot.slane %v3593_v20, 4 }
 0x45f   : > { %v3924_v17 = vsel %vm921_vm11, %v3908_v5, %v3909_v9 }
 0x460   : > { %v3636_v2 = vsel %vm921_vm11, %v3620_v21, %v3621_v13  ;;  %v3925_v18 = vsel %vm1610_vm15, %v3879_v55, %v3924_v17  ;;  %v4199_v21 = vrot.slane %v9630_v47, 4 }
 0x461   : > { %v3637_v37 = vsel %vm1311_vm13, %v3591_v7, %v3636_v2  ;;  %3947 = vst [vmem:[#allocation3 + $0x148] sm:$0xff] %v3925_v18  ;;  %v3370_v7 = vmul.f32 %v9482_v16, %v11209_v54  ;;  %v3503_v2 = vld [vmem:[#allocation2 + $0x50] sm:$0xf] }
 0x462   : > { %3659 = vst [vmem:[#allocation3 + $0xc8] sm:$0xff] %v3637_v37  ;;  %3606 = vrot.lane.b32.xlu1 %v3564_v0, %s11204_s4  ;;  %v3350_v37 = vunpack.c.l.bf16 %v3327_v23 }
 0x463   : > { %3432 = vrot.lane.b32.xlu2 %v3389_v51, %s7681_s28  ;;  %4358 = vrot.lane.b32.xlu0 %v4316_v33, %s11232_s3  ;;  %v3388_v62 = vpack.c.bf16 %v3370_v7, %v3369_v46  ;;  %v4143_v46 = vld [vmem:[#allocation2 + $0x50] sm:$0xf] }
 0x464   : > { %v3245_v49 = vpop.permute.xlu1 %3244  ;;  %v3679_v7 = vld [vmem:[#allocation2 + $0x50] sm:$0xf] }
 0x465   : > { %v9664_v4 = vpop.permute.xlu2 %3246  ;;  %v3415_v48 = vpop.permute.xlu0 %3414  ;;  %v3271_v5 = vrot.slane %v3245_v49, 4  ;;  %v3374_v49 = vmul.f32 %v7987_v57, %v3350_v37 }
 0x466   : > { %v3444_v55 = vrot.slane %v3415_v48, 4 }
 0x468   : > { %v3460_v20 = vsel %vm921_vm11, %v3444_v55, %v3445_v28 }
 0x469   : > { %v3461_v26 = vsel %vm1123_vm14, %v3415_v48, %v3460_v20  ;;  %v3526_v48 = vunpack.c.l.bf16 %v3503_v2 }
 0x46a   : > { %3483 = vst [vmem:[#allocation3 + $0x88] sm:$0xff] %v3461_v26  ;;  %3430 = vrot.lane.b32.xlu1 %v3388_v62, %s7681_s28  ;;  %v4255_v26 = vld [vmem:[#allocation2 + $0x50] sm:$0xf] }
 0x46b   : > { %3258 = vrot.lane.b32.xlu2 %v3214_v10, %s7679_s26  ;;  %3260 = vrot.lane.b32.xlu0 %v3215_v58, %s7679_s26  ;;  %v3550_v20 = vmul.f32 %v7869_v41, %v3526_v48  ;;  %v11234_v48 = vld [vmem:[#allocation27_spill] sm:$0xff] }
 0x46c   : > { %v4171_v9 = vpop.permute.xlu1 %4170 }
 0x46d   : > { %v9675_v15 = vpop.permute.xlu2 %3422  ;;  %v3243_v16 = vpop.permute.xlu0 %3242  ;;  %v4198_v13 = vrot.slane %v4171_v9, 4 }
 0x46e   : > { %v3270_v17 = vrot.slane %v3243_v16, 4 }
 0x46f   : > { %v4214_v51 = vsel %vm921_vm11, %v4198_v13, %v4199_v21  ;;  %v3391_v21 = vpack.c.bf16 %v3374_v49, %v3374_v49 }
 0x470   : > { %v3286_v18 = vsel %vm921_vm11, %v3270_v17, %v3271_v5  ;;  %v4215_v0 = vsel %vm1909_vm0, %v4171_v9, %v4214_v51  ;;  %v3967_v9 = vld [vmem:[#allocation2 + $0x50] sm:$0xf]  ;;  %v4278_v5 = vunpack.c.l.bf16 %v4255_v26  ;;  %v3567_v17 = vpack.c.bf16 %v3550_v20, %v3550_v20 }
 0x471   : > { %v3287_v33 = vsel %vm923_vm12, %v3243_v16, %v3286_v18  ;;  %4236 = vst [vmem:[#allocation3 + $0x1d0] sm:$0xff] %v4215_v0  ;;  %v3791_v16 = vld [vmem:[#allocation2 + $0x50] sm:$0xf]  ;;  %v3990_v2 = vunpack.c.l.bf16 %v3967_v9  ;;  %v3524_v26 = vunpack.c.l.bf16 %v3214_v10 }
 0x472   : > { %3308 = vst [vmem:[#allocation3 + $0x50] sm:$0xff] %v3287_v33  ;;  %4188 = vrot.lane.b32.xlu1 %v4143_v46, %s7683_s0  ;;  %v3814_v51 = vunpack.c.l.bf16 %v3791_v16  ;;  %v4302_v37 = vmul.f32 %v11231_v53, %v4278_v5 }
 0x473   : > { %3722 = vrot.lane.b32.xlu2 %v3214_v10, %s11233_s1  ;;  %3724 = vrot.lane.b32.xlu0 %v3679_v7, %s11233_s1  ;;  %v4014_v46 = vmul.f32 %v11234_v48, %v3990_v2 }
 0x474   : > { %v3421_v28 = vpop.permute.xlu1 %3420  ;;  %v3838_v7 = vmul.f32 %v11207_v32, %v3814_v51  ;;  %v4319_v20 = vpack.c.bf16 %v4302_v37, %v4302_v37  ;;  %v3372_v51 = vmul.f32 %v11208_v6, %v3524_v26 }
 0x475   : > { %v9685_v47 = vpop.permute.xlu2 %3886  ;;  %v3419_v55 = vpop.permute.xlu0 %3418  ;;  %v3447_v62 = vrot.slane %v3421_v28, 4  ;;  %v4031_v9 = vpack.c.bf16 %v4014_v46, %v4014_v46 }
 0x476   : > { %v3446_v58 = vrot.slane %v3419_v55, 4  ;;  %v3855_v16 = vpack.c.bf16 %v3838_v7, %v3838_v7 }
 0x478   : > { %v3462_v23 = vsel %vm921_vm11, %v3446_v58, %v3447_v62  ;;  %v3525_v62 = vunpack.c.h.bf16 %v3214_v10 }
 0x479   : > { %v3463_v13 = vsel %vm1123_vm14, %v3419_v55, %v3462_v23 }
 0x47a   : > { %3484 = vst [vmem:[#allocation3 + $0x90] sm:$0xff] %v3463_v13  ;;  %3612 = vrot.lane.b32.xlu1 %v3567_v17, %s11204_s4  ;;  %v3837_v5 = vmul.f32 %v3525_v62, %v11206_v8  ;;  %v3549_v2 = vmul.f32 %v3525_v62, %v11212_v1  ;;  %v3373_v37 = vmul.f32 %v3525_v62, %v11209_v54 }
 0x47b   : > { %3436 = vrot.lane.b32.xlu2 %v3391_v21, %s7681_s28  ;;  %4186 = vrot.lane.b32.xlu0 %v3214_v10, %s7683_s0  ;;  %v3836_v21 = vmul.f32 %v11205_v43, %v3524_v26  ;;  %v3548_v10 = vmul.f32 %v11211_v38, %v3524_v26 }
 0x47c   : > { %v3885_v0 = vpop.permute.xlu1 %3884  ;;  %v3390_v6 = vpack.c.bf16 %v3373_v37, %v3372_v51 }
 0x47d   : > { %v9694_v18 = vpop.permute.xlu2 %3252  ;;  %v3883_v33 = vpop.permute.xlu0 %3882  ;;  %v3911_v49 = vrot.slane %v3885_v0, 4  ;;  %v3623_v0 = vrot.slane %v9645_v52, 4  ;;  %v3566_v1 = vpack.c.bf16 %v3549_v2, %v3548_v10  ;;  %v3217_v2 = vld [vmem:[#allocation2 + $0x5c] sm:$0xf] }
 0x47e   : > { %v3910_v28 = vrot.slane %v3883_v33, 4 }
 0x480   : > { %v3926_v55 = vsel %vm921_vm11, %v3910_v28, %v3911_v49  ;;  %v3854_v49 = vpack.c.bf16 %v3837_v5, %v3836_v21 }
 0x481   : > { %v3927_v58 = vsel %vm1610_vm15, %v3883_v33, %v3926_v55  ;;  %v3272_v33 = vrot.slane %v9664_v4, 4 }
 0x482   : > { %3948 = vst [vmem:[#allocation3 + $0x150] sm:$0xff] %v3927_v58  ;;  %4076 = vrot.lane.b32.xlu1 %v4031_v9, %s11235_s2  ;;  %v4013_v58 = vmul.f32 %v3525_v62, %v11214_v3  ;;  %v4301_v9 = vmul.f32 %v3525_v62, %v11216_v59  ;;  %v3448_v59 = vrot.slane %v9675_v15, 4  ;;  %v3505_v62 = vld [vmem:[#allocation2 + $0x5c] sm:$0xf] }
 0x483   : > { %4364 = vrot.lane.b32.xlu2 %v4319_v20, %s11232_s3  ;;  %3900 = vrot.lane.b32.xlu0 %v3855_v16, %s11210_s29  ;;  %v4012_v20 = vmul.f32 %v11213_v14, %v3524_v26 }
 0x484   : > { %v3595_v13 = vpop.permute.xlu1 %3594 }
 0x485   : > { %v9704_v23 = vpop.permute.xlu2 %4178  ;;  %v3249_v17 = vpop.permute.xlu0 %3248  ;;  %v3622_v46 = vrot.slane %v3595_v13, 4 }
 0x486   : > { %v3273_v7 = vrot.slane %v3249_v17, 4  ;;  %v4030_v17 = vpack.c.bf16 %v4013_v58, %v4012_v20 }
 0x487   : > { %v3638_v43 = vsel %vm921_vm11, %v3622_v46, %v3623_v0  ;;  %v3681_v0 = vld [vmem:[#allocation2 + $0x5c] sm:$0xf] }
 0x488   : > { %v3288_v8 = vsel %vm921_vm11, %v3272_v33, %v3273_v7  ;;  %v3639_v28 = vsel %vm1311_vm13, %v3595_v13, %v3638_v43  ;;  %v3529_v33 = vunpack.c.l.bf16 %v3505_v62  ;;  %v4145_v46 = vld [vmem:[#allocation2 + $0x5c] sm:$0xf] }
 0x489   : > { %v3289_v38 = vsel %vm923_vm12, %v9664_v4, %v3288_v8  ;;  %3660 = vst [vmem:[#allocation3 + $0xd0] sm:$0xff] %v3639_v28  ;;  %v4300_v4 = vmul.f32 %v11215_v30, %v3524_v26  ;;  %v3969_v28 = vld [vmem:[#allocation2 + $0x5c] sm:$0xf] }
 0x48a   : > { %3309 = vst [vmem:[#allocation3 + $0x58] sm:$0xff] %v3289_v38  ;;  %3434 = vrot.lane.b32.xlu1 %v3390_v6, %s7681_s28  ;;  %v3793_v38 = vld [vmem:[#allocation2 + $0x5c] sm:$0xf] }
 0x48b   : > { %3898 = vrot.lane.b32.xlu2 %v3854_v49, %s11210_s29  ;;  %3610 = vrot.lane.b32.xlu0 %v3566_v1, %s11204_s4  ;;  %v4318_v10 = vpack.c.bf16 %v4301_v9, %v4300_v4  ;;  %v3553_v49 = vmul.f32 %v7869_v41, %v3529_v33  ;;  %v3275_v1 = vrot.slane %v9694_v18, 4  ;;  %v3993_v4 = vunpack.c.l.bf16 %v3969_v28 }
 0x48c   : > { %v4177_v52 = vpop.permute.xlu1 %4176  ;;  %v3817_v9 = vunpack.c.l.bf16 %v3793_v38  ;;  %v4202_v28 = vrot.slane %v9704_v23, 4 }
 0x48d   : > { %v9722_v54 = vpop.permute.xlu2 %3892  ;;  %v4175_v55 = vpop.permute.xlu0 %4174  ;;  %v4201_v16 = vrot.slane %v4177_v52, 4 }
 0x48e   : > { %v4200_v21 = vrot.slane %v4175_v55, 4 }
 0x490   : > { %v4216_v5 = vsel %vm921_vm11, %v4200_v21, %v4201_v16  ;;  %v3569_v21 = vpack.c.bf16 %v3553_v49, %v3553_v49 }
 0x491   : > { %v4217_v13 = vsel %vm1909_vm0, %v4175_v55, %v4216_v5  ;;  %v3329_v55 = vld [vmem:[#allocation2 + $0x5c] sm:$0xf] }
 0x492   : > { %4237 = vst [vmem:[#allocation3 + $0x1d8] sm:$0xff] %v4217_v13  ;;  %4362 = vrot.lane.b32.xlu1 %v4318_v10, %s11232_s3  ;;  %v3353_v5 = vunpack.c.l.bf16 %v3329_v55  ;;  %v3841_v13 = vmul.f32 %v11207_v32, %v3817_v9  ;;  %v11236_v9 = vpack.c.bf16 %v9504_v42, %v9497_v27  ;;  %v7659_v42 = vld [vmem:[#allocation2 + $0x30] sm:$0xff] }
 0x493   : > { %3264 = vrot.lane.b32.xlu2 %v3217_v2, %s7679_s26  ;;  %4074 = vrot.lane.b32.xlu0 %v4030_v17, %s11235_s2 }
 0x494   : > { %v3601_v3 = vpop.permute.xlu1 %3600  ;;  %v3377_v2 = vmul.f32 %v7987_v57, %v3353_v5  ;;  %v3963_v5 = vld [vmem:[#allocation2 + $0x38] sm:$0xf] }
 0x495   : > { %v9733_v14 = vpop.permute.xlu2 %4356  ;;  %v3425_v30 = vpop.permute.xlu0 %3424  ;;  %v3984_v27 = vunpack.c.l.bf16 %v3963_v5 }
 0x496   : > { %v3449_v26 = vrot.slane %v3425_v30, 4  ;;  %v4257_v30 = vld [vmem:[#allocation2 + $0x5c] sm:$0xf]  ;;  %v4379_v38 = vrot.slane %v9733_v14, 4 }
 0x497   : > { %v4281_v33 = vunpack.c.l.bf16 %v4257_v30 }
 0x498   : > { %v3464_v51 = vsel %vm921_vm11, %v3448_v59, %v3449_v26  ;;  %v3915_v59 = vrot.slane %v9722_v54, 4  ;;  %v3625_v26 = vrot.slane %v3601_v3, 4 }
 0x499   : > { %v3465_v37 = vsel %vm1123_vm14, %v9675_v15, %v3464_v51  ;;  %v3912_v15 = vrot.slane %v9685_v47, 4  ;;  %v4305_v49 = vmul.f32 %v11231_v53, %v4281_v33  ;;  %v3677_v33 = vld [vmem:[#allocation2 + $0x44] sm:$0xf] }
 0x49a   : > { %3485 = vst [vmem:[#allocation3 + $0x98] sm:$0xff] %v3465_v37  ;;  %3262 = vrot.lane.b32.xlu1 %v9484_v11, %s7679_s26 }
 0x49b   : > { %3728 = vrot.lane.b32.xlu2 %v3681_v0, %s11233_s1  ;;  %4192 = vrot.lane.b32.xlu0 %v4145_v46, %s7683_s0  ;;  %v3857_v0 = vpack.c.bf16 %v3841_v13, %v3841_v13 }
 0x49c   : > { %v3251_v43 = vpop.permute.xlu1 %3250 }
 0x49d   : > { %v9743_v7 = vpop.permute.xlu2 %3602  ;;  %v3889_v8 = vpop.permute.xlu0 %3888  ;;  %v3274_v6 = vrot.slane %v3251_v43, 4 }
 0x49e   : > { %v3913_v52 = vrot.slane %v3889_v8, 4  ;;  %v3393_v8 = vpack.c.bf16 %v3377_v2, %v3377_v2 }
 0x49f   : > { %v3290_v20 = vsel %vm921_vm11, %v3274_v6, %v3275_v1 }
 0x4a0   : > { %v3928_v58 = vsel %vm921_vm11, %v3912_v15, %v3913_v52  ;;  %v3291_v16 = vsel %vm923_vm12, %v3251_v43, %v3290_v20 }
 0x4a1   : > { %v3929_v41 = vsel %vm1610_vm15, %v9685_v47, %v3928_v58  ;;  %3310 = vst [vmem:[#allocation3 + $0x60] sm:$0xff] %v3291_v16  ;;  %v4017_v47 = vmul.f32 %v11234_v48, %v3993_v4  ;;  %v4321_v58 = vpack.c.bf16 %v4305_v49, %v4305_v49  ;;  %v3675_v4 = vld [vmem:[#allocation2 + $0x38] sm:$0xf] }
 0x4a2   : > { %3949 = vst [vmem:[#allocation3 + $0x158] sm:$0xff] %v3929_v41  ;;  %3726 = vrot.lane.b32.xlu1 %v9484_v11, %s11233_s1 }
 0x4a3   : > { %4190 = vrot.lane.b32.xlu2 %v9484_v11, %s7683_s0  ;;  %3616 = vrot.lane.b32.xlu0 %v3569_v21, %s11204_s4  ;;  %v4033_v43 = vpack.c.bf16 %v4017_v47, %v4017_v47  ;;  %v3626_v21 = vrot.slane %v9743_v7, 4 }
 0x4a4   : > { %v3891_v17 = vpop.permute.xlu1 %3890 }
 0x4a5   : > { %v9758_v18 = vpop.permute.xlu2 %3426  ;;  %v3599_v10 = vpop.permute.xlu0 %3598  ;;  %v3914_v62 = vrot.slane %v3891_v17, 4 }
 0x4a6   : > { %v3624_v51 = vrot.slane %v3599_v10, 4 }
 0x4a7   : > { %v3930_v37 = vsel %vm921_vm11, %v3914_v62, %v3915_v59  ;;  %v4008_v59 = vmul.f32 %v11234_v48, %v3984_v27 }
 0x4a8   : > { %v3640_v11 = vsel %vm921_vm11, %v3624_v51, %v3625_v26  ;;  %v3931_v32 = vsel %vm1610_vm15, %v3891_v17, %v3930_v37  ;;  %v3965_v37 = vld [vmem:[#allocation2 + $0x44] sm:$0xf] }
 0x4a9   : > { %v3641_v46 = vsel %vm1311_vm13, %v3599_v10, %v3640_v11  ;;  %3950 = vst [vmem:[#allocation3 + $0x160] sm:$0xff] %v3931_v32  ;;  %v11237_v10 = vpack.c.bf16 %v9335_v50, %v9331_v45  ;;  %v3987_v32 = vunpack.c.l.bf16 %v3965_v37 }
 0x4aa   : > { %3661 = vst [vmem:[#allocation3 + $0xd8] sm:$0xff] %v3641_v46  ;;  %3440 = vrot.lane.b32.xlu1 %v3393_v8, %s7681_s28  ;;  %v11238_v46 = vpack.c.bf16 %v9511_v36, %v9500_v40  ;;  %v11239_v36 = vpack.c.bf16 %v9494_v56, %v9490_v12 }
 0x4ab   : > { %3904 = vrot.lane.b32.xlu2 %v3857_v0, %s11210_s29  ;;  %4080 = vrot.lane.b32.xlu0 %v4033_v43, %s11235_s2  ;;  %v4027_v0 = vpack.c.bf16 %v4008_v59, %v4008_v59 }
 0x4ac   : > { %v4355_v54 = vpop.permute.xlu1 %4354 }
 0x4ad   : > { %v4185_v57 = vpop.permute.xlu2 %4184  ;;  %v4181_v3 = vpop.permute.xlu0 %4180  ;;  %v4378_v15 = vrot.slane %v4355_v54, 4 }
 0x4ae   : > { %v4203_v1 = vrot.slane %v4181_v3, 4  ;;  %v4205_v26 = vrot.slane %v4185_v57, 4 }
 0x4af   : > { %v4394_v6 = vsel %vm921_vm11, %v4378_v15, %v4379_v38 }
 0x4b0   : > { %v4218_v52 = vsel %vm921_vm11, %v4202_v28, %v4203_v1  ;;  %v4395_v55 = vsel %vm2095_vm6, %v4355_v54, %v4394_v6  ;;  %v4247_v54 = vld [vmem:[#allocation2 + $0x20] sm:$0xf]  ;;  %v4249_v28 = vld [vmem:[#allocation2 + $0x2c] sm:$0xf] }
 0x4b1   : > { %v4219_v20 = vsel %vm1909_vm0, %v9704_v23, %v4218_v52  ;;  %4414 = vst [vmem:[#allocation3 + $0x220] sm:$0xff] %v4395_v55  ;;  %v4266_v15 = vunpack.c.l.bf16 %v4247_v54  ;;  %v4269_v40 = vunpack.c.l.bf16 %v4249_v28  ;;  %v11240_v52 = vpack.c.bf16 %v9356_v63, %v9353_v39  ;;  %v11243_v28 = vld [vmem:[#allocation11_spill] sm:$0xff] }
 0x4b2   : > { %4238 = vst [vmem:[#allocation3 + $0x1e0] sm:$0xff] %v4219_v20  ;;  %4368 = vrot.lane.b32.xlu1 %v4321_v58, %s11232_s3  ;;  %v11241_v39 = vpack.c.bf16 %v9360_v34, %v9345_v25 }
 0x4b3   : > { %3614 = vrot.lane.b32.xlu2 %v11236_v9, %s11204_s4  ;;  %3716 = vrot.lane.b32.xlu0 %v3675_v4, %s11233_s1  ;;  %v4290_v20 = vmul.f32 %v11231_v53, %v4266_v15  ;;  %v4293_v9 = vmul.f32 %v11231_v53, %v4269_v40  ;;  %s11261_s4 = sshll.u32 %s11294_s24, 6 }
 0x4b4   : > { %v3257_v16 = vpop.permute.xlu1 %3256 }
 0x4b5   : > { %v9785_v14 = vpop.permute.xlu2 %3608  ;;  %v3605_v41 = vpop.permute.xlu0 %3604  ;;  %v3277_v3 = vrot.slane %v3257_v16, 4  ;;  %v4311_v56 = vpack.c.bf16 %v4290_v20, %v4290_v20 }
 0x4b6   : > { %v3627_v23 = vrot.slane %v3605_v41, 4 }
 0x4b8   : > { %v3642_v13 = vsel %vm921_vm11, %v3626_v21, %v3627_v23  ;;  %v4313_v23 = vpack.c.bf16 %v4293_v9, %v4293_v9 }
 0x4b9   : > { %v3643_v17 = vsel %vm1311_vm13, %v9743_v7, %v3642_v13  ;;  %v3450_v7 = vrot.slane %v9758_v18, 4 }
 0x4ba   : > { %3662 = vst [vmem:[#allocation3 + $0xe0] sm:$0xff] %v3643_v17  ;;  %3718 = vrot.lane.b32.xlu1 %v9469_v31, %s11233_s1  ;;  %v3629_v17 = vrot.slane %v9785_v14, 4  ;;  %v7661_v14 = vld [vmem:[#allocation2 + $0x24] sm:$0xff] }
 0x4bb   : > { %3714 = vrot.lane.b32.xlu2 %v7659_v42, %s11233_s1  ;;  %4066 = vrot.lane.b32.xlu0 %v11237_v10, %s11235_s2 }
 0x4bc   : > { %v4183_v2 = vpop.permute.xlu1 %4182 }
 0x4bd   : > { %v9798_v47 = vpop.permute.xlu2 %3432  ;;  %v3429_v30 = vpop.permute.xlu0 %3428  ;;  %v4204_v62 = vrot.slane %v4183_v2, 4 }
 0x4be   : > { %v3451_v51 = vrot.slane %v3429_v30, 4 }
 0x4bf   : > { %v4220_v11 = vsel %vm921_vm11, %v4204_v62, %v4205_v26  ;;  %v3671_v26 = vld [vmem:[#allocation2 + $0x20] sm:$0xf]  ;;  %v7660_v62 = vld [vmem:[#allocation2 + $0x18] sm:$0xff] }
 0x4c0   : > { %v3466_v45 = vsel %vm921_vm11, %v3450_v7, %v3451_v51  ;;  %v4221_v50 = vsel %vm1909_vm0, %v4183_v2, %v4220_v11  ;;  %v3959_v2 = vld [vmem:[#allocation2 + $0x20] sm:$0xf] }
 0x4c1   : > { %v3467_v31 = vsel %vm1123_vm14, %v9758_v18, %v3466_v45  ;;  %4239 = vst [vmem:[#allocation3 + $0x1e8] sm:$0xff] %v4221_v50  ;;  %v4011_v18 = vmul.f32 %v11234_v48, %v3987_v32  ;;  %v3978_v34 = vunpack.c.l.bf16 %v3959_v2  ;;  %v3453_v50 = vrot.slane %v9798_v47, 4  ;;  %v3961_v32 = vld [vmem:[#allocation2 + $0x2c] sm:$0xf]  ;;  %v11242_v47 = vld [vmem:[#allocation9_spill] sm:$0xff] }
 0x4c2   : > { %3486 = vst [vmem:[#allocation3 + $0xa0] sm:$0xff] %v3467_v31  ;;  %4068 = vrot.lane.b32.xlu1 %v4027_v0, %s11235_s2 }
 0x4c3   : > { %3720 = vrot.lane.b32.xlu2 %v3677_v33, %s11233_s1  ;;  %3438 = vrot.lane.b32.xlu0 %v11238_v46, %s7681_s28  ;;  %v4029_v6 = vpack.c.bf16 %v4011_v18, %v4011_v18  ;;  %v4002_v45 = vmul.f32 %v11234_v48, %v3978_v34 }
 0x4c4   : > { %v3897_v8 = vpop.permute.xlu1 %3896 }
 0x4c5   : > { %v9813_v43 = vpop.permute.xlu2 %3258  ;;  %v3255_v57 = vpop.permute.xlu0 %3254  ;;  %v3917_v16 = vrot.slane %v3897_v8, 4  ;;  %v4023_v54 = vpack.c.bf16 %v4002_v45, %v4002_v45 }
 0x4c6   : > { %v3276_v49 = vrot.slane %v3255_v57, 4  ;;  %v3278_v31 = vrot.slane %v9813_v43, 4 }
 0x4c8   : > { %v3292_v38 = vsel %vm921_vm11, %v3276_v49, %v3277_v3  ;;  %v3673_v3 = vld [vmem:[#allocation2 + $0x2c] sm:$0xf]  ;;  %v3981_v49 = vunpack.c.l.bf16 %v3961_v32 }
 0x4c9   : > { %v3293_v1 = vsel %vm923_vm12, %v3255_v57, %v3292_v38  ;;  %v11244_v38 = vpack.c.bf16 %v11242_v47, %v11243_v28 }
 0x4ca   : > { %3311 = vst [vmem:[#allocation3 + $0x68] sm:$0xff] %v3293_v1  ;;  %4346 = vrot.lane.b32.xlu1 %v11240_v52, %s11232_s3  ;;  %v4005_v40 = vmul.f32 %v11234_v48, %v3981_v49 }
 0x4cb   : > { %4070 = vrot.lane.b32.xlu2 %v11239_v36, %s11235_s2  ;;  %4072 = vrot.lane.b32.xlu0 %v4029_v6, %s11235_s2 }
 0x4cc   : > { %v4361_v58 = vpop.permute.xlu1 %4360  ;;  %v4025_v9 = vpack.c.bf16 %v4005_v40, %v4005_v40 }
 0x4cd   : > { %v9827_v55 = vpop.permute.xlu2 %3722  ;;  %v3895_v4 = vpop.permute.xlu0 %3894  ;;  %v4381_v27 = vrot.slane %v4361_v58, 4 }
 0x4ce   : > { %v3916_v41 = vrot.slane %v3895_v4, 4  ;;  %v3742_v36 = vrot.slane %v9827_v55, 4 }
 0x4d0   : > { %v3932_v12 = vsel %vm921_vm11, %v3916_v41, %v3917_v16  ;;  %v11245_v16 = vld [vmem:[#allocation26_spill] sm:$0xff]  ;;  %v11246_v41 = vld [vmem:[#allocation25_spill] sm:$0xff] }
 0x4d1   : > { %v3933_v21 = vsel %vm1610_vm15, %v3895_v4, %v3932_v12  ;;  %v11247_v12 = vpack.c.bf16 %v11245_v16, %v11246_v41  ;;  %v11256_v16 = vld [vmem:[#allocation17_spill] sm:$0xff] }
 0x4d2   : > { %3951 = vst [vmem:[#allocation3 + $0x168] sm:$0xff] %v3933_v21  ;;  %4352 = vrot.lane.b32.xlu1 %v4313_v23, %s11232_s3 }
 0x4d3   : > { %4348 = vrot.lane.b32.xlu2 %v4311_v56, %s11232_s3  ;;  %4350 = vrot.lane.b32.xlu0 %v11241_v39, %s11232_s3  ;;  %v11248_v56 = vpack.c.bf16 %v9525_v29, %v9520_v24  ;;  %v11249_v24 = vld [vmem:[#allocation34_spill] sm:$0xff]  ;;  %v11250_v29 = vld [vmem:[#allocation32_spill] sm:$0xff] }
 0x4d4   : > { %v3607_v5 = vpop.permute.xlu1 %3606 }
 0x4d5   : > { %v9839_v63 = vpop.permute.xlu2 %3436  ;;  %v4359_v13 = vpop.permute.xlu0 %4358  ;;  %v3628_v42 = vrot.slane %v3607_v5, 4 }
 0x4d6   : > { %v4380_v10 = vrot.slane %v4359_v13, 4 }
 0x4d7   : > { %v3644_v30 = vsel %vm921_vm11, %v3628_v42, %v3629_v17  ;;  %v4245_v17 = vld [vmem:[#allocation2 + $0x14] sm:$0xf] }
 0x4d8   : > { %v4396_v59 = vsel %vm921_vm11, %v4380_v10, %v4381_v27  ;;  %v3645_v7 = vsel %vm1311_vm13, %v3607_v5, %v3644_v30  ;;  %v4263_v2 = vunpack.c.l.bf16 %v4245_v17  ;;  %v11251_v30 = vpack.c.bf16 %v11249_v24, %v11250_v29 }
 0x4d9   : > { %v4397_v25 = vsel %vm2095_vm6, %v4359_v13, %v4396_v59  ;;  %3663 = vst [vmem:[#allocation3 + $0xe8] sm:$0xff] %v3645_v7  ;;  %v11252_v59 = vld [vmem:[#allocation18_spill] sm:$0xff]  ;;  %v11253_v7 = vld [vmem:[#allocation7_spill] sm:$0xff] }
 0x4da   : > { %4415 = vst [vmem:[#allocation3 + $0x228] sm:$0xff] %v4397_v25  ;;  %3710 = vrot.lane.b32.xlu1 %v7661_v14, %s11233_s1  ;;  %v11254_v25 = vpack.c.bf16 %v11252_v59, %v11253_v7  ;;  %v4287_v14 = vmul.f32 %v11231_v53, %v4263_v2 }
 0x4db   : > { %3706 = vrot.lane.b32.xlu2 %v7660_v62, %s11233_s1  ;;  %3708 = vrot.lane.b32.xlu0 %v3671_v26, %s11233_s1 }
 0x4dc   : > { %v3431_v37 = vpop.permute.xlu1 %3430 }
 0x4dd   : > { %v9849_v51 = vpop.permute.xlu2 %4364  ;;  %v3261_v11 = vpop.permute.xlu0 %3260  ;;  %v3452_v0 = vrot.slane %v3431_v37, 4 }
 0x4de   : > { %v3279_v33 = vrot.slane %v3261_v11, 4 }
 0x4df   : > { %v3468_v46 = vsel %vm921_vm11, %v3452_v0, %v3453_v50  ;;  %v7662_v0 = vld [vmem:[#allocation2] sm:$0xff] }
 0x4e0   : > { %v3294_v8 = vsel %vm921_vm11, %v3278_v31, %v3279_v33  ;;  %v3469_v57 = vsel %vm1123_vm14, %v3431_v37, %v3468_v46  ;;  %v4309_v31 = vpack.c.bf16 %v4287_v14, %v4287_v14  ;;  %v3455_v46 = vrot.slane %v9839_v63, 4  ;;  %v7663_v63 = vld [vmem:[#allocation2 + $0xc] sm:$0xff] }
 0x4e1   : > { %v3295_v18 = vsel %vm923_vm12, %v9813_v43, %v3294_v8  ;;  %3487 = vst [vmem:[#allocation3 + $0xa8] sm:$0xff] %v3469_v57  ;;  %v4243_v43 = vld [vmem:[#allocation2 + $0x8] sm:$0xf] }
 0x4e2   : > { %3312 = vst [vmem:[#allocation3 + $0x70] sm:$0xff] %v3295_v18  ;;  %4060 = vrot.lane.b32.xlu1 %v4023_v54, %s11235_s2  ;;  %v4260_v58 = vunpack.c.l.bf16 %v4243_v43  ;;  %v3955_v54 = vld [vmem:[#allocation2 + $0x8] sm:$0xf] }
 0x4e3   : > { %3712 = vrot.lane.b32.xlu2 %v3673_v3, %s11233_s1  ;;  %4058 = vrot.lane.b32.xlu0 %v11244_v38, %s11235_s2 }
 0x4e4   : > { %v4189_v1 = vpop.permute.xlu1 %4188  ;;  %v4284_v23 = vmul.f32 %v11231_v53, %v4260_v58 }
 0x4e5   : > { %v3899_v15 = vpop.permute.xlu2 %3898  ;;  %v3725_v6 = vpop.permute.xlu0 %3724  ;;  %v4207_v5 = vrot.slane %v4189_v1, 4 }
 0x4e6   : > { %v3743_v52 = vrot.slane %v3725_v6, 4  ;;  %v4307_v42 = vpack.c.bf16 %v4284_v23, %v4284_v23  ;;  %v3918_v37 = vrot.slane %v3899_v15, 4  ;;  %v4383_v6 = vrot.slane %v9849_v51, 4  ;;  %v11255_v51 = vld [vmem:[#allocation16_spill] sm:$0xff] }
 0x4e7   : > { %v11257_v41 = vpack.c.bf16 %v11255_v51, %v11256_v16  ;;  %v7477_v51 = vld [vmem:[#allocation3 + $0xe4] sm:$0xf0] }
 0x4e8   : > { %v3758_v20 = vsel %vm921_vm11, %v3742_v36, %v3743_v52  ;;  %v3957_v52 = vld [vmem:[#allocation2 + $0x14] sm:$0xf]  ;;  %v7505_v16 = vld [vmem:[#allocation3 + $0x1c4] sm:$0xf0] }
 0x4e9   : > { %v3759_v4 = vsel %vm1424_vm1, %v9827_v55, %v3758_v20 }
 0x4ea   : > { %3776 = vst [vmem:[#allocation3 + $0x130] sm:$0xff] %v3759_v4  ;;  %3902 = vrot.lane.b32.xlu1 %v11248_v56, %s11210_s29  ;;  %v3669_v4 = vld [vmem:[#allocation2 + $0x14] sm:$0xf] }
 0x4eb   : > { %4062 = vrot.lane.b32.xlu2 %v11247_v12, %s11235_s2  ;;  %4064 = vrot.lane.b32.xlu0 %v4025_v9, %s11235_s2  ;;  %v3975_v9 = vunpack.c.l.bf16 %v3957_v52 }
 0x4ec   : > { %v3613_v39 = vpop.permute.xlu1 %3612 }
 0x4ed   : > { %v9879_v21 = vpop.permute.xlu2 %3264  ;;  %v4187_v55 = vpop.permute.xlu0 %4186  ;;  %v3631_v8 = vrot.slane %v3613_v39, 4  ;;  %v3999_v39 = vmul.f32 %v11234_v48, %v3975_v9 }
 0x4ee   : > { %v4206_v13 = vrot.slane %v4187_v55, 4 }
 0x4ef   : > { %v4021_v29 = vpack.c.bf16 %v3999_v39, %v3999_v39 }
 0x4f0   : > { %v4222_v27 = vsel %vm921_vm11, %v4206_v13, %v4207_v5 }
 0x4f1   : > { %v4223_v10 = vsel %vm1909_vm0, %v4187_v55, %v4222_v27  ;;  %v3281_v55 = vrot.slane %v9879_v21, 4  ;;  %v11259_v21 = vld [vmem:[#allocation13_spill] sm:$0xff] }
 0x4f2   : > { %4240 = vst [vmem:[#allocation3 + $0x1f0] sm:$0xff] %v4223_v10  ;;  %4338 = vrot.lane.b32.xlu1 %v11254_v25, %s11232_s3  ;;  %v4514_v10 = vld [vmem:[%s10982_s7] sm:$0xff] }
 0x4f3   : > { %4340 = vrot.lane.b32.xlu2 %v4307_v42, %s11232_s3  ;;  %4342 = vrot.lane.b32.xlu0 %v11251_v30, %s11232_s3 }
 0x4f4   : > { %v4077_v26 = vpop.permute.xlu1 %4076 }
 0x4f5   : > { %v9893_v34 = vpop.permute.xlu2 %3728  ;;  %v3901_v62 = vpop.permute.xlu0 %3900  ;;  %v4095_v40 = vrot.slane %v4077_v26, 4 }
 0x4f6   : > { %v3919_v11 = vrot.slane %v3901_v62, 4  ;;  %v3745_v26 = vrot.slane %v9893_v34, 4 }
 0x4f8   : > { %v3934_v45 = vsel %vm921_vm11, %v3918_v37, %v3919_v11  ;;  %v4515_v11 = vld [vmem:[%s10982_s7 + $0x8] sm:$0xff] }
 0x4f9   : > { %v3935_v50 = vsel %vm1610_vm15, %v3899_v15, %v3934_v45 }
 0x4fa   : > { %3952 = vst [vmem:[#allocation3 + $0x170] sm:$0xff] %v3935_v50  ;;  %4344 = vrot.lane.b32.xlu1 %v4309_v31, %s11232_s3  ;;  %v4516_v31 = vld [vmem:[%s10982_s7 + $0x10] sm:$0xff] }
 0x4fb   : > { %3698 = vrot.lane.b32.xlu2 %v7662_v0, %s11233_s1  ;;  %4366 = vrot.lane.b32.xlu0 %v4320_v44, %s11232_s3  ;;  %v3972_v44 = vunpack.c.l.bf16 %v3955_v54  ;;  %v4517_v0 = vld [vmem:[%s10982_s7 + $0x18] sm:$0xff]  ;;  %v7461_v54 = vld [vmem:[#allocation3 + $0x64] sm:$0xf0] }
 0x4fc   : > { %v3435_v53 = vpop.permute.xlu1 %3434 }
 0x4fd   : > { %v4191_v33 = vpop.permute.xlu2 %4190  ;;  %v3611_v32 = vpop.permute.xlu0 %3610  ;;  %v3454_v57 = vrot.slane %v3435_v53, 4  ;;  %v3996_v1 = vmul.f32 %v11234_v48, %v3972_v44  ;;  %v11258_v48 = vld [vmem:[#allocation14_spill] sm:$0xff]  ;;  %v6979_v44 = vld [vmem:[#allocation3 + $0x60] sm:$0xf] }
 0x4fe   : > { %v3630_v18 = vrot.slane %v3611_v32, 4  ;;  %v4208_v5 = vrot.slane %v4191_v33, 4  ;;  %v11260_v30 = vpack.c.bf16 %v11258_v48, %v11259_v21  ;;  %v6955_v48 = vld [vmem:[#allocation3 + $0x30] sm:$0xf] }
 0x4ff   : > { %v3470_v3 = vsel %vm921_vm11, %v3454_v57, %v3455_v46  ;;  %v4019_v58 = vpack.c.bf16 %v3996_v1, %v3996_v1  ;;  %v7459_v1 = vld [vmem:[#allocation3 + $0x54] sm:$0xf0] }
 0x500   : > { %v3646_v49 = vsel %vm921_vm11, %v3630_v18, %v3631_v8  ;;  %v3471_v47 = vsel %vm1123_vm14, %v3435_v53, %v3470_v3  ;;  %v6987_v53 = vld [vmem:[#allocation3 + $0x70] sm:$0xf] }
 0x501   : > { %v3647_v19 = vsel %vm1311_vm13, %v3611_v32, %v3646_v49  ;;  %3488 = vst [vmem:[#allocation3 + $0xb0] sm:$0xff] %v3471_v47  ;;  %v7179_v8 = vld [vmem:[#allocation3 + $0x1f0] sm:$0xf]  ;;  %v7509_v49 = vld [vmem:[#allocation3 + $0x1e4] sm:$0xf0] }
 0x502   : > { %3664 = vst [vmem:[#allocation3 + $0xf0] sm:$0xff] %v3647_v19  ;;  %3702 = vrot.lane.b32.xlu1 %v7663_v63, %s11233_s1  ;;  %v7171_v63 = vld [vmem:[#allocation3 + $0x1e0] sm:$0xf] }
 0x503   : > { %4078 = vrot.lane.b32.xlu2 %v4032_v60, %s11235_s2  ;;  %3700 = vrot.lane.b32.xlu0 %v3667_v35, %s11233_s1  ;;  %v6980_v35 = vor.u32 %v7461_v54, %v6979_v44  ;;  %v6851_v54 = vld [vmem:[%s10981_s6] sm:$0xf] }
 0x504   : > { %v4363_v38 = vpop.permute.xlu1 %4362 }
 0x505   : > { %v9915_v28 = vpop.permute.xlu2 %3904  ;;  %v4075_v15 = vpop.permute.xlu0 %4074  ;;  %v4382_v43 = vrot.slane %v4363_v38, 4 }
 0x506   : > { %v4094_v36 = vrot.slane %v4075_v15, 4 }
 0x507   : > { %v4398_v60 = vsel %vm921_vm11, %v4382_v43, %v4383_v6  ;;  %v4519_v6 = vld [vmem:[%s10982_s7 + $0x28] sm:$0xff]  ;;  %v7507_v43 = vld [vmem:[#allocation3 + $0x1d4] sm:$0xf0] }
 0x508   : > { %v4110_v22 = vsel %vm921_vm11, %v4094_v36, %v4095_v40  ;;  %v4399_v61 = vsel %vm2095_vm6, %v4363_v38, %v4398_v60  ;;  %v7172_v38 = vor.u32 %v7509_v49, %v7171_v63  ;;  %v4520_v40 = vld [vmem:[%s10982_s7 + $0x30] sm:$0xff]  ;;  %v6971_v36 = vld [vmem:[#allocation3 + $0x50] sm:$0xf] }
 0x509   : > { %v4111_v20 = vsel %vm1796_vm2, %v4075_v15, %v4110_v22  ;;  %4416 = vst [vmem:[#allocation3 + $0x230] sm:$0xff] %v4399_v61  ;;  %v4518_v15 = vld [vmem:[%s10982_s7 + $0x20] sm:$0xff]  ;;  %v6972_v52 = vor.u32 %v7459_v1, %v6971_v36  ;;  %v7051_v60 = vld [vmem:[#allocation3 + $0xf0] sm:$0xf] }
 0x50a   : > { %4128 = vst [vmem:[#allocation3 + $0x1b0] sm:$0xff] %v4111_v20  ;;  %4052 = vrot.lane.b32.xlu1 %v4019_v58, %s11235_s2  ;;  %v7163_v61 = vld [vmem:[#allocation3 + $0x1d0] sm:$0xf] }
 0x50b   : > { %3704 = vrot.lane.b32.xlu2 %v3669_v4, %s11233_s1  ;;  %4050 = vrot.lane.b32.xlu0 %v11257_v41, %s11235_s2  ;;  %v7164_v58 = vor.u32 %v7507_v43, %v7163_v61  ;;  %v7457_v4 = vld [vmem:[#allocation3 + $0x44] sm:$0xf0]  ;;  %s11262_s1 = sld [smem:[#allocation36_spill]] }
 0x50c   : > { %v3263_v56 = vpop.permute.xlu1 %3262 }
 0x50d   : > { %v3615_v12 = vpop.permute.xlu2 %3614  ;;  %v4193_v23 = vpop.permute.xlu0 %4192  ;;  %v3280_v13 = vrot.slane %v3263_v56, 4 }
 0x50e   : > { %v4209_v17 = vrot.slane %v4193_v23, 4  ;;  %v3632_v62 = vrot.slane %v3615_v12, 4 }
 0x50f   : > { %v3296_v27 = vsel %vm921_vm11, %v3280_v13, %v3281_v55  ;;  %v7155_v13 = vld [vmem:[#allocation3 + $0x1c0] sm:$0xf] }
 0x510   : > { %v4224_v42 = vsel %vm921_vm11, %v4208_v5, %v4209_v17  ;;  %v3297_v2 = vsel %vm923_vm12, %v3263_v56, %v3296_v27  ;;  %v6963_v56 = vld [vmem:[#allocation3 + $0x40] sm:$0xf]  ;;  %v7156_v27 = vor.u32 %v7505_v16, %v7155_v13  ;;  %v7469_v13 = vld [vmem:[#allocation3 + $0xa4] sm:$0xf0] }
 0x511   : > { %v4225_v24 = vsel %vm1909_vm0, %v4191_v33, %v4224_v42  ;;  %3313 = vst [vmem:[#allocation3 + $0x78] sm:$0xff] %v3297_v2  ;;  %v6964_v55 = vor.u32 %v7457_v4, %v6963_v56  ;;  %v7043_v5 = vld [vmem:[#allocation3 + $0xe0] sm:$0xf]  ;;  %v4521_v42 = vld [vmem:[%s10982_s7 + $0x38] sm:$0xff] }
 0x512   : > { %4241 = vst [vmem:[#allocation3 + $0x1f8] sm:$0xff] %v4225_v24  ;;  %4524 = vperm.xlu1 %7605, %v4514_v10   ;;  %v7044_v17 = vor.u32 %v7477_v51, %v7043_v5  ;;  %v7455_v10 = vld [vmem:[#allocation3 + $0x34] sm:$0xf0] }
 0x513   : > { %4054 = vrot.lane.b32.xlu2 %v11260_v30, %s11235_s2  ;;  %4056 = vrot.lane.b32.xlu0 %v4021_v29, %s11235_s2  ;;  %v7475_v24 = vld [vmem:[#allocation3 + $0xd4] sm:$0xf0]  ;;  %v6956_v21 = vor.u32 %v7455_v10, %v6955_v48  ;;  %v7035_v30 = vld [vmem:[#allocation3 + $0xd0] sm:$0xf]  ;;  %s10397_s2 = scalar_lea.vmem %s11262_s1, %s11261_s4  ;;  %s7335_s4 = sshll.u32 %s11294_s24, 7 }
 0x514   : > { %v3727_v7 = vpop.permute.xlu1 %3726  ;;  %s10878_s3 = scalar_lea.vmem %s10995_s20, %s7335_s4 }
 0x515   : > { %v9943_v59 = vpop.permute.xlu2 %3714  ;;  %v3617_v25 = vpop.permute.xlu0 %3616  ;;  %v3744_v14 = vrot.slane %v3727_v7, 4 }
 0x516   : > { %v3633_v37 = vrot.slane %v3617_v25, 4  ;;  %v3738_v23 = vrot.slane %v9943_v59, 4  ;;  %v7453_v25 = vld [vmem:[#allocation3 + $0x24] sm:$0xf0] }
 0x517   : > { %v3760_v45 = vsel %vm921_vm11, %v3744_v14, %v3745_v26 }
 0x518   : > { %v3648_v50 = vsel %vm921_vm11, %v3632_v62, %v3633_v37  ;;  %v3761_v34 = vsel %vm1424_vm1, %v3727_v7, %v3760_v45  ;;  %v7463_v32 = vld [vmem:[#allocation3 + $0x74] sm:$0xf0]  ;;  %v7036_v7 = vor.u32 %v7475_v24, %v7035_v30  ;;  %v7473_v62 = vld [vmem:[#allocation3 + $0xc4] sm:$0xf0]  ;;  %v7011_v24 = vld [vmem:[#allocation3 + $0xa0] sm:$0xf] }
 0x519   : > { %v3649_v33 = vsel %vm1311_vm13, %v3615_v12, %v3648_v50  ;;  %3777 = vst [vmem:[#allocation3 + $0x138] sm:$0xff] %v3761_v34  ;;  %v6988_v46 = vor.u32 %v7463_v32, %v6987_v53  ;;  %v7511_v57 = vld [vmem:[#allocation3 + $0x1f4] sm:$0xf0]  ;;  %v6939_v34 = vld [vmem:[#allocation3 + $0x10] sm:$0xf] }
 0x51a   : > { %3665 = vst [vmem:[#allocation3 + $0xf8] sm:$0xff] %v3649_v33  ;;  %4539 = vperm.xlu1 %7605, %v4517_v0   ;;  %v7180_v18 = vor.u32 %v7511_v57, %v7179_v8  ;;  %v7451_v32 = vld [vmem:[#allocation3 + $0x14] sm:$0xf0]  ;;  %v7449_v8 = vld [vmem:[#allocation3 + $0x4] sm:$0xf0] }
 0x51b   : > { %4529 = vperm.xlu2 %7606, %v4515_v11   ;;  %4534 = vperm.xlu0 %7604, %v4516_v31   ;;  %v6947_v11 = vld [vmem:[#allocation3 + $0x20] sm:$0xf]  ;;  %v7467_v30 = vld [vmem:[#allocation3 + $0x94] sm:$0xf0] }
 0x51c   : > { %5034 = vmatpush.bf16.msrb.mxu2 %v6988_v46  ;;  %5121 = vmatpush.bf16.msrb.mxu1 %v7180_v18  ;;  %v9961_v47 = vpop.permute.xlu1 %3440  ;;  %v7027_v31 = vld [vmem:[#allocation3 + $0xc0] sm:$0xf]  ;;  %v6940_v46 = vor.u32 %v7451_v32, %v6939_v34 }
 0x51d   : > { %v9959_v3 = vpop.permute.xlu2 %3720  ;;  %v9963_v19 = vpop.permute.xlu0 %4080  ;;  %v7028_v0 = vor.u32 %v7473_v62, %v7027_v31  ;;  %v6931_v18 = vld [vmem:[#allocation3] sm:$0xf]  ;;  %v3457_v63 = vrot.slane %v9961_v47, 4 }
 0x51e   : > { %v3741_v45 = vrot.slane %v9959_v3, 4  ;;  %v7430_v3 = vld [vmem:[%s10981_s6 + $0x10] sm:$0xf0] }
 0x520   : > { %5035 = vmatpush.bf16.msrb.mxu2 %v6980_v35  ;;  %5122 = vmatpush.bf16.msrb.mxu1 %v7172_v38  ;;  %v6932_v35 = vor.u32 %v7449_v8, %v6931_v18 }
 0x521   : > { %v7479_v22 = vld [vmem:[#allocation3 + $0xf4] sm:$0xf0] }
 0x522   : > { %4554 = vperm.xlu1 %7605, %v4520_v40   ;;  %v7052_v20 = vor.u32 %v7479_v22, %v7051_v60 }
 0x523   : > { %4544 = vperm.xlu2 %7606, %v4518_v15   ;;  %4549 = vperm.xlu0 %7604, %v4519_v6   ;;  %v9997_v6 = vor.u32 %v7430_v3, %v6851_v54 }
 0x524   : > { %5036 = vmatpush.bf16.msrb.mxu2 %v6972_v52  ;;  %5063 = vmatpush.bf16.msrb.mxu3 %v7052_v20  ;;  %v9976_v41 = vpop.permute.xlu1 %4368 }
 0x525   : > { %v9974_v9 = vpop.permute.xlu2 %4070  ;;  %5123 = vmatpush.bf16.msrb.mxu1 %v7164_v58  ;;  %v3717_v12 = vpop.permute.xlu0 %3716 }
 0x526   : > { %v3739_v39 = vrot.slane %v3717_v12, 4  ;;  %v4092_v61 = vrot.slane %v9974_v9, 4 }
 0x528   : > { %v3754_v2 = vsel %vm921_vm11, %v3738_v23, %v3739_v39  ;;  %5037 = vmatpush.bf16.msrb.mxu2 %v6964_v55  ;;  %5064 = vmatpush.bf16.msrb.mxu3 %v7044_v17  ;;  %v7019_v23 = vld [vmem:[#allocation3 + $0xb0] sm:$0xf]  ;;  %v6871_v17 = vld [vmem:[%s10981_s6 + $0x28] sm:$0xf] }
 0x529   : > { %v3755_v29 = vsel %vm1424_vm1, %v9943_v59, %v3754_v2  ;;  %5124 = vmatpush.bf16.msrb.mxu1 %v7156_v27  ;;  %v6948_v59 = vor.u32 %v7453_v25, %v6947_v11  ;;  %v7435_v27 = vld [vmem:[%s10981_s6 + $0x38] sm:$0xf0]  ;;  %v7003_v25 = vld [vmem:[#allocation3 + $0x90] sm:$0xf] }
 0x52a   : > { %3774 = vst [vmem:[#allocation3 + $0x120] sm:$0xff] %v3755_v29  ;;  %v7012_v29 = vor.u32 %v7469_v13, %v7011_v24  ;;  %v10018_v48 = vor.u32 %v7435_v27, %v6871_v17  ;;  %v7433_v17 = vld [vmem:[%s10981_s6 + $0x2c] sm:$0xf]  ;;  %v6873_v27 = vld [vmem:[%s10981_s6 + $0x3c] sm:$0xf0] }
 0x52b   : > { %4559 = vperm.xlu2 %7606, %v4521_v42   ;;  %v7454_v24 = vld [vmem:[#allocation3 + $0x34] sm:$0xf] }
 0x52c   : > { %5038 = vmatpush.bf16.msrb.mxu2 %v6956_v21  ;;  %5065 = vmatpush.bf16.msrb.mxu3 %v7036_v7  ;;  %v3719_v14 = vpop.permute.xlu1 %3718 }
 0x52d   : > { %v4349_v26 = vpop.permute.xlu2 %4348  ;;  %v4067_v37 = vpop.permute.xlu0 %4066  ;;  %v3740_v50 = vrot.slane %v3719_v14, 4 }
 0x52e   : > { %v4090_v38 = vrot.slane %v4067_v37, 4  ;;  %v4375_v20 = vrot.slane %v4349_v26, 4  ;;  %v7004_v26 = vor.u32 %v7467_v30, %v7003_v25  ;;  %v10066_v25 = vor.u32 %v7433_v17, %v6873_v27 }
 0x52f   : > { %v3756_v33 = vsel %vm921_vm11, %v3740_v50, %v3741_v45  ;;  %v6989_v45 = vld [vmem:[#allocation3 + $0x78] sm:$0xf0] }
 0x530   : > { %5039 = vmatpush.bf16.msrb.mxu2 %v6948_v59  ;;  %v3757_v53 = vsel %vm1424_vm1, %v3719_v14, %v3756_v33  ;;  %5066 = vmatpush.bf16.msrb.mxu3 %v7028_v0  ;;  %v7465_v14 = vld [vmem:[#allocation3 + $0x84] sm:$0xf0]  ;;  %v7428_v50 = vld [vmem:[%s10981_s6 + $0x4] sm:$0xf]  ;;  %v6853_v59 = vld [vmem:[%s10981_s6 + $0x14] sm:$0xf0] }
 0x531   : > { %3775 = vst [vmem:[#allocation3 + $0x128] sm:$0xff] %v3757_v53  ;;  %v6995_v53 = vld [vmem:[#allocation3 + $0x80] sm:$0xf]  ;;  %v10034_v3 = vor.u32 %v7428_v50, %v6853_v59  ;;  %v7445_v50 = vld [vmem:[%s10981_s6 + $0x88] sm:$0xf0] }
 0x532   : > { %v6996_v32 = vor.u32 %v7465_v14, %v6995_v53  ;;  %v6949_v14 = vld [vmem:[#allocation3 + $0x28] sm:$0xf0] }
 0x534   : > { %5040 = vmatpush.bf16.msrb.mxu2 %v6940_v46  ;;  %v4069_v49 = vpop.permute.xlu1 %4068  ;;  %v7462_v46 = vld [vmem:[#allocation3 + $0x74] sm:$0xf] }
 0x535   : > { %v9988_v57 = vpop.permute.xlu2 %3706  ;;  %v3439_v44 = vpop.permute.xlu0 %3438  ;;  %v4091_v15 = vrot.slane %v4069_v49, 4  ;;  %v6992_v54 = vor.u32 %v7462_v46, %v6989_v45  ;;  %v6911_v45 = vld [vmem:[%s10981_s6 + $0x78] sm:$0xf] }
 0x536   : > { %v3456_v1 = vrot.slane %v3439_v44, 4  ;;  %v3734_v31 = vrot.slane %v9988_v57, 4  ;;  %v10079_v53 = vor.u32 %v7445_v50, %v6911_v45 }
 0x537   : > { %v4106_v40 = vsel %vm921_vm11, %v4090_v38, %v4091_v15 }
 0x538   : > { %v3472_v43 = vsel %vm921_vm11, %v3456_v1, %v3457_v63  ;;  %5041 = vmatpush.bf16.msrb.mxu2 %v6932_v35  ;;  %v4107_v36 = vsel %vm1796_vm2, %v4067_v37, %v4106_v40  ;;  %v6981_v35 = vld [vmem:[#allocation3 + $0x68] sm:$0xf0]  ;;  %v7460_v63 = vld [vmem:[#allocation3 + $0x64] sm:$0xf]  ;;  %v6891_v1 = vld [vmem:[%s10981_s6 + $0x50] sm:$0xf] }
 0x539   : > { %v3473_v52 = vsel %vm1123_vm14, %v3439_v44, %v3472_v43  ;;  %4126 = vst [vmem:[#allocation3 + $0x1a0] sm:$0xff] %v4107_v36  ;;  %v6984_v38 = vor.u32 %v7460_v63, %v6981_v35  ;;  %v7440_v40 = vld [vmem:[%s10981_s6 + $0x60] sm:$0xf0]  ;;  %v6933_v63 = vld [vmem:[#allocation3 + $0x8] sm:$0xf0] }
 0x53a   : > { %3489 = vst [vmem:[#allocation3 + $0xb8] sm:$0xff] %v3473_v52  ;;  %v6973_v36 = vld [vmem:[#allocation3 + $0x58] sm:$0xf0] }
 0x53b   : > { %5042 = vmatmul.bf16.vlgmr.msrb.gmra.mxu2 %v9997_v6 }
 0x53c   : > { %v4347_v47 = vpop.permute.xlu1 %4346 }
 0x53d   : > { %v3713_v60 = vpop.permute.xlu2 %3712  ;;  %v4073_v22 = vpop.permute.xlu0 %4072  ;;  %v4374_v58 = vrot.slane %v4347_v47, 4 }
 0x53e   : > { %v4093_v4 = vrot.slane %v4073_v22, 4  ;;  %v3737_v0 = vrot.slane %v3713_v60, 4  ;;  %v10048_v22 = vor.u32 %v7440_v40, %v6891_v1  ;;  %v7448_v40 = vld [vmem:[#allocation3 + $0x4] sm:$0xf] }
 0x53f   : > { %v4390_v51 = vsel %vm921_vm11, %v4374_v58, %v4375_v20 }
 0x540   : > { %v4108_v16 = vsel %vm921_vm11, %v4092_v61, %v4093_v4  ;;  %v4391_v12 = vsel %vm2095_vm6, %v4347_v47, %v4390_v51  ;;  %v7458_v47 = vld [vmem:[#allocation3 + $0x54] sm:$0xf]  ;;  %v6965_v4 = vld [vmem:[#allocation3 + $0x48] sm:$0xf0]  ;;  %v7456_v51 = vld [vmem:[#allocation3 + $0x44] sm:$0xf] }
 0x541   : > { %v4109_v56 = vsel %vm1796_vm2, %v9974_v9, %v4108_v16  ;;  %4412 = vst [vmem:[#allocation3 + $0x210] sm:$0xff] %v4391_v12  ;;  %v7471_v39 = vld [vmem:[#allocation3 + $0xb4] sm:$0xf0]  ;;  %v6976_v20 = vor.u32 %v7458_v47, %v6973_v36  ;;  %v6968_v16 = vor.u32 %v7456_v51, %v6965_v4  ;;  %v7139_v36 = vld [vmem:[#allocation3 + $0x1a0] sm:$0xf]  ;;  %v4385_v4 = vrot.slane %v9976_v41, 4 }
 0x542   : > { %4127 = vst [vmem:[#allocation3 + $0x1a8] sm:$0xff] %v4109_v56  ;;  %v7020_v55 = vor.u32 %v7471_v39, %v7019_v23  ;;  %v6957_v56 = vld [vmem:[#allocation3 + $0x38] sm:$0xf0]  ;;  %v4097_v23 = vrot.slane %v9963_v19, 4  ;;  %v7099_v41 = vld [vmem:[#allocation3 + $0x150] sm:$0xf] }
 0x544   : > { %5067 = vmatpush.bf16.msrb.mxu3 %v7020_v55  ;;  %v4353_v42 = vpop.permute.xlu1 %4352 }
 0x545   : > { %v10010_v5 = vpop.permute.xlu2 %4062  ;;  %v4351_v10 = vpop.permute.xlu0 %4350  ;;  %v4377_v9 = vrot.slane %v4353_v42, 4  ;;  %v3921_v42 = vrot.slane %v9915_v28, 4 }
 0x546   : > { %v4376_v2 = vrot.slane %v4351_v10, 4 }
 0x548   : > { %v4392_v21 = vsel %vm921_vm11, %v4376_v2, %v4377_v9  ;;  %5068 = vmatpush.bf16.msrb.mxu3 %v7012_v29  ;;  %v6960_v29 = vor.u32 %v7454_v24, %v6957_v56 }
 0x549   : > { %v4393_v7 = vsel %vm2095_vm6, %v4351_v10, %v4392_v21  ;;  %v4088_v10 = vrot.slane %v10010_v5, 4  ;;  %v7501_v1 = vld [vmem:[#allocation3 + $0x1a4] sm:$0xf0] }
 0x54a   : > { %4413 = vst [vmem:[#allocation3 + $0x218] sm:$0xff] %v4393_v7 }
 0x54b   : > { %5047 = vmatmul.bf16.gmra.mxu2 %v10018_v48 }
 0x54c   : > { %5069 = vmatpush.bf16.msrb.mxu3 %v7004_v26  ;;  %v3711_v37 = vpop.permute.xlu1 %3710 }
 0x54d   : > { %v10023_v62 = vpop.permute.xlu2 %4340  ;;  %v3709_v11 = vpop.permute.xlu0 %3708  ;;  %v3736_v34 = vrot.slane %v3711_v37, 4 }
 0x54e   : > { %v3735_v33 = vrot.slane %v3709_v11, 4 }
 0x54f   : > { %v3752_v8 = vsel %vm921_vm11, %v3736_v34, %v3737_v0  ;;  %v4371_v0 = vrot.slane %v10023_v62, 4  ;;  %v7493_v62 = vld [vmem:[#allocation3 + $0x164] sm:$0xf0] }
 0x550   : > { %v3750_v18 = vsel %vm921_vm11, %v3734_v31, %v3735_v33  ;;  %v3753_v49 = vsel %vm1424_vm1, %v3711_v37, %v3752_v8  ;;  %5070 = vmatpush.bf16.msrb.mxu3 %v6996_v32  ;;  %v7452_v37 = vld [vmem:[#allocation3 + $0x24] sm:$0xf]  ;;  %v6941_v33 = vld [vmem:[#allocation3 + $0x18] sm:$0xf0]  ;;  %v7147_v8 = vld [vmem:[#allocation3 + $0x1b0] sm:$0xf] }
 0x551   : > { %v3751_v44 = vsel %vm1424_vm1, %v9988_v57, %v3750_v18  ;;  %3773 = vst [vmem:[#allocation3 + $0x118] sm:$0xff] %v3753_v49  ;;  %v6952_v11 = vor.u32 %v7452_v37, %v6949_v14  ;;  %v7115_v49 = vld [vmem:[#allocation3 + $0x170] sm:$0xf]  ;;  %v7487_v37 = vld [vmem:[#allocation3 + $0x134] sm:$0xf0] }
 0x552   : > { %3772 = vst [vmem:[#allocation3 + $0x110] sm:$0xff] %v3751_v44 }
 0x553   : > { %5071 = vmatmul.bf16.vlgmr.msrb.gmra.mxu3 %v10034_v3 }
 0x554   : > { %5179 = vmatpush.bf16.msra.mxu3 %v6992_v54  ;;  %v4061_v57 = vpop.permute.xlu1 %4060 }
 0x555   : > { %v10040_v15 = vpop.permute.xlu2 %3698  ;;  %v4059_v43 = vpop.permute.xlu0 %4058  ;;  %v4087_v52 = vrot.slane %v4061_v57, 4  ;;  %v6936_v57 = vor.u32 %v7448_v40, %v6933_v63  ;;  %v7075_v63 = vld [vmem:[#allocation3 + $0x120] sm:$0xf] }
 0x556   : > { %v4086_v60 = vrot.slane %v4059_v43, 4 }
 0x558   : > { %5180 = vmatpush.bf16.msra.mxu3 %v6984_v38  ;;  %v4102_v61 = vsel %vm921_vm11, %v4086_v60, %v4087_v52 }
 0x559   : > { %v4103_v58 = vsel %vm1796_vm2, %v4059_v43, %v4102_v61  ;;  %v7107_v43 = vld [vmem:[#allocation3 + $0x160] sm:$0xf]  ;;  %v7140_v61 = vor.u32 %v7501_v1, %v7139_v36 }
 0x55a   : > { %4124 = vst [vmem:[#allocation3 + $0x190] sm:$0xff] %v4103_v58  ;;  %v7108_v47 = vor.u32 %v7493_v62, %v7107_v43  ;;  %v6893_v58 = vld [vmem:[%s10981_s6 + $0x64] sm:$0xf0]  ;;  %v7516_v43 = vld [vmem:[#allocation3 + $0x224] sm:$0xf] }
 0x55b   : > { %5052 = vmatmul.bf16.gmra.mxu2 %v10048_v22 }
 0x55c   : > { %5181 = vmatpush.bf16.msra.mxu3 %v6976_v20  ;;  %v3903_v39 = vpop.permute.xlu1 %3902  ;;  %v7438_v20 = vld [vmem:[%s10981_s6 + $0x54] sm:$0xf] }
 0x55d   : > { %v4079_v12 = vpop.permute.xlu2 %4078  ;;  %v4065_v55 = vpop.permute.xlu0 %4064  ;;  %v3920_v9 = vrot.slane %v3903_v39, 4 }
 0x55e   : > { %v4096_v13 = vrot.slane %v4079_v12, 4  ;;  %v4089_v2 = vrot.slane %v4065_v55, 4 }
 0x55f   : > { %v3936_v21 = vsel %vm921_vm11, %v3920_v9, %v3921_v42 }
 0x560   : > { %5182 = vmatpush.bf16.msra.mxu3 %v6968_v16  ;;  %v4112_v19 = vsel %vm921_vm11, %v4096_v13, %v4097_v23  ;;  %v4104_v30 = vsel %vm921_vm11, %v4088_v10, %v4089_v2  ;;  %v3937_v26 = vsel %vm1610_vm15, %v3903_v39, %v3936_v21  ;;  %v7491_v23 = vld [vmem:[#allocation3 + $0x154] sm:$0xf0]  ;;  %v10093_v13 = vor.u32 %v7438_v20, %v6893_v58  ;;  %v7489_v2 = vld [vmem:[#allocation3 + $0x144] sm:$0xf0] }
 0x561   : > { %v4113_v7 = vsel %vm1796_vm2, %v4079_v12, %v4112_v19  ;;  %v4105_v28 = vsel %vm1796_vm2, %v10010_v5, %v4104_v30  ;;  %3953 = vst [vmem:[#allocation3 + $0x178] sm:$0xff] %v3937_v26  ;;  %v7450_v5 = vld [vmem:[#allocation3 + $0x14] sm:$0xf]  ;;  %v7131_v17 = vld [vmem:[#allocation3 + $0x190] sm:$0xf]  ;;  %v7100_v9 = vor.u32 %v7491_v23, %v7099_v41 }
 0x562   : > { %4129 = vst [vmem:[#allocation3 + $0x1b8] sm:$0xff] %v4113_v7  ;;  %v6944_v46 = vor.u32 %v7450_v5, %v6941_v33  ;;  %v7091_v19 = vld [vmem:[#allocation3 + $0x140] sm:$0xf]  ;;  %v3730_v7 = vrot.slane %v10040_v15, 4  ;;  %v7211_v5 = vld [vmem:[#allocation3 + $0x230] sm:$0xf] }
 0x563   : > { %4125 = vst [vmem:[#allocation3 + $0x198] sm:$0xff] %v4105_v28  ;;  %5076 = vmatmul.bf16.gmra.mxu3 %v10066_v25  ;;  %v7092_v30 = vor.u32 %v7489_v2, %v7091_v19  ;;  %v7515_v58 = vld [vmem:[#allocation3 + $0x214] sm:$0xf0]  ;;  %v6859_v41 = vld [vmem:[%s10981_s6 + $0x8] sm:$0xf] }
 0x564   : > { %5183 = vmatpush.bf16.msra.mxu3 %v6960_v29  ;;  %v4339_v59 = vpop.permute.xlu1 %4338  ;;  %v7431_v2 = vld [vmem:[%s10981_s6 + $0x18] sm:$0xf0]  ;;  %v7053_v19 = vld [vmem:[#allocation3 + $0xf8] sm:$0xf0] }
 0x565   : > { %v4343_v31 = vpop.permute.xlu0 %4342  ;;  %v4370_v34 = vrot.slane %v4339_v59, 4  ;;  %v3705_v24 = vpop.permute.xlu2 %3704 }
 0x566   : > { %v4372_v51 = vrot.slane %v4343_v31, 4  ;;  %v3733_v26 = vrot.slane %v3705_v24, 4 }
 0x567   : > { %v4386_v32 = vsel %vm921_vm11, %v4370_v34, %v4371_v0  ;;  %v7518_v0 = vld [vmem:[#allocation3 + $0x234] sm:$0xf] }
 0x568   : > { %5184 = vmatpush.bf16.msra.mxu3 %v6952_v11  ;;  %v4387_v54 = vsel %vm2095_vm6, %v4339_v59, %v4386_v32  ;;  %v7495_v44 = vld [vmem:[#allocation3 + $0x174] sm:$0xf0] }
 0x569   : > { %v7503_v18 = vld [vmem:[#allocation3 + $0x1b4] sm:$0xf0]  ;;  %4410 = vst [vmem:[#allocation3 + $0x200] sm:$0xff] %v4387_v54  ;;  %v7116_v38 = vor.u32 %v7495_v44, %v7115_v49  ;;  %v7517_v54 = vld [vmem:[#allocation3 + $0x224] sm:$0xf0] }
 0x56a   : > { %v7148_v35 = vor.u32 %v7503_v18, %v7147_v8  ;;  %v7499_v56 = vld [vmem:[#allocation3 + $0x194] sm:$0xf0]  ;;  %v7485_v18 = vld [vmem:[#allocation3 + $0x124] sm:$0xf0]  ;;  %v7205_v49 = vld [vmem:[#allocation3 + $0x228] sm:$0xf0] }
 0x56b   : > { %5057 = vmatmul.bf16.gmra.mxu2 %v10079_v53  ;;  %5092 = vmatpush.bf16.msrb.mxu0 %v7116_v38  ;;  %v7132_v10 = vor.u32 %v7499_v56, %v7131_v17  ;;  %v6913_v38 = vld [vmem:[%s10981_s6 + $0x8c] sm:$0xf0]  ;;  %v7076_v40 = vor.u32 %v7485_v18, %v7075_v63  ;;  %v7514_v56 = vld [vmem:[#allocation3 + $0x214] sm:$0xf]  ;;  %v7508_v18 = vld [vmem:[#allocation3 + $0x1e4] sm:$0xf] }
 0x56c   : > { %5185 = vmatpush.bf16.msra.mxu3 %v6944_v46  ;;  %5125 = vmatpush.bf16.msrb.mxu1 %v7148_v35  ;;  %v4345_v52 = vpop.permute.xlu1 %4344  ;;  %v7474_v63 = vld [vmem:[#allocation3 + $0xd4] sm:$0xf] }
 0x56d   : > { %v4367_v60 = vpop.permute.xlu0 %4366  ;;  %v4373_v16 = vrot.slane %v4345_v52, 4  ;;  %v7208_v52 = vor.u32 %v7516_v43, %v7205_v49  ;;  %v4055_v23 = vpop.permute.xlu2 %4054  ;;  %v6861_v43 = vld [vmem:[%s10981_s6 + $0x1c] sm:$0xf0] }
 0x56e   : > { %v4384_v12 = vrot.slane %v4367_v60, 4 }
 0x56f   : > { %v4388_v39 = vsel %vm921_vm11, %v4372_v51, %v4373_v16  ;;  %5093 = vmatpush.bf16.msrb.mxu0 %v7108_v47  ;;  %v7483_v47 = vld [vmem:[#allocation3 + $0x114] sm:$0xf0] }
 0x570   : > { %5186 = vmatpush.bf16.msra.mxu3 %v6936_v57  ;;  %5126 = vmatpush.bf16.msrb.mxu1 %v7140_v61  ;;  %v4400_v55 = vsel %vm921_vm11, %v4384_v12, %v4385_v4  ;;  %v4389_v27 = vsel %vm2095_vm6, %v4343_v31, %v4388_v39  ;;  %v7083_v31 = vld [vmem:[#allocation3 + $0x130] sm:$0xf]  ;;  %v7203_v57 = vld [vmem:[#allocation3 + $0x220] sm:$0xf]  ;;  %v7197_v4 = vld [vmem:[#allocation3 + $0x218] sm:$0xf0] }
 0x571   : > { %v4401_v42 = vsel %vm2095_vm6, %v4367_v60, %v4400_v55  ;;  %4411 = vst [vmem:[#allocation3 + $0x208] sm:$0xff] %v4389_v27  ;;  %v7084_v34 = vor.u32 %v7487_v37, %v7083_v31  ;;  %v7204_v36 = vor.u32 %v7517_v54, %v7203_v57  ;;  %v7067_v60 = vld [vmem:[#allocation3 + $0x110] sm:$0xf]  ;;  %v7200_v55 = vor.u32 %v7514_v56, %v7197_v4  ;;  %v7429_v57 = vld [vmem:[%s10981_s6 + $0xc] sm:$0xf] }
 0x572   : > { %4417 = vst [vmem:[#allocation3 + $0x238] sm:$0xff] %v4401_v42  ;;  %v7068_v16 = vor.u32 %v7483_v47, %v7067_v60  ;;  %v7195_v12 = vld [vmem:[#allocation3 + $0x210] sm:$0xf]  ;;  %v7181_v42 = vld [vmem:[#allocation3 + $0x1f8] sm:$0xf0] }
 0x573   : > { %5081 = vmatmul.bf16.gmra.mxu3 %v10093_v13  ;;  %5094 = vmatpush.bf16.msrb.mxu0 %v7100_v9  ;;  %v7196_v39 = vor.u32 %v7515_v58, %v7195_v12  ;;  %v7029_v60 = vld [vmem:[#allocation3 + $0xc8] sm:$0xf0]  ;;  %v7472_v58 = vld [vmem:[#allocation3 + $0xc4] sm:$0xf] }
 0x574   : > { %5127 = vmatpush.bf16.msrb.mxu1 %v7132_v10  ;;  %v3703_v29 = vpop.permute.xlu1 %3702  ;;  %v7109_v12 = vld [vmem:[#allocation3 + $0x168] sm:$0xf0]  ;;  %v7032_v56 = vor.u32 %v7472_v58, %v7029_v60  ;;  %v6899_v60 = vld [vmem:[%s10981_s6 + $0x58] sm:$0xf]  ;;  %v7484_v58 = vld [vmem:[#allocation3 + $0x124] sm:$0xf] }
 0x575   : > { %v3701_v21 = vpop.permute.xlu0 %3700  ;;  %v3732_v28 = vrot.slane %v3703_v29, 4 }
 0x576   : > { %v3731_v14 = vrot.slane %v3701_v21, 4  ;;  %v7432_v21 = vld [vmem:[%s10981_s6 + $0x20] sm:$0xf0] }
 0x577   : > { %v3748_v11 = vsel %vm921_vm11, %v3732_v28, %v3733_v26  ;;  %5095 = vmatpush.bf16.msrb.mxu0 %v7092_v30  ;;  %v4084_v30 = vrot.slane %v4055_v23, 4  ;;  %v7187_v28 = vld [vmem:[#allocation3 + $0x200] sm:$0xf] }
 0x578   : > { %v3746_v45 = vsel %vm921_vm11, %v3730_v7, %v3731_v14  ;;  %v3749_v50 = vsel %vm1424_vm1, %v3703_v29, %v3748_v11  ;;  %v7513_v10 = vld [vmem:[#allocation3 + $0x204] sm:$0xf0]  ;;  %v7189_v9 = vld [vmem:[#allocation3 + $0x208] sm:$0xf0]  ;;  %v7512_v14 = vld [vmem:[#allocation3 + $0x204] sm:$0xf] }
 0x579   : > { %v3747_v59 = vsel %vm1424_vm1, %v10040_v15, %v3746_v45  ;;  %3771 = vst [vmem:[#allocation3 + $0x108] sm:$0xff] %v3749_v50  ;;  %v7519_v33 = vld [vmem:[#allocation3 + $0x234] sm:$0xf0]  ;;  %v7213_v32 = vld [vmem:[#allocation3 + $0x238] sm:$0xf0]  ;;  %v7188_v37 = vor.u32 %v7513_v10, %v7187_v28  ;;  %v7192_v11 = vor.u32 %v7512_v14, %v7189_v9 }
 0x57a   : > { %3770 = vst [vmem:[#allocation3 + $0x100] sm:$0xff] %v3747_v59  ;;  %v7212_v46 = vor.u32 %v7519_v33, %v7211_v5  ;;  %v7216_v8 = vor.u32 %v7518_v0, %v7213_v32  ;;  %v7443_v15 = vld [vmem:[%s10981_s6 + $0x7c] sm:$0xf]  ;;  %v6867_v29 = vld [vmem:[%s10981_s6 + $0x10] sm:$0xf]  ;;  %v10127_v59 = vor.u32 %v7431_v2, %v6859_v41 }
 0x57b   : > { %5096 = vmatpush.bf16.msrb.mxu0 %v7084_v34  ;;  %v10111_v20 = vor.u32 %v7443_v15, %v6913_v38  ;;  %v7478_v45 = vld [vmem:[#allocation3 + $0xf4] sm:$0xf]  ;;  %v10130_v34 = vor.u32 %v7432_v21, %v6867_v29  ;;  %v7045_v32 = vld [vmem:[#allocation3 + $0xe8] sm:$0xf0]  ;;  %v7492_v41 = vld [vmem:[#allocation3 + $0x164] sm:$0xf] }
 0x57c   : > { %5154 = vmatpush.bf16.msra.mxu2 %v7212_v46  ;;  %5299 = vmatpush.bf16.msrb.mxu3 %v7216_v8  ;;  %v4053_v44 = vpop.permute.xlu1 %4052  ;;  %v7510_v50 = vld [vmem:[#allocation3 + $0x1f4] sm:$0xf]  ;;  %v7056_v5 = vor.u32 %v7478_v45, %v7053_v19  ;;  %v7173_v46 = vld [vmem:[#allocation3 + $0x1e8] sm:$0xf0]  ;;  %v7476_v8 = vld [vmem:[#allocation3 + $0xe4] sm:$0xf]  ;;  %v7112_v9 = vor.u32 %v7492_v41, %v7109_v12 }
 0x57d   : > { %v4051_v35 = vpop.permute.xlu0 %4050  ;;  %v4083_v62 = vrot.slane %v4053_v44, 4  ;;  %v7184_v0 = vor.u32 %v7510_v50, %v7181_v42  ;;  %v7048_v54 = vor.u32 %v7476_v8, %v7045_v32  ;;  %v7176_v49 = vor.u32 %v7508_v18, %v7173_v46  ;;  %v7037_v44 = vld [vmem:[#allocation3 + $0xd8] sm:$0xf0]  ;;  %v7506_v15 = vld [vmem:[#allocation3 + $0x1d4] sm:$0xf] }
 0x57e   : > { %v4082_v1 = vrot.slane %v4051_v35, 4  ;;  %v7157_v38 = vld [vmem:[#allocation3 + $0x1c8] sm:$0xf0]  ;;  %v6887_v42 = vld [vmem:[%s10981_s6 + $0x38] sm:$0xf] }
 0x57f   : > { %5097 = vmatpush.bf16.msrb.mxu0 %v7076_v40  ;;  %v7117_v40 = vld [vmem:[#allocation3 + $0x178] sm:$0xf0]  ;;  %v7470_v10 = vld [vmem:[#allocation3 + $0xb4] sm:$0xf]  ;;  %v7468_v14 = vld [vmem:[#allocation3 + $0xa4] sm:$0xf] }
 0x580   : > { %v4098_v61 = vsel %vm921_vm11, %v4082_v1, %v4083_v62  ;;  %5155 = vmatpush.bf16.msra.mxu2 %v7204_v36  ;;  %5300 = vmatpush.bf16.msrb.mxu3 %v7208_v52  ;;  %v7481_v27 = vld [vmem:[#allocation3 + $0x104] sm:$0xf0]  ;;  %v7040_v62 = vor.u32 %v7474_v63, %v7037_v44  ;;  %v7502_v2 = vld [vmem:[#allocation3 + $0x1b4] sm:$0xf]  ;;  %v7101_v21 = vld [vmem:[#allocation3 + $0x158] sm:$0xf0] }
 0x581   : > { %v4099_v51 = vsel %vm1796_vm2, %v4051_v35, %v4098_v61  ;;  %v7059_v17 = vld [vmem:[#allocation3 + $0x100] sm:$0xf]  ;;  %v7165_v35 = vld [vmem:[#allocation3 + $0x1d8] sm:$0xf0]  ;;  %v7494_v61 = vld [vmem:[#allocation3 + $0x174] sm:$0xf] }
 0x582   : > { %4122 = vst [vmem:[#allocation3 + $0x180] sm:$0xff] %v4099_v51  ;;  %v7060_v26 = vor.u32 %v7481_v27, %v7059_v17  ;;  %v7168_v1 = vor.u32 %v7506_v15, %v7165_v35  ;;  %v7120_v4 = vor.u32 %v7494_v61, %v7117_v40  ;;  %v7504_v51 = vld [vmem:[#allocation3 + $0x1c4] sm:$0xf]  ;;  %v7436_v17 = vld [vmem:[%s10981_s6 + $0x40] sm:$0xf0] }
 0x583   : > { %5086 = vmatmul.bf16.gmra.mxu3 %v10111_v20  ;;  %5098 = vmatpush.bf16.msrb.mxu0 %v7068_v16  ;;  %v10142_v16 = vor.u32 %v7429_v57, %v6861_v43  ;;  %v7149_v27 = vld [vmem:[#allocation3 + $0x1b8] sm:$0xf0]  ;;  %v7490_v28 = vld [vmem:[#allocation3 + $0x154] sm:$0xf]  ;;  %v7434_v44 = vld [vmem:[%s10981_s6 + $0x34] sm:$0xf] }
 0x584   : > { %5156 = vmatpush.bf16.msra.mxu2 %v7196_v39  ;;  %5301 = vmatpush.bf16.msrb.mxu3 %v7200_v55  ;;  %v7021_v39 = vld [vmem:[#allocation3 + $0xb8] sm:$0xf0]  ;;  %v6879_v55 = vld [vmem:[%s10981_s6 + $0x30] sm:$0xf]  ;;  %v7152_v29 = vor.u32 %v7502_v2, %v7149_v27  ;;  %v7466_v32 = vld [vmem:[#allocation3 + $0x94] sm:$0xf] }
 0x585   : > { %v4057_v24 = vpop.permute.xlu0 %4056  ;;  %v7024_v19 = vor.u32 %v7470_v10, %v7021_v39  ;;  %v7498_v8 = vld [vmem:[#allocation3 + $0x194] sm:$0xf]  ;;  %v6881_v35 = vld [vmem:[%s10981_s6 + $0x44] sm:$0xf0]  ;;  %v6997_v63 = vld [vmem:[#allocation3 + $0x88] sm:$0xf0] }
 0x586   : > { %v4085_v7 = vrot.slane %v4057_v24, 4  ;;  %v10158_v24 = vor.u32 %v7436_v17, %v6879_v55  ;;  %v6884_v57 = vor.u32 %v7434_v44, %v6881_v35  ;;  %v6907_v61 = vld [vmem:[%s10981_s6 + $0x60] sm:$0xf]  ;;  %v7482_v12 = vld [vmem:[#allocation3 + $0x114] sm:$0xf] }
 0x587   : > { %5099 = vmatpush.bf16.msrb.mxu0 %v7060_v26  ;;  %v7141_v26 = vld [vmem:[#allocation3 + $0x1a8] sm:$0xf0]  ;;  %v7480_v55 = vld [vmem:[#allocation3 + $0x104] sm:$0xf]  ;;  %v6919_v10 = vld [vmem:[%s10981_s6 + $0x80] sm:$0xf] }
 0x588   : > { %v4100_v31 = vsel %vm921_vm11, %v4084_v30, %v4085_v7  ;;  %5157 = vmatpush.bf16.msra.mxu2 %v7188_v37  ;;  %5302 = vmatpush.bf16.msrb.mxu3 %v7192_v11  ;;  %v7013_v7 = vld [vmem:[#allocation3 + $0xa8] sm:$0xf0]  ;;  %v7104_v37 = vor.u32 %v7490_v28, %v7101_v21  ;;  %v7500_v11 = vld [vmem:[#allocation3 + $0x1a4] sm:$0xf]  ;;  %v6927_v2 = vld [vmem:[%s10981_s6 + $0x88] sm:$0xf] }
 0x589   : > { %v4101_v33 = vsel %vm1796_vm2, %v4055_v23, %v4100_v31  ;;  %v7123_v36 = vld [vmem:[#allocation3 + $0x180] sm:$0xf]  ;;  %v7160_v23 = vor.u32 %v7504_v51, %v7157_v38  ;;  %v7016_v45 = vor.u32 %v7468_v14, %v7013_v7  ;;  %v7144_v50 = vor.u32 %v7500_v11, %v7141_v26  ;;  %v7093_v31 = vld [vmem:[#allocation3 + $0x148] sm:$0xf0]  ;;  %v7486_v38 = vld [vmem:[#allocation3 + $0x134] sm:$0xf] }
 0x58a   : > { %4123 = vst [vmem:[#allocation3 + $0x188] sm:$0xff] %v4101_v33  ;;  %5100 = vmatmul.bf16.vlgmr.msrb.gmra.mxu0 %v10127_v59  ;;  %v7488_v33 = vld [vmem:[#allocation3 + $0x144] sm:$0xf]  ;;  %v7061_v17 = vld [vmem:[#allocation3 + $0x108] sm:$0xf0] }
 0x58b   : > { %5208 = vmatpush.bf16.msra.mxu0 %v7056_v5  ;;  %7217 = vmatmul.msk.bf16.vlgmr.msra.gmra.mxu2 %vm2731_vm7, %v10130_v34  ;;  %v7005_v5 = vld [vmem:[#allocation3 + $0x98] sm:$0xf0]  ;;  %v7096_v46 = vor.u32 %v7488_v33, %v7093_v31  ;;  %v7496_v40 = vld [vmem:[#allocation3 + $0x184] sm:$0xf]  ;;  %v7064_v27 = vor.u32 %v7480_v55, %v7061_v17  ;;  %v6921_v7 = vld [vmem:[%s10981_s6 + $0x94] sm:$0xf0]  ;;  %v10233_v33 = vpop.permute.xlu2 %4529 }
 0x58c   : > { %5266 = vmatpush.bf16.msrb.mxu2 %v7184_v0  ;;  %v7133_v0 = vld [vmem:[#allocation3 + $0x198] sm:$0xf0]  ;;  %v7008_v18 = vor.u32 %v7466_v32, %v7005_v5 }
 0x58f   : > { %5209 = vmatpush.bf16.msra.mxu0 %v7048_v54  ;;  %v7136_v54 = vor.u32 %v7498_v8, %v7133_v0 }
 0x590   : > { %5267 = vmatpush.bf16.msrb.mxu2 %v7176_v49  ;;  %v7085_v49 = vld [vmem:[#allocation3 + $0x138] sm:$0xf0] }
 0x591   : > { %v7497_v52 = vld [vmem:[#allocation3 + $0x184] sm:$0xf0]  ;;  %v7125_v15 = vld [vmem:[#allocation3 + $0x188] sm:$0xf0] }
 0x592   : > { %v7124_v47 = vor.u32 %v7497_v52, %v7123_v36  ;;  %v7128_v36 = vor.u32 %v7496_v40, %v7125_v15  ;;  %v7077_v52 = vld [vmem:[#allocation3 + $0x128] sm:$0xf0] }
 0x593   : > { %5210 = vmatpush.bf16.msra.mxu0 %v7040_v62  ;;  %5187 = vmatmul.bf16.vlgmr.msra.gmra.mxu3 %v9997_v6  ;;  %v7437_v6 = vld [vmem:[%s10981_s6 + $0x48] sm:$0xf0] }
 0x594   : > { %5268 = vmatpush.bf16.msrb.mxu2 %v7168_v1  ;;  %5128 = vmatpush.bf16.msrb.mxu1 %v7124_v47  ;;  %v10160_v30 = vor.u32 %v7437_v6, %v6887_v42  ;;  %v7464_v62 = vld [vmem:[#allocation3 + $0x84] sm:$0xf]  ;;  %v7088_v1 = vor.u32 %v7486_v38, %v7085_v49  ;;  %v7439_v42 = vld [vmem:[%s10981_s6 + $0x5c] sm:$0xf]  ;;  %v6901_v6 = vld [vmem:[%s10981_s6 + $0x6c] sm:$0xf0] }
 0x595   : > { %v7000_v43 = vor.u32 %v7464_v62, %v6997_v63  ;;  %v7441_v47 = vld [vmem:[%s10981_s6 + $0x68] sm:$0xf0]  ;;  %v6904_v41 = vor.u32 %v7439_v42, %v6901_v6 }
 0x596   : > { %v6900_v51 = vor.u32 %v7441_v47, %v6899_v60 }
 0x597   : > { %5211 = vmatpush.bf16.msra.mxu0 %v7032_v56  ;;  %5129 = vmatmul.bf16.vlgmr.msrb.gmra.mxu1 %v10142_v16  ;;  %v7069_v56 = vld [vmem:[#allocation3 + $0x118] sm:$0xf0] }
 0x598   : > { %5237 = vmatpush.bf16.msra.mxu1 %v7120_v4  ;;  %5269 = vmatpush.bf16.msrb.mxu2 %v7160_v23  ;;  %v7080_v4 = vor.u32 %v7484_v58, %v7077_v52  ;;  %v7072_v39 = vor.u32 %v7482_v12, %v7069_v56 }
 0x59a   : > { %5105 = vmatmul.bf16.gmra.mxu0 %v10158_v24 }
 0x59b   : > { %5212 = vmatpush.bf16.msra.mxu0 %v7024_v19  ;;  %7218 = vmatmul.msk.bf16.gmra.mxu2 %vm2731_vm7, %v10160_v30  ;;  %v7447_v19 = vld [vmem:[%s10981_s6 + $0x98] sm:$0xf0] }
 0x59c   : > { %5238 = vmatpush.bf16.msra.mxu1 %v7112_v9  ;;  %5270 = vmatpush.bf16.msrb.mxu2 %v7152_v29  ;;  %v7446_v9 = vld [vmem:[%s10981_s6 + $0x90] sm:$0xf0]  ;;  %v6928_v21 = vor.u32 %v7447_v19, %v6927_v2 }
 0x59d   : > { %v6920_v29 = vor.u32 %v7446_v9, %v6919_v10 }
 0x59f   : > { %5213 = vmatpush.bf16.msra.mxu0 %v7016_v45 }
 0x5a0   : > { %5239 = vmatpush.bf16.msra.mxu1 %v7104_v37  ;;  %5271 = vmatpush.bf16.msrb.mxu2 %v7144_v50  ;;  %v10218_v37 = vpop.permute.xlu1 %4524 }
 0x5a3   : > { %5214 = vmatpush.bf16.msra.mxu0 %v7008_v18  ;;  %5192 = vmatmul.bf16.gmra.mxu3 %v10018_v48  ;;  %v7442_v48 = vld [vmem:[%s10981_s6 + $0x70] sm:$0xf0] }
 0x5a4   : > { %5240 = vmatpush.bf16.msra.mxu1 %v7096_v46  ;;  %5272 = vmatpush.bf16.msrb.mxu2 %v7136_v54  ;;  %v6908_v23 = vor.u32 %v7442_v48, %v6907_v61 }
 0x5a7   : > { %5215 = vmatpush.bf16.msra.mxu0 %v7000_v43  ;;  %5134 = vmatmul.bf16.gmra.mxu1 %v6884_v57 }
 0x5a8   : > { %5241 = vmatpush.bf16.msra.mxu1 %v7088_v1  ;;  %5273 = vmatpush.bf16.msrb.mxu2 %v7128_v36  ;;  %v10244_v18 = vpop.permute.xlu1 %4539 }
 0x5aa   : > { %5110 = vmatmul.bf16.gmra.mxu0 %v6900_v51 }
 0x5ab   : > { %7219 = vmatmul.msk.bf16.gmra.mxu2 %vm2731_vm7, %v6908_v23 }
 0x5ac   : > { %5242 = vmatpush.bf16.msra.mxu1 %v7080_v4 }
 0x5b0   : > { %5243 = vmatpush.bf16.msra.mxu1 %v7072_v39  ;;  %v10250_v49 = vpop.permute.xlu1 %4554 }
 0x5b3   : > { %5197 = vmatmul.bf16.gmra.mxu3 %v10048_v22  ;;  %v7444_v22 = vld [vmem:[%s10981_s6 + $0x84] sm:$0xf] }
 0x5b4   : > { %5244 = vmatpush.bf16.msra.mxu1 %v7064_v27  ;;  %v6924_v28 = vor.u32 %v7444_v22, %v6921_v7 }
 0x5b7   : > { %5139 = vmatmul.bf16.gmra.mxu1 %v6904_v41 }
 0x5ba   : > { %5115 = vmatmul.bf16.gmra.mxu0 %v6920_v29 }
 0x5bb   : > { %7220 = vmatmul.msk.bf16.gmra.mxu2 %vm2731_vm7, %v6928_v21 }
 0x5be   : > { %v5043_v26 = vpop.f32.mrf.mxu2 }
 0x5bf   : > { %v5044_v45 = vadd.f32 %v5043_v26, %v10218_v37 }
 0x5c3   : > { %5202 = vmatmul.bf16.gmra.mxu3 %v10079_v53 }
 0x5c6   : > { %v10212_v14 = vpop.f32.mrf.mxu2 }
 0x5c7   : > { %5144 = vmatmul.bf16.gmra.mxu1 %v6924_v28 }
 0x5ca   : > { %5216 = vmatmul.bf16.vlgmr.msra.gmra.mxu0 %v10034_v3 }
 0x5cb   : > { %5274 = vmatmul.bf16.vlgmr.msrb.gmra.mxu2 %v10142_v16 }
 0x5ce   : > { %v5048_v11 = vpop.f32.mrf.mxu2 }
 0x5d3   : > { %7221 = vmatmul.msk.bf16.vlgmr.msrb.gmra.mxu3 %vm2731_vm7, %v10130_v34  ;;  %v10229_v34 = vpop.permute.xlu0 %4534 }
 0x5d4   : > { %v5049_v16 = vadd.f32 %v5048_v11, %v10229_v34 }
 0x5d6   : > { %v5072_v50 = vpop.f32.mrf.mxu3  ;;  %v10223_v53 = vpop.f32.mrf.mxu2 }
 0x5d7   : > { %5245 = vmatmul.bf16.vlgmr.msra.gmra.mxu1 %v10127_v59  ;;  %v5073_v31 = vadd.f32 %v5072_v50, %v5044_v45 }
 0x5da   : > { %5221 = vmatmul.bf16.gmra.mxu0 %v10066_v25 }
 0x5db   : > { %5279 = vmatmul.bf16.gmra.mxu2 %v6884_v57 }
 0x5de   : > { %v10225_v3 = vpop.f32.mrf.mxu3  ;;  %v5053_v59 = vpop.f32.mrf.mxu2 }
 0x5e3   : > { %7222 = vmatmul.msk.bf16.gmra.mxu3 %vm2731_vm7, %v10160_v30  ;;  %v10241_v30 = vpop.permute.xlu2 %4544 }
 0x5e4   : > { %v5054_v46 = vadd.f32 %v5053_v59, %v10241_v30 }
 0x5e6   : > { %v5077_v5 = vpop.f32.mrf.mxu3  ;;  %v10238_v32 = vpop.f32.mrf.mxu2 }
 0x5e7   : > { %5250 = vmatmul.bf16.gmra.mxu1 %v10158_v24  ;;  %v5078_v0 = vadd.f32 %v5077_v5, %v5049_v16 }
 0x5ea   : > { %5226 = vmatmul.bf16.gmra.mxu0 %v10093_v13 }
 0x5eb   : > { %5284 = vmatmul.bf16.gmra.mxu2 %v6904_v41 }
 0x5ee   : > { %v10236_v25 = vpop.f32.mrf.mxu3  ;;  %v5058_v13 = vpop.f32.mrf.mxu2 }
 0x5ef   : > { %v5059_v44 = vadd.f32 %v5058_v13, %v10250_v49 }
 0x5f3   : > { %7223 = vmatmul.msk.bf16.gmra.mxu3 %vm2731_vm7, %v6908_v23 }
 0x5f6   : > { %v5082_v8 = vpop.f32.mrf.mxu3  ;;  %v10253_v35 = vpop.f32.mrf.mxu2 }
 0x5f7   : > { %5255 = vmatmul.bf16.gmra.mxu1 %v6900_v51  ;;  %v5083_v24 = vadd.f32 %v5082_v8, %v5054_v46 }
 0x5fa   : > { %5231 = vmatmul.bf16.gmra.mxu0 %v10111_v20 }
 0x5fb   : > { %5289 = vmatmul.bf16.gmra.mxu2 %v6924_v28 }
 0x5fe   : > { %v10247_v54 = vpop.f32.mrf.mxu3 }
 0x603   : > { %7224 = vmatmul.msk.bf16.gmra.mxu3 %vm2731_vm7, %v6928_v21 }
 0x606   : > { %v5087_v63 = vpop.f32.mrf.mxu3 }
 0x607   : > { %5260 = vmatmul.bf16.gmra.mxu1 %v6920_v29  ;;  %v5088_v15 = vadd.f32 %v5087_v63, %v5059_v44  ;;  %v5101_v38 = vpop.f32.mrf.mxu0 }
 0x608   : > { %v5102_v62 = vadd.f32 %v5101_v38, %v5073_v31 }
 0x60e   : > { %v10255_v1 = vpop.f32.mrf.mxu3  ;;  %v5159_v20 = vpop.f32.mrf.mxu2 }
 0x60f   : > { %v5103_v40 = vpop.f32.mrf.mxu0 }
 0x614   : > { %v5130_v57 = vpop.f32.mrf.mxu1 }
 0x615   : > { %v5131_v43 = vadd.f32 %v5130_v57, %v5102_v62  ;;  %v5046_v62 = vadd.f32 %v10212_v14, %v10233_v33 }
 0x616   : > { %v5188_v52 = vpop.f32.mrf.mxu3  ;;  %v5161_v60 = vpop.f32.mrf.mxu2 }
 0x617   : > { %v10257_v36 = vadd.f32 %v5159_v20, %v5131_v43  ;;  %v5106_v47 = vpop.f32.mrf.mxu0  ;;  %v5189_v44 = vadd.f32 %v5188_v52, %v10218_v37 }
 0x618   : > { %v5107_v61 = vadd.f32 %v5106_v47, %v5078_v0 }
 0x61c   : > { %v5132_v48 = vpop.f32.mrf.mxu1 }
 0x61e   : > { %v5190_v58 = vpop.f32.mrf.mxu3  ;;  %v5164_v4 = vpop.f32.mrf.mxu2 }
 0x61f   : > { %v10259_v51 = vpop.f32.mrf.mxu0 }
 0x624   : > { %v5135_v12 = vpop.f32.mrf.mxu1 }
 0x625   : > { %v5136_v56 = vadd.f32 %v5135_v12, %v5107_v61  ;;  %v5075_v61 = vadd.f32 %v10225_v3, %v5046_v62 }
 0x626   : > { %v5193_v39 = vpop.f32.mrf.mxu3  ;;  %v10263_v55 = vpop.f32.mrf.mxu2 }
 0x627   : > { %v10261_v23 = vadd.f32 %v5164_v4, %v5136_v56  ;;  %v5111_v17 = vpop.f32.mrf.mxu0  ;;  %v5191_v4 = vadd.f32 %v5190_v58, %v10233_v33  ;;  %v5104_v56 = vadd.f32 %v5103_v40, %v5075_v61  ;;  %v5194_v3 = vadd.f32 %v5193_v39, %v10229_v34 }
 0x628   : > { %v5112_v27 = vadd.f32 %v5111_v17, %v5083_v24 }
 0x62c   : > { %v10265_v42 = vpop.f32.mrf.mxu1 }
 0x62e   : > { %v5195_v6 = vpop.f32.mrf.mxu3  ;;  %v5169_v41 = vpop.f32.mrf.mxu2 }
 0x62f   : > { %v10267_v10 = vpop.f32.mrf.mxu0 }
 0x634   : > { %v5140_v9 = vpop.f32.mrf.mxu1 }
 0x635   : > { %v5141_v2 = vadd.f32 %v5140_v9, %v5112_v27  ;;  %v5133_v27 = vadd.f32 %v5132_v48, %v5104_v56  ;;  %v5051_v48 = vadd.f32 %v10223_v53, %v10244_v18  ;;  %v4550_v56 = vpop.permute.xlu0 %4549 }
 0x636   : > { %v10271_v29 = vpop.f32.mrf.mxu3  ;;  %v10273_v21 = vpop.f32.mrf.mxu2 }
 0x637   : > { %v10269_v19 = vadd.f32 %v5169_v41, %v5141_v2  ;;  %v5116_v22 = vpop.f32.mrf.mxu0 }
 0x638   : > { %v5117_v7 = vadd.f32 %v5116_v22, %v5088_v15 }
 0x63c   : > { %v10275_v26 = vpop.f32.mrf.mxu1 }
 0x63e   : > { %v10277_v28 = vpop.f32.mrf.mxu3  ;;  %v5174_v11 = vpop.f32.mrf.mxu2 }
 0x63f   : > { %v10279_v45 = vpop.f32.mrf.mxu0 }
 0x644   : > { %v5145_v50 = vpop.f32.mrf.mxu1 }
 0x645   : > { %v5146_v31 = vadd.f32 %v5145_v50, %v5117_v7  ;;  %v10300_v7 = vadd.f32 %v5161_v60, %v5133_v27  ;;  %v5080_v60 = vadd.f32 %v10236_v25, %v5051_v48  ;;  %v5201_v27 = vadd.f32 %v10277_v28, %v4550_v56 }
 0x646   : > { %v10283_v5 = vpop.f32.mrf.mxu3  ;;  %v10285_v0 = vpop.f32.mrf.mxu2 }
 0x647   : > { %v10281_v16 = vadd.f32 %v5174_v11, %v5146_v31  ;;  %v5217_v59 = vpop.f32.mrf.mxu0  ;;  %v5204_v28 = vadd.f32 %v10283_v5, %v10250_v49 }
 0x648   : > { %v5218_v63 = vadd.f32 %v5217_v59, %v5189_v44  ;;  %v5109_v44 = vadd.f32 %v10259_v51, %v5080_v60 }
 0x64a   : > { %v5138_v62 = vadd.f32 %v10265_v42, %v5109_v44 }
 0x64c   : > { %v10287_v46 = vpop.f32.mrf.mxu1  ;;  %v10318_v25 = vadd.f32 %v10263_v55, %v5138_v62 }
 0x64e   : > { %v10289_v8 = vpop.f32.mrf.mxu3  ;;  %v5275_v24 = vpop.f32.mrf.mxu2 }
 0x64f   : > { %v5219_v13 = vpop.f32.mrf.mxu0 }
 0x650   : > { %v5220_v17 = vadd.f32 %v5219_v13, %v5191_v4  ;;  %v5196_v13 = vadd.f32 %v5195_v6, %v10244_v18  ;;  %v5199_v18 = vadd.f32 %v10271_v29, %v10241_v30 }
 0x654   : > { %v5246_v15 = vpop.f32.mrf.mxu1 }
 0x655   : > { %v5247_v38 = vadd.f32 %v5246_v15, %v5218_v63 }
 0x656   : > { %v5304_v57 = vpop.f32.mrf.mxu3  ;;  %v5277_v43 = vpop.f32.mrf.mxu2 }
 0x657   : > { %v5276_v20 = vadd.f32 %v5275_v24, %v5247_v38  ;;  %v5222_v47 = vpop.f32.mrf.mxu0 }
 0x658   : > { %v5223_v58 = vadd.f32 %v5222_v47, %v5194_v3 }
 0x659   : > { %v10296_v12 = vadd.f32 %v5304_v57, %v5276_v20 }
 0x65b   : > { %v5324_v37 = vadd.f32 %v10296_v12, %v10257_v36 }
 0x65c   : > { %v5248_v52 = vpop.f32.mrf.mxu1 }
 0x65d   : > { %v5249_v41 = vadd.f32 %v5248_v52, %v5220_v17  ;;  %5325 = vadd.xlane.f32.xlu0 %v5324_v37  ;;  %v5056_v17 = vadd.f32 %v10238_v32, %v4550_v56  ;;  %v5358_v56 = vld [vmem:[%s10983_s8 + $0x10] sm:$0xff] }
 0x65e   : > { %v5306_v9 = vpop.f32.mrf.mxu3  ;;  %v5280_v2 = vpop.f32.mrf.mxu2 }
 0x65f   : > { %v5278_v14 = vadd.f32 %v5277_v43, %v5249_v41  ;;  %v5224_v22 = vpop.f32.mrf.mxu0  ;;  %v5085_v55 = vadd.f32 %v10247_v54, %v5056_v17 }
 0x660   : > { %v5225_v63 = vadd.f32 %v5224_v22, %v5196_v13 }
 0x661   : > { %v10303_v33 = vadd.f32 %v5306_v9, %v5278_v14  ;;  %v5114_v41 = vadd.f32 %v10267_v10, %v5085_v55  ;;  %v5359_v55 = vld [vmem:[%s10983_s8 + $0x18] sm:$0xff] }
 0x663   : > { %v5327_v40 = vadd.f32 %v10303_v33, %v10300_v7  ;;  %v5143_v22 = vadd.f32 %v10275_v26, %v5114_v41 }
 0x664   : > { %v5251_v11 = vpop.f32.mrf.mxu1 }
 0x665   : > { %v5252_v50 = vadd.f32 %v5251_v11, %v5223_v58  ;;  %5328 = vadd.xlane.f32.xlu1 %v5327_v40  ;;  %v10336_v54 = vadd.f32 %v10273_v21, %v5143_v22 }
 0x666   : > { %v5309_v59 = vpop.f32.mrf.mxu3  ;;  %v5282_v24 = vpop.f32.mrf.mxu2 }
 0x667   : > { %v5281_v31 = vadd.f32 %v5280_v2, %v5252_v50  ;;  %v5227_v39 = vpop.f32.mrf.mxu0 }
 0x668   : > { %v5228_v51 = vadd.f32 %v5227_v39, %v5199_v18 }
 0x669   : > { %v10311_v34 = vadd.f32 %v5309_v59, %v5281_v31  ;;  %v4560_v59 = vpop.permute.xlu2 %4559 }
 0x66a   : > { %v5206_v49 = vadd.f32 %v10289_v8, %v4560_v59 }
 0x66b   : > { %v5330_v15 = vadd.f32 %v10311_v34, %v10261_v23 }
 0x66c   : > { %v5253_v38 = vpop.f32.mrf.mxu1 }
 0x66d   : > { %v5254_v53 = vadd.f32 %v5253_v38, %v5225_v63  ;;  %5331 = vadd.xlane.f32.xlu2 %v5330_v15 }
 0x66e   : > { %v5311_v57 = vpop.f32.mrf.mxu3  ;;  %v5285_v43 = vpop.f32.mrf.mxu2 }
 0x66f   : > { %v5283_v20 = vadd.f32 %v5282_v24, %v5254_v53  ;;  %v5229_v61 = vpop.f32.mrf.mxu0  ;;  %v5061_v24 = vadd.f32 %v10253_v35, %v4560_v59 }
 0x670   : > { %v5230_v14 = vadd.f32 %v5229_v61, %v5201_v27 }
 0x671   : > { %v10322_v6 = vadd.f32 %v5311_v57, %v5283_v20  ;;  %v5090_v39 = vadd.f32 %v10255_v1, %v5061_v24 }
 0x673   : > { %v5333_v47 = vadd.f32 %v10322_v6, %v10318_v25  ;;  %v5119_v44 = vadd.f32 %v10279_v45, %v5090_v39 }
 0x674   : > { %v5256_v4 = vpop.f32.mrf.mxu1 }
 0x675   : > { %v5257_v42 = vadd.f32 %v5256_v4, %v5228_v51  ;;  %5334 = vadd.xlane.f32.xlu2 %v5333_v47  ;;  %v5148_v62 = vadd.f32 %v10287_v46, %v5119_v44  ;;  %v5357_v46 = vld [vmem:[%s10983_s8 + $0x8] sm:$0xff]  ;;  %v5363_v44 = vld [vmem:[%s10983_s8 + $0x38] sm:$0xff] }
 0x676   : > { %v5314_v52 = vpop.f32.mrf.mxu3  ;;  %v5287_v29 = vpop.f32.mrf.mxu2 }
 0x677   : > { %v5286_v37 = vadd.f32 %v5285_v43, %v5257_v42  ;;  %v5232_v32 = vpop.f32.mrf.mxu0  ;;  %v10354_v1 = vadd.f32 %v10285_v0, %v5148_v62  ;;  %v5356_v0 = vld [vmem:[%s10983_s8] sm:$0xff] }
 0x678   : > { %v5233_v10 = vadd.f32 %v5232_v32, %v5204_v28  ;;  %v5361_v32 = vld [vmem:[%s10983_s8 + $0x28] sm:$0xff] }
 0x679   : > { %v10329_v30 = vadd.f32 %v5314_v52, %v5286_v37 }
 0x67b   : > { %v5336_v9 = vadd.f32 %v10329_v30, %v10269_v19 }
 0x67c   : > { %v5258_v2 = vpop.f32.mrf.mxu1 }
 0x67d   : > { %v5259_v3 = vadd.f32 %v5258_v2, %v5230_v14  ;;  %5337 = vadd.xlane.f32.xlu0 %v5336_v9  ;;  %v5360_v9 = vld [vmem:[%s10983_s8 + $0x20] sm:$0xff] }
 0x67e   : > { %v5316_v40 = vpop.f32.mrf.mxu3  ;;  %v5290_v31 = vpop.f32.mrf.mxu2 }
 0x67f   : > { %v5288_v58 = vadd.f32 %v5287_v29, %v5259_v3  ;;  %v5234_v21 = vpop.f32.mrf.mxu0 }
 0x680   : > { %v5235_v63 = vadd.f32 %v5234_v21, %v5206_v49 }
 0x681   : > { %v10340_v11 = vadd.f32 %v5316_v40, %v5288_v58 }
 0x683   : > { %v5339_v50 = vadd.f32 %v10340_v11, %v10336_v54 }
 0x684   : > { %v5261_v48 = vpop.f32.mrf.mxu1 }
 0x685   : > { %v5262_v26 = vadd.f32 %v5261_v48, %v5233_v10  ;;  %5340 = vadd.xlane.f32.xlu1 %v5339_v50 }
 0x686   : > { %v5319_v13 = vpop.f32.mrf.mxu3  ;;  %v5292_v35 = vpop.f32.mrf.mxu2 }
 0x687   : > { %v5291_v60 = vadd.f32 %v5290_v31, %v5262_v26  ;;  %v5362_v31 = vld [vmem:[%s10983_s8 + $0x30] sm:$0xff] }
 0x689   : > { %v10347_v5 = vadd.f32 %v5319_v13, %v5291_v60 }
 0x68b   : > { %v5342_v15 = vadd.f32 %v10347_v5, %v10281_v16 }
 0x68c   : > { %v5263_v38 = vpop.f32.mrf.mxu1 }
 0x68d   : > { %v5264_v53 = vadd.f32 %v5263_v38, %v5235_v63  ;;  %5343 = vadd.xlane.f32.xlu2 %v5342_v15 }
 0x68e   : > { %v5321_v57 = vpop.f32.mrf.mxu3 }
 0x68f   : > { %v5293_v20 = vadd.f32 %v5292_v35, %v5264_v53 }
 0x691   : > { %v10356_v8 = vadd.f32 %v5321_v57, %v5293_v20 }
 0x693   : > { %v5345_v45 = vadd.f32 %v10356_v8, %v10354_v1 }
 0x695   : > { %5346 = vadd.xlane.f32.xlu0 %v5345_v45 }
 0x6d0   : > { %v5326_v18 = vpop.xlane.xlu0 %5325 }
 0x6d1   : > { %v5348_v4 = vmul.f32 0.00390625, %v5326_v18 }
 0x6d3   : > { %v5364_v29 = vmul.f32 %v5356_v0, %v5348_v4  ;;  %v7530_v4 = vld [vmem:[%s10397_s2 + $0x34] sm:$0xf]  ;;  %v7261_v0 = vld [vmem:[%s10397_s2 + $0x20] sm:$0xf] }
 0x6d5   : > { %v5373_v40 = vsel %vm5372_vm3, %v5364_v29, 0.0  ;;  %v5394_v29 = vld [vmem:[%s10984_s9] sm:$0x1] }
 0x6d8   : > { %v5329_v51 = vpop.xlane.xlu1 %5328 }
 0x6d9   : > { %v5349_v47 = vmul.f32 0.00390625, %v5329_v51  ;;  %v7269_v51 = vld [vmem:[%s10397_s2 + $0x30] sm:$0xf] }
 0x6db   : > { %v5365_v37 = vmul.f32 %v5357_v46, %v5349_v47  ;;  %v7531_v47 = vld [vmem:[%s10397_s2 + $0x34] sm:$0xf0] }
 0x6dd   : > { %v5374_v2 = vsel %vm5372_vm3, %v5365_v37, 0.0  ;;  %v7528_v37 = vld [vmem:[%s10397_s2 + $0x24] sm:$0xf] }
 0x6de   : > { %v5375_v48 = vadd.f32 %v5374_v2, %v5373_v40 }
 0x6e0   : > { %v5332_v43 = vpop.xlane.xlu2 %5331 }
 0x6e1   : > { %v5350_v42 = vmul.f32 0.00390625, %v5332_v43 }
 0x6e3   : > { %v5366_v41 = vmul.f32 %v5358_v56, %v5350_v42  ;;  %v7271_v42 = vld [vmem:[%s10397_s2 + $0x38] sm:$0xf0] }
 0x6e4   : > { %v7274_v56 = vor.u32 %v7530_v4, %v7271_v42 }
 0x6e5   : > { %v5376_v28 = vsel %vm5372_vm3, %v5366_v41, 0.0 }
 0x6e6   : > { %v5377_v24 = vadd.f32 %v5376_v28, %v5375_v48  ;;  %5976 = vmatpush.bf16.msra.mxu3 %v7274_v56  ;;  %v7245_v28 = vld [vmem:[%s10397_s2] sm:$0xf]  ;;  %v5404_v48 = vld [vmem:[%s10985_s10 + $0x38] sm:$0xff] }
 0x6e8   : > { %v5335_v61 = vpop.xlane.xlu2 %5334 }
 0x6e9   : > { %v5351_v52 = vmul.f32 0.00390625, %v5335_v61  ;;  %v7270_v61 = vor.u32 %v7531_v47, %v7269_v51 }
 0x6eb   : > { %v5367_v22 = vmul.f32 %v5359_v55, %v5351_v52  ;;  %v7263_v52 = vld [vmem:[%s10397_s2 + $0x28] sm:$0xf0]  ;;  %5947 = vmatpush.bf16.msra.mxu2 %v7270_v61  ;;  %v5397_v61 = vld [vmem:[%s10985_s10] sm:$0xff] }
 0x6ec   : > { %v7266_v41 = vor.u32 %v7528_v37, %v7263_v52  ;;  %v7522_v37 = vld [vmem:[%s10991_s16 + $0x10] sm:$0xff]  ;;  %v7523_v52 = vld [vmem:[%s10991_s16 + $0x18] sm:$0xff] }
 0x6ed   : > { %v5378_v26 = vsel %vm5372_vm3, %v5367_v22, 0.0  ;;  %v7526_v22 = vld [vmem:[%s10397_s2 + $0x14] sm:$0xf] }
 0x6ee   : > { %v5379_v21 = vadd.f32 %v5378_v26, %v5377_v24  ;;  %5977 = vmatpush.bf16.msra.mxu3 %v7266_v41  ;;  %v5401_v26 = vld [vmem:[%s10985_s10 + $0x20] sm:$0xff]  ;;  %v7247_v24 = vld [vmem:[%s10397_s2 + $0x8] sm:$0xf0] }
 0x6f0   : > { %v5338_v17 = vpop.xlane.xlu0 %5337 }
 0x6f1   : > { %v5352_v14 = vmul.f32 0.00390625, %v5338_v17  ;;  %v7529_v17 = vld [vmem:[%s10397_s2 + $0x24] sm:$0xf0] }
 0x6f3   : > { %v5368_v10 = vmul.f32 %v5360_v9, %v5352_v14  ;;  %v7253_v14 = vld [vmem:[%s10397_s2 + $0x10] sm:$0xf]  ;;  %v7527_v9 = vld [vmem:[%s10397_s2 + $0x14] sm:$0xf0] }
 0x6f5   : > { %v5380_v60 = vsel %vm5372_vm3, %v5368_v10, 0.0  ;;  %v7525_v10 = vld [vmem:[%s10397_s2 + $0x4] sm:$0xf0] }
 0x6f6   : > { %v5381_v49 = vadd.f32 %v5380_v60, %v5379_v21 }
 0x6f8   : > { %v5341_v27 = vpop.xlane.xlu1 %5340 }
 0x6f9   : > { %v5353_v3 = vmul.f32 0.00390625, %v5341_v27  ;;  %v7262_v27 = vor.u32 %v7529_v17, %v7261_v0  ;;  %v7521_v0 = vld [vmem:[%s10991_s16 + $0x8] sm:$0xff] }
 0x6fb   : > { %v5369_v59 = vmul.f32 %v5361_v32, %v5353_v3  ;;  %v7255_v3 = vld [vmem:[%s10397_s2 + $0x18] sm:$0xf0]  ;;  %5948 = vmatpush.bf16.msra.mxu2 %v7262_v27  ;;  %v5444_v27 = vld [vmem:[%s10986_s11 + $0x30] sm:$0xff] }
 0x6fc   : > { %v7258_v40 = vor.u32 %v7526_v22, %v7255_v3 }
 0x6fd   : > { %v5382_v39 = vsel %vm5372_vm3, %v5369_v59, 0.0  ;;  %v7524_v59 = vld [vmem:[%s10397_s2 + $0x4] sm:$0xf] }
 0x6fe   : > { %v5383_v62 = vadd.f32 %v5382_v39, %v5381_v49  ;;  %5978 = vmatpush.bf16.msra.mxu3 %v7258_v40 }
 0x700   : > { %v5344_v58 = vpop.xlane.xlu2 %5343 }
 0x701   : > { %v5354_v50 = vmul.f32 0.00390625, %v5344_v58  ;;  %v7254_v58 = vor.u32 %v7527_v9, %v7253_v14 }
 0x703   : > { %v5370_v13 = vmul.f32 %v5362_v31, %v5354_v50  ;;  %v5403_v31 = vld [vmem:[%s10985_s10 + $0x30] sm:$0xff]  ;;  %5949 = vmatpush.bf16.msra.mxu2 %v7254_v58 }
 0x705   : > { %v5384_v15 = vsel %vm5372_vm3, %v5370_v13, 0.0  ;;  %v7246_v13 = vor.u32 %v7525_v10, %v7245_v28 }
 0x706   : > { %v5385_v35 = vadd.f32 %v5384_v15, %v5383_v62 }
 0x707   : > { %5950 = vmatpush.bf16.msra.mxu2 %v7246_v13 }
 0x708   : > { %v5347_v63 = vpop.xlane.xlu0 %5346 }
 0x709   : > { %v5355_v38 = vmul.f32 0.00390625, %v5347_v63  ;;  %v7520_v63 = vld [vmem:[%s10991_s16] sm:$0xff] }
 0x70a   : > { %7275 = vmatmul.msk.bf16.vlgmr.msra.gmra.mxu2 %vm2731_vm7, %v7520_v63 }
 0x70b   : > { %v5371_v53 = vmul.f32 %v5363_v44, %v5355_v38  ;;  %v7250_v44 = vor.u32 %v7524_v59, %v7247_v24 }
 0x70d   : > { %v5386_v20 = vsel %vm5372_vm3, %v5371_v53, 0.0  ;;  %v5402_v53 = vld [vmem:[%s10985_s10 + $0x28] sm:$0xff]  ;;  %5979 = vmatpush.bf16.msra.mxu3 %v7250_v44 }
 0x70e   : > { %v5387_v57 = vadd.f32 %v5386_v20, %v5385_v35  ;;  %v5399_v35 = vld [vmem:[%s10985_s10 + $0x10] sm:$0xff]  ;;  %v5400_v20 = vld [vmem:[%s10985_s10 + $0x18] sm:$0xff] }
 0x710   : > { %v5388_v45 = vrot.slane %v5387_v57, 4  ;;  %7279 = vmatmul.msk.bf16.vlgmr.msra.gmra.mxu3 %vm2731_vm7, %v7520_v63 }
 0x712   : > { %v5389_v43 = vadd.f32 %v5388_v45, %v5387_v57 }
 0x714   : > { %v5390_v18 = vrot.slane %v5389_v43, 2 }
 0x716   : > { %v5391_v46 = vadd.f32 %v5390_v18, %v5389_v43 }
 0x718   : > { %v5392_v55 = vrot.slane %v5391_v46, 1 }
 0x71a   : > { %v5393_v2 = vadd.f32 %v5392_v55, %v5391_v46  ;;  %v5398_v46 = vld [vmem:[%s10985_s10 + $0x8] sm:$0xff]  ;;  %7276 = vmatmul.msk.bf16.gmra.mxu2 %vm2731_vm7, %v7521_v0  ;;  %v5445_v55 = vld [vmem:[%s10986_s11 + $0x38] sm:$0xff] }
 0x71c   : > { %v5395_v32 = vadd.f32 %v5394_v29, %v5393_v2  ;;  %v5442_v29 = vld [vmem:[%s10986_s11 + $0x20] sm:$0xff] }
 0x71e   : > { %v5396_v50 = vmax.f32 %v5395_v32, 0.0 }
 0x720   : > { %v5405_v60 = vperm.slane %v5396_v50, 0  ;;  %7280 = vmatmul.msk.bf16.gmra.mxu3 %vm2731_vm7, %v7521_v0 }
 0x722   : > { %v5413_v21 = vmul.f32 %v5405_v60, %v5404_v48  ;;  %v5412_v39 = vmul.f32 %v5405_v60, %v5403_v31  ;;  %v5410_v49 = vmul.f32 %v5405_v60, %v5401_v26  ;;  %v5411_v57 = vmul.f32 %v5405_v60, %v5402_v53  ;;  %v5443_v48 = vld [vmem:[%s10986_s11 + $0x28] sm:$0xff]  ;;  %v5440_v31 = vld [vmem:[%s10986_s11 + $0x10] sm:$0xff]  ;;  %v5441_v26 = vld [vmem:[%s10986_s11 + $0x18] sm:$0xff] }
 0x723   : > { %v5408_v45 = vmul.f32 %v5405_v60, %v5399_v35  ;;  %v5409_v43 = vmul.f32 %v5405_v60, %v5400_v20  ;;  %v5407_v4 = vmul.f32 %v5405_v60, %v5398_v46  ;;  %v5406_v42 = vmul.f32 %v5405_v60, %v5397_v61  ;;  %v5439_v35 = vld [vmem:[%s10986_s11 + $0x8] sm:$0xff]  ;;  %v5438_v20 = vld [vmem:[%s10986_s11] sm:$0xff] }
 0x724   : > { %v5435_v15 = vsel %vm5372_vm3, %v5413_v21, 0.0  ;;  %v5432_v38 = vsel %vm5372_vm3, %v5412_v39, 0.0  ;;  %v5426_v62 = vsel %vm5372_vm3, %v5410_v49, 0.0  ;;  %v5429_v18 = vsel %vm5372_vm3, %v5411_v57, 0.0 }
 0x725   : > { %5436 = vadd.xlane.f32.xlu2 %v5435_v15  ;;  %5433 = vadd.xlane.f32.xlu1 %v5432_v38  ;;  %v5420_v51 = vsel %vm5372_vm3, %v5408_v45, 0.0  ;;  %v5423_v47 = vsel %vm5372_vm3, %v5409_v43, 0.0  ;;  %v5417_v56 = vsel %vm5372_vm3, %v5407_v4, 0.0  ;;  %v5414_v17 = vsel %vm5372_vm3, %v5406_v42, 0.0 }
 0x726   : > { %5427 = vadd.xlane.f32.xlu0 %v5426_v62 }
 0x72a   : > { %7277 = vmatmul.msk.bf16.gmra.mxu2 %vm2731_vm7, %v7522_v37 }
 0x72d   : > { %5430 = vadd.xlane.f32.xlu1 %v5429_v18  ;;  %5421 = vadd.xlane.f32.xlu2 %v5420_v51 }
 0x72e   : > { %5424 = vadd.xlane.f32.xlu0 %v5423_v47 }
 0x730   : > { %7281 = vmatmul.msk.bf16.gmra.mxu3 %vm2731_vm7, %v7522_v37 }
 0x735   : > { %5418 = vadd.xlane.f32.xlu2 %v5417_v56  ;;  %5415 = vadd.xlane.f32.xlu1 %v5414_v17 }
 0x73a   : > { %7278 = vmatmul.msk.bf16.gmra.mxu2 %vm2731_vm7, %v7523_v52 }
 0x740   : > { %7282 = vmatmul.msk.bf16.gmra.mxu3 %vm2731_vm7, %v7523_v52 }
 0x798   : > { %v5437_v41 = vpop.xlane.xlu2 %5436  ;;  %v5434_v14 = vpop.xlane.xlu1 %5433 }
 0x799   : > { %v5453_v9 = vadd.f32 %v5445_v55, %v5437_v41  ;;  %v5452_v2 = vadd.f32 %v5444_v27, %v5434_v14  ;;  %v5428_v22 = vpop.xlane.xlu0 %5427 }
 0x79a   : > { %v5450_v3 = vadd.f32 %v5442_v29, %v5428_v22 }
 0x79b   : > { %v5461_v32 = vsub.f32 0.0, %v5453_v9  ;;  %v5460_v58 = vsub.f32 0.0, %v5452_v2 }
 0x79c   : > { %v5458_v40 = vsub.f32 0.0, %v5450_v3 }
 0x79d   : > { %v5476_v28 = vmul.f32 1.442695, %v5461_v32  ;;  %v5474_v10 = vmul.f32 1.442695, %v5460_v58 }
 0x79e   : > { %v5470_v50 = vmul.f32 1.442695, %v5458_v40 }
 0x79f   : > { %7607 = vpow2.f32 %v5476_v28 }
 0x7a0   : > { %7609 = vpow2.f32 %v5474_v10  ;;  %v5431_v59 = vpop.xlane.xlu1 %5430  ;;  %v5422_v24 = vpop.xlane.xlu2 %5421 }
 0x7a1   : > { %7611 = vpow2.f32 %v5470_v50  ;;  %v5451_v60 = vadd.f32 %v5443_v48, %v5431_v59  ;;  %v5425_v13 = vpop.xlane.xlu0 %5424  ;;  %v5448_v21 = vadd.f32 %v5440_v31, %v5422_v24 }
 0x7a2   : > { %v5449_v39 = vadd.f32 %v5441_v26, %v5425_v13 }
 0x7a3   : > { %v5459_v49 = vsub.f32 0.0, %v5451_v60  ;;  %v5456_v63 = vsub.f32 0.0, %v5448_v21 }
 0x7a4   : > { %v5457_v44 = vsub.f32 0.0, %v5449_v39 }
 0x7a5   : > { %v7608_v15 = vpop.eup %7607  ;;  %v5472_v38 = vmul.f32 1.442695, %v5459_v49  ;;  %v5466_v51 = vmul.f32 1.442695, %v5456_v63 }
 0x7a6   : > { %v7610_v62 = vpop.eup %7609  ;;  %v10488_v53 = vadd.f32 1.0, %v7608_v15  ;;  %v5468_v43 = vmul.f32 1.442695, %v5457_v44 }
 0x7a7   : > { %v7612_v57 = vpop.eup %7611  ;;  %v10496_v45 = vadd.f32 1.0, %v7610_v62  ;;  %7613 = vpow2.f32 %v5472_v38 }
 0x7a8   : > { %7615 = vrcp.f32 %v10488_v53  ;;  %v10499_v18 = vadd.f32 1.0, %v7612_v57  ;;  %v5419_v47 = vpop.xlane.xlu2 %5418  ;;  %v5416_v46 = vpop.xlane.xlu1 %5415  ;;  %vm5596_vm4 = vweird.f32 %v10488_v53  ;;  %v5600_v29 = vand.u32 2147483647, %v10488_v53 }
 0x7a9   : > { %7617 = vrcp.f32 %v10496_v45  ;;  %v5447_v61 = vadd.f32 %v5439_v35, %v5419_v47  ;;  %v5446_v4 = vadd.f32 %v5438_v20, %v5416_v46  ;;  %v5585_v52 = vand.u32 2147483647, %v10496_v45 }
 0x7aa   : > { %7619 = vrcp.f32 %v10499_v18  ;;  %vm5581_vm5 = vweird.f32 %v10496_v45  ;;  %v5587_v14 = vand.u32 2147483648, %v10496_v45  ;;  %vm5551_vm8 = vweird.f32 %v10499_v18 }
 0x7ab   : > { %7621 = vpow2.f32 %v5468_v43  ;;  %v5455_v42 = vsub.f32 0.0, %v5447_v61  ;;  %v5454_v0 = vsub.f32 0.0, %v5446_v4  ;;  %v5555_v3 = vand.u32 2147483647, %v10499_v18 }
 0x7ac   : > { %7623 = vpow2.f32 %v5466_v51  ;;  %vm10515_vm9 = vcmp.eq.f32.partialorder %v5585_v52, 8.507059e+37  ;;  %v5557_v31 = vand.u32 2147483648, %v10499_v18  ;;  %v5602_v26 = vand.u32 2147483648, %v10488_v53 }
 0x7ad   : > { %v7614_v56 = vpop.eup %7613  ;;  %v5464_v17 = vmul.f32 1.442695, %v5455_v42  ;;  %v5462_v37 = vmul.f32 1.442695, %v5454_v0  ;;  %v5588_v21 = vor.u32 1.1754944e-38, %v5587_v14  ;;  %vm5601_vm14 = vcmp.eq.f32.partialorder %v5600_v29, 8.507059e+37 }
 0x7ae   : > { %v7616_v55 = vpop.eup %7615  ;;  %v10504_v27 = vadd.f32 1.0, %v7614_v56  ;;  %v5603_v62 = vor.u32 1.1754944e-38, %v5602_v26  ;;  %v5558_v57 = vor.u32 1.1754944e-38, %v5557_v31  ;;  %vm5556_vm1 = vcmp.eq.f32.partialorder %v5555_v3, 8.507059e+37  ;;  %v6079_v31 = vld [vmem:[%s10994_s19 + $0x30] sm:$0xff] }
 0x7af   : > { %v7618_v41 = vpop.eup %7617  ;;  %7625 = vpow2.f32 %v5464_v17  ;;  %v5592_v9 = vmul.f32 %v7616_v55, %v10488_v53  ;;  %vm5597_vm10 = vweird.f32 %v7616_v55 }
 0x7b0   : > { %v7620_v2 = vpop.eup %7619  ;;  %7627 = vrcp.f32 %v10504_v27  ;;  %v5577_v22 = vmul.f32 %v7618_v41, %v10496_v45  ;;  %vm5582_vm11 = vweird.f32 %v7618_v41  ;;  %vm5598_vm13 = vmor %vm5596_vm4, %vm5597_vm10  ;;  %v5570_v56 = vand.u32 2147483647, %v10504_v27 }
 0x7b1   : > { %v7622_v32 = vpop.eup %7621  ;;  %7629 = vpow2.f32 %v5462_v37  ;;  %v5547_v40 = vmul.f32 %v7620_v2, %v10499_v18  ;;  %v5593_v28 = vsub.f32 1.0, %v5592_v9  ;;  %vm5552_vm12 = vweird.f32 %v7620_v2  ;;  %vm5583_vm15 = vmor %vm5581_vm5, %vm5582_vm11 }
 0x7b2   : > { %v7624_v10 = vpop.eup %7623  ;;  %v10520_v50 = vadd.f32 1.0, %v7622_v32  ;;  %v5578_v48 = vsub.f32 1.0, %v5577_v22  ;;  %vm5553_vm0 = vmor %vm5551_vm8, %vm5552_vm12  ;;  %v5572_v17 = vand.u32 2147483648, %v10504_v27  ;;  %vm5566_vm6 = vweird.f32 %v10504_v27 }
 0x7b3   : > { %v10524_v59 = vadd.f32 1.0, %v7624_v10  ;;  %v5548_v24 = vsub.f32 1.0, %v5547_v40  ;;  %v5594_v60 = vmul.f32 %v7616_v55, %v5593_v28  ;;  %vm5571_vm4 = vcmp.eq.f32.partialorder %v5570_v56, 8.507059e+37 }
 0x7b4   : > { %7631 = vrcp.f32 %v10520_v50  ;;  %v5579_v13 = vmul.f32 %v7618_v41, %v5578_v48  ;;  %vm5536_vm5 = vweird.f32 %v10520_v50  ;;  %v5540_v26 = vand.u32 2147483647, %v10520_v50 }
 0x7b5   : > { %v7626_v39 = vpop.eup %7625  ;;  %7633 = vrcp.f32 %v10524_v59  ;;  %v5549_v49 = vmul.f32 %v7620_v2, %v5548_v24  ;;  %v5595_v44 = vadd.f32 %v7616_v55, %v5594_v60  ;;  %v5527_v32 = vand.u32 2147483648, %v10524_v59 }
 0x7b6   : > { %v7628_v63 = vpop.eup %7627  ;;  %v10528_v15 = vadd.f32 1.0, %v7626_v39  ;;  %v5580_v38 = vadd.f32 %v7618_v41, %v5579_v13  ;;  %vm5521_vm8 = vweird.f32 %v10524_v59  ;;  %v5542_v39 = vand.u32 2147483648, %v10520_v50 }
 0x7b7   : > { %v7630_v35 = vpop.eup %7629  ;;  %v5550_v20 = vadd.f32 %v7620_v2, %v5549_v49  ;;  %v5599_v43 = vsel %vm5598_vm13, %v7616_v55, %v5595_v44  ;;  %v5562_v51 = vmul.f32 %v7628_v63, %v10504_v27  ;;  %vm5567_vm2 = vweird.f32 %v7628_v63  ;;  %v5830_v27 = vld [vmem:[%s10992_s17 + $0x38] sm:$0xff] }
 0x7b8   : > { %7635 = vrcp.f32 %v10528_v15  ;;  %v10536_v47 = vadd.f32 1.0, %v7630_v35  ;;  %v5584_v46 = vsel %vm5583_vm15, %v7618_v41, %v5580_v38  ;;  %v5604_v53 = vsel %vm5601_vm14, %v5603_v62, %v5599_v43  ;;  %vm5568_vm3 = vmor %vm5566_vm6, %vm5567_vm2 }
 0x7b9   : > { %v5589_v61 = vsel %vm10515_vm9, %v5588_v21, %v5584_v46  ;;  %v5554_v45 = vsel %vm5553_vm0, %v7620_v2, %v5550_v20  ;;  %5643 = vperm.xlu1 %7605, %v5604_v53   ;;  %v5563_v4 = vsub.f32 1.0, %v5562_v51  ;;  %v5525_v41 = vand.u32 2147483647, %v10524_v59 }
 0x7ba   : > { %v10543_v42 = vpop.eup %7631  ;;  %7637 = vrcp.f32 %v10536_v47  ;;  %5638 = vperm.xlu0 %7604, %v5589_v61   ;;  %v5559_v0 = vsel %vm5556_vm1, %v5558_v57, %v5554_v45  ;;  %v5573_v2 = vor.u32 1.1754944e-38, %v5572_v17  ;;  %v5512_v44 = vand.u32 2147483648, %v10528_v15 }
 0x7bb   : > { %v7634_v18 = vpop.eup %7633  ;;  %5628 = vperm.xlu2 %7606, %v5559_v0   ;;  %v5564_v37 = vmul.f32 %v7628_v63, %v5563_v4  ;;  %v5532_v52 = vmul.f32 %v10543_v42, %v10520_v50  ;;  %vm10561_vm10 = vcmp.eq.f32.partialorder %v5525_v41, 8.507059e+37  ;;  %vm5537_vm11 = vweird.f32 %v10543_v42  ;;  %v5823_v41 = vld [vmem:[%s10992_s17] sm:$0xff] }
 0x7bc   : > { %v5517_v55 = vmul.f32 %v7634_v18, %v10524_v59  ;;  %vm5522_vm9 = vweird.f32 %v7634_v18  ;;  %v5528_v59 = vor.u32 1.1754944e-38, %v5527_v32  ;;  %v5497_v62 = vand.u32 2147483648, %v10536_v47  ;;  %vm10576_vm15 = vmor %vm5536_vm5, %vm5537_vm11  ;;  %v6074_v32 = vld [vmem:[%s10994_s19 + $0x8] sm:$0xff] }
 0x7bd   : > { %v5565_v29 = vadd.f32 %v7628_v63, %v5564_v37  ;;  %v5533_v14 = vsub.f32 1.0, %v5532_v52  ;;  %vm5523_vm12 = vmor %vm5521_vm8, %vm5522_vm9  ;;  %v5495_v51 = vand.u32 2147483647, %v10536_v47  ;;  %vm5506_vm0 = vweird.f32 %v10528_v15  ;;  %v5827_v37 = vld [vmem:[%s10992_s17 + $0x20] sm:$0xff]  ;;  %v5828_v52 = vld [vmem:[%s10992_s17 + $0x28] sm:$0xff] }
 0x7be   : > { %v7636_v9 = vpop.eup %7635  ;;  %v5518_v22 = vsub.f32 1.0, %v5517_v55  ;;  %v5510_v53 = vand.u32 2147483647, %v10528_v15  ;;  %v5543_v61 = vor.u32 1.1754944e-38, %v5542_v39  ;;  %vm5491_vm2 = vweird.f32 %v10536_v47  ;;  %v5824_v55 = vld [vmem:[%s10992_s17 + $0x8] sm:$0xff]  ;;  %v6083_v39 = vld [vmem:[%s10994_s19 + $0x50] sm:$0xff] }
 0x7bf   : > { %v5569_v3 = vsel %vm5568_vm3, %v7628_v63, %v5565_v29  ;;  %v5534_v58 = vmul.f32 %v10543_v42, %v5533_v14  ;;  %v5502_v40 = vmul.f32 %v7636_v9, %v10528_v15  ;;  %vm5507_vm13 = vweird.f32 %v7636_v9  ;;  %v5829_v15 = vld [vmem:[%s10992_s17 + $0x30] sm:$0xff]  ;;  %v5826_v29 = vld [vmem:[%s10992_s17 + $0x18] sm:$0xff]  ;;  %v5728_v14 = vld [vmem:[#allocation4] sm:$0x1] }
 0x7c0   : > { %v7638_v28 = vpop.eup %7637  ;;  %v5574_v10 = vsel %vm5571_vm4, %v5573_v2, %v5569_v3  ;;  %v5519_v48 = vmul.f32 %v7634_v18, %v5518_v22  ;;  %vm5508_vm1 = vmor %vm5506_vm0, %vm5507_vm13  ;;  %vm5541_vm6 = vcmp.eq.f32.partialorder %v5540_v26, 8.507059e+37  ;;  %v5498_v4 = vor.u32 1.1754944e-38, %v5497_v62  ;;  %v5708_v2 = vld [vmem:[%s10989_s14] sm:$0xff]  ;;  %v6075_v22 = vld [vmem:[%s10994_s19 + $0x10] sm:$0xff] }
 0x7c1   : > { %v5503_v24 = vsub.f32 1.0, %v5502_v40  ;;  %v5487_v60 = vmul.f32 %v7638_v28, %v10536_v47  ;;  %v5535_v21 = vadd.f32 %v10543_v42, %v5534_v58  ;;  %vm5492_vm14 = vweird.f32 %v7638_v28  ;;  %v5825_v47 = vld [vmem:[%s10992_s17 + $0x10] sm:$0xff]  ;;  %v6073_v3 = vld [vmem:[%s10994_s19] sm:$0xff]  ;;  %v6078_v58 = vld [vmem:[%s10994_s19 + $0x28] sm:$0xff] }
 0x7c2   : > { %5633 = vperm.xlu0 %7604, %v5574_v10   ;;  %v5520_v13 = vadd.f32 %v7634_v18, %v5519_v48  ;;  %vm5493_vm3 = vmor %vm5491_vm2, %vm5492_vm14  ;;  %v5513_v56 = vor.u32 1.1754944e-38, %v5512_v44  ;;  %vm5496_vm4 = vcmp.eq.f32.partialorder %v5495_v51, 8.507059e+37  ;;  %vm5511_vm5 = vcmp.eq.f32.partialorder %v5510_v53, 8.507059e+37  ;;  %v6076_v40 = vld [vmem:[%s10994_s19 + $0x18] sm:$0xff]  ;;  %v10632_v10 = vpop.f32.mrf.mxu3  ;;  %v6081_v48 = vld [vmem:[%s10994_s19 + $0x40] sm:$0xff] }
 0x7c3   : > { %5868 = vperm.xlu2 %7606, %v5830_v27   ;;  %v5504_v49 = vmul.f32 %v7636_v9, %v5503_v24  ;;  %v5488_v63 = vsub.f32 1.0, %v5487_v60  ;;  %v5539_v46 = vsel %vm10576_vm15, %v10543_v42, %v5535_v21  ;;  %v6077_v27 = vld [vmem:[%s10994_s19 + $0x20] sm:$0xff]  ;;  %v6080_v26 = vld [vmem:[%s10994_s19 + $0x38] sm:$0xff]  ;;  %v6082_v21 = vld [vmem:[%s10994_s19 + $0x48] sm:$0xff] }
 0x7c4   : > { %v5524_v38 = vsel %vm5523_vm12, %v7634_v18, %v5520_v13  ;;  %v5544_v0 = vsel %vm5541_vm6, %v5543_v61, %v5539_v46  ;;  %v6084_v24 = vld [vmem:[%s10994_s19 + $0x58] sm:$0xff] }
 0x7c5   : > { %v5529_v35 = vsel %vm10561_vm10, %v5528_v59, %v5524_v38  ;;  %v5505_v57 = vadd.f32 %v7636_v9, %v5504_v49  ;;  %v5489_v43 = vmul.f32 %v7638_v28, %v5488_v63  ;;  %v6087_v59 = vld [vmem:[%s10994_s19 + $0x70] sm:$0xff]  ;;  %v6085_v63 = vld [vmem:[%s10994_s19 + $0x60] sm:$0xff]  ;;  %v6086_v38 = vld [vmem:[%s10994_s19 + $0x68] sm:$0xff] }
 0x7c6   : > { %5618 = vperm.xlu1 %7605, %v5529_v35   ;;  %v6088_v62 = vld [vmem:[%s10994_s19 + $0x78] sm:$0xff] }
 0x7c7   : > { %v5490_v50 = vadd.f32 %v7638_v28, %v5489_v43  ;;  %v5509_v45 = vsel %vm5508_vm1, %v7636_v9, %v5505_v57  ;;  %v5671_v9 = vld [vmem:[%s10988_s13] sm:$0xff] }
 0x7c8   : > { %v5514_v18 = vsel %vm5511_vm5, %v5513_v56, %v5509_v45 }
 0x7c9   : > { %v5494_v17 = vsel %vm5493_vm3, %v7638_v28, %v5490_v50  ;;  %v10630_v28 = vpop.f32.mrf.mxu2 }
 0x7ca   : > { %5623 = vperm.xlu0 %7604, %v5544_v0   ;;  %v5499_v42 = vsel %vm5496_vm4, %v5498_v4, %v5494_v17  ;;  %v10651_v13 = vpop.f32.mrf.mxu3 }
 0x7cb   : > { %5608 = vperm.xlu2 %7606, %v5499_v42  }
 0x7ce   : > { %5613 = vperm.xlu1 %7605, %v5514_v18  }
 0x7d1   : > { %v10649_v60 = vpop.f32.mrf.mxu2 }
 0x7d2   : > { %5863 = vperm.xlu0 %7604, %v5829_v15   ;;  %v10664_v44 = vpop.f32.mrf.mxu3 }
 0x7d3   : > { %5843 = vperm.xlu2 %7606, %v5825_v47  }
 0x7d6   : > { %5853 = vperm.xlu1 %7605, %v5827_v37  }
 0x7d9   : > { %v10662_v49 = vpop.f32.mrf.mxu2 }
 0x7da   : > { %5858 = vperm.xlu0 %7604, %v5828_v52   ;;  %v10677_v20 = vpop.f32.mrf.mxu3 }
 0x7db   : > { %5838 = vperm.xlu2 %7606, %v5824_v55  }
 0x7de   : > { %5848 = vperm.xlu1 %7605, %v5826_v29  }
 0x7e1   : > { %v10675_v35 = vpop.f32.mrf.mxu2 }
 0x7e2   : > { %5833 = vperm.xlu0 %7604, %v5823_v41   ;;  %v10681_v43 = vpop.f32.mrf.mxu3 }
 0x7e3   : > { %5731 = vperm.xlu2 %7606, %v5728_v14  }
 0x7e6   : > { %5674 = vperm.xlu1 %7605, %v5671_v9  }
 0x7e9   : > { %v10679_v57 = vpop.f32.mrf.mxu2 }
 0x7ea   : > { %5711 = vperm.xlu0 %7604, %v5708_v2   ;;  %v10685_v53 = vpop.f32.mrf.mxu3 }
 0x7eb   : > { %6101 = vperm.xlu2 %7606, %v6075_v22  }
 0x7ee   : > { %6091 = vperm.xlu1 %7605, %v6073_v3  }
 0x7f1   : > { %v10683_v46 = vpop.f32.mrf.mxu2 }
 0x7f2   : > { %6096 = vperm.xlu0 %7604, %v6074_v32   ;;  %v5996_v15 = vpop.f32.mrf.mxu3 }
 0x7f3   : > { %6116 = vperm.xlu2 %7606, %v6078_v58  }
 0x7f6   : > { %6106 = vperm.xlu1 %7605, %v6076_v40  }
 0x7fa   : > { %6111 = vperm.xlu0 %7604, %v6077_v27  }
 0x7fb   : > { %6131 = vperm.xlu2 %7606, %v6081_v48  }
 0x7fe   : > { %6121 = vperm.xlu1 %7605, %v6079_v31  }
 0x802   : > { %6126 = vperm.xlu0 %7604, %v6080_v26  }
 0x803   : > { %6146 = vperm.xlu2 %7606, %v6084_v24  }
 0x806   : > { %6136 = vperm.xlu1 %7605, %v6082_v21  }
 0x80a   : > { %6141 = vperm.xlu0 %7604, %v6083_v39  }
 0x80b   : > { %6161 = vperm.xlu2 %7606, %v6087_v59  }
 0x80e   : > { %6151 = vperm.xlu1 %7605, %v6085_v63  }
 0x812   : > { %6156 = vperm.xlu0 %7604, %v6086_v38  }
 0x815   : > { %v5629_v51 = vpop.permute.xlu2 %5628 }
 0x816   : > { %6166 = vperm.xlu1 %7605, %v6088_v62  }
 0x81d   : > { %v5869_v17 = vpop.permute.xlu2 %5868 }
 0x825   : > { %v5609_v41 = vpop.permute.xlu2 %5608 }
 0x82b   : > { %v5644_v61 = vpop.permute.xlu1 %5643 }
 0x82c   : > { %v5639_v50 = vpop.permute.xlu0 %5638  ;;  %v10688_v45 = vmul.f32 %v5644_v61, %v10354_v1  ;;  %v10691_v4 = vmul.f32 %v5644_v61, %v10356_v8  ;;  %v5967_v1 = vpop.f32.mrf.mxu2  ;;  %v10704_v8 = vmul.f32 %v5629_v51, %v10269_v19 }
 0x82d   : > { %v10694_v0 = vmul.f32 %v5639_v50, %v10281_v16  ;;  %v10697_v56 = vmul.f32 %v5639_v50, %v10347_v5  ;;  %v10707_v16 = vmul.f32 %v5629_v51, %v10329_v30  ;;  %v5998_v30 = vpop.f32.mrf.mxu3  ;;  %v5844_v27 = vpop.permute.xlu2 %5843 }
 0x82e   : > { %v5999_v58 = vadd.f32 %v5998_v30, %v5869_v17 }
 0x82f   : > { %v5669_v42 = vpack.c.bf16 %v10688_v45, %v10694_v0  ;;  %v5670_v18 = vpack.c.bf16 %v10691_v4, %v10697_v56 }
 0x830   : > { %v6032_v26 = vmul.f32 0.1, %v5999_v58  ;;  %vm6016_vm9 = vcmp.gt.f32.partialorder %v5999_v58, 0.0 }
 0x831   : > { %5684 = vmatpush.bf16.msrb.mxu0 %v5669_v42  ;;  %5697 = vmatpush.bf16.msrb.mxu1 %v5670_v18  ;;  %v5987_v42 = vadd.f32 %v10664_v44, %v5844_v27 }
 0x832   : > { %v6048_v63 = vsel %vm6016_vm9, %v5999_v58, %v6032_v26 }
 0x833   : > { %vm6006_vm15 = vcmp.gt.f32.partialorder %v5987_v42, 0.0 }
 0x834   : > { %v5634_v47 = vpop.permute.xlu0 %5633  ;;  %v5969_v14 = vpop.f32.mrf.mxu2 }
 0x835   : > { %v10710_v5 = vmul.f32 %v5634_v47, %v10336_v54  ;;  %v10713_v37 = vmul.f32 %v5634_v47, %v10340_v11  ;;  %v5970_v32 = vadd.f32 %v5969_v14, %v5869_v17  ;;  %v5958_v17 = vadd.f32 %v10662_v49, %v5844_v27 }
 0x836   : > { %v6022_v49 = vmul.f32 0.1, %v5987_v42 }
 0x837   : > { %v5667_v52 = vpack.c.bf16 %v10710_v5, %v10704_v8  ;;  %v5668_v55 = vpack.c.bf16 %v10713_v37, %v10707_v16  ;;  %v6031_v31 = vmul.f32 0.1, %v5970_v32  ;;  %vm6015_vm8 = vcmp.gt.f32.partialorder %v5970_v32, 0.0 }
 0x838   : > { %v5619_v29 = vpop.permute.xlu1 %5618  ;;  %vm6005_vm14 = vcmp.gt.f32.partialorder %v5958_v17, 0.0 }
 0x839   : > { %5685 = vmatpush.bf16.msrb.mxu0 %v5667_v52  ;;  %5698 = vmatpush.bf16.msrb.mxu1 %v5668_v55  ;;  %v10720_v9 = vmul.f32 %v5619_v29, %v10261_v23  ;;  %v10723_v54 = vmul.f32 %v5619_v29, %v10311_v34  ;;  %v10736_v23 = vmul.f32 %v5609_v41, %v10257_v36  ;;  %v5839_v55 = vpop.permute.xlu2 %5838 }
 0x83a   : > { %v10739_v34 = vmul.f32 %v5609_v41, %v10296_v12  ;;  %v6047_v59 = vsel %vm6015_vm8, %v5970_v32, %v6031_v31  ;;  %v5984_v14 = vadd.f32 %v10651_v13, %v5839_v55 }
 0x83c   : > { %v5624_v19 = vpop.permute.xlu0 %5623  ;;  %v6020_v26 = vmul.f32 0.1, %v5984_v14  ;;  %vm6004_vm4 = vcmp.gt.f32.partialorder %v5984_v14, 0.0 }
 0x83d   : > { %v10726_v11 = vmul.f32 %v5624_v19, %v10318_v25  ;;  %v10729_v2 = vmul.f32 %v5624_v19, %v10322_v6  ;;  %v5955_v19 = vadd.f32 %v10649_v60, %v5839_v55 }
 0x83f   : > { %v5665_v22 = vpack.c.bf16 %v10726_v11, %v10720_v9  ;;  %v5666_v3 = vpack.c.bf16 %v10729_v2, %v10723_v54  ;;  %v6019_v31 = vmul.f32 0.1, %v5955_v19  ;;  %vm6003_vm3 = vcmp.gt.f32.partialorder %v5955_v19, 0.0 }
 0x840   : > { %v5614_v40 = vpop.permute.xlu1 %5613 }
 0x841   : > { %v10742_v25 = vmul.f32 %v5614_v40, %v10300_v7  ;;  %v10745_v6 = vmul.f32 %v5614_v40, %v10303_v33  ;;  %5686 = vmatpush.bf16.msrb.mxu0 %v5665_v22  ;;  %5699 = vmatpush.bf16.msrb.mxu1 %v5666_v3  ;;  %v5662_v33 = vld [vmem:[%s10987_s12] sm:$0xf] }
 0x843   : > { %v5663_v48 = vpack.c.bf16 %v10742_v25, %v10736_v23  ;;  %v5664_v36 = vpack.c.bf16 %v10745_v6, %v10739_v34 }
 0x844   : > { %v5864_v24 = vpop.permute.xlu0 %5863 }
 0x845   : > { %v5968_v12 = vadd.f32 %v5967_v1, %v5864_v24  ;;  %v5997_v7 = vadd.f32 %v5996_v15, %v5864_v24  ;;  %5687 = vmatpush.bf16.msrb.mxu0 %v5663_v48  ;;  %5700 = vmatpush.bf16.msrb.mxu1 %v5664_v36  ;;  %v6038_v24 = vsel %vm6006_vm15, %v5987_v42, %v6022_v49  ;;  %v7535_v42 = vld [vmem:[%s10993_s18 + $0x18] sm:$0xff] }
 0x847   : > { %vm6013_vm10 = vcmp.gt.f32.partialorder %v5968_v12, 0.0  ;;  %vm6014_vm11 = vcmp.gt.f32.partialorder %v5997_v7, 0.0  ;;  %v6029_v21 = vmul.f32 0.1, %v5968_v12  ;;  %v6030_v39 = vmul.f32 0.1, %v5997_v7 }
 0x848   : > { %v5854_v38 = vpop.permute.xlu1 %5853  ;;  %7225 = vmatmul.msk.bf16.vlgmr.msrb.gmra.mxu0 %vm2731_vm7, %v5662_v33  ;;  %7226 = vmatmul.msk.bf16.vlgmr.msrb.gmra.mxu1 %vm2731_vm7, %v5662_v33 }
 0x849   : > { %v6045_v62 = vsel %vm6013_vm10, %v5968_v12, %v6029_v21  ;;  %v6046_v51 = vsel %vm6014_vm11, %v5997_v7, %v6030_v39  ;;  %v5963_v61 = vadd.f32 %v10679_v57, %v5854_v38  ;;  %v5992_v50 = vadd.f32 %v10681_v43, %v5854_v38 }
 0x84a   : > { %v6071_v18 = vpack.c.bf16 %v6047_v59, %v6045_v62  ;;  %v6072_v1 = vpack.c.bf16 %v6048_v63, %v6046_v51  ;;  %v6021_v43 = vmul.f32 0.1, %v5958_v17  ;;  %v6035_v38 = vsel %vm6003_vm3, %v5955_v19, %v6019_v31 }
 0x84b   : > { %v6025_v15 = vmul.f32 0.1, %v5963_v61  ;;  %v6026_v47 = vmul.f32 0.1, %v5992_v50  ;;  %vm6009_vm12 = vcmp.gt.f32.partialorder %v5963_v61, 0.0  ;;  %vm6010_vm13 = vcmp.gt.f32.partialorder %v5992_v50, 0.0 }
 0x84c   : > { %v5859_v52 = vpop.permute.xlu0 %5858  ;;  %6237 = vmatpush.bf16.msra.mxu0 %v6071_v18  ;;  %6286 = vmatpush.bf16.msra.mxu1 %v6072_v1  ;;  %v6037_v13 = vsel %vm6005_vm14, %v5958_v17, %v6021_v43  ;;  %v6036_v51 = vsel %vm6004_vm4, %v5984_v14, %v6020_v26  ;;  %v7534_v17 = vld [vmem:[%s10993_s18 + $0x10] sm:$0xff]  ;;  %v7536_v18 = vld [vmem:[%s10993_s18 + $0x20] sm:$0xff]  ;;  %v7537_v1 = vld [vmem:[%s10993_s18 + $0x28] sm:$0xff] }
 0x84d   : > { %v5965_v29 = vadd.f32 %v10683_v46, %v5859_v52  ;;  %v5994_v57 = vadd.f32 %v10685_v53, %v5859_v52  ;;  %v6041_v22 = vsel %vm6009_vm12, %v5963_v61, %v6025_v15  ;;  %v6042_v3 = vsel %vm6010_vm13, %v5992_v50, %v6026_v47  ;;  %v7533_v50 = vld [vmem:[%s10993_s18 + $0x8] sm:$0xff]  ;;  %v7538_v15 = vld [vmem:[%s10993_s18 + $0x30] sm:$0xff] }
 0x84f   : > { %vm6011_vm0 = vcmp.gt.f32.partialorder %v5965_v29, 0.0  ;;  %vm6012_vm1 = vcmp.gt.f32.partialorder %v5994_v57, 0.0  ;;  %v6027_v44 = vmul.f32 0.1, %v5965_v29  ;;  %v6028_v41 = vmul.f32 0.1, %v5994_v57 }
 0x850   : > { %v5849_v30 = vpop.permute.xlu1 %5848 }
 0x851   : > { %v5960_v32 = vadd.f32 %v10675_v35, %v5849_v30  ;;  %v5989_v46 = vadd.f32 %v10677_v20, %v5849_v30  ;;  %v6043_v53 = vsel %vm6011_vm0, %v5965_v29, %v6027_v44  ;;  %v6044_v58 = vsel %vm6012_vm1, %v5994_v57, %v6028_v41 }
 0x852   : > { %v6069_v40 = vpack.c.bf16 %v6043_v53, %v6041_v22  ;;  %v6070_v27 = vpack.c.bf16 %v6044_v58, %v6042_v3 }
 0x853   : > { %vm6007_vm2 = vcmp.gt.f32.partialorder %v5960_v32, 0.0  ;;  %vm6008_vm6 = vcmp.gt.f32.partialorder %v5989_v46, 0.0  ;;  %v6023_v48 = vmul.f32 0.1, %v5960_v32  ;;  %v6024_v36 = vmul.f32 0.1, %v5989_v46 }
 0x854   : > { %v5834_v60 = vpop.permute.xlu0 %5833  ;;  %6238 = vmatpush.bf16.msra.mxu0 %v6069_v40  ;;  %6287 = vmatpush.bf16.msra.mxu1 %v6070_v27  ;;  %v5732_v40 = vpop.permute.xlu2 %5731 }
 0x855   : > { %v5953_v35 = vadd.f32 %v10630_v28, %v5834_v60  ;;  %v5982_v20 = vadd.f32 %v10632_v10, %v5834_v60  ;;  %v6039_v12 = vsel %vm6007_vm2, %v5960_v32, %v6023_v48  ;;  %v6040_v7 = vsel %vm6008_vm6, %v5989_v46, %v6024_v36  ;;  %v7532_v10 = vld [vmem:[%s10993_s18] sm:$0xff]  ;;  %v7539_v60 = vld [vmem:[%s10993_s18 + $0x38] sm:$0xff] }
 0x856   : > { %v6067_v33 = vpack.c.bf16 %v6039_v12, %v6037_v13  ;;  %v6068_v21 = vpack.c.bf16 %v6040_v7, %v6038_v24  ;;  %v5734_v31 = vperm.slane %v5732_v40, 0 }
 0x857   : > { %vm6001_vm5 = vcmp.gt.f32.partialorder %v5953_v35, 0.0  ;;  %vm6002_vm8 = vcmp.gt.f32.partialorder %v5982_v20, 0.0  ;;  %v6017_v39 = vmul.f32 0.1, %v5953_v35  ;;  %v6018_v59 = vmul.f32 0.1, %v5982_v20 }
 0x858   : > { %6239 = vmatpush.bf16.msra.mxu0 %v6067_v33  ;;  %6288 = vmatpush.bf16.msra.mxu1 %v6068_v21  ;;  %v5675_v47 = vpop.permute.xlu1 %5674 }
 0x859   : > { %v6033_v63 = vsel %vm6001_vm5, %v5953_v35, %v6017_v39  ;;  %v6034_v62 = vsel %vm6002_vm8, %v5982_v20, %v6018_v59 }
 0x85a   : > { %v6065_v61 = vpack.c.bf16 %v6035_v38, %v6033_v63  ;;  %v6066_v28 = vpack.c.bf16 %v6036_v51, %v6034_v62 }
 0x85c   : > { %6240 = vmatpush.bf16.msra.mxu0 %v6065_v61  ;;  %6289 = vmatpush.bf16.msra.mxu1 %v6066_v28  ;;  %v5712_v57 = vpop.permute.xlu0 %5711 }
 0x85f   : > { %7315 = vmatmul.msk.bf16.vlgmr.msra.gmra.mxu0 %vm2731_vm7, %v7532_v10  ;;  %7323 = vmatmul.msk.bf16.vlgmr.msra.gmra.mxu1 %vm2731_vm7, %v7532_v10 }
 0x86f   : > { %7316 = vmatmul.msk.bf16.gmra.mxu0 %vm2731_vm7, %v7533_v50  ;;  %7324 = vmatmul.msk.bf16.gmra.mxu1 %vm2731_vm7, %v7533_v50 }
 0x87f   : > { %7317 = vmatmul.msk.bf16.gmra.mxu0 %vm2731_vm7, %v7534_v17  ;;  %7325 = vmatmul.msk.bf16.gmra.mxu1 %vm2731_vm7, %v7534_v17 }
 0x88f   : > { %7318 = vmatmul.msk.bf16.gmra.mxu0 %vm2731_vm7, %v7535_v42  ;;  %7326 = vmatmul.msk.bf16.gmra.mxu1 %vm2731_vm7, %v7535_v42 }
 0x89f   : > { %7319 = vmatmul.msk.bf16.gmra.mxu0 %vm2731_vm7, %v7536_v18  ;;  %7327 = vmatmul.msk.bf16.gmra.mxu1 %vm2731_vm7, %v7536_v18 }
 0x8af   : > { %7320 = vmatmul.msk.bf16.gmra.mxu0 %vm2731_vm7, %v7537_v1  ;;  %7328 = vmatmul.msk.bf16.gmra.mxu1 %vm2731_vm7, %v7537_v1 }
 0x8bf   : > { %7321 = vmatmul.msk.bf16.gmra.mxu0 %vm2731_vm7, %v7538_v15  ;;  %7329 = vmatmul.msk.bf16.gmra.mxu1 %vm2731_vm7, %v7538_v15 }
 0x8c5   : > { %v5689_v52 = vpop.f32.mrf.mxu0  ;;  %v5702_v14 = vpop.f32.mrf.mxu1 }
 0x8c6   : > { %v5690_v55 = vadd.f32 %v5689_v52, %v5675_v47  ;;  %v5703_v30 = vadd.f32 %v5702_v14, %v5675_v47  ;;  %v10828_v52 = vpop.permute.xlu0 %6096 }
 0x8c8   : > { %v5706_v29 = vmax.f32 %v5690_v55, 0.0  ;;  %v5707_v3 = vmax.f32 %v5703_v30, 0.0 }
 0x8ca   : > { %v5714_v43 = vmul.f32 %v5712_v57, %v5706_v29  ;;  %v5715_v32 = vmul.f32 %v5712_v57, %v5707_v3 }
 0x8cc   : > { %v5716_v49 = vrot.slane %v5714_v43, 4  ;;  %v5722_v53 = vrot.slane %v5715_v32, 4 }
 0x8cd   : > { %v5691_v44 = vpop.f32.mrf.mxu0  ;;  %v5704_v58 = vpop.f32.mrf.mxu1 }
 0x8ce   : > { %v5717_v41 = vadd.f32 %v5716_v49, %v5714_v43  ;;  %v5723_v27 = vadd.f32 %v5722_v53, %v5715_v32  ;;  %v6092_v44 = vpop.permute.xlu1 %6091  ;;  %v10836_v30 = vpop.permute.xlu0 %6111 }
 0x8cf   : > { %7322 = vmatmul.msk.bf16.gmra.mxu0 %vm2731_vm7, %v7539_v60  ;;  %7330 = vmatmul.msk.bf16.gmra.mxu1 %vm2731_vm7, %v7539_v60 }
 0x8d0   : > { %v5718_v19 = vrot.slane %v5717_v41, 2  ;;  %v5724_v36 = vrot.slane %v5723_v27, 2 }
 0x8d2   : > { %v5719_v22 = vadd.f32 %v5718_v19, %v5717_v41  ;;  %v5725_v26 = vadd.f32 %v5724_v36, %v5723_v27  ;;  %v10834_v19 = vpop.permute.xlu2 %6101 }
 0x8d4   : > { %v5720_v46 = vrot.slane %v5719_v22, 1  ;;  %v5726_v35 = vrot.slane %v5725_v26, 1 }
 0x8d6   : > { %v5721_v48 = vadd.f32 %v5720_v46, %v5719_v22  ;;  %v5727_v20 = vadd.f32 %v5726_v35, %v5725_v26 }
 0x8d8   : > { %v5735_v24 = vadd.f32 %v5734_v31, %v5721_v48  ;;  %v5736_v7 = vadd.f32 %v5734_v31, %v5727_v20  ;;  %v10842_v48 = vpop.permute.xlu1 %6106 }
 0x8da   : > { %v5737_v12 = vsub.f32 0.0, %v5735_v24  ;;  %v5738_v59 = vsub.f32 0.0, %v5736_v7  ;;  %v10846_v60 = vpop.permute.xlu2 %6116 }
 0x8dc   : > { %v10808_v13 = vpop.f32.mrf.mxu0  ;;  %v10812_v33 = vpop.f32.mrf.mxu1  ;;  %v5739_v21 = vmul.f32 1.442695, %v5737_v12  ;;  %v5741_v63 = vmul.f32 1.442695, %v5738_v59 }
 0x8dd   : > { %v6127_v12 = vpop.permute.xlu0 %6126 }
 0x8de   : > { %7639 = vpow2.f32 %v5739_v21 }
 0x8df   : > { %7641 = vpow2.f32 %v5741_v63 }
 0x8e4   : > { %v10814_v39 = vpop.f32.mrf.mxu0  ;;  %v10816_v38 = vpop.f32.mrf.mxu1 }
 0x8e5   : > { %v7640_v51 = vpop.eup %7639 }
 0x8e6   : > { %v5743_v61 = vadd.f32 1.0, %v7640_v51  ;;  %v7642_v10 = vpop.eup %7641 }
 0x8e7   : > { %v5744_v17 = vadd.f32 1.0, %v7642_v10  ;;  %v11269_v10 = vld [vmem:[#allocation15_spill] sm:$0xff] }
 0x8e8   : > { %7643 = vrcp.f32 %v5743_v61  ;;  %v5756_v22 = vand.u32 2147483648, %v5743_v61  ;;  %vm5750_vm9 = vweird.f32 %v5743_v61  ;;  %v5754_v46 = vand.u32 2147483647, %v5743_v61 }
 0x8e9   : > { %7645 = vrcp.f32 %v5744_v17  ;;  %v5771_v36 = vand.u32 2147483648, %v5744_v17  ;;  %vm5765_vm13 = vweird.f32 %v5744_v17  ;;  %v5769_v26 = vand.u32 2147483647, %v5744_v17 }
 0x8ea   : > { %v5757_v40 = vor.u32 1.1754944e-38, %v5756_v22  ;;  %vm5755_vm11 = vcmp.eq.f32.partialorder %v5754_v46, 8.507059e+37  ;;  %v6292_v46 = vadd.f32 %v10812_v33, %v6092_v44  ;;  %v6245_v33 = vadd.f32 %v10814_v39, %v10828_v52 }
 0x8eb   : > { %v5772_v7 = vor.u32 1.1754944e-38, %v5771_v36  ;;  %vm5770_vm15 = vcmp.eq.f32.partialorder %v5769_v26, 8.507059e+37  ;;  %v11273_v36 = vunpack.c.h.bf16 %v11269_v10  ;;  %v6294_v39 = vadd.f32 %v10816_v38, %v10828_v52 }
 0x8ec   : > { %v10818_v62 = vpop.f32.mrf.mxu0  ;;  %v10820_v28 = vpop.f32.mrf.mxu1 }
 0x8ee   : > { %v7644_v42 = vpop.eup %7643 }
 0x8ef   : > { %v5746_v15 = vmul.f32 %v7644_v42, %v5743_v61  ;;  %v7646_v47 = vpop.eup %7645  ;;  %vm5751_vm7 = vweird.f32 %v7644_v42  ;;  %v6243_v61 = vadd.f32 %v10808_v13, %v6092_v44 }
 0x8f0   : > { %v5761_v57 = vmul.f32 %v7646_v47, %v5744_v17  ;;  %vm5752_vm10 = vmor %vm5750_vm9, %vm5751_vm7  ;;  %vm5766_vm12 = vweird.f32 %v7646_v47  ;;  %v11270_v17 = vunpack.c.l.bf16 %v11269_v10  ;;  %v6333_v10 = vadd.f32 1.0, %v6245_v33 }
 0x8f1   : > { %v5747_v55 = vsub.f32 1.0, %v5746_v15  ;;  %vm5767_vm14 = vmor %vm5765_vm13, %vm5766_vm12 }
 0x8f2   : > { %v5762_v41 = vsub.f32 1.0, %v5761_v57 }
 0x8f3   : > { %v5748_v49 = vmul.f32 %v7644_v42, %v5747_v55 }
 0x8f4   : > { %v10822_v50 = vpop.f32.mrf.mxu0  ;;  %v10824_v18 = vpop.f32.mrf.mxu1  ;;  %v5763_v32 = vmul.f32 %v7646_v47, %v5762_v41 }
 0x8f5   : > { %v5749_v14 = vadd.f32 %v7644_v42, %v5748_v49  ;;  %v10865_v41 = vpop.permute.xlu1 %6121 }
 0x8f6   : > { %v5764_v27 = vadd.f32 %v7646_v47, %v5763_v32  ;;  %v6132_v32 = vpop.permute.xlu2 %6131 }
 0x8f7   : > { %v5753_v58 = vsel %vm5752_vm10, %v7644_v42, %v5749_v14  ;;  %v6331_v14 = vadd.f32 1.0, %v6243_v61 }
 0x8f8   : > { %v10844_v31 = vsel %vm5755_vm11, %v5757_v40, %v5753_v58  ;;  %v5768_v35 = vsel %vm5767_vm14, %v7646_v47, %v5764_v27  ;;  %v11271_v47 = vld [vmem:[#allocation20_spill] sm:$0xff] }
 0x8f9   : > { %v5789_v20 = vmul.f32 %v10844_v31, %v10688_v45  ;;  %v5775_v59 = vmul.f32 %v10844_v31, %v10736_v23  ;;  %v10854_v51 = vsel %vm5770_vm15, %v5772_v7, %v5768_v35  ;;  %v11272_v55 = vunpack.c.l.bf16 %v11271_v47  ;;  %v11275_v7 = vld [vmem:[#allocation19_spill] sm:$0xff] }
 0x8fa   : > { %v5790_v49 = vmul.f32 %v10854_v51, %v10691_v4  ;;  %v5776_v13 = vmul.f32 %v10854_v51, %v10739_v34  ;;  %v5777_v58 = vmul.f32 %v10844_v31, %v10742_v25  ;;  %v11274_v34 = vunpack.c.h.bf16 %v11271_v47 }
 0x8fb   : > { %v5805_v42 = vadd.f32 %v5789_v20, %v11270_v17  ;;  %v5791_v45 = vadd.f32 %v5775_v59, %v11272_v55  ;;  %v5778_v17 = vmul.f32 %v10854_v51, %v10745_v6 }
 0x8fc   : > { %v10826_v1 = vpop.f32.mrf.mxu0  ;;  %v10830_v29 = vpop.f32.mrf.mxu1  ;;  %v5806_v4 = vadd.f32 %v5790_v49, %v11273_v36  ;;  %v5792_v20 = vadd.f32 %v5776_v13, %v11274_v34  ;;  %v5781_v34 = vmul.f32 %v10844_v31, %v10726_v11  ;;  %v5782_v11 = vmul.f32 %v10854_v51, %v10729_v2 }
 0x8fd   : > { %v6347_v27 = vmul.f32 %v6331_v14, %v5791_v45  ;;  %v5779_v45 = vmul.f32 %v10844_v31, %v10720_v9  ;;  %v11277_v14 = vunpack.c.h.bf16 %v11275_v7  ;;  %v5780_v9 = vmul.f32 %v10854_v51, %v10723_v54 }
 0x8ff   : > { %v5794_v13 = vadd.f32 %v5778_v17, %v11277_v14 }
 0x904   : > { %v10832_v43 = vpop.f32.mrf.mxu0  ;;  %v10838_v3 = vpop.f32.mrf.mxu1 }
 0x90c   : > { %v10840_v53 = vpop.f32.mrf.mxu0  ;;  %v10848_v24 = vpop.f32.mrf.mxu1 }
 0x914   : > { %v6259_v21 = vpop.f32.mrf.mxu0  ;;  %v6308_v23 = vpop.f32.mrf.mxu1 }
 0x915   : > { %v6260_v63 = vadd.f32 %v6259_v21, %v6127_v12  ;;  %v6309_v22 = vadd.f32 %v6308_v23, %v6127_v12  ;;  %v6332_v12 = vadd.f32 1.0, %v6292_v46  ;;  %v11276_v21 = vunpack.c.l.bf16 %v11275_v7  ;;  %v11278_v46 = vld [vmem:[#allocation22_spill] sm:$0xff] }
 0x916   : > { %v6250_v7 = vadd.f32 %v10822_v50, %v10842_v48  ;;  %v6253_v50 = vadd.f32 %v10826_v1, %v10836_v30  ;;  %v11284_v1 = vld [vmem:[#allocation12_spill] sm:$0xff] }
 0x917   : > { %v6345_v15 = vadd.f32 1.0, %v6260_v63  ;;  %v6346_v26 = vadd.f32 1.0, %v6309_v22  ;;  %v5793_v59 = vadd.f32 %v5777_v58, %v11276_v21  ;;  %v6348_v61 = vmul.f32 %v6332_v12, %v5792_v20 }
 0x918   : > { %v6248_v22 = vadd.f32 %v10818_v62, %v10834_v19  ;;  %v11279_v58 = vunpack.c.l.bf16 %v11278_v46  ;;  %v6297_v62 = vadd.f32 %v10820_v28, %v10834_v19 }
 0x919   : > { %v10861_v57 = vmul.f32 %v6345_v15, %v5805_v42  ;;  %v10884_v25 = vmul.f32 %v6346_v26, %v5806_v4  ;;  %v6137_v15 = vpop.permute.xlu1 %6136  ;;  %v6349_v55 = vmul.f32 %v6333_v10, %v5793_v59  ;;  %v6142_v4 = vpop.permute.xlu0 %6141  ;;  %v11281_v59 = vld [vmem:[#allocation21_spill] sm:$0xff]  ;;  %v6337_v10 = vadd.f32 1.0, %v6250_v7 }
 0x91a   : > { %v6336_v21 = vadd.f32 1.0, %v6297_v62  ;;  %v5785_v62 = vmul.f32 %v10844_v31, %v10710_v5 }
 0x91c   : > { %v6262_v40 = vpop.f32.mrf.mxu0  ;;  %v6311_v63 = vpop.f32.mrf.mxu1 }
 0x91d   : > { %v6263_v35 = vadd.f32 %v6262_v40, %v6132_v32  ;;  %v6312_v42 = vadd.f32 %v6311_v63, %v6132_v32  ;;  %v6334_v32 = vadd.f32 1.0, %v6294_v39  ;;  %v5795_v40 = vadd.f32 %v5779_v45, %v11279_v58 }
 0x91e   : > { %v11282_v63 = vunpack.c.l.bf16 %v11281_v59 }
 0x91f   : > { %v6363_v44 = vadd.f32 %v6347_v27, %v6263_v35  ;;  %v6364_v49 = vadd.f32 %v6348_v61, %v6312_v42  ;;  %v6350_v52 = vmul.f32 %v6334_v32, %v5794_v13  ;;  %v6335_v27 = vadd.f32 1.0, %v6248_v22  ;;  %v6147_v42 = vpop.permute.xlu2 %6146 }
 0x920   : > { %v5797_v61 = vadd.f32 %v5781_v34, %v11282_v63  ;;  %v6339_v13 = vadd.f32 1.0, %v6253_v50  ;;  %v5787_v50 = vmul.f32 %v10844_v31, %v10694_v0 }
 0x921   : > { %6379 = vst [vmem:[%s10878_s3] sm:$0xff] %v6363_v44  ;;  %v6351_v35 = vmul.f32 %v6335_v27, %v5795_v40  ;;  %v11280_v44 = vunpack.c.h.bf16 %v11278_v46  ;;  %v6255_v27 = vadd.f32 %v10832_v43, %v10846_v60  ;;  %v6157_v5 = vpop.permute.xlu0 %6156 }
 0x922   : > { %6380 = vst [vmem:[%s10878_s3 + $0x8] sm:$0xff] %v6364_v49  ;;  %v6353_v39 = vmul.f32 %v6337_v10, %v5797_v61  ;;  %v5783_v49 = vmul.f32 %v10844_v31, %v10704_v8  ;;  %v6152_v8 = vpop.permute.xlu1 %6151 }
 0x923   : > { %v5796_v12 = vadd.f32 %v5780_v9, %v11280_v44  ;;  %v6304_v44 = vadd.f32 %v10838_v3, %v10846_v60 }
 0x924   : > { %v6264_v47 = vpop.f32.mrf.mxu0  ;;  %v6313_v38 = vpop.f32.mrf.mxu1 }
 0x925   : > { %v6265_v23 = vadd.f32 %v6264_v47, %v6137_v15  ;;  %v6314_v36 = vadd.f32 %v6313_v38, %v6137_v15  ;;  %v6352_v19 = vmul.f32 %v6336_v21, %v5796_v12  ;;  %v6299_v47 = vadd.f32 %v10824_v18, %v10842_v48 }
 0x926   : > { %v6302_v18 = vadd.f32 %v10830_v29, %v10836_v30  ;;  %v11286_v29 = vunpack.c.h.bf16 %v11284_v1  ;;  %v5786_v21 = vmul.f32 %v10854_v51, %v10713_v37  ;;  %v6342_v61 = vadd.f32 1.0, %v6304_v44 }
 0x927   : > { %v6365_v6 = vadd.f32 %v6349_v55, %v6265_v23  ;;  %v6366_v20 = vadd.f32 %v6350_v52, %v6314_v36  ;;  %v11283_v23 = vunpack.c.h.bf16 %v11281_v59  ;;  %v6338_v22 = vadd.f32 1.0, %v6299_v47 }
 0x928   : > { %v5784_v52 = vmul.f32 %v10854_v51, %v10707_v16  ;;  %v6307_v37 = vadd.f32 %v10848_v24, %v10865_v41 }
 0x929   : > { %6381 = vst [vmem:[%s10878_s3 + $0x10] sm:$0xff] %v6365_v6  ;;  %v5798_v14 = vadd.f32 %v5782_v11, %v11283_v23  ;;  %v11285_v6 = vunpack.c.l.bf16 %v11284_v1 }
 0x92a   : > { %6382 = vst [vmem:[%s10878_s3 + $0x18] sm:$0xff] %v6366_v20  ;;  %v5800_v30 = vadd.f32 %v5784_v52, %v11286_v29  ;;  %v11287_v20 = vld [vmem:[#allocation24_spill] sm:$0xff]  ;;  %v6344_v47 = vadd.f32 1.0, %v6307_v37 }
 0x92b   : > { %v5799_v32 = vadd.f32 %v5783_v49, %v11285_v6  ;;  %v6354_v58 = vmul.f32 %v6338_v22, %v5798_v14 }
 0x92c   : > { %v6267_v26 = vpop.f32.mrf.mxu0  ;;  %v6316_v28 = vpop.f32.mrf.mxu1 }
 0x92d   : > { %v6268_v33 = vadd.f32 %v6267_v26, %v6142_v4  ;;  %v6317_v17 = vadd.f32 %v6316_v28, %v6142_v4  ;;  %v6355_v40 = vmul.f32 %v6339_v13, %v5799_v32  ;;  %v6340_v4 = vadd.f32 1.0, %v6302_v18 }
 0x92f   : > { %v6367_v54 = vadd.f32 %v6351_v35, %v6268_v33  ;;  %v6368_v55 = vadd.f32 %v6352_v19, %v6317_v17  ;;  %v6341_v35 = vadd.f32 1.0, %v6255_v27  ;;  %v6356_v16 = vmul.f32 %v6340_v4, %v5800_v30 }
 0x930   : > { %v11288_v33 = vunpack.c.l.bf16 %v11287_v20  ;;  %v11289_v19 = vunpack.c.h.bf16 %v11287_v20 }
 0x931   : > { %6383 = vst [vmem:[%s10878_s3 + $0x20] sm:$0xff] %v6367_v54 }
 0x932   : > { %6384 = vst [vmem:[%s10878_s3 + $0x28] sm:$0xff] %v6368_v55  ;;  %v5801_v43 = vadd.f32 %v5785_v62, %v11288_v33  ;;  %v5802_v10 = vadd.f32 %v5786_v21, %v11289_v19  ;;  %v6162_v55 = vpop.permute.xlu2 %6161 }
 0x934   : > { %v6269_v15 = vpop.f32.mrf.mxu0  ;;  %v6318_v46 = vpop.f32.mrf.mxu1  ;;  %v6357_v54 = vmul.f32 %v6341_v35, %v5801_v43  ;;  %v6358_v17 = vmul.f32 %v6342_v61, %v5802_v10 }
 0x935   : > { %v6270_v45 = vadd.f32 %v6269_v15, %v6147_v42  ;;  %v6319_v48 = vadd.f32 %v6318_v46, %v6147_v42  ;;  %v6258_v42 = vadd.f32 %v10840_v53, %v10865_v41  ;;  %v5788_v15 = vmul.f32 %v10854_v51, %v10697_v56  ;;  %v6167_v56 = vpop.permute.xlu1 %6166 }
 0x937   : > { %v6369_v2 = vadd.f32 %v6353_v39, %v6270_v45  ;;  %v6370_v9 = vadd.f32 %v6354_v58, %v6319_v48  ;;  %v6343_v39 = vadd.f32 1.0, %v6258_v42  ;;  %v11290_v45 = vld [vmem:[#allocation23_spill] sm:$0xff] }
 0x938   : > { %v11291_v49 = vunpack.c.l.bf16 %v11290_v45  ;;  %v11292_v14 = vunpack.c.h.bf16 %v11290_v45 }
 0x939   : > { %6385 = vst [vmem:[%s10878_s3 + $0x30] sm:$0xff] %v6369_v2 }
 0x93a   : > { %6386 = vst [vmem:[%s10878_s3 + $0x38] sm:$0xff] %v6370_v9  ;;  %v5803_v23 = vadd.f32 %v5787_v50, %v11291_v49  ;;  %v5804_v53 = vadd.f32 %v5788_v15, %v11292_v14 }
 0x93c   : > { %v6272_v38 = vpop.f32.mrf.mxu0  ;;  %v6321_v34 = vpop.f32.mrf.mxu1  ;;  %v6359_v24 = vmul.f32 %v6343_v39, %v5803_v23  ;;  %v6360_v41 = vmul.f32 %v6344_v47, %v5804_v53 }
 0x93d   : > { %v6273_v36 = vadd.f32 %v6272_v38, %v6152_v8  ;;  %v6322_v12 = vadd.f32 %v6321_v34, %v6152_v8 }
 0x93f   : > { %v6371_v26 = vadd.f32 %v6355_v40, %v6273_v36  ;;  %v6372_v59 = vadd.f32 %v6356_v16, %v6322_v12 }
 0x941   : > { %6387 = vst [vmem:[%s10878_s3 + $0x40] sm:$0xff] %v6371_v26 }
 0x942   : > { %6388 = vst [vmem:[%s10878_s3 + $0x48] sm:$0xff] %v6372_v59 }
 0x944   : > { %v6274_v7 = vpop.f32.mrf.mxu0  ;;  %v6323_v11 = vpop.f32.mrf.mxu1 }
 0x945   : > { %v6275_v63 = vadd.f32 %v6274_v7, %v6157_v5  ;;  %v6324_v3 = vadd.f32 %v6323_v11, %v6157_v5 }
 0x947   : > { %v6373_v28 = vadd.f32 %v6357_v54, %v6275_v63  ;;  %v6374_v60 = vadd.f32 %v6358_v17, %v6324_v3 }
 0x949   : > { %6389 = vst [vmem:[%s10878_s3 + $0x50] sm:$0xff] %v6373_v28 }
 0x94a   : > { %6390 = vst [vmem:[%s10878_s3 + $0x58] sm:$0xff] %v6374_v60 }
 0x94c   : > { %v6277_v2 = vpop.f32.mrf.mxu0  ;;  %v6326_v13 = vpop.f32.mrf.mxu1 }
 0x94d   : > { %v6278_v0 = vadd.f32 %v6277_v2, %v6162_v55  ;;  %v6327_v31 = vadd.f32 %v6326_v13, %v6162_v55 }
 0x94f   : > { %v6375_v22 = vadd.f32 %v6359_v24, %v6278_v0  ;;  %v6376_v1 = vadd.f32 %v6360_v41, %v6327_v31 }
 0x951   : > { %6391 = vst [vmem:[%s10878_s3 + $0x60] sm:$0xff] %v6375_v22 }
 0x952   : > { %6392 = vst [vmem:[%s10878_s3 + $0x68] sm:$0xff] %v6376_v1 }
 0x954   : > { %v6279_v51 = vpop.f32.mrf.mxu0  ;;  %v6328_v6 = vpop.f32.mrf.mxu1 }
 0x955   : > { %v6280_v32 = vadd.f32 %v6279_v51, %v6167_v56  ;;  %v6329_v46 = vadd.f32 %v6328_v6, %v6167_v56 }
 0x957   : > { %v6377_v58 = vadd.f32 %v10861_v57, %v6280_v32  ;;  %v6378_v18 = vadd.f32 %v10884_v25, %v6329_v46 }
 0x959   : > { %6393 = vst [vmem:[%s10878_s3 + $0x70] sm:$0xff] %v6377_v58 }
 0x95a   : > { %6394 = vst [vmem:[%s10878_s3 + $0x78] sm:$0xff] %v6378_v18 }
 0x95b PF: > { %s32_s23 = sadd.s32 1, %s7670_s23  }
 0x95c   : > { %p29_p4 = scmp.ge.s32.totalorder %s32_s23, 4  }
 0x95e   :  { %31 = sbr.rel (!%p29_p4) target bundleno = 6 (0x6), region = 133 }

</bundles_post_ra>
